<compile_context>
chip_gen: v5e
topology: v5e:2x2
jax: 0.10.0
libtpu: 0.0.40
codegen_flags: <defaults>
</compile_context>

<pallas_src>
import functools

import jax
import jax.numpy as jnp
from jax import lax
from jax.experimental import pallas as pl
from jax.experimental.pallas import tpu as pltpu


def _sign(z):
    return jnp.where(z > 0, jnp.float32(1.0), jnp.float32(0.0)) - \
           jnp.where(z < 0, jnp.float32(1.0), jnp.float32(0.0))


def _cae_kernel(x_ref, wf_ref, wt_ref, bwin_ref, step_ref,
                xhat_ref, zhat_ref, z2_ref,
                *, num_layers, twosided, k, Wp, Lwin, Lout, win_start):
    # x_ref    : (1, Lout, Cin)   x in the Wp-strided flat layout
    # wf_ref   : (k*k, Cin, Cout) analysis conv panels, wf[i*k+j] = W[:, :, i, j].T
    # wt_ref   : (k*k, Cout, Cin) synthesis panels, spatially flipped + transposed
    # bwin_ref : (Lwin, Cout)     bias per window row; +1e30 at wrap rows (mask)
    # step_ref : (1,)             SMEM scalar
    # xhat_ref : (1, Lout, Cin)   output (flat layout)
    # zhat_ref : (1, Lwin, Cout)  output (flat layout)
    # z2_ref   : (Zrows, Cout)    VMEM scratch: zero-padded zhat, flattened (stride Wp)
    Cin = x_ref.shape[-1]
    Cout = wf_ref.shape[-1]
    step = step_ref[0]
    # row in z2_ref where the padded grid's (0, 0) position lives
    pad_base = win_start - ((k - 1) * Wp + (k - 1))

    def nonlin(z):
        # bias slab is huge at wrap rows, so they come out exactly 0.
        bw = bwin_ref[...]
        if twosided:
            return jnp.maximum(jnp.abs(z) - bw, 0.0) * _sign(z)
        return jnp.maximum(z - bw, 0.0)

    def conv_win(row_slice):
        # VALID cross-correlation on the Wp-strided flat grid -> (Lwin, Cout).
        acc = jnp.zeros((Lwin, Cout), jnp.float32)
        for i in range(k):
            for j in range(k):
                acc = acc + jnp.dot(row_slice(i * Wp + j), wf_ref[i * k + j],
                                    preferred_element_type=jnp.float32)
        return acc

    def conv_transpose():
        # conv_transpose2d == VALID conv of the zero-padded zhat (z2_ref) with
        # the spatially flipped, channel-transposed weights -> (Lout, Cin).
        acc = jnp.zeros((Lout, Cin), jnp.float32)
        for a in range(k):
            for c in range(k):
                off = pad_base + a * Wp + c
                acc = acc + jnp.dot(z2_ref[off:off + Lout, :], wt_ref[a * k + c],
                                    preferred_element_type=jnp.float32)
        return acc

    # zero-initialize the padded-zhat buffer (its zeros are convT's padding)
    z2_ref[...] = jnp.zeros_like(z2_ref)

    # zhat_0 = nonlin(conv2d(x, W) * step)
    x0 = x_ref[0]                                        # (Lout, Cin)
    z2_ref[win_start:win_start + Lwin, :] = nonlin(
        conv_win(lambda off: x0[off:off + Lwin, :]) * step)

    # ISTA: zhat <- nonlin(zhat - conv2d(convT(zhat) - x, W) * step)
    def ista_body(_, carry):
        res = conv_transpose() - x_ref[0]                # (Lout, Cin)
        grad = conv_win(lambda off: res[off:off + Lwin, :])
        zcur = z2_ref[win_start:win_start + Lwin, :]
        z2_ref[win_start:win_start + Lwin, :] = nonlin(zcur - grad * step)
        return carry

    lax.fori_loop(0, num_layers - 1, ista_body, 0)

    # xhat = conv_transpose2d(zhat, W)
    xhat_ref[0] = conv_transpose().astype(xhat_ref.dtype)
    zhat_ref[0] = z2_ref[win_start:win_start + Lwin, :].astype(zhat_ref.dtype)


def cae_learnbias_step_forward(x_nchw, W, step, b, *, num_layers, twosided,
                               stride=1, split_stride=1):
    """Pallas implementation of CAElearnbiasstep.forward (stride=1, split_stride=1)."""
    # TODO(synk): stride > 1 and split_stride > 1 (reflect-padded split_image +
    # masked_select averaging) paths are not implemented in the kernel.
    assert stride == 1 and split_stride == 1

    x = jnp.transpose(x_nchw, (0, 2, 3, 1)).astype(jnp.float32)      # (B, H, W, Cin)
    B, H, Wd, Cin = x.shape
    Cout, Cin_w, kh, kw = W.shape
    assert Cin_w == Cin and kh == kw
    k = kh
    Ho, Wo = H - k + 1, Wd - k + 1
    Wp = Wd + k - 1                       # row stride of the flat layout (= Wo + 2(k-1))
    Hp = H + k - 1
    Lwin = (Ho - 1) * Wp + Wo             # rows covering all valid conv outputs
    Lout = (H - 1) * Wp + Wd              # rows covering all valid convT outputs
    PAD = (k - 1) * Wp + (k - 1)          # flat offset of zhat(0,0) in the padded grid
    Z0 = (-PAD) % 8                       # align the zhat window start to a sublane tile
    win_start = Z0 + PAD
    Zrows = ((Z0 + Hp * Wp + 7) // 8) * 8

    # x in the Wp-strided flat layout: pad width W -> Wp, flatten, crop.
    x_win = jnp.pad(x, ((0, 0), (0, 0), (0, k - 1), (0, 0)))
    x_win = x_win.reshape(B, H * Wp, Cin)[:, :Lout, :]

    # per-tap weight panels (layout plumbing only)
    wf = jnp.transpose(W, (2, 3, 1, 0)).reshape(k * k, Cin, Cout).astype(jnp.float32)
    wt = jnp.transpose(W[:, :, ::-1, ::-1], (2, 3, 0, 1)).reshape(
        k * k, Cout, Cin).astype(jnp.float32)

    # bias pre-broadcast over the window rows; wrap rows get a huge bias so the
    # shrinkage nonlinearity zeroes them (keeps the padded-zhat buffer exact).
    b_row = jnp.reshape(b, (1, Cout)).astype(jnp.float32)
    valid = (jnp.arange(Lwin) % Wp) < Wo
    bias_win = jnp.where(valid[:, None],
                         jnp.broadcast_to(b_row, (Lwin, Cout)),
                         jnp.float32(1e30))

    step_arr = jnp.reshape(jnp.asarray(step, jnp.float32), (1,))

    kernel = functools.partial(_cae_kernel, num_layers=num_layers, twosided=twosided,
                               k=k, Wp=Wp, Lwin=Lwin, Lout=Lout, win_start=win_start)

    xhat_flat, zhat_flat = pl.pallas_call(
        kernel,
        out_shape=(jax.ShapeDtypeStruct((B, Lout, Cin), jnp.float32),
                   jax.ShapeDtypeStruct((B, Lwin, Cout), jnp.float32)),
        grid=(B,),
        in_specs=[
            pl.BlockSpec((1, Lout, Cin), lambda n: (n, 0, 0)),
            pl.BlockSpec((k * k, Cin, Cout), lambda n: (0, 0, 0)),
            pl.BlockSpec((k * k, Cout, Cin), lambda n: (0, 0, 0)),
            pl.BlockSpec((Lwin, Cout), lambda n: (0, 0)),
            pl.BlockSpec(memory_space=pltpu.MemorySpace.SMEM),
        ],
        out_specs=(
            pl.BlockSpec((1, Lout, Cin), lambda n: (n, 0, 0)),
            pl.BlockSpec((1, Lwin, Cout), lambda n: (n, 0, 0)),
        ),
        scratch_shapes=[pltpu.VMEM((Zrows, Cout), jnp.float32)],
        compiler_params=pltpu.CompilerParams(
            dimension_semantics=("parallel",),
            vmem_limit_bytes=32 * 1024 * 1024),
    )(x_win, wf, wt, bias_win, step_arr)

    # unpack the flat layouts back to NCHW (pure layout plumbing)
    xhat = jnp.pad(xhat_flat, ((0, 0), (0, H * Wp - Lout), (0, 0)))
    xhat = xhat.reshape(B, H, Wp, Cin)[:, :, :Wd, :]
    xhat = jnp.transpose(xhat, (0, 3, 1, 2))

    zhat = jnp.pad(zhat_flat, ((0, 0), (0, Ho * Wp - Lwin), (0, 0)))
    zhat = zhat.reshape(B, Ho, Wp, Cout)[:, :, :Wo, :]
    zhat = jnp.transpose(zhat, (0, 3, 1, 2))
    return xhat, zhat


def _ref_forward_nchw(x, W, step, b, num_layers, twosided):
    """Plain-JAX reference matching torch semantics (NCHW), for sanity checking."""
    k = W.shape[-1]
    conv = lambda v: lax.conv_general_dilated(
        v, W, (1, 1), 'VALID', dimension_numbers=('NCHW', 'OIHW', 'NCHW'))
    Wt = jnp.transpose(W[:, :, ::-1, ::-1], (1, 0, 2, 3))
    convT = lambda z: lax.conv_general_dilated(
        z, Wt, (1, 1), [(k - 1, k - 1), (k - 1, k - 1)],
        dimension_numbers=('NCHW', 'OIHW', 'NCHW'))

    def nonlin(z):
        if twosided:
            return jnp.maximum(jnp.abs(z) - b, 0.0) * jnp.sign(z)
        return jnp.maximum(z - b, 0.0)

    zhat = nonlin(conv(x) * step)
    for _ in range(num_layers - 1):
        res = convT(zhat) - x
        grad = conv(res)
        zhat = nonlin(zhat - grad * step)
    xhat = convT(zhat)
    return xhat, zhat


if __name__ == "__main__":
    params = dict(num_ch=8, num_conv=32, dictionary_dim=3, num_layers=3,
                  stride=1, split_stride=1, twosided=True, step=0.1, lam=0.5)
    B, Hs, Ws = 2, 16, 16

    key = jax.random.PRNGKey(0)
    kw_key, kx_key = jax.random.split(key)

    # Deterministic parameter init mirroring __init__: W ~ N(0,1), fro-normalized
    # over the last two dims, divided by num_ch.
    W = jax.random.normal(kw_key, (params['num_conv'], params['num_ch'],
                                   params['dictionary_dim'], params['dictionary_dim']),
                          dtype=jnp.float32)
    fro = jnp.sqrt(jnp.sum(W * W, axis=(-1, -2), keepdims=True))
    W = W / jnp.maximum(fro, 1e-12) / params['num_ch']
    step = jnp.float32(params['step'])
    b = jnp.full((1, params['num_conv'], 1, 1), params['lam'] * params['step'],
                 dtype=jnp.float32)

    x = jax.random.normal(kx_key, (B, params['num_ch'], Hs, Ws), dtype=jnp.float32)

    xhat, zhat = cae_learnbias_step_forward(
        x, W, step, b,
        num_layers=params['num_layers'], twosided=params['twosided'],
        stride=params['stride'], split_stride=params['split_stride'])
    jax.block_until_ready((xhat, zhat))

    xhat_ref, zhat_ref = _ref_forward_nchw(x, W, step, b,
                                           params['num_layers'], params['twosided'])
    assert xhat.shape == (B, params['num_ch'], Hs, Ws)
    assert zhat.shape == (B, params['num_conv'],
                          Hs - params['dictionary_dim'] + 1,
                          Ws - params['dictionary_dim'] + 1)
    assert jnp.allclose(xhat, xhat_ref, atol=1e-4, rtol=1e-4), "xhat mismatch"
    assert jnp.allclose(zhat, zhat_ref, atol=1e-4, rtol=1e-4), "zhat mismatch"
    print("KERNEL_OK")
</pallas_src>

<mosaic_0001>
module attributes {stable_mosaic.version = 11 : i64} {
  func.func @_cae_kernel(%arg0: i32, %arg1: memref<1x286x8xf32, #tpu.memory_space<vmem>>, %arg2: memref<9x8x32xf32, #tpu.memory_space<vmem>>, %arg3: memref<9x32x8xf32, #tpu.memory_space<vmem>>, %arg4: memref<248x32xf32, #tpu.memory_space<vmem>>, %arg5: memref<1xf32, #tpu.memory_space<smem>>, %arg6: memref<1x286x8xf32, #tpu.memory_space<vmem>>, %arg7: memref<1x248x32xf32, #tpu.memory_space<vmem>>, %arg8: memref<328x32xf32, #tpu.memory_space<vmem>>) attributes {dimension_semantics = [#tpu.dimension_semantics<parallel>], iteration_bounds = array<i64: 2>, scalar_prefetch = 0 : i64, scratch_operands = 1 : i64, tpu.core_type = #tpu.core_type<tc>, window_params = [{transform_indices = @transform_0, window_bounds = array<i64: 1, 286, 8>}, {pipeline_mode = #tpu.pipeline_mode<synchronous>, transform_indices = @transform_1, window_bounds = array<i64: 9, 8, 32>}, {pipeline_mode = #tpu.pipeline_mode<synchronous>, transform_indices = @transform_2, window_bounds = array<i64: 9, 32, 8>}, {pipeline_mode = #tpu.pipeline_mode<synchronous>, transform_indices = @transform_3, window_bounds = array<i64: 248, 32>}, {transform_indices = @transform_4, window_bounds = array<i64: 1>}, {transform_indices = @transform_5, window_bounds = array<i64: 1, 286, 8>}, {transform_indices = @transform_6, window_bounds = array<i64: 1, 248, 32>}]} {
    %c0 = arith.constant 0 : index
    %0 = memref.load %arg5[%c0] : memref<1xf32, #tpu.memory_space<smem>>
    %cst = arith.constant 0.000000e+00 : f32
    %1 = vector.broadcast %cst : f32 to vector<328x32xf32>
    %c0_0 = arith.constant 0 : index
    %c0_1 = arith.constant 0 : index
    %2 = vector.load %arg8[%c0_0, %c0_1] : memref<328x32xf32, #tpu.memory_space<vmem>>, vector<328x32xf32>
    tpu.vector_store %arg8[%c0_0, %c0_1], %1 {strides = array<i32>} : memref<328x32xf32, #tpu.memory_space<vmem>>, vector<328x32xf32>,
    %c0_2 = arith.constant 0 : index
    %c0_3 = arith.constant 0 : index
    %c0_4 = arith.constant 0 : index
    %3 = vector.load %arg1[%c0_2, %c0_3, %c0_4] : memref<1x286x8xf32, #tpu.memory_space<vmem>>, vector<1x286x8xf32>
    %4 = vector.shape_cast %3 : vector<1x286x8xf32> to vector<286x8xf32>
    %cst_5 = arith.constant 0.000000e+00 : f32
    %5 = vector.broadcast %cst_5 : f32 to vector<248x32xf32>
    %6 = vector.extract_strided_slice %4 {offsets = [0, 0], sizes = [248, 8], strides = [1, 1]} : vector<286x8xf32> to vector<248x8xf32>
    %c0_6 = arith.constant 0 : index
    %c0_7 = arith.constant 0 : index
    %c0_8 = arith.constant 0 : index
    %7 = vector.load %arg2[%c0_6, %c0_7, %c0_8] : memref<9x8x32xf32, #tpu.memory_space<vmem>>, vector<1x8x32xf32>
    %8 = vector.shape_cast %7 : vector<1x8x32xf32> to vector<8x32xf32>
    %cst_9 = arith.constant dense<0.000000e+00> : vector<248x32xf32>
    %9 = tpu.matmul %6, %8, %cst_9 {dimension_numbers = #tpu.dot_dimension_numbers<[1], [0], [0], [1], [0, 0, 1, 1], [], []>} : vector<248x8xf32>, vector<8x32xf32>, vector<248x32xf32> -> vector<248x32xf32>
    %10 = arith.addf %5, %9 : vector<248x32xf32>
    %11 = vector.extract_strided_slice %4 {offsets = [1, 0], sizes = [248, 8], strides = [1, 1]} : vector<286x8xf32> to vector<248x8xf32>
    %c1 = arith.constant 1 : index
    %c0_10 = arith.constant 0 : index
    %c0_11 = arith.constant 0 : index
    %12 = vector.load %arg2[%c1, %c0_10, %c0_11] : memref<9x8x32xf32, #tpu.memory_space<vmem>>, vector<1x8x32xf32>
    %13 = vector.shape_cast %12 : vector<1x8x32xf32> to vector<8x32xf32>
    %cst_12 = arith.constant dense<0.000000e+00> : vector<248x32xf32>
    %14 = tpu.matmul %11, %13, %cst_12 {dimension_numbers = #tpu.dot_dimension_numbers<[1], [0], [0], [1], [0, 0, 1, 1], [], []>} : vector<248x8xf32>, vector<8x32xf32>, vector<248x32xf32> -> vector<248x32xf32>
    %15 = arith.addf %10, %14 : vector<248x32xf32>
    %16 = vector.extract_strided_slice %4 {offsets = [2, 0], sizes = [248, 8], strides = [1, 1]} : vector<286x8xf32> to vector<248x8xf32>
    %c2 = arith.constant 2 : index
    %c0_13 = arith.constant 0 : index
    %c0_14 = arith.constant 0 : index
    %17 = vector.load %arg2[%c2, %c0_13, %c0_14] : memref<9x8x32xf32, #tpu.memory_space<vmem>>, vector<1x8x32xf32>
    %18 = vector.shape_cast %17 : vector<1x8x32xf32> to vector<8x32xf32>
    %cst_15 = arith.constant dense<0.000000e+00> : vector<248x32xf32>
    %19 = tpu.matmul %16, %18, %cst_15 {dimension_numbers = #tpu.dot_dimension_numbers<[1], [0], [0], [1], [0, 0, 1, 1], [], []>} : vector<248x8xf32>, vector<8x32xf32>, vector<248x32xf32> -> vector<248x32xf32>
    %20 = arith.addf %15, %19 : vector<248x32xf32>
    %21 = vector.extract_strided_slice %4 {offsets = [18, 0], sizes = [248, 8], strides = [1, 1]} : vector<286x8xf32> to vector<248x8xf32>
    %c3 = arith.constant 3 : index
    %c0_16 = arith.constant 0 : index
    %c0_17 = arith.constant 0 : index
    %22 = vector.load %arg2[%c3, %c0_16, %c0_17] : memref<9x8x32xf32, #tpu.memory_space<vmem>>, vector<1x8x32xf32>
    %23 = vector.shape_cast %22 : vector<1x8x32xf32> to vector<8x32xf32>
    %cst_18 = arith.constant dense<0.000000e+00> : vector<248x32xf32>
    %24 = tpu.matmul %21, %23, %cst_18 {dimension_numbers = #tpu.dot_dimension_numbers<[1], [0], [0], [1], [0, 0, 1, 1], [], []>} : vector<248x8xf32>, vector<8x32xf32>, vector<248x32xf32> -> vector<248x32xf32>
    %25 = arith.addf %20, %24 : vector<248x32xf32>
    %26 = vector.extract_strided_slice %4 {offsets = [19, 0], sizes = [248, 8], strides = [1, 1]} : vector<286x8xf32> to vector<248x8xf32>
    %c4 = arith.constant 4 : index
    %c0_19 = arith.constant 0 : index
    %c0_20 = arith.constant 0 : index
    %27 = vector.load %arg2[%c4, %c0_19, %c0_20] : memref<9x8x32xf32, #tpu.memory_space<vmem>>, vector<1x8x32xf32>
    %28 = vector.shape_cast %27 : vector<1x8x32xf32> to vector<8x32xf32>
    %cst_21 = arith.constant dense<0.000000e+00> : vector<248x32xf32>
    %29 = tpu.matmul %26, %28, %cst_21 {dimension_numbers = #tpu.dot_dimension_numbers<[1], [0], [0], [1], [0, 0, 1, 1], [], []>} : vector<248x8xf32>, vector<8x32xf32>, vector<248x32xf32> -> vector<248x32xf32>
    %30 = arith.addf %25, %29 : vector<248x32xf32>
    %31 = vector.extract_strided_slice %4 {offsets = [20, 0], sizes = [248, 8], strides = [1, 1]} : vector<286x8xf32> to vector<248x8xf32>
    %c5 = arith.constant 5 : index
    %c0_22 = arith.constant 0 : index
    %c0_23 = arith.constant 0 : index
    %32 = vector.load %arg2[%c5, %c0_22, %c0_23] : memref<9x8x32xf32, #tpu.memory_space<vmem>>, vector<1x8x32xf32>
    %33 = vector.shape_cast %32 : vector<1x8x32xf32> to vector<8x32xf32>
    %cst_24 = arith.constant dense<0.000000e+00> : vector<248x32xf32>
    %34 = tpu.matmul %31, %33, %cst_24 {dimension_numbers = #tpu.dot_dimension_numbers<[1], [0], [0], [1], [0, 0, 1, 1], [], []>} : vector<248x8xf32>, vector<8x32xf32>, vector<248x32xf32> -> vector<248x32xf32>
    %35 = arith.addf %30, %34 : vector<248x32xf32>
    %36 = vector.extract_strided_slice %4 {offsets = [36, 0], sizes = [248, 8], strides = [1, 1]} : vector<286x8xf32> to vector<248x8xf32>
    %c6 = arith.constant 6 : index
    %c0_25 = arith.constant 0 : index
    %c0_26 = arith.constant 0 : index
    %37 = vector.load %arg2[%c6, %c0_25, %c0_26] : memref<9x8x32xf32, #tpu.memory_space<vmem>>, vector<1x8x32xf32>
    %38 = vector.shape_cast %37 : vector<1x8x32xf32> to vector<8x32xf32>
    %cst_27 = arith.constant dense<0.000000e+00> : vector<248x32xf32>
    %39 = tpu.matmul %36, %38, %cst_27 {dimension_numbers = #tpu.dot_dimension_numbers<[1], [0], [0], [1], [0, 0, 1, 1], [], []>} : vector<248x8xf32>, vector<8x32xf32>, vector<248x32xf32> -> vector<248x32xf32>
    %40 = arith.addf %35, %39 : vector<248x32xf32>
    %41 = vector.extract_strided_slice %4 {offsets = [37, 0], sizes = [248, 8], strides = [1, 1]} : vector<286x8xf32> to vector<248x8xf32>
    %c7 = arith.constant 7 : index
    %c0_28 = arith.constant 0 : index
    %c0_29 = arith.constant 0 : index
    %42 = vector.load %arg2[%c7, %c0_28, %c0_29] : memref<9x8x32xf32, #tpu.memory_space<vmem>>, vector<1x8x32xf32>
    %43 = vector.shape_cast %42 : vector<1x8x32xf32> to vector<8x32xf32>
    %cst_30 = arith.constant dense<0.000000e+00> : vector<248x32xf32>
    %44 = tpu.matmul %41, %43, %cst_30 {dimension_numbers = #tpu.dot_dimension_numbers<[1], [0], [0], [1], [0, 0, 1, 1], [], []>} : vector<248x8xf32>, vector<8x32xf32>, vector<248x32xf32> -> vector<248x32xf32>
    %45 = arith.addf %40, %44 : vector<248x32xf32>
    %46 = vector.extract_strided_slice %4 {offsets = [38, 0], sizes = [248, 8], strides = [1, 1]} : vector<286x8xf32> to vector<248x8xf32>
    %c8 = arith.constant 8 : index
    %c0_31 = arith.constant 0 : index
    %c0_32 = arith.constant 0 : index
    %47 = vector.load %arg2[%c8, %c0_31, %c0_32] : memref<9x8x32xf32, #tpu.memory_space<vmem>>, vector<1x8x32xf32>
    %48 = vector.shape_cast %47 : vector<1x8x32xf32> to vector<8x32xf32>
    %cst_33 = arith.constant dense<0.000000e+00> : vector<248x32xf32>
    %49 = tpu.matmul %46, %48, %cst_33 {dimension_numbers = #tpu.dot_dimension_numbers<[1], [0], [0], [1], [0, 0, 1, 1], [], []>} : vector<248x8xf32>, vector<8x32xf32>, vector<248x32xf32> -> vector<248x32xf32>
    %50 = arith.addf %45, %49 : vector<248x32xf32>
    %51 = vector.broadcast %0 : f32 to vector<248x32xf32>
    %52 = arith.mulf %50, %51 : vector<248x32xf32>
    %c0_34 = arith.constant 0 : index
    %c0_35 = arith.constant 0 : index
    %53 = vector.load %arg4[%c0_34, %c0_35] : memref<248x32xf32, #tpu.memory_space<vmem>>, vector<248x32xf32>
    %54 = math.absf %52 : vector<248x32xf32>
    %55 = arith.subf %54, %53 : vector<248x32xf32>
    %cst_36 = arith.constant 0.000000e+00 : f32
    %56 = vector.broadcast %cst_36 : f32 to vector<248x32xf32>
    %57 = arith.maximumf %55, %56 : vector<248x32xf32>
    %cst_37 = arith.constant 0.000000e+00 : f32
    %58 = vector.broadcast %cst_37 : f32 to vector<248x32xf32>
    %59 = arith.cmpf ogt, %52, %58 : vector<248x32xf32>
    %cst_38 = arith.constant 1.000000e+00 : f32
    %cst_39 = arith.constant 0.000000e+00 : f32
    %60 = vector.broadcast %cst_38 : f32 to vector<248x32xf32>
    %61 = vector.broadcast %cst_39 : f32 to vector<248x32xf32>
    %62 = arith.select %59, %60, %61 : vector<248x32xi1>, vector<248x32xf32>
    %cst_40 = arith.constant 0.000000e+00 : f32
    %63 = vector.broadcast %cst_40 : f32 to vector<248x32xf32>
    %64 = arith.cmpf olt, %52, %63 : vector<248x32xf32>
    %cst_41 = arith.constant 1.000000e+00 : f32
    %cst_42 = arith.constant 0.000000e+00 : f32
    %65 = vector.broadcast %cst_41 : f32 to vector<248x32xf32>
    %66 = vector.broadcast %cst_42 : f32 to vector<248x32xf32>
    %67 = arith.select %64, %65, %66 : vector<248x32xi1>, vector<248x32xf32>
    %68 = arith.subf %62, %67 : vector<248x32xf32>
    %69 = arith.mulf %57, %68 : vector<248x32xf32>
    %c40 = arith.constant 40 : index
    %c0_43 = arith.constant 0 : index
    %70 = vector.load %arg8[%c40, %c0_43] : memref<328x32xf32, #tpu.memory_space<vmem>>, vector<248x32xf32>
    tpu.vector_store %arg8[%c40, %c0_43], %69 {strides = array<i32>} : memref<328x32xf32, #tpu.memory_space<vmem>>, vector<248x32xf32>,
    %c0_i32 = arith.constant 0 : i32
    %c2_i32 = arith.constant 2 : i32
    %71 = arith.addi %c0_i32, %c2_i32 : i32
    %c1_i32 = arith.constant 1 : i32
    scf.for %arg9 = %c0_i32 to %71 step %c1_i32  : i32 {
      %cst_102 = arith.constant 0.000000e+00 : f32
      %125 = vector.broadcast %cst_102 : f32 to vector<286x8xf32>
      %c2_103 = arith.constant 2 : index
      %c0_104 = arith.constant 0 : index
      %126 = vector.load %arg8[%c2_103, %c0_104] : memref<328x32xf32, #tpu.memory_space<vmem>>, vector<286x32xf32>
      %c0_105 = arith.constant 0 : index
      %c0_106 = arith.constant 0 : index
      %c0_107 = arith.constant 0 : index
      %127 = vector.load %arg3[%c0_105, %c0_106, %c0_107] : memref<9x32x8xf32, #tpu.memory_space<vmem>>, vector<1x32x8xf32>
      %128 = vector.shape_cast %127 : vector<1x32x8xf32> to vector<32x8xf32>
      %cst_108 = arith.constant dense<0.000000e+00> : vector<286x8xf32>
      %129 = tpu.matmul %126, %128, %cst_108 {dimension_numbers = #tpu.dot_dimension_numbers<[1], [0], [0], [1], [0, 0, 1, 1], [], []>} : vector<286x32xf32>, vector<32x8xf32>, vector<286x8xf32> -> vector<286x8xf32>
      %130 = arith.addf %125, %129 : vector<286x8xf32>
      %c3_109 = arith.constant 3 : index
      %c0_110 = arith.constant 0 : index
      %131 = vector.load %arg8[%c3_109, %c0_110] : memref<328x32xf32, #tpu.memory_space<vmem>>, vector<286x32xf32>
      %c1_111 = arith.constant 1 : index
      %c0_112 = arith.constant 0 : index
      %c0_113 = arith.constant 0 : index
      %132 = vector.load %arg3[%c1_111, %c0_112, %c0_113] : memref<9x32x8xf32, #tpu.memory_space<vmem>>, vector<1x32x8xf32>
      %133 = vector.shape_cast %132 : vector<1x32x8xf32> to vector<32x8xf32>
      %cst_114 = arith.constant dense<0.000000e+00> : vector<286x8xf32>
      %134 = tpu.matmul %131, %133, %cst_114 {dimension_numbers = #tpu.dot_dimension_numbers<[1], [0], [0], [1], [0, 0, 1, 1], [], []>} : vector<286x32xf32>, vector<32x8xf32>, vector<286x8xf32> -> vector<286x8xf32>
      %135 = arith.addf %130, %134 : vector<286x8xf32>
      %c4_115 = arith.constant 4 : index
      %c0_116 = arith.constant 0 : index
      %136 = vector.load %arg8[%c4_115, %c0_116] : memref<328x32xf32, #tpu.memory_space<vmem>>, vector<286x32xf32>
      %c2_117 = arith.constant 2 : index
      %c0_118 = arith.constant 0 : index
      %c0_119 = arith.constant 0 : index
      %137 = vector.load %arg3[%c2_117, %c0_118, %c0_119] : memref<9x32x8xf32, #tpu.memory_space<vmem>>, vector<1x32x8xf32>
      %138 = vector.shape_cast %137 : vector<1x32x8xf32> to vector<32x8xf32>
      %cst_120 = arith.constant dense<0.000000e+00> : vector<286x8xf32>
      %139 = tpu.matmul %136, %138, %cst_120 {dimension_numbers = #tpu.dot_dimension_numbers<[1], [0], [0], [1], [0, 0, 1, 1], [], []>} : vector<286x32xf32>, vector<32x8xf32>, vector<286x8xf32> -> vector<286x8xf32>
      %140 = arith.addf %135, %139 : vector<286x8xf32>
      %c20_121 = arith.constant 20 : index
      %c0_122 = arith.constant 0 : index
      %141 = vector.load %arg8[%c20_121, %c0_122] : memref<328x32xf32, #tpu.memory_space<vmem>>, vector<286x32xf32>
      %c3_123 = arith.constant 3 : index
      %c0_124 = arith.constant 0 : index
      %c0_125 = arith.constant 0 : index
      %142 = vector.load %arg3[%c3_123, %c0_124, %c0_125] : memref<9x32x8xf32, #tpu.memory_space<vmem>>, vector<1x32x8xf32>
      %143 = vector.shape_cast %142 : vector<1x32x8xf32> to vector<32x8xf32>
      %cst_126 = arith.constant dense<0.000000e+00> : vector<286x8xf32>
      %144 = tpu.matmul %141, %143, %cst_126 {dimension_numbers = #tpu.dot_dimension_numbers<[1], [0], [0], [1], [0, 0, 1, 1], [], []>} : vector<286x32xf32>, vector<32x8xf32>, vector<286x8xf32> -> vector<286x8xf32>
      %145 = arith.addf %140, %144 : vector<286x8xf32>
      %c21_127 = arith.constant 21 : index
      %c0_128 = arith.constant 0 : index
      %146 = vector.load %arg8[%c21_127, %c0_128] : memref<328x32xf32, #tpu.memory_space<vmem>>, vector<286x32xf32>
      %c4_129 = arith.constant 4 : index
      %c0_130 = arith.constant 0 : index
      %c0_131 = arith.constant 0 : index
      %147 = vector.load %arg3[%c4_129, %c0_130, %c0_131] : memref<9x32x8xf32, #tpu.memory_space<vmem>>, vector<1x32x8xf32>
      %148 = vector.shape_cast %147 : vector<1x32x8xf32> to vector<32x8xf32>
      %cst_132 = arith.constant dense<0.000000e+00> : vector<286x8xf32>
      %149 = tpu.matmul %146, %148, %cst_132 {dimension_numbers = #tpu.dot_dimension_numbers<[1], [0], [0], [1], [0, 0, 1, 1], [], []>} : vector<286x32xf32>, vector<32x8xf32>, vector<286x8xf32> -> vector<286x8xf32>
      %150 = arith.addf %145, %149 : vector<286x8xf32>
      %c22_133 = arith.constant 22 : index
      %c0_134 = arith.constant 0 : index
      %151 = vector.load %arg8[%c22_133, %c0_134] : memref<328x32xf32, #tpu.memory_space<vmem>>, vector<286x32xf32>
      %c5_135 = arith.constant 5 : index
      %c0_136 = arith.constant 0 : index
      %c0_137 = arith.constant 0 : index
      %152 = vector.load %arg3[%c5_135, %c0_136, %c0_137] : memref<9x32x8xf32, #tpu.memory_space<vmem>>, vector<1x32x8xf32>
      %153 = vector.shape_cast %152 : vector<1x32x8xf32> to vector<32x8xf32>
      %cst_138 = arith.constant dense<0.000000e+00> : vector<286x8xf32>
      %154 = tpu.matmul %151, %153, %cst_138 {dimension_numbers = #tpu.dot_dimension_numbers<[1], [0], [0], [1], [0, 0, 1, 1], [], []>} : vector<286x32xf32>, vector<32x8xf32>, vector<286x8xf32> -> vector<286x8xf32>
      %155 = arith.addf %150, %154 : vector<286x8xf32>
      %c38_139 = arith.constant 38 : index
      %c0_140 = arith.constant 0 : index
      %156 = vector.load %arg8[%c38_139, %c0_140] : memref<328x32xf32, #tpu.memory_space<vmem>>, vector<286x32xf32>
      %c6_141 = arith.constant 6 : index
      %c0_142 = arith.constant 0 : index
      %c0_143 = arith.constant 0 : index
      %157 = vector.load %arg3[%c6_141, %c0_142, %c0_143] : memref<9x32x8xf32, #tpu.memory_space<vmem>>, vector<1x32x8xf32>
      %158 = vector.shape_cast %157 : vector<1x32x8xf32> to vector<32x8xf32>
      %cst_144 = arith.constant dense<0.000000e+00> : vector<286x8xf32>
      %159 = tpu.matmul %156, %158, %cst_144 {dimension_numbers = #tpu.dot_dimension_numbers<[1], [0], [0], [1], [0, 0, 1, 1], [], []>} : vector<286x32xf32>, vector<32x8xf32>, vector<286x8xf32> -> vector<286x8xf32>
      %160 = arith.addf %155, %159 : vector<286x8xf32>
      %c39_145 = arith.constant 39 : index
      %c0_146 = arith.constant 0 : index
      %161 = vector.load %arg8[%c39_145, %c0_146] : memref<328x32xf32, #tpu.memory_space<vmem>>, vector<286x32xf32>
      %c7_147 = arith.constant 7 : index
      %c0_148 = arith.constant 0 : index
      %c0_149 = arith.constant 0 : index
      %162 = vector.load %arg3[%c7_147, %c0_148, %c0_149] : memref<9x32x8xf32, #tpu.memory_space<vmem>>, vector<1x32x8xf32>
      %163 = vector.shape_cast %162 : vector<1x32x8xf32> to vector<32x8xf32>
      %cst_150 = arith.constant dense<0.000000e+00> : vector<286x8xf32>
      %164 = tpu.matmul %161, %163, %cst_150 {dimension_numbers = #tpu.dot_dimension_numbers<[1], [0], [0], [1], [0, 0, 1, 1], [], []>} : vector<286x32xf32>, vector<32x8xf32>, vector<286x8xf32> -> vector<286x8xf32>
      %165 = arith.addf %160, %164 : vector<286x8xf32>
      %c40_151 = arith.constant 40 : index
      %c0_152 = arith.constant 0 : index
      %166 = vector.load %arg8[%c40_151, %c0_152] : memref<328x32xf32, #tpu.memory_space<vmem>>, vector<286x32xf32>
      %c8_153 = arith.constant 8 : index
      %c0_154 = arith.constant 0 : index
      %c0_155 = arith.constant 0 : index
      %167 = vector.load %arg3[%c8_153, %c0_154, %c0_155] : memref<9x32x8xf32, #tpu.memory_space<vmem>>, vector<1x32x8xf32>
      %168 = vector.shape_cast %167 : vector<1x32x8xf32> to vector<32x8xf32>
      %cst_156 = arith.constant dense<0.000000e+00> : vector<286x8xf32>
      %169 = tpu.matmul %166, %168, %cst_156 {dimension_numbers = #tpu.dot_dimension_numbers<[1], [0], [0], [1], [0, 0, 1, 1], [], []>} : vector<286x32xf32>, vector<32x8xf32>, vector<286x8xf32> -> vector<286x8xf32>
      %170 = arith.addf %165, %169 : vector<286x8xf32>
      %c0_157 = arith.constant 0 : index
      %c0_158 = arith.constant 0 : index
      %c0_159 = arith.constant 0 : index
      %171 = vector.load %arg1[%c0_157, %c0_158, %c0_159] : memref<1x286x8xf32, #tpu.memory_space<vmem>>, vector<1x286x8xf32>
      %172 = vector.shape_cast %171 : vector<1x286x8xf32> to vector<286x8xf32>
      %173 = arith.subf %170, %172 : vector<286x8xf32>
      %cst_160 = arith.constant 0.000000e+00 : f32
      %174 = vector.broadcast %cst_160 : f32 to vector<248x32xf32>
      %175 = vector.extract_strided_slice %173 {offsets = [0, 0], sizes = [248, 8], strides = [1, 1]} : vector<286x8xf32> to vector<248x8xf32>
      %c0_161 = arith.constant 0 : index
      %c0_162 = arith.constant 0 : index
      %c0_163 = arith.constant 0 : index
      %176 = vector.load %arg2[%c0_161, %c0_162, %c0_163] : memref<9x8x32xf32, #tpu.memory_space<vmem>>, vector<1x8x32xf32>
      %177 = vector.shape_cast %176 : vector<1x8x32xf32> to vector<8x32xf32>
      %cst_164 = arith.constant dense<0.000000e+00> : vector<248x32xf32>
      %178 = tpu.matmul %175, %177, %cst_164 {dimension_numbers = #tpu.dot_dimension_numbers<[1], [0], [0], [1], [0, 0, 1, 1], [], []>} : vector<248x8xf32>, vector<8x32xf32>, vector<248x32xf32> -> vector<248x32xf32>
      %179 = arith.addf %174, %178 : vector<248x32xf32>
      %180 = vector.extract_strided_slice %173 {offsets = [1, 0], sizes = [248, 8], strides = [1, 1]} : vector<286x8xf32> to vector<248x8xf32>
      %c1_165 = arith.constant 1 : index
      %c0_166 = arith.constant 0 : index
      %c0_167 = arith.constant 0 : index
      %181 = vector.load %arg2[%c1_165, %c0_166, %c0_167] : memref<9x8x32xf32, #tpu.memory_space<vmem>>, vector<1x8x32xf32>
      %182 = vector.shape_cast %181 : vector<1x8x32xf32> to vector<8x32xf32>
      %cst_168 = arith.constant dense<0.000000e+00> : vector<248x32xf32>
      %183 = tpu.matmul %180, %182, %cst_168 {dimension_numbers = #tpu.dot_dimension_numbers<[1], [0], [0], [1], [0, 0, 1, 1], [], []>} : vector<248x8xf32>, vector<8x32xf32>, vector<248x32xf32> -> vector<248x32xf32>
      %184 = arith.addf %179, %183 : vector<248x32xf32>
      %185 = vector.extract_strided_slice %173 {offsets = [2, 0], sizes = [248, 8], strides = [1, 1]} : vector<286x8xf32> to vector<248x8xf32>
      %c2_169 = arith.constant 2 : index
      %c0_170 = arith.constant 0 : index
      %c0_171 = arith.constant 0 : index
      %186 = vector.load %arg2[%c2_169, %c0_170, %c0_171] : memref<9x8x32xf32, #tpu.memory_space<vmem>>, vector<1x8x32xf32>
      %187 = vector.shape_cast %186 : vector<1x8x32xf32> to vector<8x32xf32>
      %cst_172 = arith.constant dense<0.000000e+00> : vector<248x32xf32>
      %188 = tpu.matmul %185, %187, %cst_172 {dimension_numbers = #tpu.dot_dimension_numbers<[1], [0], [0], [1], [0, 0, 1, 1], [], []>} : vector<248x8xf32>, vector<8x32xf32>, vector<248x32xf32> -> vector<248x32xf32>
      %189 = arith.addf %184, %188 : vector<248x32xf32>
      %190 = vector.extract_strided_slice %173 {offsets = [18, 0], sizes = [248, 8], strides = [1, 1]} : vector<286x8xf32> to vector<248x8xf32>
      %c3_173 = arith.constant 3 : index
      %c0_174 = arith.constant 0 : index
      %c0_175 = arith.constant 0 : index
      %191 = vector.load %arg2[%c3_173, %c0_174, %c0_175] : memref<9x8x32xf32, #tpu.memory_space<vmem>>, vector<1x8x32xf32>
      %192 = vector.shape_cast %191 : vector<1x8x32xf32> to vector<8x32xf32>
      %cst_176 = arith.constant dense<0.000000e+00> : vector<248x32xf32>
      %193 = tpu.matmul %190, %192, %cst_176 {dimension_numbers = #tpu.dot_dimension_numbers<[1], [0], [0], [1], [0, 0, 1, 1], [], []>} : vector<248x8xf32>, vector<8x32xf32>, vector<248x32xf32> -> vector<248x32xf32>
      %194 = arith.addf %189, %193 : vector<248x32xf32>
      %195 = vector.extract_strided_slice %173 {offsets = [19, 0], sizes = [248, 8], strides = [1, 1]} : vector<286x8xf32> to vector<248x8xf32>
      %c4_177 = arith.constant 4 : index
      %c0_178 = arith.constant 0 : index
      %c0_179 = arith.constant 0 : index
      %196 = vector.load %arg2[%c4_177, %c0_178, %c0_179] : memref<9x8x32xf32, #tpu.memory_space<vmem>>, vector<1x8x32xf32>
      %197 = vector.shape_cast %196 : vector<1x8x32xf32> to vector<8x32xf32>
      %cst_180 = arith.constant dense<0.000000e+00> : vector<248x32xf32>
      %198 = tpu.matmul %195, %197, %cst_180 {dimension_numbers = #tpu.dot_dimension_numbers<[1], [0], [0], [1], [0, 0, 1, 1], [], []>} : vector<248x8xf32>, vector<8x32xf32>, vector<248x32xf32> -> vector<248x32xf32>
      %199 = arith.addf %194, %198 : vector<248x32xf32>
      %200 = vector.extract_strided_slice %173 {offsets = [20, 0], sizes = [248, 8], strides = [1, 1]} : vector<286x8xf32> to vector<248x8xf32>
      %c5_181 = arith.constant 5 : index
      %c0_182 = arith.constant 0 : index
      %c0_183 = arith.constant 0 : index
      %201 = vector.load %arg2[%c5_181, %c0_182, %c0_183] : memref<9x8x32xf32, #tpu.memory_space<vmem>>, vector<1x8x32xf32>
      %202 = vector.shape_cast %201 : vector<1x8x32xf32> to vector<8x32xf32>
      %cst_184 = arith.constant dense<0.000000e+00> : vector<248x32xf32>
      %203 = tpu.matmul %200, %202, %cst_184 {dimension_numbers = #tpu.dot_dimension_numbers<[1], [0], [0], [1], [0, 0, 1, 1], [], []>} : vector<248x8xf32>, vector<8x32xf32>, vector<248x32xf32> -> vector<248x32xf32>
      %204 = arith.addf %199, %203 : vector<248x32xf32>
      %205 = vector.extract_strided_slice %173 {offsets = [36, 0], sizes = [248, 8], strides = [1, 1]} : vector<286x8xf32> to vector<248x8xf32>
      %c6_185 = arith.constant 6 : index
      %c0_186 = arith.constant 0 : index
      %c0_187 = arith.constant 0 : index
      %206 = vector.load %arg2[%c6_185, %c0_186, %c0_187] : memref<9x8x32xf32, #tpu.memory_space<vmem>>, vector<1x8x32xf32>
      %207 = vector.shape_cast %206 : vector<1x8x32xf32> to vector<8x32xf32>
      %cst_188 = arith.constant dense<0.000000e+00> : vector<248x32xf32>
      %208 = tpu.matmul %205, %207, %cst_188 {dimension_numbers = #tpu.dot_dimension_numbers<[1], [0], [0], [1], [0, 0, 1, 1], [], []>} : vector<248x8xf32>, vector<8x32xf32>, vector<248x32xf32> -> vector<248x32xf32>
      %209 = arith.addf %204, %208 : vector<248x32xf32>
      %210 = vector.extract_strided_slice %173 {offsets = [37, 0], sizes = [248, 8], strides = [1, 1]} : vector<286x8xf32> to vector<248x8xf32>
      %c7_189 = arith.constant 7 : index
      %c0_190 = arith.constant 0 : index
      %c0_191 = arith.constant 0 : index
      %211 = vector.load %arg2[%c7_189, %c0_190, %c0_191] : memref<9x8x32xf32, #tpu.memory_space<vmem>>, vector<1x8x32xf32>
      %212 = vector.shape_cast %211 : vector<1x8x32xf32> to vector<8x32xf32>
      %cst_192 = arith.constant dense<0.000000e+00> : vector<248x32xf32>
      %213 = tpu.matmul %210, %212, %cst_192 {dimension_numbers = #tpu.dot_dimension_numbers<[1], [0], [0], [1], [0, 0, 1, 1], [], []>} : vector<248x8xf32>, vector<8x32xf32>, vector<248x32xf32> -> vector<248x32xf32>
      %214 = arith.addf %209, %213 : vector<248x32xf32>
      %215 = vector.extract_strided_slice %173 {offsets = [38, 0], sizes = [248, 8], strides = [1, 1]} : vector<286x8xf32> to vector<248x8xf32>
      %c8_193 = arith.constant 8 : index
      %c0_194 = arith.constant 0 : index
      %c0_195 = arith.constant 0 : index
      %216 = vector.load %arg2[%c8_193, %c0_194, %c0_195] : memref<9x8x32xf32, #tpu.memory_space<vmem>>, vector<1x8x32xf32>
      %217 = vector.shape_cast %216 : vector<1x8x32xf32> to vector<8x32xf32>
      %cst_196 = arith.constant dense<0.000000e+00> : vector<248x32xf32>
      %218 = tpu.matmul %215, %217, %cst_196 {dimension_numbers = #tpu.dot_dimension_numbers<[1], [0], [0], [1], [0, 0, 1, 1], [], []>} : vector<248x8xf32>, vector<8x32xf32>, vector<248x32xf32> -> vector<248x32xf32>
      %219 = arith.addf %214, %218 : vector<248x32xf32>
      %c40_197 = arith.constant 40 : index
      %c0_198 = arith.constant 0 : index
      %220 = vector.load %arg8[%c40_197, %c0_198] : memref<328x32xf32, #tpu.memory_space<vmem>>, vector<248x32xf32>
      %221 = vector.broadcast %0 : f32 to vector<248x32xf32>
      %222 = arith.mulf %219, %221 : vector<248x32xf32>
      %223 = arith.subf %220, %222 : vector<248x32xf32>
      %c0_199 = arith.constant 0 : index
      %c0_200 = arith.constant 0 : index
      %224 = vector.load %arg4[%c0_199, %c0_200] : memref<248x32xf32, #tpu.memory_space<vmem>>, vector<248x32xf32>
      %225 = math.absf %223 : vector<248x32xf32>
      %226 = arith.subf %225, %224 : vector<248x32xf32>
      %cst_201 = arith.constant 0.000000e+00 : f32
      %227 = vector.broadcast %cst_201 : f32 to vector<248x32xf32>
      %228 = arith.maximumf %226, %227 : vector<248x32xf32>
      %cst_202 = arith.constant 0.000000e+00 : f32
      %229 = vector.broadcast %cst_202 : f32 to vector<248x32xf32>
      %230 = arith.cmpf ogt, %223, %229 : vector<248x32xf32>
      %cst_203 = arith.constant 1.000000e+00 : f32
      %cst_204 = arith.constant 0.000000e+00 : f32
      %231 = vector.broadcast %cst_203 : f32 to vector<248x32xf32>
      %232 = vector.broadcast %cst_204 : f32 to vector<248x32xf32>
      %233 = arith.select %230, %231, %232 : vector<248x32xi1>, vector<248x32xf32>
      %cst_205 = arith.constant 0.000000e+00 : f32
      %234 = vector.broadcast %cst_205 : f32 to vector<248x32xf32>
      %235 = arith.cmpf olt, %223, %234 : vector<248x32xf32>
      %cst_206 = arith.constant 1.000000e+00 : f32
      %cst_207 = arith.constant 0.000000e+00 : f32
      %236 = vector.broadcast %cst_206 : f32 to vector<248x32xf32>
      %237 = vector.broadcast %cst_207 : f32 to vector<248x32xf32>
      %238 = arith.select %235, %236, %237 : vector<248x32xi1>, vector<248x32xf32>
      %239 = arith.subf %233, %238 : vector<248x32xf32>
      %240 = arith.mulf %228, %239 : vector<248x32xf32>
      %c40_208 = arith.constant 40 : index
      %c0_209 = arith.constant 0 : index
      %241 = vector.load %arg8[%c40_208, %c0_209] : memref<328x32xf32, #tpu.memory_space<vmem>>, vector<248x32xf32>
      tpu.vector_store %arg8[%c40_208, %c0_209], %240 {strides = array<i32>} : memref<328x32xf32, #tpu.memory_space<vmem>>, vector<248x32xf32>,
    }
    %cst_44 = arith.constant 0.000000e+00 : f32
    %72 = vector.broadcast %cst_44 : f32 to vector<286x8xf32>
    %c2_45 = arith.constant 2 : index
    %c0_46 = arith.constant 0 : index
    %73 = vector.load %arg8[%c2_45, %c0_46] : memref<328x32xf32, #tpu.memory_space<vmem>>, vector<286x32xf32>
    %c0_47 = arith.constant 0 : index
    %c0_48 = arith.constant 0 : index
    %c0_49 = arith.constant 0 : index
    %74 = vector.load %arg3[%c0_47, %c0_48, %c0_49] : memref<9x32x8xf32, #tpu.memory_space<vmem>>, vector<1x32x8xf32>
    %75 = vector.shape_cast %74 : vector<1x32x8xf32> to vector<32x8xf32>
    %cst_50 = arith.constant dense<0.000000e+00> : vector<286x8xf32>
    %76 = tpu.matmul %73, %75, %cst_50 {dimension_numbers = #tpu.dot_dimension_numbers<[1], [0], [0], [1], [0, 0, 1, 1], [], []>} : vector<286x32xf32>, vector<32x8xf32>, vector<286x8xf32> -> vector<286x8xf32>
    %77 = arith.addf %72, %76 : vector<286x8xf32>
    %c3_51 = arith.constant 3 : index
    %c0_52 = arith.constant 0 : index
    %78 = vector.load %arg8[%c3_51, %c0_52] : memref<328x32xf32, #tpu.memory_space<vmem>>, vector<286x32xf32>
    %c1_53 = arith.constant 1 : index
    %c0_54 = arith.constant 0 : index
    %c0_55 = arith.constant 0 : index
    %79 = vector.load %arg3[%c1_53, %c0_54, %c0_55] : memref<9x32x8xf32, #tpu.memory_space<vmem>>, vector<1x32x8xf32>
    %80 = vector.shape_cast %79 : vector<1x32x8xf32> to vector<32x8xf32>
    %cst_56 = arith.constant dense<0.000000e+00> : vector<286x8xf32>
    %81 = tpu.matmul %78, %80, %cst_56 {dimension_numbers = #tpu.dot_dimension_numbers<[1], [0], [0], [1], [0, 0, 1, 1], [], []>} : vector<286x32xf32>, vector<32x8xf32>, vector<286x8xf32> -> vector<286x8xf32>
    %82 = arith.addf %77, %81 : vector<286x8xf32>
    %c4_57 = arith.constant 4 : index
    %c0_58 = arith.constant 0 : index
    %83 = vector.load %arg8[%c4_57, %c0_58] : memref<328x32xf32, #tpu.memory_space<vmem>>, vector<286x32xf32>
    %c2_59 = arith.constant 2 : index
    %c0_60 = arith.constant 0 : index
    %c0_61 = arith.constant 0 : index
    %84 = vector.load %arg3[%c2_59, %c0_60, %c0_61] : memref<9x32x8xf32, #tpu.memory_space<vmem>>, vector<1x32x8xf32>
    %85 = vector.shape_cast %84 : vector<1x32x8xf32> to vector<32x8xf32>
    %cst_62 = arith.constant dense<0.000000e+00> : vector<286x8xf32>
    %86 = tpu.matmul %83, %85, %cst_62 {dimension_numbers = #tpu.dot_dimension_numbers<[1], [0], [0], [1], [0, 0, 1, 1], [], []>} : vector<286x32xf32>, vector<32x8xf32>, vector<286x8xf32> -> vector<286x8xf32>
    %87 = arith.addf %82, %86 : vector<286x8xf32>
    %c20 = arith.constant 20 : index
    %c0_63 = arith.constant 0 : index
    %88 = vector.load %arg8[%c20, %c0_63] : memref<328x32xf32, #tpu.memory_space<vmem>>, vector<286x32xf32>
    %c3_64 = arith.constant 3 : index
    %c0_65 = arith.constant 0 : index
    %c0_66 = arith.constant 0 : index
    %89 = vector.load %arg3[%c3_64, %c0_65, %c0_66] : memref<9x32x8xf32, #tpu.memory_space<vmem>>, vector<1x32x8xf32>
    %90 = vector.shape_cast %89 : vector<1x32x8xf32> to vector<32x8xf32>
    %cst_67 = arith.constant dense<0.000000e+00> : vector<286x8xf32>
    %91 = tpu.matmul %88, %90, %cst_67 {dimension_numbers = #tpu.dot_dimension_numbers<[1], [0], [0], [1], [0, 0, 1, 1], [], []>} : vector<286x32xf32>, vector<32x8xf32>, vector<286x8xf32> -> vector<286x8xf32>
    %92 = arith.addf %87, %91 : vector<286x8xf32>
    %c21 = arith.constant 21 : index
    %c0_68 = arith.constant 0 : index
    %93 = vector.load %arg8[%c21, %c0_68] : memref<328x32xf32, #tpu.memory_space<vmem>>, vector<286x32xf32>
    %c4_69 = arith.constant 4 : index
    %c0_70 = arith.constant 0 : index
    %c0_71 = arith.constant 0 : index
    %94 = vector.load %arg3[%c4_69, %c0_70, %c0_71] : memref<9x32x8xf32, #tpu.memory_space<vmem>>, vector<1x32x8xf32>
    %95 = vector.shape_cast %94 : vector<1x32x8xf32> to vector<32x8xf32>
    %cst_72 = arith.constant dense<0.000000e+00> : vector<286x8xf32>
    %96 = tpu.matmul %93, %95, %cst_72 {dimension_numbers = #tpu.dot_dimension_numbers<[1], [0], [0], [1], [0, 0, 1, 1], [], []>} : vector<286x32xf32>, vector<32x8xf32>, vector<286x8xf32> -> vector<286x8xf32>
    %97 = arith.addf %92, %96 : vector<286x8xf32>
    %c22 = arith.constant 22 : index
    %c0_73 = arith.constant 0 : index
    %98 = vector.load %arg8[%c22, %c0_73] : memref<328x32xf32, #tpu.memory_space<vmem>>, vector<286x32xf32>
    %c5_74 = arith.constant 5 : index
    %c0_75 = arith.constant 0 : index
    %c0_76 = arith.constant 0 : index
    %99 = vector.load %arg3[%c5_74, %c0_75, %c0_76] : memref<9x32x8xf32, #tpu.memory_space<vmem>>, vector<1x32x8xf32>
    %100 = vector.shape_cast %99 : vector<1x32x8xf32> to vector<32x8xf32>
    %cst_77 = arith.constant dense<0.000000e+00> : vector<286x8xf32>
    %101 = tpu.matmul %98, %100, %cst_77 {dimension_numbers = #tpu.dot_dimension_numbers<[1], [0], [0], [1], [0, 0, 1, 1], [], []>} : vector<286x32xf32>, vector<32x8xf32>, vector<286x8xf32> -> vector<286x8xf32>
    %102 = arith.addf %97, %101 : vector<286x8xf32>
    %c38 = arith.constant 38 : index
    %c0_78 = arith.constant 0 : index
    %103 = vector.load %arg8[%c38, %c0_78] : memref<328x32xf32, #tpu.memory_space<vmem>>, vector<286x32xf32>
    %c6_79 = arith.constant 6 : index
    %c0_80 = arith.constant 0 : index
    %c0_81 = arith.constant 0 : index
    %104 = vector.load %arg3[%c6_79, %c0_80, %c0_81] : memref<9x32x8xf32, #tpu.memory_space<vmem>>, vector<1x32x8xf32>
    %105 = vector.shape_cast %104 : vector<1x32x8xf32> to vector<32x8xf32>
    %cst_82 = arith.constant dense<0.000000e+00> : vector<286x8xf32>
    %106 = tpu.matmul %103, %105, %cst_82 {dimension_numbers = #tpu.dot_dimension_numbers<[1], [0], [0], [1], [0, 0, 1, 1], [], []>} : vector<286x32xf32>, vector<32x8xf32>, vector<286x8xf32> -> vector<286x8xf32>
    %107 = arith.addf %102, %106 : vector<286x8xf32>
    %c39 = arith.constant 39 : index
    %c0_83 = arith.constant 0 : index
    %108 = vector.load %arg8[%c39, %c0_83] : memref<328x32xf32, #tpu.memory_space<vmem>>, vector<286x32xf32>
    %c7_84 = arith.constant 7 : index
    %c0_85 = arith.constant 0 : index
    %c0_86 = arith.constant 0 : index
    %109 = vector.load %arg3[%c7_84, %c0_85, %c0_86] : memref<9x32x8xf32, #tpu.memory_space<vmem>>, vector<1x32x8xf32>
    %110 = vector.shape_cast %109 : vector<1x32x8xf32> to vector<32x8xf32>
    %cst_87 = arith.constant dense<0.000000e+00> : vector<286x8xf32>
    %111 = tpu.matmul %108, %110, %cst_87 {dimension_numbers = #tpu.dot_dimension_numbers<[1], [0], [0], [1], [0, 0, 1, 1], [], []>} : vector<286x32xf32>, vector<32x8xf32>, vector<286x8xf32> -> vector<286x8xf32>
    %112 = arith.addf %107, %111 : vector<286x8xf32>
    %c40_88 = arith.constant 40 : index
    %c0_89 = arith.constant 0 : index
    %113 = vector.load %arg8[%c40_88, %c0_89] : memref<328x32xf32, #tpu.memory_space<vmem>>, vector<286x32xf32>
    %c8_90 = arith.constant 8 : index
    %c0_91 = arith.constant 0 : index
    %c0_92 = arith.constant 0 : index
    %114 = vector.load %arg3[%c8_90, %c0_91, %c0_92] : memref<9x32x8xf32, #tpu.memory_space<vmem>>, vector<1x32x8xf32>
    %115 = vector.shape_cast %114 : vector<1x32x8xf32> to vector<32x8xf32>
    %cst_93 = arith.constant dense<0.000000e+00> : vector<286x8xf32>
    %116 = tpu.matmul %113, %115, %cst_93 {dimension_numbers = #tpu.dot_dimension_numbers<[1], [0], [0], [1], [0, 0, 1, 1], [], []>} : vector<286x32xf32>, vector<32x8xf32>, vector<286x8xf32> -> vector<286x8xf32>
    %117 = arith.addf %112, %116 : vector<286x8xf32>
    %c0_94 = arith.constant 0 : index
    %c0_95 = arith.constant 0 : index
    %c0_96 = arith.constant 0 : index
    %118 = vector.load %arg6[%c0_94, %c0_95, %c0_96] : memref<1x286x8xf32, #tpu.memory_space<vmem>>, vector<1x286x8xf32>
    %119 = vector.shape_cast %118 : vector<1x286x8xf32> to vector<286x8xf32>
    %120 = vector.shape_cast %117 : vector<286x8xf32> to vector<1x286x8xf32>
    tpu.vector_store %arg6[%c0_94, %c0_95, %c0_96], %120 {strides = array<i32>} : memref<1x286x8xf32, #tpu.memory_space<vmem>>, vector<1x286x8xf32>,
    %c40_97 = arith.constant 40 : index
    %c0_98 = arith.constant 0 : index
    %121 = vector.load %arg8[%c40_97, %c0_98] : memref<328x32xf32, #tpu.memory_space<vmem>>, vector<248x32xf32>
    %c0_99 = arith.constant 0 : index
    %c0_100 = arith.constant 0 : index
    %c0_101 = arith.constant 0 : index
    %122 = vector.load %arg7[%c0_99, %c0_100, %c0_101] : memref<1x248x32xf32, #tpu.memory_space<vmem>>, vector<1x248x32xf32>
    %123 = vector.shape_cast %122 : vector<1x248x32xf32> to vector<248x32xf32>
    %124 = vector.shape_cast %121 : vector<248x32xf32> to vector<1x248x32xf32>
    tpu.vector_store %arg7[%c0_99, %c0_100, %c0_101], %124 {strides = array<i32>} : memref<1x248x32xf32, #tpu.memory_space<vmem>>, vector<1x248x32xf32>,
    return
  }
  func.func @transform_0(%arg0: i32) -> (i32, i32, i32) {
    %c0_i32 = arith.constant 0 : i32
    %c0_i32_0 = arith.constant 0 : i32
    %c0_i32_1 = arith.constant 0 : i32
    return %arg0, %c0_i32, %c0_i32_0 : i32, i32, i32
  }
  func.func @transform_1(%arg0: i32) -> (i32, i32, i32) {
    %c0_i32 = arith.constant 0 : i32
    %c0_i32_0 = arith.constant 0 : i32
    %c0_i32_1 = arith.constant 0 : i32
    %c0_i32_2 = arith.constant 0 : i32
    return %c0_i32, %c0_i32_0, %c0_i32_1 : i32, i32, i32
  }
  func.func @transform_2(%arg0: i32) -> (i32, i32, i32) {
    %c0_i32 = arith.constant 0 : i32
    %c0_i32_0 = arith.constant 0 : i32
    %c0_i32_1 = arith.constant 0 : i32
    %c0_i32_2 = arith.constant 0 : i32
    return %c0_i32, %c0_i32_0, %c0_i32_1 : i32, i32, i32
  }
  func.func @transform_3(%arg0: i32) -> (i32, i32) {
    %c0_i32 = arith.constant 0 : i32
    %c0_i32_0 = arith.constant 0 : i32
    %c0_i32_1 = arith.constant 0 : i32
    return %c0_i32, %c0_i32_0 : i32, i32
  }
  func.func @transform_4(%arg0: i32) -> i32 {
    %c0_i32 = arith.constant 0 : i32
    %c0_i32_0 = arith.constant 0 : i32
    return %c0_i32 : i32
  }
  func.func @transform_5(%arg0: i32) -> (i32, i32, i32) {
    %c0_i32 = arith.constant 0 : i32
    %c0_i32_0 = arith.constant 0 : i32
    %c0_i32_1 = arith.constant 0 : i32
    return %arg0, %c0_i32, %c0_i32_0 : i32, i32, i32
  }
  func.func @transform_6(%arg0: i32) -> (i32, i32, i32) {
    %c0_i32 = arith.constant 0 : i32
    %c0_i32_0 = arith.constant 0 : i32
    %c0_i32_1 = arith.constant 0 : i32
    return %arg0, %c0_i32, %c0_i32_0 : i32, i32, i32
  }
}

</mosaic_0001>

<bundles_post_ra>
// kernel: tpu_custom_call.1
= control target key start
LH: loop header
LB: loop body
LE: loop exit
PB: predicated region body
PF: predicated region fallthrough
CT: control target
= control target key end

     0   :  { %s12457_s23 = smov 0   ;;  %s17617_s0 = inlined_call_operand.vmem [shape: f32[2,286,8], index: 0, kind: input, shape index: {}]   ;;  %s17618_s1 = inlined_call_operand.vmem [shape: f32[9,8,32], index: 1, kind: input, shape index: {}]   ;;  %s17619_s2 = inlined_call_operand.vmem [shape: f32[9,32,8], index: 2, kind: input, shape index: {}]   ;;  %s17620_s3 = inlined_call_operand.vmem [shape: f32[248,32], index: 3, kind: input, shape index: {}]   ;;  %s17621_s4 = inlined_call_operand.<no memory space> [shape: f32[1], index: 4, kind: input, shape index: {}]   ;;  %s17622_s5 = inlined_call_operand.vmem [shape: f32[2,286,8], index: 5, kind: output, shape index: {0}]   ;;  %s17623_s6 = inlined_call_operand.vmem [shape: f32[2,248,32], index: 6, kind: output, shape index: {1}]  }
   0x1   :  { %12 = sst [smem:[#allocation3]] %s17621_s4 }
   0x2 LB: > { %s11031_s24 = sadd.s32 4294967295, %s12411_s23   ;;  %p11035_p0 = scmp.ge.s32.totalorder %s12411_s23, 1  ;;  %s12411_s23 = sphi %s12457_s23, %s18_s23  }
   0x3   : > { %p216_p1 = scmp.lt.s32.totalorder %s12411_s23, 3 }
   0x5   : > { %p217_p2 = pnand %p11035_p0, %p216_p1 }
   0x7   : > { %220 = sbr.rel (%p217_p2) target bundleno = 3201 (0xc81), region = 40 }
   0xc   : > { %v11039_v0 = vld [vmem:[%s17618_s1 + $0x8] sm:$0xff]  ;;  %p251_p3 = scmp.lt.s32.totalorder %s11031_s24, 1  ;;  %v11102_v1 = vld [vmem:[%s17618_s1 + $0x10] sm:$0xff]  ;;  %v345_v2 = vld [vmem:[%s17618_s1] sm:$0xff]  ;;  %vm380_vm0 = vcmask 1046528   ;;  %vm444_vm1 = vcmask 64512  }
   0xd   : > { %12327 = vmatpush.msra.mxu1 %v11039_v0  ;;  %12328 = vmatpush.msra.mxu2 %v11039_v0  ;;  %v11134_v3 = vld [vmem:[%s17618_s1 + $0x18] sm:$0xff]  ;;  %v11166_v4 = vld [vmem:[%s17618_s1 + $0x20] sm:$0xff]  ;;  %vm791_vm2 = vcmask 1045504   ;;  %vm1213_vm3 = vcmask 1044480   ;;  %vm1904_vm4 = vcmask 1042432   ;;  %vm1482_vm5 = vcmask 1043456  }
   0xe   : > { %s18233_s24 = smov (!%p251_p3, %s11031_s24), 1  ;;  %522 = vmatpush.msra.mxu0 %v11039_v0  ;;  %12329 = vmatpush.msra.mxu3 %v11039_v0  ;;  %vm2173_vm6 = vcmask 1041408   ;;  %vm267_vm7 = vcmask 261120   ;;  %s266_s29 = sld [smem:[#allocation3]] }
   0xf   : > { %932 = vmatpush.msrb.mxu2 %v11102_v1  ;;  %694 = vmatpush.msrb.mxu1 %v345_v2  ;;  %s12354_s10 = smul.u32 288, %s18233_s24 }
  0x10   : > { %1085 = vmatpush.msrb.mxu3 %v11134_v3  ;;  %1354 = vmatpush.msrb.mxu0 %v11166_v4  ;;  %s12355_s11 = smul.u32 248, %s18233_s24 }
  0x11   : > { %s12483_s14 = scalar_lea.vmem %s17617_s0, %s12354_s10  ;;  %s12488_s17 = scalar_lea.vmem %s17622_s5, %s12354_s10 }
  0x12   : > { %s12493_s20 = scalar_lea.vmem %s17623_s6, %s12355_s11  ;;  %v12496_v5 = vld [vmem:[%s12483_s14 + $0x40] sm:$0xff]  ;;  %v12499_v6 = vld [vmem:[%s12483_s14 + $0x48] sm:$0xff]  ;;  %v12511_v12 = vld [vmem:[%s12483_s14 + $0x50] sm:$0xff] }
  0x13   : > { %v12502_v7 = vld [vmem:[%s12483_s14 + $0x80] sm:$0xff]  ;;  %v396_v8 = vrot.slane %v12496_v5, 1  ;;  %v398_v9 = vrot.slane %v12499_v6, 1  ;;  %v12507_v10 = vld [vmem:[%s12483_s14 + $0x88] sm:$0xff]  ;;  %v12527_v18 = vld [vmem:[%s12483_s14 + $0x90] sm:$0xff]  ;;  %v400_v26 = vrot.slane %v12511_v12, 1 }
  0x14   : > { %v412_v11 = vrot.slane %v12502_v7, 1  ;;  %v414_v13 = vrot.slane %v12507_v10, 1  ;;  %v12515_v14 = vld [vmem:[%s12483_s14] sm:$0xff]  ;;  %v12518_v15 = vld [vmem:[%s12483_s14 + $0x8] sm:$0xff]  ;;  %v12541_v25 = vld [vmem:[%s12483_s14 + $0x10] sm:$0xff]  ;;  %v416_v29 = vrot.slane %v12527_v18, 1 }
  0x15   : > { %v12521_v16 = vld [vmem:[%s12483_s14 + $0xc0] sm:$0xff]  ;;  %v399_v17 = vsel %vm380_vm0, %v396_v8, %v398_v9  ;;  %v381_v19 = vrot.slane %v12515_v14, 1  ;;  %v382_v20 = vrot.slane %v12518_v15, 1  ;;  %v12532_v21 = vld [vmem:[%s12483_s14 + $0xc8] sm:$0xff]  ;;  %v12547_v28 = vld [vmem:[%s12483_s14 + $0xd0] sm:$0xff]  ;;  %v384_v31 = vrot.slane %v12541_v25, 1 }
  0x16   : > { %v428_v22 = vrot.slane %v12521_v16, 1  ;;  %11048 = vmatmul.msk.f32.vlgmr.msra.gmra.mxu1 %vm444_vm1, %v399_v17  ;;  %v415_v23 = vsel %vm380_vm0, %v412_v11, %v414_v13  ;;  %v430_v24 = vrot.slane %v12532_v21, 1  ;;  %v432_v32 = vrot.slane %v12547_v28, 1  ;;  %v12560_v35 = vld [vmem:[%s12483_s14 + $0x58] sm:$0xff]  ;;  %v12584_v47 = vld [vmem:[%s12483_s14 + $0x60] sm:$0xff]  ;;  %v12608_v59 = vld [vmem:[%s12483_s14 + $0x68] sm:$0xff] }
  0x17   : > { %11056 = vmatmul.msk.f32.vlgmr.msra.gmra.mxu2 %vm444_vm1, %v415_v23  ;;  %v383_v27 = vsel %vm380_vm0, %v381_v19, %v382_v20  ;;  %v401_v33 = vsel %vm380_vm0, %v398_v9, %v400_v26  ;;  %v417_v34 = vsel %vm380_vm0, %v414_v13, %v416_v29  ;;  %v12563_v36 = vld [vmem:[%s12483_s14 + $0x98] sm:$0xff]  ;;  %v385_v37 = vsel %vm380_vm0, %v382_v20, %v384_v31  ;;  %v12587_v48 = vld [vmem:[%s12483_s14 + $0xa0] sm:$0xff]  ;;  %v12611_v60 = vld [vmem:[%s12483_s14 + $0xa8] sm:$0xff] }
  0x18   : > { %11040 = vmatmul.msk.f32.vlgmr.msra.gmra.mxu0 %vm444_vm1, %v383_v27  ;;  %v431_v30 = vsel %vm380_vm0, %v428_v22, %v430_v24  ;;  %v433_v38 = vsel %vm380_vm0, %v430_v24, %v432_v32  ;;  %v12569_v39 = vld [vmem:[%s12483_s14 + $0x18] sm:$0xff]  ;;  %v402_v40 = vrot.slane %v12560_v35, 1  ;;  %v418_v42 = vrot.slane %v12563_v36, 1  ;;  %v12593_v51 = vld [vmem:[%s12483_s14 + $0x20] sm:$0xff]  ;;  %v12617_v63 = vld [vmem:[%s12483_s14 + $0x28] sm:$0xff] }
  0x19   : > { %11064 = vmatmul.msk.f32.vlgmr.msra.gmra.mxu3 %vm444_vm1, %v431_v30  ;;  %v12574_v41 = vld [vmem:[%s12483_s14 + $0xd8] sm:$0xff]  ;;  %v386_v43 = vrot.slane %v12569_v39, 1  ;;  %v404_v52 = vrot.slane %v12584_v47, 1  ;;  %v12598_v53 = vld [vmem:[%s12483_s14 + $0xe0] sm:$0xff]  ;;  %v420_v54 = vrot.slane %v12587_v48, 1  ;;  %v388_v55 = vrot.slane %v12593_v51, 1 }
  0x1a   : > { %v434_v44 = vrot.slane %v12574_v41, 1  ;;  %v403_v45 = vsel %vm380_vm0, %v400_v26, %v402_v40  ;;  %v419_v46 = vsel %vm380_vm0, %v416_v29, %v418_v42  ;;  %v436_v56 = vrot.slane %v12598_v53, 1  ;;  %v12622_v1 = vld [vmem:[%s12483_s14 + $0xe8] sm:$0xff]  ;;  %v12632_v17 = vld [vmem:[%s12483_s14 + $0x70] sm:$0xff]  ;;  %v11262_v30 = vld [vmem:[%s17618_s1 + $0x38] sm:$0xff] }
  0x1b   : > { %v387_v49 = vsel %vm380_vm0, %v384_v31, %v386_v43  ;;  %v405_v57 = vsel %vm380_vm0, %v402_v40, %v404_v52  ;;  %v421_v58 = vsel %vm380_vm0, %v418_v42, %v420_v54  ;;  %v389_v61 = vsel %vm380_vm0, %v386_v43, %v388_v55  ;;  %v12635_v19 = vld [vmem:[%s12483_s14 + $0xb0] sm:$0xff]  ;;  %v11198_v31 = vld [vmem:[%s17618_s1 + $0x28] sm:$0xff]  ;;  %2045 = vmatpush.msra.mxu3 %v11262_v30  ;;  %v12665_v40 = vld [vmem:[%s12483_s14 + $0x78] sm:$0xff] }
  0x1c   : > { %v435_v50 = vsel %vm380_vm0, %v432_v32, %v434_v44  ;;  %v437_v62 = vsel %vm380_vm0, %v434_v44, %v436_v56  ;;  %v406_v0 = vrot.slane %v12608_v59, 1  ;;  %v422_v2 = vrot.slane %v12611_v60, 1  ;;  %v12641_v24 = vld [vmem:[%s12483_s14 + $0x30] sm:$0xff]  ;;  %1623 = vmatpush.msra.mxu1 %v11198_v31  ;;  %v12668_v42 = vld [vmem:[%s12483_s14 + $0xb8] sm:$0xff] }
  0x1d   : > { %v390_v3 = vrot.slane %v12617_v63, 1  ;;  %v438_v4 = vrot.slane %v12622_v1, 1  ;;  %v12644_v26 = vld [vmem:[%s12483_s14 + $0xf0] sm:$0xff]  ;;  %v408_v27 = vrot.slane %v12632_v17, 1  ;;  %v424_v32 = vrot.slane %v12635_v19, 1 }
  0x1e   : > { %11049 = vmatmul.msk.f32.gmra.mxu1 %vm444_vm1, %v401_v33  ;;  %v407_v9 = vsel %vm380_vm0, %v404_v52, %v406_v0  ;;  %v423_v13 = vsel %vm380_vm0, %v420_v54, %v422_v2  ;;  %v11230_v29 = vld [vmem:[%s17618_s1 + $0x30] sm:$0xff]  ;;  %v392_v33 = vrot.slane %v12641_v24, 1  ;;  %v426_v52 = vrot.slane %v12668_v42, 1 }
  0x1f   : > { %11057 = vmatmul.msk.f32.gmra.mxu2 %vm444_vm1, %v417_v34  ;;  %v391_v20 = vsel %vm380_vm0, %v388_v55, %v390_v3  ;;  %v439_v23 = vsel %vm380_vm0, %v436_v56, %v438_v4  ;;  %v440_v34 = vrot.slane %v12644_v26, 1  ;;  %v1217_v30 = vrot.slane %v12593_v51, 3 }
  0x20   : > { %11041 = vmatmul.msk.f32.gmra.mxu0 %vm444_vm1, %v385_v37  ;;  %1776 = vmatpush.msra.mxu2 %v11230_v29  ;;  %v409_v37 = vsel %vm380_vm0, %v406_v0, %v408_v27  ;;  %v393_v43 = vsel %vm380_vm0, %v390_v3, %v392_v33  ;;  %v797_v0 = vrot.slane %v12569_v39, 2  ;;  %v429_v3 = vsel %vm380_vm0, %v426_v52, %v428_v22 }
  0x21   : > { %11065 = vmatmul.msk.f32.gmra.mxu3 %vm444_vm1, %v433_v38  ;;  %v425_v38 = vsel %vm380_vm0, %v422_v2, %v424_v32  ;;  %v441_v44 = vsel %vm380_vm0, %v438_v4, %v440_v34  ;;  %v1215_v22 = vrot.slane %v12569_v39, 3  ;;  %v801_v31 = vrot.slane %v12617_v63, 2 }
  0x26   : > { %11050 = vmatmul.msk.f32.gmra.mxu1 %vm444_vm1, %v403_v45  ;;  %v12674_v45 = vld [vmem:[%s12483_s14 + $0x38] sm:$0xff] }
  0x27   : > { %11058 = vmatmul.msk.f32.gmra.mxu2 %vm444_vm1, %v419_v46  ;;  %v410_v46 = vrot.slane %v12665_v40, 1  ;;  %v394_v54 = vrot.slane %v12674_v45, 1 }
  0x28   : > { %11042 = vmatmul.msk.f32.gmra.mxu0 %vm444_vm1, %v387_v49  ;;  %v12679_v49 = vld [vmem:[%s12483_s14 + $0xf8] sm:$0xff] }
  0x29   : > { %11066 = vmatmul.msk.f32.gmra.mxu3 %vm444_vm1, %v435_v50  ;;  %v11294_v50 = vld [vmem:[%s17618_s1 + $0x40] sm:$0xff]  ;;  %v442_v55 = vrot.slane %v12679_v49, 1  ;;  %v411_v56 = vsel %vm380_vm0, %v408_v27, %v410_v46  ;;  %v413_v2 = vsel %vm380_vm0, %v410_v46, %v412_v11  ;;  %v397_v4 = vsel %vm380_vm0, %v394_v54, %v396_v8 }
  0x2a   : > { %2314 = vmatpush.msra.mxu0 %v11294_v50  ;;  %v1214_v11 = vrot.slane %v12541_v25, 3  ;;  %v799_v8 = vrot.slane %v12593_v51, 2 }
  0x2c   : > { %v1216_v27 = vsel %vm1213_vm3, %v1214_v11, %v1215_v22  ;;  %v800_v29 = vsel %vm791_vm2, %v797_v0, %v799_v8  ;;  %v1231_v11 = vrot.slane %v12560_v35, 3 }
  0x2e   : > { %11051 = vmatmul.msk.f32.gmra.mxu1 %vm444_vm1, %v405_v57  ;;  %v427_v57 = vsel %vm380_vm0, %v424_v32, %v426_v52  ;;  %v807_v52 = vrot.slane %v12496_v5, 2 }
  0x2f   : > { %11059 = vmatmul.msk.f32.gmra.mxu2 %vm444_vm1, %v421_v58  ;;  %v395_v58 = vsel %vm380_vm0, %v392_v33, %v394_v54  ;;  %v1218_v33 = vsel %vm1213_vm3, %v1215_v22, %v1217_v30  ;;  %v815_v22 = vrot.slane %v12584_v47, 2 }
  0x30   : > { %11043 = vmatmul.msk.f32.gmra.mxu0 %vm444_vm1, %v389_v61  ;;  %v443_v61 = vsel %vm380_vm0, %v440_v34, %v442_v55  ;;  %v1219_v34 = vrot.slane %v12617_v63, 3 }
  0x31   : > { %11067 = vmatmul.msk.f32.gmra.mxu3 %vm444_vm1, %v437_v62  ;;  %v795_v62 = vrot.slane %v12541_v25, 2 }
  0x36   : > { %11052 = vmatmul.msk.f32.gmra.mxu1 %vm444_vm1, %v407_v9  ;;  %v798_v9 = vsel %vm791_vm2, %v795_v62, %v797_v0  ;;  %v811_v0 = vrot.slane %v12511_v12, 2 }
  0x37   : > { %11060 = vmatmul.msk.f32.gmra.mxu2 %vm444_vm1, %v423_v13  ;;  %v792_v13 = vrot.slane %v12515_v14, 2 }
  0x38   : > { %11044 = vmatmul.msk.f32.gmra.mxu0 %vm444_vm1, %v391_v20  ;;  %v793_v20 = vrot.slane %v12518_v15, 2 }
  0x39   : > { %11068 = vmatmul.msk.f32.gmra.mxu3 %vm444_vm1, %v439_v23 }
  0x3a   : > { %v794_v23 = vsel %vm791_vm2, %v792_v13, %v793_v20  ;;  %v796_v32 = vsel %vm791_vm2, %v793_v20, %v795_v62  ;;  %v1227_v62 = vrot.slane %v12499_v6, 3 }
  0x3e   : > { %11053 = vmatmul.msk.f32.gmra.mxu1 %vm444_vm1, %v409_v37  ;;  %v803_v37 = vrot.slane %v12641_v24, 2 }
  0x3f   : > { %11061 = vmatmul.msk.f32.gmra.mxu2 %vm444_vm1, %v425_v38  ;;  %v1220_v38 = vsel %vm1213_vm3, %v1217_v30, %v1219_v34  ;;  %v1233_v30 = vrot.slane %v12584_v47, 3 }
  0x40   : > { %11045 = vmatmul.msk.f32.gmra.mxu0 %vm444_vm1, %v393_v43  ;;  %v804_v43 = vsel %vm791_vm2, %v801_v31, %v803_v37 }
  0x41   : > { %11069 = vmatmul.msk.f32.gmra.mxu3 %vm444_vm1, %v441_v44  ;;  %v805_v44 = vrot.slane %v12674_v45, 2 }
  0x43   : > { %v806_v50 = vsel %vm791_vm2, %v803_v37, %v805_v44  ;;  %v808_v55 = vsel %vm791_vm2, %v805_v44, %v807_v52 }
  0x46   : > { %11054 = vmatmul.msk.f32.gmra.mxu1 %vm444_vm1, %v411_v56  ;;  %v1225_v56 = vrot.slane %v12496_v5, 3 }
  0x47   : > { %11062 = vmatmul.msk.f32.gmra.mxu2 %vm444_vm1, %v427_v57  ;;  %v809_v57 = vrot.slane %v12499_v6, 2 }
  0x48   : > { %11046 = vmatmul.msk.f32.gmra.mxu0 %vm444_vm1, %v395_v58 }
  0x49   : > { %11070 = vmatmul.msk.f32.gmra.mxu3 %vm444_vm1, %v443_v61  ;;  %v810_v61 = vsel %vm791_vm2, %v807_v52, %v809_v57  ;;  %v1237_v52 = vrot.slane %v12632_v17, 3 }
  0x4e   : > { %11055 = vmatmul.msk.f32.gmra.mxu1 %vm444_vm1, %v413_v2  ;;  %v1228_v2 = vsel %vm1213_vm3, %v1225_v56, %v1227_v62 }
  0x4f   : > { %11063 = vmatmul.msk.f32.gmra.mxu2 %vm444_vm1, %v429_v3  ;;  %v812_v3 = vsel %vm791_vm2, %v809_v57, %v811_v0 }
  0x50   : > { %11047 = vmatmul.msk.f32.gmra.mxu0 %vm444_vm1, %v397_v4  ;;  %v1229_v4 = vrot.slane %v12511_v12, 3 }
  0x51   : > { %11135 = vmatmul.msk.f32.vlgmr.msrb.gmra.mxu3 %vm444_vm1, %v798_v9 }
  0x52   : > { %v1230_v13 = vsel %vm1213_vm3, %v1227_v62, %v1229_v4  ;;  %v1239_v62 = vrot.slane %v12665_v40, 3 }
  0x56   : > { %11071 = vmatmul.msk.f32.vlgmr.msrb.gmra.mxu1 %vm444_vm1, %v12515_v14  ;;  %v802_v14 = vsel %vm791_vm2, %v799_v8, %v801_v31 }
  0x57   : > { %11103 = vmatmul.msk.f32.vlgmr.msrb.gmra.mxu2 %vm444_vm1, %v794_v23 }
  0x58   : > { %11167 = vmatmul.msk.f32.vlgmr.msrb.gmra.mxu0 %vm444_vm1, %v1216_v27  ;;  %v1232_v27 = vsel %vm1213_vm3, %v1229_v4, %v1231_v11 }
  0x59   : > { %11136 = vmatmul.msk.f32.gmra.mxu3 %vm444_vm1, %v800_v29 }
  0x5e   : > { %11072 = vmatmul.msk.f32.gmra.mxu1 %vm444_vm1, %v12518_v15  ;;  %v1221_v15 = vrot.slane %v12641_v24, 3 }
  0x5f   : > { %11104 = vmatmul.msk.f32.gmra.mxu2 %vm444_vm1, %v796_v32  ;;  %v817_v32 = vrot.slane %v12608_v59, 2 }
  0x60   : > { %11168 = vmatmul.msk.f32.gmra.mxu0 %vm444_vm1, %v1218_v33  ;;  %v1222_v46 = vsel %vm1213_vm3, %v1219_v34, %v1221_v15 }
  0x61   : > { %11137 = vmatmul.msk.f32.gmra.mxu3 %vm444_vm1, %v802_v14  ;;  %v818_v37 = vsel %vm791_vm2, %v815_v22, %v817_v32 }
  0x66   : > { %11073 = vmatmul.msk.f32.gmra.mxu1 %vm444_vm1, %v12541_v25  ;;  %v1223_v25 = vrot.slane %v12674_v45, 3 }
  0x67   : > { %11105 = vmatmul.msk.f32.gmra.mxu2 %vm444_vm1, %v798_v9  ;;  %v813_v9 = vrot.slane %v12560_v35, 2 }
  0x68   : > { %11169 = vmatmul.msk.f32.gmra.mxu0 %vm444_vm1, %v1220_v38  ;;  %v1224_v54 = vsel %vm1213_vm3, %v1221_v15, %v1223_v25  ;;  %v1226_v58 = vsel %vm1213_vm3, %v1223_v25, %v1225_v56  ;;  %v1235_v38 = vrot.slane %v12608_v59, 3  ;;  %v819_v15 = vrot.slane %v12632_v17, 2 }
  0x69   : > { %11138 = vmatmul.msk.f32.gmra.mxu3 %vm444_vm1, %v804_v43  ;;  %v814_v20 = vsel %vm791_vm2, %v811_v0, %v813_v9 }
  0x6a   : > { %v820_v25 = vsel %vm791_vm2, %v817_v32, %v819_v15 }
  0x6e   : > { %11074 = vmatmul.msk.f32.gmra.mxu1 %vm444_vm1, %v12569_v39 }
  0x6f   : > { %11106 = vmatmul.msk.f32.gmra.mxu2 %vm444_vm1, %v800_v29  ;;  %v816_v29 = vsel %vm791_vm2, %v813_v9, %v815_v22  ;;  %v825_v22 = vrot.slane %v12507_v10, 2 }
  0x70   : > { %11170 = vmatmul.msk.f32.gmra.mxu0 %vm444_vm1, %v1222_v46 }
  0x71   : > { %11139 = vmatmul.msk.f32.gmra.mxu3 %vm444_vm1, %v806_v50 }
  0x76   : > { %11075 = vmatmul.msk.f32.gmra.mxu1 %vm444_vm1, %v12593_v51 }
  0x77   : > { %11107 = vmatmul.msk.f32.gmra.mxu2 %vm444_vm1, %v802_v14 }
  0x78   : > { %11171 = vmatmul.msk.f32.gmra.mxu0 %vm444_vm1, %v1224_v54 }
  0x79   : > { %11140 = vmatmul.msk.f32.gmra.mxu3 %vm444_vm1, %v808_v55 }
  0x7e   : > { %11076 = vmatmul.msk.f32.gmra.mxu1 %vm444_vm1, %v12617_v63 }
  0x7f   : > { %11108 = vmatmul.msk.f32.gmra.mxu2 %vm444_vm1, %v804_v43 }
  0x80   : > { %11172 = vmatmul.msk.f32.gmra.mxu0 %vm444_vm1, %v1226_v58 }
  0x81   : > { %11141 = vmatmul.msk.f32.gmra.mxu3 %vm444_vm1, %v810_v61 }
  0x86   : > { %11077 = vmatmul.msk.f32.gmra.mxu1 %vm444_vm1, %v12641_v24 }
  0x87   : > { %11109 = vmatmul.msk.f32.gmra.mxu2 %vm444_vm1, %v806_v50 }
  0x88   : > { %11173 = vmatmul.msk.f32.gmra.mxu0 %vm444_vm1, %v1228_v2  ;;  %v823_v2 = vrot.slane %v12502_v7, 2 }
  0x89   : > { %11142 = vmatmul.msk.f32.gmra.mxu3 %vm444_vm1, %v812_v3 }
  0x8a   : > { %v826_v32 = vsel %vm791_vm2, %v823_v2, %v825_v22 }
  0x8e   : > { %11078 = vmatmul.msk.f32.gmra.mxu1 %vm444_vm1, %v12674_v45 }
  0x8f   : > { %11110 = vmatmul.msk.f32.gmra.mxu2 %vm444_vm1, %v808_v55  ;;  %v821_v55 = vrot.slane %v12665_v40, 2 }
  0x90   : > { %11174 = vmatmul.msk.f32.gmra.mxu0 %vm444_vm1, %v1230_v13 }
  0x91   : > { %11143 = vmatmul.msk.f32.gmra.mxu3 %vm444_vm1, %v814_v20  ;;  %v824_v13 = vsel %vm791_vm2, %v821_v55, %v823_v2 }
  0x93   : > { %v12792_v8 = vpop.f32.mrf.mxu1 }
  0x95   : > { %v12794_v23 = vpop.f32.mrf.mxu0 }
  0x96   : > { %11079 = vmatmul.msk.f32.gmra.mxu1 %vm444_vm1, %v12496_v5  ;;  %v1234_v5 = vsel %vm1213_vm3, %v1231_v11, %v1233_v30 }
  0x97   : > { %11111 = vmatmul.msk.f32.gmra.mxu2 %vm444_vm1, %v810_v61  ;;  %v822_v61 = vsel %vm791_vm2, %v819_v15, %v821_v55  ;;  %v1245_v55 = vrot.slane %v12527_v18, 3 }
  0x98   : > { %11175 = vmatmul.msk.f32.gmra.mxu0 %vm444_vm1, %v1232_v27 }
  0x99   : > { %11144 = vmatmul.msk.f32.gmra.mxu3 %vm444_vm1, %v816_v29 }
  0x9a   : > { %v12804_v31 = vpop.f32.mrf.mxu2 }
  0x9b   : > { %v12807_v33 = vpop.f32.mrf.mxu1 }
  0x9c   : > { %v12809_v14 = vpop.f32.mrf.mxu3 }
  0x9d   : > { %17660 = vst [vmem:[#allocation4_spill] sm:$0xff] %v12809_v14  ;;  %v12811_v34 = vpop.f32.mrf.mxu0 }
  0x9e   : > { %11080 = vmatmul.msk.f32.gmra.mxu1 %vm444_vm1, %v12499_v6  ;;  %v1236_v6 = vsel %vm1213_vm3, %v1233_v30, %v1235_v38 }
  0x9f   : > { %11112 = vmatmul.msk.f32.gmra.mxu2 %vm444_vm1, %v812_v3 }
  0xa0   : > { %11176 = vmatmul.msk.f32.gmra.mxu0 %vm444_vm1, %v1234_v5  ;;  %v1243_v5 = vrot.slane %v12507_v10, 3 }
  0xa1   : > { %11145 = vmatmul.msk.f32.gmra.mxu3 %vm444_vm1, %v818_v37 }
  0xa2   : > { %v12821_v43 = vpop.f32.mrf.mxu2 }
  0xa3   : > { %v12824_v44 = vpop.f32.mrf.mxu1 }
  0xa4   : > { %v12826_v46 = vpop.f32.mrf.mxu3 }
  0xa5   : > { %17661 = vst [vmem:[#allocation5_spill] sm:$0xff] %v12826_v46  ;;  %v12828_v50 = vpop.f32.mrf.mxu0 }
  0xa6   : > { %11081 = vmatmul.msk.f32.gmra.mxu1 %vm444_vm1, %v12511_v12  ;;  %v1238_v12 = vsel %vm1213_vm3, %v1235_v38, %v1237_v52  ;;  %v827_v38 = vrot.slane %v12527_v18, 2 }
  0xa7   : > { %11113 = vmatmul.msk.f32.gmra.mxu2 %vm444_vm1, %v814_v20  ;;  %v1241_v20 = vrot.slane %v12502_v7, 3 }
  0xa8   : > { %11177 = vmatmul.msk.f32.gmra.mxu0 %vm444_vm1, %v1236_v6 }
  0xa9   : > { %11146 = vmatmul.msk.f32.gmra.mxu3 %vm444_vm1, %v820_v25 }
  0xaa   : > { %v12838_v54 = vpop.f32.mrf.mxu2 }
  0xab   : > { %v12841_v56 = vpop.f32.mrf.mxu1 }
  0xac   : > { %v12843_v57 = vpop.f32.mrf.mxu3 }
  0xad   : > { %17662 = vst [vmem:[#allocation6_spill] sm:$0xff] %v12843_v57  ;;  %v12845_v58 = vpop.f32.mrf.mxu0 }
  0xae   : > { %11082 = vmatmul.msk.f32.gmra.mxu1 %vm444_vm1, %v12560_v35  ;;  %v1240_v35 = vsel %vm1213_vm3, %v1237_v52, %v1239_v62 }
  0xaf   : > { %11114 = vmatmul.msk.f32.gmra.mxu2 %vm444_vm1, %v816_v29 }
  0xb0   : > { %11178 = vmatmul.msk.f32.gmra.mxu0 %vm444_vm1, %v1238_v12 }
  0xb1   : > { %11147 = vmatmul.msk.f32.gmra.mxu3 %vm444_vm1, %v822_v61 }
  0xb2   : > { %v12855_v0 = vpop.f32.mrf.mxu2 }
  0xb3   : > { %v12858_v3 = vpop.f32.mrf.mxu1 }
  0xb4   : > { %v12860_v4 = vpop.f32.mrf.mxu3 }
  0xb5   : > { %17663 = vst [vmem:[#allocation7_spill] sm:$0xff] %v12860_v4  ;;  %v12862_v9 = vpop.f32.mrf.mxu0  ;;  %v833_v4 = vrot.slane %v12611_v60, 2 }
  0xb6   : > { %11083 = vmatmul.msk.f32.gmra.mxu1 %vm444_vm1, %v12584_v47  ;;  %v1242_v47 = vsel %vm1213_vm3, %v1239_v62, %v1241_v20  ;;  %v829_v62 = vrot.slane %v12563_v36, 2 }
  0xb7   : > { %11115 = vmatmul.msk.f32.gmra.mxu2 %vm444_vm1, %v818_v37 }
  0xb8   : > { %11179 = vmatmul.msk.f32.gmra.mxu0 %vm444_vm1, %v1240_v35 }
  0xb9   : > { %11148 = vmatmul.msk.f32.gmra.mxu3 %vm444_vm1, %v824_v13 }
  0xba   : > { %v12872_v11 = vpop.f32.mrf.mxu2 }
  0xbb   : > { %v12875_v27 = vpop.f32.mrf.mxu1 }
  0xbc   : > { %v12877_v29 = vpop.f32.mrf.mxu3 }
  0xbd   : > { %17664 = vst [vmem:[#allocation8_spill] sm:$0xff] %v12877_v29  ;;  %v12879_v30 = vpop.f32.mrf.mxu0 }
  0xbe   : > { %11084 = vmatmul.msk.f32.gmra.mxu1 %vm444_vm1, %v12608_v59  ;;  %v1244_v59 = vsel %vm1213_vm3, %v1241_v20, %v1243_v5 }
  0xbf   : > { %11116 = vmatmul.msk.f32.gmra.mxu2 %vm444_vm1, %v820_v25  ;;  %v828_v25 = vsel %vm791_vm2, %v825_v22, %v827_v38  ;;  %v1247_v22 = vrot.slane %v12563_v36, 3 }
  0xc0   : > { %11180 = vmatmul.msk.f32.gmra.mxu0 %vm444_vm1, %v1242_v47 }
  0xc1   : > { %11149 = vmatmul.msk.f32.gmra.mxu3 %vm444_vm1, %v826_v32  ;;  %v1248_v29 = vsel %vm1213_vm3, %v1245_v55, %v1247_v22 }
  0xc2   : > { %v12889_v37 = vpop.f32.mrf.mxu2 }
  0xc3   : > { %v12892_v15 = vpop.f32.mrf.mxu1 }
  0xc4   : > { %v12894_v6 = vpop.f32.mrf.mxu3 }
  0xc5   : > { %17665 = vst [vmem:[#allocation9_spill] sm:$0xff] %v12894_v6  ;;  %v12896_v52 = vpop.f32.mrf.mxu0 }
  0xc6   : > { %11085 = vmatmul.msk.f32.gmra.mxu1 %vm444_vm1, %v12632_v17  ;;  %v1246_v17 = vsel %vm1213_vm3, %v1243_v5, %v1245_v55 }
  0xc7   : > { %11117 = vmatmul.msk.f32.gmra.mxu2 %vm444_vm1, %v822_v61  ;;  %v830_v61 = vsel %vm791_vm2, %v827_v38, %v829_v62  ;;  %v1249_v38 = vrot.slane %v12587_v48, 3 }
  0xc8   : > { %11181 = vmatmul.msk.f32.gmra.mxu0 %vm444_vm1, %v1244_v59  ;;  %v831_v59 = vrot.slane %v12587_v48, 2 }
  0xc9   : > { %11150 = vmatmul.msk.f32.gmra.mxu3 %vm444_vm1, %v828_v25 }
  0xca   : > { %v12906_v12 = vpop.f32.mrf.mxu2 }
  0xcb   : > { %v12909_v2 = vpop.f32.mrf.mxu1 }
  0xcc   : > { %v12911_v35 = vpop.f32.mrf.mxu3 }
  0xcd   : > { %17666 = vst [vmem:[#allocation10_spill] sm:$0xff] %v12911_v35  ;;  %v12913_v20 = vpop.f32.mrf.mxu0 }
  0xce   : > { %11086 = vmatmul.msk.f32.gmra.mxu1 %vm444_vm1, %v12665_v40  ;;  %v832_v40 = vsel %vm791_vm2, %v829_v62, %v831_v59  ;;  %v1250_v62 = vsel %vm1213_vm3, %v1247_v22, %v1249_v38 }
  0xcf   : > { %11118 = vmatmul.msk.f32.gmra.mxu2 %vm444_vm1, %v824_v13 }
  0xd0   : > { %11182 = vmatmul.msk.f32.gmra.mxu0 %vm444_vm1, %v1246_v17 }
  0xd1   : > { %11151 = vmatmul.msk.f32.gmra.mxu3 %vm444_vm1, %v830_v61 }
  0xd2   : > { %v12923_v47 = vpop.f32.mrf.mxu2 }
  0xd3   : > { %v696_v35 = vpop.f32.mrf.mxu1 }
  0xd4   : > { %v1087_v6 = vpop.f32.mrf.mxu3  ;;  %v697_v13 = vadd.f32 %v696_v35, %v12794_v23  ;;  %v835_v35 = vrot.slane %v12635_v19, 2 }
  0xd5   : > { %v1356_v5 = vpop.f32.mrf.mxu0 }
  0xd6   : > { %11087 = vmatmul.msk.f32.gmra.mxu1 %vm444_vm1, %v12502_v7 }
  0xd7   : > { %11119 = vmatmul.msk.f32.gmra.mxu2 %vm444_vm1, %v826_v32 }
  0xd8   : > { %11183 = vmatmul.msk.f32.gmra.mxu0 %vm444_vm1, %v1248_v29  ;;  %v834_v29 = vsel %vm791_vm2, %v831_v59, %v833_v4 }
  0xd9   : > { %11152 = vmatmul.msk.f32.gmra.mxu3 %vm444_vm1, %v832_v40 }
  0xda   : > { %v934_v17 = vpop.f32.mrf.mxu2 }
  0xdb   : > { %v1027_v57 = vadd.f32 %v934_v17, %v697_v13  ;;  %v699_v55 = vpop.f32.mrf.mxu1 }
  0xdc   : > { %v1090_v46 = vpop.f32.mrf.mxu3  ;;  %v700_v32 = vadd.f32 %v699_v55, %v12811_v34 }
  0xdd   : > { %v1180_v14 = vadd.f32 %v1087_v6, %v1027_v57  ;;  %v1359_v7 = vpop.f32.mrf.mxu0  ;;  %v1251_v57 = vrot.slane %v12611_v60, 3 }
  0xde   : > { %11088 = vmatmul.msk.f32.gmra.mxu1 %vm444_vm1, %v12507_v10 }
  0xdf   : > { %v12940_v23 = vadd.f32 %v1356_v5, %v1180_v14  ;;  %11120 = vmatmul.msk.f32.gmra.mxu2 %vm444_vm1, %v828_v25  ;;  %v1252_v14 = vsel %vm1213_vm3, %v1249_v38, %v1251_v57  ;;  %v836_v25 = vsel %vm791_vm2, %v833_v4, %v835_v35  ;;  %v837_v38 = vrot.slane %v12668_v42, 2 }
  0xe0   : > { %11184 = vmatmul.msk.f32.gmra.mxu0 %vm444_vm1, %v1250_v62 }
  0xe1   : > { %11153 = vmatmul.msk.f32.gmra.mxu3 %vm444_vm1, %v834_v29 }
  0xe2   : > { %v937_v6 = vpop.f32.mrf.mxu2 }
  0xe3   : > { %v1028_v22 = vadd.f32 %v937_v6, %v700_v32  ;;  %v702_v13 = vpop.f32.mrf.mxu1 }
  0xe4   : > { %v1093_v10 = vpop.f32.mrf.mxu3  ;;  %v703_v5 = vadd.f32 %v702_v13, %v12828_v50  ;;  %v1255_v13 = vrot.slane %v12668_v42, 3 }
  0xe5   : > { %v1181_v17 = vadd.f32 %v1090_v46, %v1028_v22  ;;  %v1362_v59 = vpop.f32.mrf.mxu0  ;;  %v1253_v46 = vrot.slane %v12635_v19, 3 }
  0xe6   : > { %11089 = vmatmul.msk.f32.gmra.mxu1 %vm444_vm1, %v12527_v18 }
  0xe7   : > { %v12952_v34 = vadd.f32 %v1359_v7, %v1181_v17  ;;  %11121 = vmatmul.msk.f32.gmra.mxu2 %vm444_vm1, %v830_v61  ;;  %v1254_v7 = vsel %vm1213_vm3, %v1251_v57, %v1253_v46  ;;  %v838_v61 = vsel %vm791_vm2, %v835_v35, %v837_v38  ;;  %v839_v57 = vrot.slane %v12521_v16, 2 }
  0xe8   : > { %11185 = vmatmul.msk.f32.gmra.mxu0 %vm444_vm1, %v1252_v14 }
  0xe9   : > { %11154 = vmatmul.msk.f32.gmra.mxu3 %vm444_vm1, %v836_v25 }
  0xea   : > { %v940_v55 = vpop.f32.mrf.mxu2 }
  0xeb   : > { %v1029_v62 = vadd.f32 %v940_v55, %v703_v5  ;;  %v705_v32 = vpop.f32.mrf.mxu1 }
  0xec   : > { %v1096_v18 = vpop.f32.mrf.mxu3  ;;  %v706_v22 = vadd.f32 %v705_v32, %v12845_v58 }
  0xed   : > { %v1182_v6 = vadd.f32 %v1093_v10, %v1029_v62  ;;  %v1365_v4 = vpop.f32.mrf.mxu0  ;;  %v1257_v62 = vrot.slane %v12521_v16, 3 }
  0xee   : > { %11090 = vmatmul.msk.f32.gmra.mxu1 %vm444_vm1, %v12563_v36 }
  0xef   : > { %v12964_v50 = vadd.f32 %v1362_v59, %v1182_v6  ;;  %11122 = vmatmul.msk.f32.gmra.mxu2 %vm444_vm1, %v832_v40  ;;  %v1256_v59 = vsel %vm1213_vm3, %v1253_v46, %v1255_v13  ;;  %v840_v40 = vsel %vm791_vm2, %v837_v38, %v839_v57  ;;  %v841_v46 = vrot.slane %v12532_v21, 2 }
  0xf0   : > { %11186 = vmatmul.msk.f32.gmra.mxu0 %vm444_vm1, %v1254_v7 }
  0xf1   : > { %11155 = vmatmul.msk.f32.gmra.mxu3 %vm444_vm1, %v838_v61 }
  0xf2   : > { %v943_v10 = vpop.f32.mrf.mxu2 }
  0xf3   : > { %v1030_v17 = vadd.f32 %v943_v10, %v706_v22  ;;  %v708_v14 = vpop.f32.mrf.mxu1  ;;  %v1259_v10 = vrot.slane %v12532_v21, 3 }
  0xf4   : > { %v1099_v36 = vpop.f32.mrf.mxu3  ;;  %v709_v55 = vadd.f32 %v708_v14, %v12862_v9 }
  0xf5   : > { %v1183_v5 = vadd.f32 %v1096_v18, %v1030_v17  ;;  %v1368_v35 = vpop.f32.mrf.mxu0 }
  0xf6   : > { %11091 = vmatmul.msk.f32.gmra.mxu1 %vm444_vm1, %v12587_v48 }
  0xf7   : > { %v12976_v58 = vadd.f32 %v1365_v4, %v1183_v5  ;;  %11123 = vmatmul.msk.f32.gmra.mxu2 %vm444_vm1, %v834_v29  ;;  %v1258_v4 = vsel %vm1213_vm3, %v1255_v13, %v1257_v62  ;;  %v842_v29 = vsel %vm791_vm2, %v839_v57, %v841_v46  ;;  %v843_v13 = vrot.slane %v12547_v28, 2 }
  0xf8   : > { %11187 = vmatmul.msk.f32.gmra.mxu0 %vm444_vm1, %v1256_v59 }
  0xf9   : > { %11156 = vmatmul.msk.f32.gmra.mxu3 %vm444_vm1, %v840_v40 }
  0xfa   : > { %v946_v32 = vpop.f32.mrf.mxu2 }
  0xfb   : > { %v1031_v18 = vadd.f32 %v946_v32, %v709_v55  ;;  %v711_v6 = vpop.f32.mrf.mxu1  ;;  %v1261_v55 = vrot.slane %v12547_v28, 3 }
  0xfc   : > { %v1102_v48 = vpop.f32.mrf.mxu3  ;;  %v712_v22 = vadd.f32 %v711_v6, %v12879_v30 }
  0xfd   : > { %v1184_v7 = vadd.f32 %v1099_v36, %v1031_v18  ;;  %v1371_v38 = vpop.f32.mrf.mxu0 }
  0xfe   : > { %11092 = vmatmul.msk.f32.gmra.mxu1 %vm444_vm1, %v12611_v60 }
  0xff   : > { %v12988_v9 = vadd.f32 %v1368_v35, %v1184_v7  ;;  %11124 = vmatmul.msk.f32.gmra.mxu2 %vm444_vm1, %v836_v25  ;;  %v1260_v35 = vsel %vm1213_vm3, %v1257_v62, %v1259_v10  ;;  %v844_v25 = vsel %vm791_vm2, %v841_v46, %v843_v13  ;;  %v845_v62 = vrot.slane %v12574_v41, 2 }
 0x100   : > { %11188 = vmatmul.msk.f32.gmra.mxu0 %vm444_vm1, %v1258_v4  ;;  %v1262_v7 = vsel %vm1213_vm3, %v1259_v10, %v1261_v55  ;;  %v1263_v4 = vrot.slane %v12574_v41, 3  ;;  %v847_v10 = vrot.slane %v12598_v53, 2 }
 0x101   : > { %11157 = vmatmul.msk.f32.gmra.mxu3 %vm444_vm1, %v842_v29 }
 0x102   : > { %v949_v17 = vpop.f32.mrf.mxu2 }
 0x103   : > { %v1032_v14 = vadd.f32 %v949_v17, %v712_v22  ;;  %v714_v36 = vpop.f32.mrf.mxu1 }
 0x104   : > { %v1105_v60 = vpop.f32.mrf.mxu3  ;;  %v715_v59 = vadd.f32 %v714_v36, %v12896_v52 }
 0x105   : > { %v1185_v5 = vadd.f32 %v1102_v48, %v1032_v14  ;;  %v1374_v57 = vpop.f32.mrf.mxu0 }
 0x106   : > { %11093 = vmatmul.msk.f32.gmra.mxu1 %vm444_vm1, %v12635_v19 }
 0x107   : > { %v13000_v30 = vadd.f32 %v1371_v38, %v1185_v5  ;;  %11125 = vmatmul.msk.f32.gmra.mxu2 %vm444_vm1, %v838_v61  ;;  %v846_v61 = vsel %vm791_vm2, %v843_v13, %v845_v62 }
 0x108   : > { %11189 = vmatmul.msk.f32.gmra.mxu0 %vm444_vm1, %v1260_v35 }
 0x109   : > { %11158 = vmatmul.msk.f32.gmra.mxu3 %vm444_vm1, %v844_v25 }
 0x10a   : > { %v952_v32 = vpop.f32.mrf.mxu2 }
 0x10b   : > { %v1033_v18 = vadd.f32 %v952_v32, %v715_v59  ;;  %v717_v6 = vpop.f32.mrf.mxu1  ;;  %v849_v59 = vrot.slane %v12622_v1, 2 }
 0x10c   : > { %v1108_v19 = vpop.f32.mrf.mxu3  ;;  %v718_v38 = vadd.f32 %v717_v6, %v12913_v20 }
 0x10d   : > { %v1186_v48 = vadd.f32 %v1105_v60, %v1033_v18  ;;  %v1377_v46 = vpop.f32.mrf.mxu0  ;;  %v1264_v60 = vsel %vm1213_vm3, %v1261_v55, %v1263_v4 }
 0x10e   : > { %11094 = vmatmul.msk.f32.gmra.mxu1 %vm444_vm1, %v12668_v42 }
 0x10f   : > { %v13012_v52 = vadd.f32 %v1374_v57, %v1186_v48  ;;  %11126 = vmatmul.msk.f32.gmra.mxu2 %vm444_vm1, %v840_v40  ;;  %v848_v40 = vsel %vm791_vm2, %v845_v62, %v847_v10  ;;  %v1265_v57 = vrot.slane %v12598_v53, 3  ;;  %v1267_v48 = vrot.slane %v12622_v1, 3 }
 0x110   : > { %11190 = vmatmul.msk.f32.gmra.mxu0 %vm444_vm1, %v1262_v7  ;;  %v851_v7 = vrot.slane %v12644_v26, 2 }
 0x111   : > { %11159 = vmatmul.msk.f32.gmra.mxu3 %vm444_vm1, %v846_v61  ;;  %v1266_v6 = vsel %vm1213_vm3, %v1263_v4, %v1265_v57 }
 0x112   : > { %v955_v22 = vpop.f32.mrf.mxu2 }
 0x113   : > { %v1034_v17 = vadd.f32 %v955_v22, %v718_v38  ;;  %v720_v14 = vpop.f32.mrf.mxu1 }
 0x114   : > { %v1111_v42 = vpop.f32.mrf.mxu3  ;;  %v721_v5 = vadd.f32 %v720_v14, %v12792_v8 }
 0x115   : > { %v1187_v36 = vadd.f32 %v1108_v19, %v1034_v17  ;;  %v1380_v13 = vpop.f32.mrf.mxu0  ;;  %v1268_v17 = vsel %vm1213_vm3, %v1265_v57, %v1267_v48 }
 0x116   : > { %11095 = vmatmul.msk.f32.gmra.mxu1 %vm444_vm1, %v12521_v16 }
 0x117   : > { %v13024_v20 = vadd.f32 %v1377_v46, %v1187_v36  ;;  %11127 = vmatmul.msk.f32.gmra.mxu2 %vm444_vm1, %v842_v29  ;;  %v850_v29 = vsel %vm791_vm2, %v847_v10, %v849_v59 }
 0x118   : > { %11191 = vmatmul.msk.f32.gmra.mxu0 %vm444_vm1, %v1264_v60 }
 0x119   : > { %11160 = vmatmul.msk.f32.gmra.mxu3 %vm444_vm1, %v848_v40 }
 0x11a   : > { %v958_v35 = vpop.f32.mrf.mxu2 }
 0x11b   : > { %v1035_v55 = vadd.f32 %v958_v35, %v721_v5  ;;  %v723_v32 = vpop.f32.mrf.mxu1 }
 0x11c   : > { %v1114_v16 = vpop.f32.mrf.mxu3  ;;  %v724_v19 = vadd.f32 %v723_v32, %v12807_v33 }
 0x11d   : > { %v1188_v18 = vadd.f32 %v1111_v42, %v1035_v55  ;;  %v1383_v62 = vpop.f32.mrf.mxu0  ;;  %v1269_v42 = vrot.slane %v12644_v26, 3  ;;  %v341_v55 = vld [vmem:[%s12483_s14 + $0x100] sm:$0xff] }
 0x11e   : > { %11096 = vmatmul.msk.f32.gmra.mxu1 %vm444_vm1, %v12532_v21 }
 0x11f   : > { %v13036_v8 = vadd.f32 %v1380_v13, %v1188_v18  ;;  %11128 = vmatmul.msk.f32.gmra.mxu2 %vm444_vm1, %v844_v25  ;;  %v852_v25 = vsel %vm791_vm2, %v849_v59, %v851_v7  ;;  %v853_v13 = vrot.slane %v12679_v49, 2  ;;  %v1270_v59 = vsel %vm1213_vm3, %v1267_v48, %v1269_v42 }
 0x120   : > { %11192 = vmatmul.msk.f32.gmra.mxu0 %vm444_vm1, %v1266_v6 }
 0x121   : > { %11161 = vmatmul.msk.f32.gmra.mxu3 %vm444_vm1, %v850_v29 }
 0x122   : > { %v961_v46 = vpop.f32.mrf.mxu2 }
 0x123   : > { %v1036_v38 = vadd.f32 %v961_v46, %v724_v19  ;;  %v726_v4 = vpop.f32.mrf.mxu1 }
 0x124   : > { %v1117_v21 = vpop.f32.mrf.mxu3  ;;  %v727_v14 = vadd.f32 %v726_v4, %v12824_v44  ;;  %v1273_v4 = vrot.slane %v341_v55, 3 }
 0x125   : > { %v1189_v22 = vadd.f32 %v1114_v16, %v1036_v38  ;;  %v1386_v10 = vpop.f32.mrf.mxu0  ;;  %v1271_v16 = vrot.slane %v12679_v49, 3 }
 0x126   : > { %11097 = vmatmul.msk.f32.gmra.mxu1 %vm444_vm1, %v12547_v28 }
 0x127   : > { %v13048_v33 = vadd.f32 %v1383_v62, %v1189_v22  ;;  %11129 = vmatmul.msk.f32.gmra.mxu2 %vm444_vm1, %v846_v61  ;;  %v854_v61 = vsel %vm791_vm2, %v851_v7, %v853_v13  ;;  %v1062_v62 = vrot.slane %v341_v55, 2  ;;  %v1272_v7 = vsel %vm1213_vm3, %v1269_v42, %v1271_v16 }
 0x128   : > { %11193 = vmatmul.msk.f32.gmra.mxu0 %vm444_vm1, %v1268_v17 }
 0x129   : > { %11162 = vmatmul.msk.f32.gmra.mxu3 %vm444_vm1, %v852_v25 }
 0x12a   : > { %v964_v36 = vpop.f32.mrf.mxu2 }
 0x12b   : > { %v1037_v60 = vadd.f32 %v964_v36, %v727_v14  ;;  %v729_v28 = vpop.f32.mrf.mxu1  ;;  %v1274_v36 = vsel %vm1213_vm3, %v1271_v16, %v1273_v4 }
 0x12c   : > { %v1120_v5 = vpop.f32.mrf.mxu3  ;;  %v730_v32 = vadd.f32 %v729_v28, %v12841_v56  ;;  %v342_v56 = vld [vmem:[%s12483_s14 + $0x108] sm:$0xff] }
 0x12d   : > { %v1190_v57 = vadd.f32 %v1117_v21, %v1037_v60  ;;  %v1389_v35 = vpop.f32.mrf.mxu0  ;;  %v1064_v22 = vrot.slane %v342_v56, 2  ;;  %v1275_v60 = vrot.slane %v342_v56, 3 }
 0x12e   : > { %11098 = vmatmul.msk.f32.gmra.mxu1 %vm444_vm1, %v12574_v41 }
 0x12f   : > { %v13060_v44 = vadd.f32 %v1386_v10, %v1190_v57  ;;  %11130 = vmatmul.msk.f32.gmra.mxu2 %vm444_vm1, %v848_v40  ;;  %v1063_v40 = vsel %vm791_vm2, %v853_v13, %v1062_v62  ;;  %v1906_v57 = vrot.slane %v12617_v63, 5 }
 0x130   : > { %11194 = vmatmul.msk.f32.gmra.mxu0 %vm444_vm1, %v1270_v59 }
 0x131   : > { %11163 = vmatmul.msk.f32.gmra.mxu3 %vm444_vm1, %v854_v61 }
 0x132   : > { %v967_v18 = vpop.f32.mrf.mxu2 }
 0x133   : > { %v1038_v6 = vadd.f32 %v967_v18, %v730_v32  ;;  %v732_v41 = vpop.f32.mrf.mxu1  ;;  %v12374_v18 = vld [vmem:[%s12483_s14 + $0x10] sm:$0xff] }
 0x134   : > { %v1123_v19 = vpop.f32.mrf.mxu3  ;;  %v733_v49 = vadd.f32 %v732_v41, %v12858_v3  ;;  %v1486_v41 = vrot.slane %v12593_v51, 4 }
 0x135   : > { %v1191_v48 = vadd.f32 %v1120_v5, %v1038_v6  ;;  %v1392_v46 = vpop.f32.mrf.mxu0  ;;  %v1905_v5 = vrot.slane %v12593_v51, 5  ;;  %v1484_v6 = vrot.slane %v12569_v39, 4 }
 0x136   : > { %11099 = vmatmul.msk.f32.gmra.mxu1 %vm444_vm1, %v12598_v53 }
 0x137   : > { %v13072_v38 = vadd.f32 %v1389_v35, %v1191_v48  ;;  %11131 = vmatmul.msk.f32.gmra.mxu2 %vm444_vm1, %v850_v29  ;;  %v1065_v29 = vsel %vm791_vm2, %v1062_v62, %v1064_v22  ;;  %v1483_v62 = vrot.slane %v12374_v18, 4 }
 0x138   : > { %11195 = vmatmul.msk.f32.gmra.mxu0 %vm444_vm1, %v1272_v7  ;;  %v1908_v7 = vrot.slane %v12641_v24, 5 }
 0x139   : > { %11164 = vmatmul.msk.f32.gmra.mxu3 %vm444_vm1, %v1063_v40  ;;  %v1485_v56 = vsel %vm1482_vm5, %v1483_v62, %v1484_v6 }
 0x13a   : > { %v970_v21 = vpop.f32.mrf.mxu2 }
 0x13b   : > { %v1039_v10 = vadd.f32 %v970_v21, %v733_v49  ;;  %v735_v17 = vpop.f32.mrf.mxu1 }
 0x13c   : > { %v1126_v14 = vpop.f32.mrf.mxu3  ;;  %v736_v3 = vadd.f32 %v735_v17, %v12875_v27  ;;  %v1907_v27 = vsel %vm1904_vm4, %v1905_v5, %v1906_v57 }
 0x13d   : > { %v1192_v53 = vadd.f32 %v1123_v19, %v1039_v10  ;;  %v1395_v42 = vpop.f32.mrf.mxu0  ;;  %v1488_v19 = vrot.slane %v12617_v63, 4  ;;  %v1490_v10 = vrot.slane %v12641_v24, 4 }
 0x13e   : > { %11100 = vmatmul.msk.f32.gmra.mxu1 %vm444_vm1, %v12622_v1 }
 0x13f   : > { %v13083_v13 = vadd.f32 %v1392_v46, %v1192_v53  ;;  %11132 = vmatmul.msk.f32.gmra.mxu2 %vm444_vm1, %v852_v25  ;;  %v1276_v25 = vsel %vm1213_vm3, %v1273_v4, %v1275_v60  ;;  %v2175_v46 = vrot.slane %v12617_v63, 6  ;;  %v1489_v49 = vsel %vm1482_vm5, %v1486_v41, %v1488_v19 }
 0x140   : > { %11196 = vmatmul.msk.f32.gmra.mxu0 %vm444_vm1, %v1274_v36  ;;  %v1491_v60 = vsel %vm1482_vm5, %v1488_v19, %v1490_v10 }
 0x141   : > { %11165 = vmatmul.msk.f32.gmra.mxu3 %vm444_vm1, %v1065_v29 }
 0x142   : > { %v973_v28 = vpop.f32.mrf.mxu2 }
 0x143   : > { %v1040_v1 = vadd.f32 %v973_v28, %v736_v3  ;;  %v738_v35 = vpop.f32.mrf.mxu1  ;;  %v1487_v3 = vsel %vm1482_vm5, %v1484_v6, %v1486_v41 }
 0x144   : > { %v1129_v59 = vpop.f32.mrf.mxu3  ;;  %v739_v48 = vadd.f32 %v738_v35, %v12892_v15  ;;  %v1492_v35 = vrot.slane %v12674_v45, 4 }
 0x145   : > { %v1193_v55 = vadd.f32 %v1126_v14, %v1040_v1  ;;  %v1398_v32 = vpop.f32.mrf.mxu0  ;;  %v2177_v14 = vrot.slane %v12641_v24, 6 }
 0x146   : > { %11101 = vmatmul.msk.f32.gmra.mxu1 %vm444_vm1, %v12644_v26  ;;  %v2174_v26 = vrot.slane %v12593_v51, 6  ;;  %v1909_v51 = vsel %vm1904_vm4, %v1906_v57, %v1908_v7  ;;  %v1493_v6 = vsel %vm1482_vm5, %v1490_v10, %v1492_v35 }
 0x147   : > { %v13095_v16 = vadd.f32 %v1395_v42, %v1193_v55  ;;  %11133 = vmatmul.msk.f32.gmra.mxu2 %vm444_vm1, %v854_v61  ;;  %v1910_v42 = vrot.slane %v12674_v45, 5  ;;  %v2178_v1 = vsel %vm2173_vm6, %v2175_v46, %v2177_v14  ;;  %v2179_v55 = vrot.slane %v12674_v45, 6 }
 0x148   : > { %11197 = vmatmul.msk.f32.gmra.mxu0 %vm444_vm1, %v1276_v25  ;;  %v2176_v15 = vsel %vm2173_vm6, %v2174_v26, %v2175_v46  ;;  %v12375_v25 = vld [vmem:[%s12483_s14 + $0x40] sm:$0xff] }
 0x149   : > { %11263 = vmatmul.msk.f32.vlgmr.msra.gmra.mxu3 %vm444_vm1, %v1907_v27  ;;  %v1912_v27 = vrot.slane %v12375_v25, 5  ;;  %v2180_v26 = vsel %vm2173_vm6, %v2177_v14, %v2179_v55  ;;  %v1494_v45 = vrot.slane %v12375_v25, 4 }
 0x14a   : > { %v976_v61 = vpop.f32.mrf.mxu2 }
 0x14b   : > { %v1041_v39 = vadd.f32 %v976_v61, %v739_v48  ;;  %v741_v40 = vpop.f32.mrf.mxu1 }
 0x14c   : > { %v1132_v4 = vpop.f32.mrf.mxu3  ;;  %v742_v17 = vadd.f32 %v741_v40, %v12909_v2  ;;  %v1911_v2 = vsel %vm1904_vm4, %v1908_v7, %v1910_v42  ;;  %v2181_v7 = vrot.slane %v12375_v25, 6  ;;  %v12376_v40 = vld [vmem:[%s12483_s14 + $0x48] sm:$0xff] }
 0x14d   : > { %v1194_v21 = vadd.f32 %v1129_v59, %v1041_v39  ;;  %v1401_v22 = vpop.f32.mrf.mxu0  ;;  %v1496_v14 = vrot.slane %v12376_v40, 4 }
 0x14e   : > { %11199 = vmatmul.msk.f32.vlgmr.msra.gmra.mxu1 %vm444_vm1, %v1485_v56  ;;  %v1914_v56 = vrot.slane %v12376_v40, 5  ;;  %v2182_v10 = vsel %vm2173_vm6, %v2179_v55, %v2181_v7 }
 0x14f   : > { %v13113_v63 = vadd.f32 %v1398_v32, %v1194_v21  ;;  %11231 = vmatmul.msk.f32.vlgmr.msra.gmra.mxu2 %vm444_vm1, %v1489_v49 }
 0x150   : > { %11295 = vmatmul.msk.f32.vlgmr.msra.gmra.mxu0 %vm444_vm1, %v2176_v15 }
 0x151   : > { %11264 = vmatmul.msk.f32.gmra.mxu3 %vm444_vm1, %v1909_v51 }
 0x152   : > { %v979_v53 = vpop.f32.mrf.mxu2 }
 0x153   : > { %v1042_v36 = vadd.f32 %v979_v53, %v742_v17  ;;  %v744_v29 = vpop.f32.mrf.mxu1 }
 0x154   : > { %v1135_v28 = vpop.f32.mrf.mxu3  ;;  %v745_v59 = vadd.f32 %v744_v29, %v12804_v31  ;;  %v1913_v31 = vsel %vm1904_vm4, %v1910_v42, %v1912_v27  ;;  %v2183_v42 = vrot.slane %v12376_v40, 6  ;;  %v12377_v29 = vld [vmem:[%s12483_s14 + $0x50] sm:$0xff] }
 0x155   : > { %v1195_v5 = vadd.f32 %v1132_v4, %v1042_v36  ;;  %v1404_v57 = vpop.f32.mrf.mxu0  ;;  %v1498_v55 = vrot.slane %v12377_v29, 4  ;;  %v2185_v25 = vrot.slane %v12377_v29, 6 }
 0x156   : > { %11200 = vmatmul.msk.f32.gmra.mxu1 %vm444_vm1, %v1487_v3  ;;  %v1916_v3 = vrot.slane %v12377_v29, 5 }
 0x157   : > { %v13127_v24 = vadd.f32 %v1401_v22, %v1195_v5  ;;  %11232 = vmatmul.msk.f32.gmra.mxu2 %vm444_vm1, %v1491_v60 }
 0x158   : > { %11296 = vmatmul.msk.f32.gmra.mxu0 %vm444_vm1, %v2178_v1 }
 0x159   : > { %11265 = vmatmul.msk.f32.gmra.mxu3 %vm444_vm1, %v1911_v2 }
 0x15a   : > { %v982_v32 = vpop.f32.mrf.mxu2 }
 0x15b   : > { %v1043_v18 = vadd.f32 %v982_v32, %v745_v59  ;;  %v747_v62 = vpop.f32.mrf.mxu1 }
 0x15c   : > { %v1138_v41 = vpop.f32.mrf.mxu3  ;;  %v748_v61 = vadd.f32 %v747_v62, %v12821_v43  ;;  %v1915_v43 = vsel %vm1904_vm4, %v1912_v27, %v1914_v56 }
 0x15d   : > { %v1196_v19 = vadd.f32 %v1135_v28, %v1043_v18  ;;  %v1407_v48 = vpop.f32.mrf.mxu0  ;;  %v12378_v18 = vld [vmem:[%s12483_s14 + $0x58] sm:$0xff] }
 0x15e   : > { %11201 = vmatmul.msk.f32.gmra.mxu1 %vm444_vm1, %v1489_v49  ;;  %v1495_v49 = vsel %vm1482_vm5, %v1492_v35, %v1494_v45  ;;  %v2184_v35 = vsel %vm2173_vm6, %v2181_v7, %v2183_v42  ;;  %v1918_v62 = vrot.slane %v12378_v18, 5  ;;  %v1500_v7 = vrot.slane %v12378_v18, 4 }
 0x15f   : > { %v13140_v46 = vadd.f32 %v1404_v57, %v1196_v19  ;;  %11233 = vmatmul.msk.f32.gmra.mxu2 %vm444_vm1, %v1493_v6  ;;  %v2187_v40 = vrot.slane %v12378_v18, 6 }
 0x160   : > { %11297 = vmatmul.msk.f32.gmra.mxu0 %vm444_vm1, %v2180_v26 }
 0x161   : > { %11266 = vmatmul.msk.f32.gmra.mxu3 %vm444_vm1, %v1913_v31 }
 0x162   : > { %v985_v39 = vpop.f32.mrf.mxu2 }
 0x163   : > { %v1044_v4 = vadd.f32 %v985_v39, %v748_v61  ;;  %v750_v21 = vpop.f32.mrf.mxu1 }
 0x164   : > { %v1141_v22 = vpop.f32.mrf.mxu3  ;;  %v751_v53 = vadd.f32 %v750_v21, %v12838_v54  ;;  %v1917_v54 = vsel %vm1904_vm4, %v1914_v56, %v1916_v3 }
 0x165   : > { %v1197_v15 = vadd.f32 %v1138_v41, %v1044_v4  ;;  %v1410_v51 = vpop.f32.mrf.mxu0  ;;  %v12379_v4 = vld [vmem:[%s12483_s14 + $0x60] sm:$0xff] }
 0x166   : > { %11202 = vmatmul.msk.f32.gmra.mxu1 %vm444_vm1, %v1491_v60  ;;  %v1497_v60 = vsel %vm1482_vm5, %v1494_v45, %v1496_v14  ;;  %v2186_v45 = vsel %vm2173_vm6, %v2183_v42, %v2185_v25  ;;  %v1920_v21 = vrot.slane %v12379_v4, 5  ;;  %v1502_v42 = vrot.slane %v12379_v4, 4 }
 0x167   : > { %v13151_v17 = vadd.f32 %v1407_v48, %v1197_v15  ;;  %11234 = vmatmul.msk.f32.gmra.mxu2 %vm444_vm1, %v1495_v49  ;;  %v2189_v29 = vrot.slane %v12379_v4, 6 }
 0x168   : > { %11298 = vmatmul.msk.f32.gmra.mxu0 %vm444_vm1, %v2182_v10 }
 0x169   : > { %11267 = vmatmul.msk.f32.gmra.mxu3 %vm444_vm1, %v1915_v43 }
 0x16a   : > { %v988_v36 = vpop.f32.mrf.mxu2 }
 0x16b   : > { %v1045_v28 = vadd.f32 %v988_v36, %v751_v53  ;;  %v753_v5 = vpop.f32.mrf.mxu1 }
 0x16c   : > { %v1144_v57 = vpop.f32.mrf.mxu3  ;;  %v754_v32 = vadd.f32 %v753_v5, %v12855_v0  ;;  %v1919_v0 = vsel %vm1904_vm4, %v1916_v3, %v1918_v62 }
 0x16d   : > { %v1198_v1 = vadd.f32 %v1141_v22, %v1045_v28  ;;  %v1413_v2 = vpop.f32.mrf.mxu0  ;;  %v12380_v28 = vld [vmem:[%s12483_s14 + $0x68] sm:$0xff] }
 0x16e   : > { %11203 = vmatmul.msk.f32.gmra.mxu1 %vm444_vm1, %v1493_v6  ;;  %v1499_v6 = vsel %vm1482_vm5, %v1496_v14, %v1498_v55  ;;  %v2188_v14 = vsel %vm2173_vm6, %v2185_v25, %v2187_v40  ;;  %v1922_v5 = vrot.slane %v12380_v28, 5  ;;  %v1504_v25 = vrot.slane %v12380_v28, 4 }
 0x16f   : > { %v13162_v59 = vadd.f32 %v1410_v51, %v1198_v1  ;;  %11235 = vmatmul.msk.f32.gmra.mxu2 %vm444_vm1, %v1497_v60  ;;  %v2191_v18 = vrot.slane %v12380_v28, 6 }
 0x170   : > { %11299 = vmatmul.msk.f32.gmra.mxu0 %vm444_vm1, %v2184_v35 }
 0x171   : > { %11268 = vmatmul.msk.f32.gmra.mxu3 %vm444_vm1, %v1917_v54 }
 0x172   : > { %v991_v27 = vpop.f32.mrf.mxu2 }
 0x173   : > { %v1046_v41 = vadd.f32 %v991_v27, %v754_v32  ;;  %v756_v19 = vpop.f32.mrf.mxu1 }
 0x174   : > { %v1147_v48 = vpop.f32.mrf.mxu3  ;;  %v757_v39 = vadd.f32 %v756_v19, %v12872_v11  ;;  %v1921_v11 = vsel %vm1904_vm4, %v1918_v62, %v1920_v21 }
 0x175   : > { %v1199_v26 = vadd.f32 %v1144_v57, %v1046_v41  ;;  %v1416_v31 = vpop.f32.mrf.mxu0  ;;  %v12381_v41 = vld [vmem:[%s12483_s14 + $0x70] sm:$0xff] }
 0x176   : > { %11204 = vmatmul.msk.f32.gmra.mxu1 %vm444_vm1, %v1495_v49  ;;  %v1501_v49 = vsel %vm1482_vm5, %v1498_v55, %v1500_v7  ;;  %v2190_v55 = vsel %vm2173_vm6, %v2187_v40, %v2189_v29  ;;  %v1924_v19 = vrot.slane %v12381_v41, 5  ;;  %v1506_v40 = vrot.slane %v12381_v41, 4 }
 0x177   : > { %v13173_v61 = vadd.f32 %v1413_v2, %v1199_v26  ;;  %11236 = vmatmul.msk.f32.gmra.mxu2 %vm444_vm1, %v1499_v6  ;;  %v2193_v4 = vrot.slane %v12381_v41, 6 }
 0x178   : > { %11300 = vmatmul.msk.f32.gmra.mxu0 %vm444_vm1, %v2186_v45 }
 0x179   : > { %11269 = vmatmul.msk.f32.gmra.mxu3 %vm444_vm1, %v1919_v0 }
 0x17a   : > { %v994_v56 = vpop.f32.mrf.mxu2 }
 0x17b   : > { %v1047_v22 = vadd.f32 %v994_v56, %v757_v39  ;;  %v759_v15 = vpop.f32.mrf.mxu1 }
 0x17c   : > { %v1150_v51 = vpop.f32.mrf.mxu3  ;;  %v760_v36 = vadd.f32 %v759_v15, %v12889_v37  ;;  %v1923_v37 = vsel %vm1904_vm4, %v1920_v21, %v1922_v5 }
 0x17d   : > { %v1200_v10 = vadd.f32 %v1147_v48, %v1047_v22  ;;  %v1419_v43 = vpop.f32.mrf.mxu0  ;;  %v12382_v22 = vld [vmem:[%s12483_s14 + $0x78] sm:$0xff] }
 0x17e   : > { %11205 = vmatmul.msk.f32.gmra.mxu1 %vm444_vm1, %v1497_v60  ;;  %v1503_v60 = vsel %vm1482_vm5, %v1500_v7, %v1502_v42  ;;  %v2192_v7 = vsel %vm2173_vm6, %v2189_v29, %v2191_v18  ;;  %v1926_v15 = vrot.slane %v12382_v22, 5  ;;  %v1508_v29 = vrot.slane %v12382_v22, 4 }
 0x17f   : > { %v13184_v53 = vadd.f32 %v1416_v31, %v1200_v10  ;;  %11237 = vmatmul.msk.f32.gmra.mxu2 %vm444_vm1, %v1501_v49 }
 0x180   : > { %11301 = vmatmul.msk.f32.gmra.mxu0 %vm444_vm1, %v2188_v14 }
 0x181   : > { %11270 = vmatmul.msk.f32.gmra.mxu3 %vm444_vm1, %v1921_v11 }
 0x182   : > { %v997_v3 = vpop.f32.mrf.mxu2 }
 0x183   : > { %v1048_v57 = vadd.f32 %v997_v3, %v760_v36  ;;  %v762_v1 = vpop.f32.mrf.mxu1  ;;  %v17667_v3 = vld [vmem:[#allocation4_spill] sm:$0xff] }
 0x184   : > { %v1153_v2 = vpop.f32.mrf.mxu3  ;;  %v763_v27 = vadd.f32 %v762_v1, %v12906_v12  ;;  %v1925_v12 = vsel %vm1904_vm4, %v1922_v5, %v1924_v19  ;;  %v2195_v5 = vrot.slane %v12382_v22, 6  ;;  %v12383_v1 = vld [vmem:[%s12483_s14 + $0x80] sm:$0xff] }
 0x185   : > { %v1201_v35 = vadd.f32 %v1150_v51, %v1048_v57  ;;  %v1422_v54 = vpop.f32.mrf.mxu0  ;;  %v1510_v41 = vrot.slane %v12383_v1, 4 }
 0x186   : > { %11206 = vmatmul.msk.f32.gmra.mxu1 %vm444_vm1, %v1499_v6  ;;  %v1505_v6 = vsel %vm1482_vm5, %v1502_v42, %v1504_v25  ;;  %v2194_v42 = vsel %vm2173_vm6, %v2191_v18, %v2193_v4 }
 0x187   : > { %v13195_v32 = vadd.f32 %v1419_v43, %v1201_v35  ;;  %11238 = vmatmul.msk.f32.gmra.mxu2 %vm444_vm1, %v1503_v60 }
 0x188   : > { %11302 = vmatmul.msk.f32.gmra.mxu0 %vm444_vm1, %v2190_v55 }
 0x189   : > { %11271 = vmatmul.msk.f32.gmra.mxu3 %vm444_vm1, %v1923_v37 }
 0x18a   : > { %v1000_v62 = vpop.f32.mrf.mxu2 }
 0x18b   : > { %v1049_v48 = vadd.f32 %v1000_v62, %v763_v27  ;;  %v765_v26 = vpop.f32.mrf.mxu1  ;;  %v2196_v27 = vsel %vm2173_vm6, %v2193_v4, %v2195_v5 }
 0x18c   : > { %v1156_v31 = vpop.f32.mrf.mxu3  ;;  %v766_v56 = vadd.f32 %v765_v26, %v12923_v47  ;;  %v1927_v47 = vsel %vm1904_vm4, %v1924_v19, %v1926_v15  ;;  %v17668_v19 = vld [vmem:[#allocation5_spill] sm:$0xff]  ;;  %v2197_v26 = vrot.slane %v12383_v1, 6 }
 0x18d   : > { %v1202_v45 = vadd.f32 %v1153_v2, %v1049_v48  ;;  %v1425_v0 = vpop.f32.mrf.mxu0  ;;  %v1928_v2 = vrot.slane %v12383_v1, 5 }
 0x18e   : > { %11207 = vmatmul.msk.f32.gmra.mxu1 %vm444_vm1, %v1501_v49  ;;  %v1507_v49 = vsel %vm1482_vm5, %v1504_v25, %v1506_v40 }
 0x18f   : > { %v13206_v39 = vadd.f32 %v1422_v54, %v1202_v45  ;;  %11239 = vmatmul.msk.f32.gmra.mxu2 %vm444_vm1, %v1505_v6  ;;  %v1929_v18 = vsel %vm1904_vm4, %v1926_v15, %v1928_v2  ;;  %v12384_v45 = vld [vmem:[%s12483_s14 + $0x88] sm:$0xff] }
 0x190   : > { %11303 = vmatmul.msk.f32.gmra.mxu0 %vm444_vm1, %v2192_v7 }
 0x191   : > { %11272 = vmatmul.msk.f32.gmra.mxu3 %vm444_vm1, %v1925_v12 }
 0x192   : > { %v1003_v21 = vpop.f32.mrf.mxu2 }
 0x193   : > { %v1050_v51 = vadd.f32 %v1003_v21, %v766_v56  ;;  %v768_v10 = vpop.f32.mrf.mxu1  ;;  %v2198_v21 = vsel %vm2173_vm6, %v2195_v5, %v2197_v26 }
 0x194   : > { %v1159_v43 = vpop.f32.mrf.mxu3  ;;  %v769_v28 = vadd.f32 %v768_v10, %v17667_v3  ;;  %v17669_v10 = vld [vmem:[#allocation6_spill] sm:$0xff] }
 0x195   : > { %v1203_v14 = vadd.f32 %v1156_v31, %v1050_v51  ;;  %v1428_v11 = vpop.f32.mrf.mxu0  ;;  %v1512_v51 = vrot.slane %v12384_v45, 4 }
 0x196   : > { %11208 = vmatmul.msk.f32.gmra.mxu1 %vm444_vm1, %v1503_v60  ;;  %v1509_v60 = vsel %vm1482_vm5, %v1506_v40, %v1508_v29 }
 0x197   : > { %v13217_v36 = vadd.f32 %v1425_v0, %v1203_v14  ;;  %11240 = vmatmul.msk.f32.gmra.mxu2 %vm444_vm1, %v1507_v49  ;;  %v1930_v0 = vrot.slane %v12384_v45, 5  ;;  %v2199_v14 = vrot.slane %v12384_v45, 6 }
 0x198   : > { %11304 = vmatmul.msk.f32.gmra.mxu0 %vm444_vm1, %v2194_v42  ;;  %v12385_v42 = vld [vmem:[%s12483_s14 + $0x90] sm:$0xff] }
 0x199   : > { %11273 = vmatmul.msk.f32.gmra.mxu3 %vm444_vm1, %v1927_v47  ;;  %v1931_v22 = vsel %vm1904_vm4, %v1928_v2, %v1930_v0  ;;  %v1932_v47 = vrot.slane %v12385_v42, 5  ;;  %v2200_v1 = vsel %vm2173_vm6, %v2197_v26, %v2199_v14 }
 0x19a   : > { %v1006_v57 = vpop.f32.mrf.mxu2 }
 0x19b   : > { %v1051_v35 = vadd.f32 %v1006_v57, %v769_v28  ;;  %v771_v54 = vpop.f32.mrf.mxu1  ;;  %v1933_v2 = vsel %vm1904_vm4, %v1930_v0, %v1932_v47 }
 0x19c   : > { %v1162_v55 = vpop.f32.mrf.mxu3  ;;  %v772_v48 = vadd.f32 %v771_v54, %v17668_v19  ;;  %v1514_v54 = vrot.slane %v12385_v42, 4 }
 0x19d   : > { %v1204_v37 = vadd.f32 %v1159_v43, %v1051_v35  ;;  %v1431_v25 = vpop.f32.mrf.mxu0 }
 0x19e   : > { %11209 = vmatmul.msk.f32.gmra.mxu1 %vm444_vm1, %v1505_v6  ;;  %v1511_v6 = vsel %vm1482_vm5, %v1508_v29, %v1510_v41 }
 0x19f   : > { %v13228_v62 = vadd.f32 %v1428_v11, %v1204_v37  ;;  %11241 = vmatmul.msk.f32.gmra.mxu2 %vm444_vm1, %v1509_v60 }
 0x1a0   : > { %11305 = vmatmul.msk.f32.gmra.mxu0 %vm444_vm1, %v2196_v27 }
 0x1a1   : > { %11274 = vmatmul.msk.f32.gmra.mxu3 %vm444_vm1, %v1929_v18  ;;  %v13257_v18 = vld [vmem:[%s12483_s14 + $0x98] sm:$0xff] }
 0x1a2   : > { %v1009_v31 = vpop.f32.mrf.mxu2 }
 0x1a3   : > { %v1052_v7 = vadd.f32 %v1009_v31, %v772_v48  ;;  %v774_v12 = vpop.f32.mrf.mxu1  ;;  %v1515_v48 = vsel %vm1482_vm5, %v1512_v51, %v1514_v54 }
 0x1a4   : > { %v1165_v40 = vpop.f32.mrf.mxu3  ;;  %v775_v43 = vadd.f32 %v774_v12, %v17669_v10  ;;  %v12417_v12 = vmov 0.0  }
 0x1a5   : > { %v1205_v56 = vadd.f32 %v1162_v55, %v1052_v7  ;;  %v1434_v4 = vpop.f32.mrf.mxu0  ;;  %v17670_v55 = vld [vmem:[#allocation7_spill] sm:$0xff]  ;;  %273 = vst.msk [vmem:[#allocation2 + $0x28] sm:$0xff] %vm267_vm7, %v12417_v12 }
 0x1a6   : > { %11210 = vmatmul.msk.f32.gmra.mxu1 %vm444_vm1, %v1507_v49  ;;  %v1513_v49 = vsel %vm1482_vm5, %v1510_v41, %v1512_v51  ;;  %v1934_v41 = vrot.slane %v13257_v18, 5  ;;  %268 = vst.msk [vmem:[#allocation2] sm:$0xff] %vm267_vm7, %v12417_v12  ;;  %v13281_v51 = vld [vmem:[%s12483_s14 + $0xa0] sm:$0xff] }
 0x1a7   : > { %v13239_v15 = vadd.f32 %v1431_v25, %v1205_v56  ;;  %11242 = vmatmul.msk.f32.gmra.mxu2 %vm444_vm1, %v1511_v6  ;;  %v2201_v25 = vrot.slane %v12385_v42, 6  ;;  %v1516_v56 = vrot.slane %v13257_v18, 4  ;;  %269 = vst.msk [vmem:[#allocation2 + $0x8] sm:$0xff] %vm267_vm7, %v12417_v12  ;;  %v1936_v10 = vrot.slane %v13281_v51, 5 }
 0x1a8   : > { %11306 = vmatmul.msk.f32.gmra.mxu0 %vm444_vm1, %v2198_v21  ;;  %v1935_v7 = vsel %vm1904_vm4, %v1932_v47, %v1934_v41  ;;  %v2203_v21 = vrot.slane %v13257_v18, 6  ;;  %270 = vst.msk [vmem:[#allocation2 + $0x10] sm:$0xff] %vm267_vm7, %v12417_v12 }
 0x1a9   : > { %11275 = vmatmul.msk.f32.gmra.mxu3 %vm444_vm1, %v1931_v22  ;;  %v2202_v0 = vsel %vm2173_vm6, %v2199_v14, %v2201_v25  ;;  %271 = vst.msk [vmem:[#allocation2 + $0x18] sm:$0xff] %vm267_vm7, %v12417_v12 }
 0x1aa   : > { %v1012_v11 = vpop.f32.mrf.mxu2  ;;  %272 = vst.msk [vmem:[#allocation2 + $0x20] sm:$0xff] %vm267_vm7, %v12417_v12 }
 0x1ab   : > { %v1053_v29 = vadd.f32 %v1012_v11, %v775_v43  ;;  %v777_v3 = vpop.f32.mrf.mxu1  ;;  %v1517_v11 = vsel %vm1482_vm5, %v1514_v54, %v1516_v56  ;;  %274 = vst.msk [vmem:[#allocation2 + $0x30] sm:$0xff] %vm267_vm7, %v12417_v12 }
 0x1ac   : > { %v1168_v28 = vpop.f32.mrf.mxu3  ;;  %v778_v37 = vadd.f32 %v777_v3, %v17670_v55  ;;  %v2204_v3 = vsel %vm2173_vm6, %v2201_v25, %v2203_v21  ;;  %275 = vst.msk [vmem:[#allocation2 + $0x38] sm:$0xff] %vm267_vm7, %v12417_v12  ;;  %v13313_v55 = vld [vmem:[%s12483_s14 + $0xa8] sm:$0xff] }
 0x1ad   : > { %v1206_v5 = vadd.f32 %v1165_v40, %v1053_v29  ;;  %v1437_v57 = vpop.f32.mrf.mxu0  ;;  %276 = vst.msk [vmem:[#allocation2 + $0x40] sm:$0xff] %vm267_vm7, %v12417_v12 }
 0x1ae   : > { %11211 = vmatmul.msk.f32.gmra.mxu1 %vm444_vm1, %v1509_v60  ;;  %277 = vst.msk [vmem:[#allocation2 + $0x48] sm:$0xff] %vm267_vm7, %v12417_v12 }
 0x1af   : > { %v13250_v35 = vadd.f32 %v1434_v4, %v1206_v5  ;;  %11243 = vmatmul.msk.f32.gmra.mxu2 %vm444_vm1, %v1513_v49  ;;  %278 = vst.msk [vmem:[#allocation2 + $0x50] sm:$0xff] %vm267_vm7, %v12417_v12 }
 0x1b0   : > { %11307 = vmatmul.msk.f32.gmra.mxu0 %vm444_vm1, %v2200_v1  ;;  %279 = vst.msk [vmem:[#allocation2 + $0x58] sm:$0xff] %vm267_vm7, %v12417_v12 }
 0x1b1   : > { %11276 = vmatmul.msk.f32.gmra.mxu3 %vm444_vm1, %v1933_v2  ;;  %v2205_v2 = vrot.slane %v13281_v51, 6  ;;  %280 = vst.msk [vmem:[#allocation2 + $0x60] sm:$0xff] %vm267_vm7, %v12417_v12 }
 0x1b2   : > { %v1015_v27 = vpop.f32.mrf.mxu2  ;;  %281 = vst.msk [vmem:[#allocation2 + $0x68] sm:$0xff] %vm267_vm7, %v12417_v12 }
 0x1b3   : > { %v1054_v60 = vadd.f32 %v1015_v27, %v778_v37  ;;  %v780_v19 = vpop.f32.mrf.mxu1  ;;  %v1938_v37 = vrot.slane %v13313_v55, 5  ;;  %282 = vst.msk [vmem:[#allocation2 + $0x70] sm:$0xff] %vm267_vm7, %v12417_v12 }
 0x1b4   : > { %v1171_v26 = vpop.f32.mrf.mxu3  ;;  %283 = vst.msk [vmem:[#allocation2 + $0x78] sm:$0xff] %vm267_vm7, %v12417_v12 }
 0x1b5   : > { %v1207_v31 = vadd.f32 %v1168_v28, %v1054_v60  ;;  %v1440_v45 = vpop.f32.mrf.mxu0  ;;  %v1937_v28 = vsel %vm1904_vm4, %v1934_v41, %v1936_v10  ;;  %284 = vst.msk [vmem:[#allocation2 + $0x80] sm:$0xff] %vm267_vm7, %v12417_v12 }
 0x1b6   : > { %11212 = vmatmul.msk.f32.gmra.mxu1 %vm444_vm1, %v1511_v6  ;;  %v17671_v6 = vld [vmem:[#allocation8_spill] sm:$0xff]  ;;  %285 = vst.msk [vmem:[#allocation2 + $0x88] sm:$0xff] %vm267_vm7, %v12417_v12 }
 0x1b7   : > { %v13266_v40 = vadd.f32 %v1437_v57, %v1207_v31  ;;  %11244 = vmatmul.msk.f32.gmra.mxu2 %vm444_vm1, %v1515_v48  ;;  %v781_v4 = vadd.f32 %v780_v19, %v17671_v6  ;;  %v1518_v57 = vrot.slane %v13281_v51, 4  ;;  %v1939_v31 = vsel %vm1904_vm4, %v1936_v10, %v1938_v37  ;;  %286 = vst.msk [vmem:[#allocation2 + $0x90] sm:$0xff] %vm267_vm7, %v12417_v12 }
 0x1b8   : > { %11308 = vmatmul.msk.f32.gmra.mxu0 %vm444_vm1, %v2202_v0  ;;  %v1520_v0 = vrot.slane %v13313_v55, 4  ;;  %287 = vst.msk [vmem:[#allocation2 + $0x98] sm:$0xff] %vm267_vm7, %v12417_v12 }
 0x1b9   : > { %11277 = vmatmul.msk.f32.gmra.mxu3 %vm444_vm1, %v1935_v7  ;;  %v13321_v18 = vsel %vm1482_vm5, %v1516_v56, %v1518_v57  ;;  %v2207_v56 = vrot.slane %v13313_v55, 6  ;;  %288 = vst.msk [vmem:[#allocation2 + $0xa0] sm:$0xff] %vm267_vm7, %v12417_v12 }
 0x1ba   : > { %v1018_v22 = vpop.f32.mrf.mxu2  ;;  %289 = vst.msk [vmem:[#allocation2 + $0xa8] sm:$0xff] %vm267_vm7, %v12417_v12  ;;  %v13356_v10 = vsel %vm1482_vm5, %v1518_v57, %v1520_v0 }
 0x1bb   : > { %v1055_v43 = vadd.f32 %v1018_v22, %v781_v4  ;;  %v783_v14 = vpop.f32.mrf.mxu1  ;;  %v13350_v4 = vld [vmem:[%s12483_s14 + $0xb0] sm:$0xff]  ;;  %290 = vst.msk [vmem:[#allocation2 + $0xb0] sm:$0xff] %vm267_vm7, %v12417_v12 }
 0x1bc   : > { %v1174_v42 = vpop.f32.mrf.mxu3  ;;  %291 = vst.msk [vmem:[#allocation2 + $0xb8] sm:$0xff] %vm267_vm7, %v12417_v12  ;;  %v2209_v57 = vrot.slane %v13350_v4, 6 }
 0x1bd   : > { %v1208_v47 = vadd.f32 %v1171_v26, %v1055_v43  ;;  %v1443_v29 = vpop.f32.mrf.mxu0  ;;  %v2206_v26 = vsel %vm2173_vm6, %v2203_v21, %v2205_v2  ;;  %v1940_v21 = vrot.slane %v13350_v4, 5  ;;  %292 = vst.msk [vmem:[#allocation2 + $0xc0] sm:$0xff] %vm267_vm7, %v12417_v12 }
 0x1be   : > { %11213 = vmatmul.msk.f32.gmra.mxu1 %vm444_vm1, %v1513_v49  ;;  %v17672_v49 = vld [vmem:[#allocation9_spill] sm:$0xff]  ;;  %293 = vst.msk [vmem:[#allocation2 + $0xc8] sm:$0xff] %vm267_vm7, %v12417_v12 }
 0x1bf   : > { %v13298_v5 = vadd.f32 %v1440_v45, %v1208_v47  ;;  %11245 = vmatmul.msk.f32.gmra.mxu2 %vm444_vm1, %v1517_v11  ;;  %v784_v1 = vadd.f32 %v783_v14, %v17672_v49  ;;  %v2208_v47 = vsel %vm2173_vm6, %v2205_v2, %v2207_v56  ;;  %294 = vst.msk [vmem:[#allocation2 + $0xd0] sm:$0xff] %vm267_vm7, %v12417_v12 }
 0x1c0   : > { %11309 = vmatmul.msk.f32.gmra.mxu0 %vm444_vm1, %v2204_v3  ;;  %295 = vst.msk [vmem:[#allocation2 + $0xd8] sm:$0xff] %vm267_vm7, %v12417_v12 }
 0x1c1   : > { %11278 = vmatmul.msk.f32.gmra.mxu3 %vm444_vm1, %v1937_v28  ;;  %296 = vst.msk [vmem:[#allocation2 + $0xe0] sm:$0xff] %vm267_vm7, %v12417_v12 }
 0x1c2   : > { %v1021_v54 = vpop.f32.mrf.mxu2  ;;  %297 = vst.msk [vmem:[#allocation2 + $0xe8] sm:$0xff] %vm267_vm7, %v12417_v12 }
 0x1c3   : > { %v1056_v25 = vadd.f32 %v1021_v54, %v784_v1  ;;  %v786_v27 = vpop.f32.mrf.mxu1  ;;  %v13385_v1 = vld [vmem:[%s12483_s14 + $0xb8] sm:$0xff]  ;;  %298 = vst.msk [vmem:[#allocation2 + $0xf0] sm:$0xff] %vm267_vm7, %v12417_v12 }
 0x1c4   : > { %v1177_v41 = vpop.f32.mrf.mxu3  ;;  %v1942_v2 = vrot.slane %v13385_v1, 5  ;;  %299 = vst.msk [vmem:[#allocation2 + $0xf8] sm:$0xff] %vm267_vm7, %v12417_v12 }
 0x1c5   : > { %v1209_v60 = vadd.f32 %v1174_v42, %v1056_v25  ;;  %v1446_v19 = vpop.f32.mrf.mxu0  ;;  %300 = vst.msk [vmem:[#allocation2 + $0x100] sm:$0xff] %vm267_vm7, %v12417_v12 }
 0x1c6   : > { %11214 = vmatmul.msk.f32.gmra.mxu1 %vm444_vm1, %v1515_v48  ;;  %v17673_v48 = vld [vmem:[#allocation10_spill] sm:$0xff]  ;;  %301 = vst.msk [vmem:[#allocation2 + $0x108] sm:$0xff] %vm267_vm7, %v12417_v12 }
 0x1c7   : > { %v13332_v45 = vadd.f32 %v1443_v29, %v1209_v60  ;;  %11246 = vmatmul.msk.f32.gmra.mxu2 %vm444_vm1, %v13321_v18  ;;  %v787_v7 = vadd.f32 %v786_v27, %v17673_v48  ;;  %v1941_v29 = vsel %vm1904_vm4, %v1938_v37, %v1940_v21  ;;  %v13398_v60 = vstv %s266_s29  ;;  %302 = vst.msk [vmem:[#allocation2 + $0x110] sm:$0xff] %vm267_vm7, %v12417_v12  ;;  %s13876_s29 = smov 0  }
 0x1c8   : > { %11310 = vmatmul.msk.f32.gmra.mxu0 %vm444_vm1, %v2206_v26  ;;  %17674 = vst [vmem:[#allocation4_spill] sm:$0xff] %v13398_v60  ;;  %v2211_v48 = vrot.slane %v13385_v1, 6 }
 0x1c9   : > { %11279 = vmatmul.msk.f32.gmra.mxu3 %vm444_vm1, %v1939_v31  ;;  %v1524_v31 = vrot.slane %v13385_v1, 4  ;;  %303 = vst.msk [vmem:[#allocation2 + $0x118] sm:$0xff] %vm267_vm7, %v12417_v12 }
 0x1ca   : > { %v1024_v6 = vpop.f32.mrf.mxu2  ;;  %304 = vst.msk [vmem:[#allocation2 + $0x120] sm:$0xff] %vm267_vm7, %v12417_v12 }
 0x1cb   : > { %v1057_v22 = vadd.f32 %v1024_v6, %v787_v7  ;;  %v1625_v51 = vpop.f32.mrf.mxu1  ;;  %v2472_v7 = vld [vmem:[%s17620_s3] sm:$0xff]  ;;  %305 = vst.msk [vmem:[#allocation2 + $0x128] sm:$0xff] %vm267_vm7, %v12417_v12 }
 0x1cc   : > { %v2047_v43 = vpop.f32.mrf.mxu3  ;;  %v1718_v28 = vadd.f32 %v1625_v51, %v12940_v23  ;;  %v13425_v6 = vld [vmem:[%s12483_s14 + $0xc0] sm:$0xff]  ;;  %306 = vst.msk [vmem:[#allocation2 + $0x130] sm:$0xff] %vm267_vm7, %v12417_v12 }
 0x1cd   : > { %v1210_v14 = vadd.f32 %v1177_v41, %v1057_v22  ;;  %v2316_v42 = vpop.f32.mrf.mxu0  ;;  %v2210_v41 = vsel %vm2173_vm6, %v2207_v56, %v2209_v57  ;;  %307 = vst.msk [vmem:[#allocation2 + $0x138] sm:$0xff] %vm267_vm7, %v12417_v12 }
 0x1ce   : > { %11215 = vmatmul.msk.f32.gmra.mxu1 %vm444_vm1, %v1517_v11  ;;  %v1522_v11 = vrot.slane %v13350_v4, 4  ;;  %308 = vst.msk [vmem:[#allocation2 + $0x140] sm:$0xff] %vm267_vm7, %v12417_v12 }
 0x1cf   : > { %v13367_v3 = vadd.f32 %v1446_v19, %v1210_v14  ;;  %11247 = vmatmul.msk.f32.gmra.mxu2 %vm444_vm1, %v13356_v10  ;;  %v1943_v19 = vsel %vm1904_vm4, %v1940_v21, %v1942_v2 }
 0x1d0   : > { %11311 = vmatmul.msk.f32.gmra.mxu0 %vm444_vm1, %v2208_v47  ;;  %v13393_v23 = vsel %vm1482_vm5, %v1520_v0, %v1522_v11  ;;  %v13435_v14 = vsel %vm1482_vm5, %v1522_v11, %v1524_v31 }
 0x1d1   : > { %11280 = vmatmul.msk.f32.gmra.mxu3 %vm444_vm1, %v1941_v29 }
 0x1d2   : > { %v1778_v49 = vpop.f32.mrf.mxu2 }
 0x1d3   : > { %v1871_v54 = vadd.f32 %v1778_v49, %v1718_v28  ;;  %v1628_v55 = vpop.f32.mrf.mxu1  ;;  %v2212_v49 = vsel %vm2173_vm6, %v2209_v57, %v2211_v48 }
 0x1d4   : > { %v2050_v37 = vpop.f32.mrf.mxu3  ;;  %v1719_v0 = vadd.f32 %v1628_v55, %v12952_v34  ;;  %v1944_v34 = vrot.slane %v13425_v6, 5 }
 0x1d5   : > { %v2140_v25 = vadd.f32 %v2047_v43, %v1871_v54  ;;  %v2319_v27 = vpop.f32.mrf.mxu0 }
 0x1d6   : > { %11216 = vmatmul.msk.f32.gmra.mxu1 %vm444_vm1, %v13321_v18  ;;  %v1945_v1 = vsel %vm1904_vm4, %v1942_v2, %v1944_v34  ;;  %v2473_v2 = vld [vmem:[%s17620_s3 + $0x8] sm:$0xff] }
 0x1d7   : > { %v2409_v26 = vadd.f32 %v2316_v42, %v2140_v25  ;;  %11248 = vmatmul.msk.f32.gmra.mxu2 %vm444_vm1, %v13393_v23 }
 0x1d8   : > { %11312 = vmatmul.msk.f32.gmra.mxu0 %vm444_vm1, %v2210_v41 }
 0x1d9   : > { %v2441_v18 = vmul.f32 %v13398_v60, %v2409_v26  ;;  %11281 = vmatmul.msk.f32.gmra.mxu3 %vm444_vm1, %v1943_v19  ;;  %v13457_v19 = vld [vmem:[%s12483_s14 + $0xc8] sm:$0xff] }
 0x1da   : > { %v1781_v56 = vpop.f32.mrf.mxu2  ;;  %v1946_v26 = vrot.slane %v13457_v19, 5 }
 0x1db   : > { %v2503_v4 = vand.u32 2147483647, %v2441_v18  ;;  %vm2596_vm8 = vcmp.gt.f32.partialorder %v2441_v18, 0.0  ;;  %vm2658_vm9 = vcmp.lt.f32.partialorder %v2441_v18, 0.0  ;;  %v1872_v21 = vadd.f32 %v1781_v56, %v1719_v0  ;;  %v1631_v22 = vpop.f32.mrf.mxu1 }
 0x1dc   : > { %v2627_v51 = vsel %vm2596_vm8, 1.0, %v12417_v12  ;;  %v2689_v43 = vsel %vm2658_vm9, 1.0, %v12417_v12  ;;  %v2053_v42 = vpop.f32.mrf.mxu3  ;;  %v1720_v25 = vadd.f32 %v1631_v22, %v12964_v50 }
 0x1dd   : > { %v2534_v47 = vsub.f32 %v2503_v4, %v2472_v7  ;;  %v2141_v29 = vadd.f32 %v2050_v37, %v1872_v21  ;;  %v2322_v28 = vpop.f32.mrf.mxu0  ;;  %v2720_v54 = vsub.f32 %v2627_v51, %v2689_v43  ;;  %v1526_v37 = vrot.slane %v13425_v6, 4 }
 0x1de   : > { %11217 = vmatmul.msk.f32.gmra.mxu1 %vm444_vm1, %v13356_v10  ;;  %v2213_v10 = vrot.slane %v13425_v6, 6 }
 0x1df   : > { %v2565_v11 = vmax.f32 %v2534_v47, 0.0  ;;  %v2410_v55 = vadd.f32 %v2319_v27, %v2141_v29  ;;  %11249 = vmatmul.msk.f32.gmra.mxu2 %vm444_vm1, %v13435_v14  ;;  %v13464_v6 = vsel %vm1482_vm5, %v1524_v31, %v1526_v37  ;;  %v1947_v47 = vsel %vm1904_vm4, %v1944_v34, %v1946_v26  ;;  %v2474_v34 = vld [vmem:[%s17620_s3 + $0x10] sm:$0xff] }
 0x1e0   : > { %11313 = vmatmul.msk.f32.gmra.mxu0 %vm444_vm1, %v2212_v49  ;;  %v2214_v43 = vsel %vm2173_vm6, %v2211_v48, %v2213_v10  ;;  %v1528_v31 = vrot.slane %v13457_v19, 4 }
 0x1e1   : > { %v2751_v57 = vmul.f32 %v2720_v54, %v2565_v11  ;;  %v2442_v41 = vmul.f32 %v13398_v60, %v2410_v55  ;;  %11282 = vmatmul.msk.f32.gmra.mxu3 %vm444_vm1, %v1945_v1  ;;  %v13482_v54 = vld [vmem:[%s12483_s14 + $0xd0] sm:$0xff] }
 0x1e2   : > { %v1784_v27 = vpop.f32.mrf.mxu2  ;;  %v1948_v55 = vrot.slane %v13482_v54, 5 }
 0x1e3   : > { %2782 = vst.msk [vmem:[#allocation2 + $0x28] sm:$0xff] %vm267_vm7, %v2751_v57  ;;  %v2504_v0 = vand.u32 2147483647, %v2442_v41  ;;  %vm2597_vm10 = vcmp.gt.f32.partialorder %v2442_v41, 0.0  ;;  %vm2659_vm11 = vcmp.lt.f32.partialorder %v2442_v41, 0.0  ;;  %v1873_v50 = vadd.f32 %v1784_v27, %v1720_v25  ;;  %v1634_v18 = vpop.f32.mrf.mxu1 }
 0x1e4   : > { %v2628_v7 = vsel %vm2597_vm10, 1.0, %v12417_v12  ;;  %v2690_v56 = vsel %vm2659_vm11, 1.0, %v12417_v12  ;;  %v2056_v4 = vpop.f32.mrf.mxu3  ;;  %v1721_v11 = vadd.f32 %v1634_v18, %v12976_v58  ;;  %v13489_v27 = vsel %vm1482_vm5, %v1526_v37, %v1528_v31 }
 0x1e5   : > { %v2535_v21 = vsub.f32 %v2504_v0, %v2473_v2  ;;  %v2142_v22 = vadd.f32 %v2053_v42, %v1873_v50  ;;  %v2325_v51 = vpop.f32.mrf.mxu0  ;;  %v2721_v49 = vsub.f32 %v2628_v7, %v2690_v56  ;;  %v1949_v56 = vsel %vm1904_vm4, %v1946_v26, %v1948_v55  ;;  %v2475_v26 = vld [vmem:[%s17620_s3 + $0x18] sm:$0xff] }
 0x1e6   : > { %11218 = vmatmul.msk.f32.gmra.mxu1 %vm444_vm1, %v13393_v23  ;;  %v2215_v23 = vrot.slane %v13457_v19, 6  ;;  %v1530_v37 = vrot.slane %v13482_v54, 4 }
 0x1e7   : > { %v2566_v29 = vmax.f32 %v2535_v21, 0.0  ;;  %v2411_v1 = vadd.f32 %v2322_v28, %v2142_v22  ;;  %11250 = vmatmul.msk.f32.gmra.mxu2 %vm444_vm1, %v13464_v6 }
 0x1e8   : > { %11314 = vmatmul.msk.f32.gmra.mxu0 %vm444_vm1, %v2214_v43  ;;  %v2216_v7 = vsel %vm2173_vm6, %v2213_v10, %v2215_v23 }
 0x1e9   : > { %v2752_v42 = vmul.f32 %v2721_v49, %v2566_v29  ;;  %v2443_v48 = vmul.f32 %v13398_v60, %v2411_v1  ;;  %11283 = vmatmul.msk.f32.gmra.mxu3 %vm444_vm1, %v1947_v47  ;;  %v13507_v29 = vld [vmem:[%s12483_s14 + $0xd8] sm:$0xff] }
 0x1ea   : > { %v1787_v28 = vpop.f32.mrf.mxu2  ;;  %v1950_v49 = vrot.slane %v13507_v29, 5 }
 0x1eb   : > { %2783 = vst.msk [vmem:[#allocation2 + $0x30] sm:$0xff] %vm267_vm7, %v2752_v42  ;;  %v2505_v57 = vand.u32 2147483647, %v2443_v48  ;;  %vm2598_vm12 = vcmp.gt.f32.partialorder %v2443_v48, 0.0  ;;  %vm2660_vm13 = vcmp.lt.f32.partialorder %v2443_v48, 0.0  ;;  %v1874_v58 = vadd.f32 %v1787_v28, %v1721_v11  ;;  %v1637_v25 = vpop.f32.mrf.mxu1 }
 0x1ec   : > { %v2629_v41 = vsel %vm2598_vm12, 1.0, %v12417_v12  ;;  %v2691_v2 = vsel %vm2660_vm13, 1.0, %v12417_v12  ;;  %v2059_v19 = vpop.f32.mrf.mxu3  ;;  %v1722_v47 = vadd.f32 %v1637_v25, %v12988_v9 }
 0x1ed   : > { %v2536_v0 = vsub.f32 %v2505_v57, %v2474_v34  ;;  %v2143_v50 = vadd.f32 %v2056_v4, %v1874_v58  ;;  %v2328_v18 = vpop.f32.mrf.mxu0  ;;  %v2722_v22 = vsub.f32 %v2629_v41, %v2691_v2  ;;  %v13514_v34 = vsel %vm1482_vm5, %v1528_v31, %v1530_v37 }
 0x1ee   : > { %11219 = vmatmul.msk.f32.gmra.mxu1 %vm444_vm1, %v13435_v14  ;;  %v2217_v14 = vrot.slane %v13482_v54, 6  ;;  %v1951_v41 = vsel %vm1904_vm4, %v1948_v55, %v1950_v49  ;;  %v1532_v31 = vrot.slane %v13507_v29, 4  ;;  %v2476_v55 = vld [vmem:[%s17620_s3 + $0x20] sm:$0xff] }
 0x1ef   : > { %v2567_v21 = vmax.f32 %v2536_v0, 0.0  ;;  %v2412_v43 = vadd.f32 %v2325_v51, %v2143_v50  ;;  %11251 = vmatmul.msk.f32.gmra.mxu2 %vm444_vm1, %v13489_v27 }
 0x1f0   : > { %11315 = vmatmul.msk.f32.gmra.mxu0 %vm444_vm1, %v2216_v7  ;;  %v2218_v25 = vsel %vm2173_vm6, %v2215_v23, %v2217_v14 }
 0x1f1   : > { %v2753_v4 = vmul.f32 %v2722_v22, %v2567_v21  ;;  %v2444_v10 = vmul.f32 %v13398_v60, %v2412_v43  ;;  %11284 = vmatmul.msk.f32.gmra.mxu3 %vm444_vm1, %v1949_v56  ;;  %v13532_v56 = vld [vmem:[%s12483_s14 + $0xe0] sm:$0xff] }
 0x1f2   : > { %v1790_v51 = vpop.f32.mrf.mxu2  ;;  %v1952_v21 = vrot.slane %v13532_v56, 5 }
 0x1f3   : > { %2784 = vst.msk [vmem:[#allocation2 + $0x38] sm:$0xff] %vm267_vm7, %v2753_v4  ;;  %v2506_v1 = vand.u32 2147483647, %v2444_v10  ;;  %vm2599_vm14 = vcmp.gt.f32.partialorder %v2444_v10, 0.0  ;;  %vm2661_vm15 = vcmp.lt.f32.partialorder %v2444_v10, 0.0  ;;  %v1875_v9 = vadd.f32 %v1790_v51, %v1722_v47  ;;  %v1640_v42 = vpop.f32.mrf.mxu1 }
 0x1f4   : > { %v2630_v11 = vsel %vm2599_vm14, 1.0, %v12417_v12  ;;  %v2692_v48 = vsel %vm2661_vm15, 1.0, %v12417_v12  ;;  %v2062_v28 = vpop.f32.mrf.mxu3  ;;  %v1723_v7 = vadd.f32 %v1640_v42, %v13000_v30  ;;  %v13539_v10 = vsel %vm1482_vm5, %v1530_v37, %v1532_v31 }
 0x1f5   : > { %v2537_v54 = vsub.f32 %v2506_v1, %v2475_v26  ;;  %v2144_v57 = vadd.f32 %v2059_v19, %v1875_v9  ;;  %v2331_v58 = vpop.f32.mrf.mxu0  ;;  %v2723_v0 = vsub.f32 %v2630_v11, %v2692_v48  ;;  %v1953_v42 = vsel %vm1904_vm4, %v1950_v49, %v1952_v21  ;;  %v2477_v49 = vld [vmem:[%s17620_s3 + $0x28] sm:$0xff] }
 0x1f6   : > { %11220 = vmatmul.msk.f32.gmra.mxu1 %vm444_vm1, %v13464_v6  ;;  %v2219_v6 = vrot.slane %v13507_v29, 6  ;;  %v1534_v37 = vrot.slane %v13532_v56, 4 }
 0x1f7   : > { %v2568_v2 = vmax.f32 %v2537_v54, 0.0  ;;  %v2413_v50 = vadd.f32 %v2328_v18, %v2144_v57  ;;  %11252 = vmatmul.msk.f32.gmra.mxu2 %vm444_vm1, %v13514_v34 }
 0x1f8   : > { %11316 = vmatmul.msk.f32.gmra.mxu0 %vm444_vm1, %v2218_v25  ;;  %v2220_v9 = vsel %vm2173_vm6, %v2217_v14, %v2219_v6  ;;  %v13557_v25 = vld [vmem:[%s12483_s14 + $0xe8] sm:$0xff] }
 0x1f9   : > { %v2754_v19 = vmul.f32 %v2723_v0, %v2568_v2  ;;  %v2445_v23 = vmul.f32 %v13398_v60, %v2413_v50  ;;  %11285 = vmatmul.msk.f32.gmra.mxu3 %vm444_vm1, %v1951_v41  ;;  %v1954_v41 = vrot.slane %v13557_v25, 5 }
 0x1fa   : > { %v1793_v18 = vpop.f32.mrf.mxu2 }
 0x1fb   : > { %2785 = vst.msk [vmem:[#allocation2 + $0x40] sm:$0xff] %vm267_vm7, %v2754_v19  ;;  %v2507_v22 = vand.u32 2147483647, %v2445_v23  ;;  %vm2600_vm8 = vcmp.gt.f32.partialorder %v2445_v23, 0.0  ;;  %vm2662_vm9 = vcmp.lt.f32.partialorder %v2445_v23, 0.0  ;;  %v1876_v30 = vadd.f32 %v1793_v18, %v1723_v7  ;;  %v1643_v43 = vpop.f32.mrf.mxu1 }
 0x1fc   : > { %v2631_v4 = vsel %vm2600_vm8, 1.0, %v12417_v12  ;;  %v2693_v47 = vsel %vm2662_vm9, 1.0, %v12417_v12  ;;  %v2065_v26 = vpop.f32.mrf.mxu3  ;;  %v1724_v57 = vadd.f32 %v1643_v43, %v13012_v52  ;;  %v13564_v7 = vsel %vm1482_vm5, %v1532_v31, %v1534_v37 }
 0x1fd   : > { %v2538_v51 = vsub.f32 %v2507_v22, %v2476_v55  ;;  %v2145_v29 = vadd.f32 %v2062_v28, %v1876_v30  ;;  %v2334_v1 = vpop.f32.mrf.mxu0  ;;  %v2724_v48 = vsub.f32 %v2631_v4, %v2693_v47  ;;  %v1955_v30 = vsel %vm1904_vm4, %v1952_v21, %v1954_v41  ;;  %v2478_v21 = vld [vmem:[%s17620_s3 + $0x30] sm:$0xff] }
 0x1fe   : > { %11221 = vmatmul.msk.f32.gmra.mxu1 %vm444_vm1, %v13489_v27  ;;  %v2221_v27 = vrot.slane %v13532_v56, 6  ;;  %v1536_v31 = vrot.slane %v13557_v25, 4 }
 0x1ff   : > { %v2569_v11 = vmax.f32 %v2538_v51, 0.0  ;;  %v2414_v54 = vadd.f32 %v2331_v58, %v2145_v29  ;;  %11253 = vmatmul.msk.f32.gmra.mxu2 %vm444_vm1, %v13539_v10 }
 0x200   : > { %11317 = vmatmul.msk.f32.gmra.mxu0 %vm444_vm1, %v2220_v9  ;;  %v2222_v22 = vsel %vm2173_vm6, %v2219_v6, %v2221_v27 }
 0x201   : > { %v2755_v28 = vmul.f32 %v2724_v48, %v2569_v11  ;;  %v2446_v14 = vmul.f32 %v13398_v60, %v2414_v54  ;;  %11286 = vmatmul.msk.f32.gmra.mxu3 %vm444_vm1, %v1953_v42 }
 0x202   : > { %v1796_v58 = vpop.f32.mrf.mxu2 }
 0x203   : > { %2786 = vst.msk [vmem:[#allocation2 + $0x48] sm:$0xff] %vm267_vm7, %v2755_v28  ;;  %v2508_v2 = vand.u32 2147483647, %v2446_v14  ;;  %vm2601_vm10 = vcmp.gt.f32.partialorder %v2446_v14, 0.0  ;;  %vm2663_vm11 = vcmp.lt.f32.partialorder %v2446_v14, 0.0  ;;  %v1877_v52 = vadd.f32 %v1796_v58, %v1724_v57  ;;  %v1646_v0 = vpop.f32.mrf.mxu1 }
 0x204   : > { %v2632_v50 = vsel %vm2601_vm10, 1.0, %v12417_v12  ;;  %v2694_v19 = vsel %vm2663_vm11, 1.0, %v12417_v12  ;;  %v2068_v23 = vpop.f32.mrf.mxu3  ;;  %v1725_v51 = vadd.f32 %v1646_v0, %v13024_v20  ;;  %v13589_v28 = vsel %vm1482_vm5, %v1534_v37, %v1536_v31 }
 0x205   : > { %v2539_v55 = vsub.f32 %v2508_v2, %v2477_v49  ;;  %v2146_v18 = vadd.f32 %v2065_v26, %v1877_v52  ;;  %v2337_v56 = vpop.f32.mrf.mxu0  ;;  %v2725_v4 = vsub.f32 %v2632_v50, %v2694_v19 }
 0x206   : > { %11222 = vmatmul.msk.f32.gmra.mxu1 %vm444_vm1, %v13514_v34  ;;  %v2223_v34 = vrot.slane %v13557_v25, 6 }
 0x207   : > { %v2570_v43 = vmax.f32 %v2539_v55, 0.0  ;;  %v2415_v47 = vadd.f32 %v2334_v1, %v2146_v18  ;;  %11254 = vmatmul.msk.f32.gmra.mxu2 %vm444_vm1, %v13564_v7  ;;  %v13582_v1 = vld [vmem:[%s12483_s14 + $0xf0] sm:$0xff]  ;;  %v13607_v18 = vld [vmem:[%s12483_s14 + $0xf8] sm:$0xff] }
 0x208   : > { %11318 = vmatmul.msk.f32.gmra.mxu0 %vm444_vm1, %v2222_v22  ;;  %v1956_v9 = vrot.slane %v13582_v1, 5  ;;  %v2224_v25 = vsel %vm2173_vm6, %v2221_v27, %v2223_v34  ;;  %v1538_v37 = vrot.slane %v13582_v1, 4 }
 0x209   : > { %v2756_v26 = vmul.f32 %v2725_v4, %v2570_v43  ;;  %v2447_v6 = vmul.f32 %v13398_v60, %v2415_v47  ;;  %11287 = vmatmul.msk.f32.gmra.mxu3 %vm444_vm1, %v1955_v30 }
 0x20a   : > { %v1799_v29 = vpop.f32.mrf.mxu2  ;;  %v1957_v2 = vsel %vm1904_vm4, %v1954_v41, %v1956_v9  ;;  %v2479_v41 = vld [vmem:[%s17620_s3 + $0x38] sm:$0xff]  ;;  %v13614_v47 = vsel %vm1482_vm5, %v1536_v31, %v1538_v37  ;;  %v1540_v31 = vrot.slane %v13607_v18, 4 }
 0x20b   : > { %2787 = vst.msk [vmem:[#allocation2 + $0x50] sm:$0xff] %vm267_vm7, %v2756_v26  ;;  %v2509_v42 = vand.u32 2147483647, %v2447_v6  ;;  %vm2602_vm12 = vcmp.gt.f32.partialorder %v2447_v6, 0.0  ;;  %vm2664_vm13 = vcmp.lt.f32.partialorder %v2447_v6, 0.0  ;;  %v1878_v20 = vadd.f32 %v1799_v29, %v1725_v51  ;;  %v1649_v11 = vpop.f32.mrf.mxu1 }
 0x20c   : > { %v2633_v48 = vsel %vm2602_vm12, 1.0, %v12417_v12  ;;  %v2695_v54 = vsel %vm2664_vm13, 1.0, %v12417_v12  ;;  %v2071_v57 = vpop.f32.mrf.mxu3 }
 0x20d   : > { %v2540_v14 = vsub.f32 %v2509_v42, %v2478_v21  ;;  %v2147_v49 = vadd.f32 %v2068_v23, %v1878_v20  ;;  %v2340_v58 = vpop.f32.mrf.mxu0  ;;  %v2726_v0 = vsub.f32 %v2633_v48, %v2695_v54  ;;  %v1726_v23 = vadd.f32 %v1649_v11, %v13036_v8 }
 0x20e   : > { %11223 = vmatmul.msk.f32.gmra.mxu1 %vm444_vm1, %v13539_v10  ;;  %v2225_v10 = vrot.slane %v13582_v1, 6 }
 0x20f   : > { %v2571_v52 = vmax.f32 %v2540_v14, 0.0  ;;  %v2416_v50 = vadd.f32 %v2337_v56, %v2147_v49  ;;  %11255 = vmatmul.msk.f32.gmra.mxu2 %vm444_vm1, %v13589_v28  ;;  %v1958_v56 = vrot.slane %v13607_v18, 5  ;;  %v13632_v14 = vld [vmem:[%s12483_s14 + $0x100] sm:$0xff] }
 0x210   : > { %11319 = vmatmul.msk.f32.gmra.mxu0 %vm444_vm1, %v2224_v25  ;;  %v2226_v29 = vsel %vm2173_vm6, %v2223_v34, %v2225_v10  ;;  %v1960_v49 = vrot.slane %v13632_v14, 5 }
 0x211   : > { %v2757_v19 = vmul.f32 %v2726_v0, %v2571_v52  ;;  %v2448_v27 = vmul.f32 %v13398_v60, %v2416_v50  ;;  %11288 = vmatmul.msk.f32.gmra.mxu3 %vm444_vm1, %v1957_v2  ;;  %v1959_v1 = vsel %vm1904_vm4, %v1956_v9, %v1958_v56  ;;  %v2480_v9 = vld [vmem:[%s17620_s3 + $0x40] sm:$0xff]  ;;  %v13639_v0 = vsel %vm1482_vm5, %v1538_v37, %v1540_v31 }
 0x212   : > { %v1802_v55 = vpop.f32.mrf.mxu2  ;;  %v1542_v37 = vrot.slane %v13632_v14, 4 }
 0x213   : > { %2788 = vst.msk [vmem:[#allocation2 + $0x58] sm:$0xff] %vm267_vm7, %v2757_v19  ;;  %v2510_v22 = vand.u32 2147483647, %v2448_v27  ;;  %vm2603_vm14 = vcmp.gt.f32.partialorder %v2448_v27, 0.0  ;;  %vm2665_vm15 = vcmp.lt.f32.partialorder %v2448_v27, 0.0  ;;  %v1879_v8 = vadd.f32 %v1802_v55, %v1726_v23  ;;  %v1652_v30 = vpop.f32.mrf.mxu1 }
 0x214   : > { %v2634_v43 = vsel %vm2603_vm14, 1.0, %v12417_v12  ;;  %v2696_v4 = vsel %vm2665_vm15, 1.0, %v12417_v12  ;;  %v2074_v26 = vpop.f32.mrf.mxu3  ;;  %v1727_v54 = vadd.f32 %v1652_v30, %v13048_v33  ;;  %v1961_v55 = vsel %vm1904_vm4, %v1958_v56, %v1960_v49  ;;  %v2481_v56 = vld [vmem:[%s17620_s3 + $0x48] sm:$0xff] }
 0x215   : > { %v2541_v51 = vsub.f32 %v2510_v22, %v2479_v41  ;;  %v2148_v6 = vadd.f32 %v2071_v57, %v1879_v8  ;;  %v2343_v21 = vpop.f32.mrf.mxu0  ;;  %v2727_v20 = vsub.f32 %v2634_v43, %v2696_v4 }
 0x216   : > { %11224 = vmatmul.msk.f32.gmra.mxu1 %vm444_vm1, %v13564_v7  ;;  %v2227_v7 = vrot.slane %v13607_v18, 6 }
 0x217   : > { %v2572_v42 = vmax.f32 %v2541_v51, 0.0  ;;  %v2417_v11 = vadd.f32 %v2340_v58, %v2148_v6  ;;  %11256 = vmatmul.msk.f32.gmra.mxu2 %vm444_vm1, %v13614_v47 }
 0x218   : > { %11320 = vmatmul.msk.f32.gmra.mxu0 %vm444_vm1, %v2226_v29  ;;  %v2228_v41 = vsel %vm2173_vm6, %v2225_v10, %v2227_v7 }
 0x219   : > { %v2758_v48 = vmul.f32 %v2727_v20, %v2572_v42  ;;  %v2449_v34 = vmul.f32 %v13398_v60, %v2417_v11  ;;  %11289 = vmatmul.msk.f32.gmra.mxu3 %vm444_vm1, %v1959_v1  ;;  %v13664_v42 = vsel %vm1482_vm5, %v1540_v31, %v1542_v37 }
 0x21a   : > { %v1805_v57 = vpop.f32.mrf.mxu2 }
 0x21b   : > { %2789 = vst.msk [vmem:[#allocation2 + $0x60] sm:$0xff] %vm267_vm7, %v2758_v48  ;;  %v2511_v58 = vand.u32 2147483647, %v2449_v34  ;;  %vm2604_vm8 = vcmp.gt.f32.partialorder %v2449_v34, 0.0  ;;  %vm2666_vm9 = vcmp.lt.f32.partialorder %v2449_v34, 0.0  ;;  %v1880_v33 = vadd.f32 %v1805_v57, %v1727_v54  ;;  %v1655_v25 = vpop.f32.mrf.mxu1 }
 0x21c   : > { %v2635_v2 = vsel %vm2604_vm8, 1.0, %v12417_v12  ;;  %v2697_v52 = vsel %vm2666_vm9, 1.0, %v12417_v12  ;;  %v2077_v50 = vpop.f32.mrf.mxu3  ;;  %v1728_v43 = vadd.f32 %v1655_v25, %v13060_v44 }
 0x21d   : > { %v2542_v19 = vsub.f32 %v2511_v58, %v2480_v9  ;;  %v2149_v23 = vadd.f32 %v2074_v26, %v1880_v33  ;;  %v2346_v27 = vpop.f32.mrf.mxu0  ;;  %v2728_v22 = vsub.f32 %v2635_v2, %v2697_v52  ;;  %v13657_v26 = vld [vmem:[%s12483_s14 + $0x108] sm:$0xff]  ;;  %v2482_v2 = vld [vmem:[%s17620_s3 + $0x50] sm:$0xff] }
 0x21e   : > { %11225 = vmatmul.msk.f32.gmra.mxu1 %vm444_vm1, %v13589_v28  ;;  %v2229_v28 = vrot.slane %v13632_v14, 6  ;;  %v1962_v51 = vrot.slane %v13657_v26, 5  ;;  %v1544_v31 = vrot.slane %v13657_v26, 4 }
 0x21f   : > { %v2573_v18 = vmax.f32 %v2542_v19, 0.0  ;;  %v2418_v8 = vadd.f32 %v2343_v21, %v2149_v23  ;;  %11257 = vmatmul.msk.f32.gmra.mxu2 %vm444_vm1, %v13639_v0 }
 0x220   : > { %11321 = vmatmul.msk.f32.gmra.mxu0 %vm444_vm1, %v2228_v41  ;;  %v2230_v34 = vsel %vm2173_vm6, %v2227_v7, %v2229_v28  ;;  %v1963_v9 = vsel %vm1904_vm4, %v1960_v49, %v1962_v51  ;;  %v2231_v49 = vrot.slane %v13657_v26, 6 }
 0x221   : > { %v2759_v30 = vmul.f32 %v2728_v22, %v2573_v18  ;;  %v2450_v10 = vmul.f32 %v13398_v60, %v2418_v8  ;;  %11290 = vmatmul.msk.f32.gmra.mxu3 %vm444_vm1, %v1961_v55  ;;  %v13689_v55 = vsel %vm1482_vm5, %v1542_v37, %v1544_v31 }
 0x222   : > { %v1808_v4 = vpop.f32.mrf.mxu2 }
 0x223   : > { %2790 = vst.msk [vmem:[#allocation2 + $0x68] sm:$0xff] %vm267_vm7, %v2759_v30  ;;  %v2512_v6 = vand.u32 2147483647, %v2450_v10  ;;  %vm2605_vm10 = vcmp.gt.f32.partialorder %v2450_v10, 0.0  ;;  %vm2667_vm11 = vcmp.lt.f32.partialorder %v2450_v10, 0.0  ;;  %v1881_v44 = vadd.f32 %v1808_v4, %v1728_v43  ;;  %v1658_v21 = vpop.f32.mrf.mxu1 }
 0x224   : > { %v2636_v29 = vsel %vm2605_vm10, 1.0, %v12417_v12  ;;  %v2698_v1 = vsel %vm2667_vm11, 1.0, %v12417_v12  ;;  %v2080_v20 = vpop.f32.mrf.mxu3  ;;  %v1729_v25 = vadd.f32 %v1658_v21, %v13072_v38  ;;  %v2232_v43 = vsel %vm2173_vm6, %v2229_v28, %v2231_v49  ;;  %v2483_v21 = vld [vmem:[%s17620_s3 + $0x58] sm:$0xff] }
 0x225   : > { %v2543_v11 = vsub.f32 %v2512_v6, %v2481_v56  ;;  %v2150_v48 = vadd.f32 %v2077_v50, %v1881_v44  ;;  %v2349_v54 = vpop.f32.mrf.mxu0  ;;  %v2729_v14 = vsub.f32 %v2636_v29, %v2698_v1 }
 0x226   : > { %11226 = vmatmul.msk.f32.gmra.mxu1 %vm444_vm1, %v13614_v47  ;;  %v13678_v47 = vld [vmem:[%s12483_s14 + $0x110] sm:$0xff] }
 0x227   : > { %v2574_v57 = vmax.f32 %v2543_v11, 0.0  ;;  %v2419_v58 = vadd.f32 %v2346_v27, %v2150_v48  ;;  %11258 = vmatmul.msk.f32.gmra.mxu2 %vm444_vm1, %v13664_v42  ;;  %v1964_v50 = vrot.slane %v13678_v47, 5  ;;  %v1753_v37 = vrot.slane %v13678_v47, 4 }
 0x228   : > { %11322 = vmatmul.msk.f32.gmra.mxu0 %vm444_vm1, %v2230_v34 }
 0x229   : > { %v2760_v33 = vmul.f32 %v2729_v14, %v2574_v57  ;;  %v2451_v7 = vmul.f32 %v13398_v60, %v2419_v58  ;;  %11291 = vmatmul.msk.f32.gmra.mxu3 %vm444_vm1, %v1963_v9  ;;  %v1965_v10 = vsel %vm1904_vm4, %v1962_v51, %v1964_v50  ;;  %v2233_v51 = vrot.slane %v13678_v47, 6 }
 0x22a   : > { %v1811_v52 = vpop.f32.mrf.mxu2  ;;  %v1754_v34 = vsel %vm1482_vm5, %v1544_v31, %v1753_v37 }
 0x22b   : > { %2791 = vst.msk [vmem:[#allocation2 + $0x70] sm:$0xff] %vm267_vm7, %v2760_v33  ;;  %v2513_v19 = vand.u32 2147483647, %v2451_v7  ;;  %vm2606_vm12 = vcmp.gt.f32.partialorder %v2451_v7, 0.0  ;;  %vm2668_vm13 = vcmp.lt.f32.partialorder %v2451_v7, 0.0  ;;  %v1882_v38 = vadd.f32 %v1811_v52, %v1729_v25  ;;  %v1661_v23 = vpop.f32.mrf.mxu1 }
 0x22c   : > { %v2637_v27 = vsel %vm2606_vm12, 1.0, %v12417_v12  ;;  %v2699_v41 = vsel %vm2668_vm13, 1.0, %v12417_v12  ;;  %v2083_v18 = vpop.f32.mrf.mxu3  ;;  %v1730_v44 = vadd.f32 %v1661_v23, %v13083_v13  ;;  %v2234_v33 = vsel %vm2173_vm6, %v2231_v49, %v2233_v51 }
 0x22d   : > { %v2544_v22 = vsub.f32 %v2513_v19, %v2482_v2  ;;  %v2151_v8 = vadd.f32 %v2080_v20, %v1882_v38  ;;  %v2352_v30 = vpop.f32.mrf.mxu0  ;;  %v2730_v4 = vsub.f32 %v2637_v27, %v2699_v41 }
 0x22e   : > { %11227 = vmatmul.msk.f32.gmra.mxu1 %vm444_vm1, %v13639_v0  ;;  %v344_v0 = vld [vmem:[%s12483_s14 + $0x118] sm:$0x3f] }
 0x22f   : > { %v2575_v56 = vmax.f32 %v2544_v22, 0.0  ;;  %v2420_v26 = vadd.f32 %v2349_v54, %v2151_v8  ;;  %11259 = vmatmul.msk.f32.gmra.mxu2 %vm444_vm1, %v13689_v55  ;;  %v1966_v1 = vrot.slane %v344_v0, 5  ;;  %v1755_v52 = vrot.slane %v344_v0, 4 }
 0x230   : > { %11323 = vmatmul.msk.f32.gmra.mxu0 %vm444_vm1, %v2232_v43  ;;  %v2235_v49 = vrot.slane %v344_v0, 6  ;;  %v2485_v0 = vld [vmem:[%s17620_s3 + $0x68] sm:$0xff] }
 0x231   : > { %v2761_v6 = vmul.f32 %v2730_v4, %v2575_v56  ;;  %v2452_v28 = vmul.f32 %v13398_v60, %v2420_v26  ;;  %11292 = vmatmul.msk.f32.gmra.mxu3 %vm444_vm1, %v1965_v10  ;;  %v1967_v25 = vsel %vm1904_vm4, %v1964_v50, %v1966_v1  ;;  %v1756_v22 = vsel %vm1482_vm5, %v1753_v37, %v1755_v52 }
 0x232   : > { %v1814_v29 = vpop.f32.mrf.mxu2  ;;  %v2236_v56 = vsel %vm2173_vm6, %v2233_v51, %v2235_v49 }
 0x233   : > { %2792 = vst.msk [vmem:[#allocation2 + $0x78] sm:$0xff] %vm267_vm7, %v2761_v6  ;;  %v2514_v20 = vand.u32 2147483647, %v2452_v28  ;;  %vm2607_vm14 = vcmp.gt.f32.partialorder %v2452_v28, 0.0  ;;  %vm2669_vm15 = vcmp.lt.f32.partialorder %v2452_v28, 0.0  ;;  %v1883_v11 = vadd.f32 %v1814_v29, %v1730_v44  ;;  %v1664_v13 = vpop.f32.mrf.mxu1 }
 0x234   : > { %v2638_v48 = vsel %vm2607_vm14, 1.0, %v12417_v12  ;;  %v2700_v54 = vsel %vm2669_vm15, 1.0, %v12417_v12  ;;  %v2086_v9 = vpop.f32.mrf.mxu3  ;;  %v1731_v19 = vadd.f32 %v1664_v13, %v13095_v16 }
 0x235   : > { %v2545_v57 = vsub.f32 %v2514_v20, %v2483_v21  ;;  %v2152_v14 = vadd.f32 %v2083_v18, %v1883_v11  ;;  %v2355_v58 = vpop.f32.mrf.mxu0  ;;  %v2731_v47 = vsub.f32 %v2638_v48, %v2700_v54 }
 0x236   : > { %11228 = vmatmul.msk.f32.gmra.mxu1 %vm444_vm1, %v13664_v42  ;;  %v2484_v42 = vld [vmem:[%s17620_s3 + $0x60] sm:$0xff] }
 0x237   : > { %v2576_v7 = vmax.f32 %v2545_v57, 0.0  ;;  %v2421_v2 = vadd.f32 %v2352_v30, %v2152_v14  ;;  %11260 = vmatmul.msk.f32.gmra.mxu2 %vm444_vm1, %v1754_v34 }
 0x238   : > { %11324 = vmatmul.msk.f32.gmra.mxu0 %vm444_vm1, %v2234_v33  ;;  %v2486_v33 = vld [vmem:[%s17620_s3 + $0x70] sm:$0xff] }
 0x239   : > { %v2762_v31 = vmul.f32 %v2731_v47, %v2576_v7  ;;  %v2453_v38 = vmul.f32 %v13398_v60, %v2421_v2  ;;  %11293 = vmatmul.msk.f32.gmra.mxu3 %vm444_vm1, %v1967_v25 }
 0x23a   : > { %v1817_v50 = vpop.f32.mrf.mxu2 }
 0x23b   : > { %2793 = vst.msk [vmem:[#allocation2 + $0x80] sm:$0xff] %vm267_vm7, %v2762_v31  ;;  %v2515_v23 = vand.u32 2147483647, %v2453_v38  ;;  %vm2608_vm8 = vcmp.gt.f32.partialorder %v2453_v38, 0.0  ;;  %vm2670_vm9 = vcmp.lt.f32.partialorder %v2453_v38, 0.0  ;;  %v1884_v27 = vadd.f32 %v1817_v50, %v1731_v19  ;;  %v1667_v41 = vpop.f32.mrf.mxu1 }
 0x23c   : > { %v2639_v18 = vsel %vm2608_vm8, 1.0, %v12417_v12  ;;  %v2701_v16 = vsel %vm2670_vm9, 1.0, %v12417_v12  ;;  %v2089_v8 = vpop.f32.mrf.mxu3  ;;  %v1732_v28 = vadd.f32 %v1667_v41, %v13113_v63 }
 0x23d   : > { %v2546_v30 = vsub.f32 %v2515_v23, %v2484_v42  ;;  %v2153_v43 = vadd.f32 %v2086_v9, %v1884_v27  ;;  %v2358_v10 = vpop.f32.mrf.mxu0  ;;  %v2732_v26 = vsub.f32 %v2639_v18, %v2701_v16  ;;  %v2487_v16 = vld [vmem:[%s17620_s3 + $0x78] sm:$0xff] }
 0x23e   : > { %11229 = vmatmul.msk.f32.gmra.mxu1 %vm444_vm1, %v13689_v55 }
 0x23f   : > { %v2577_v4 = vmax.f32 %v2546_v30, 0.0  ;;  %v2422_v6 = vadd.f32 %v2355_v58, %v2153_v43  ;;  %11261 = vmatmul.msk.f32.gmra.mxu2 %vm444_vm1, %v1756_v22 }
 0x240   : > { %11325 = vmatmul.msk.f32.gmra.mxu0 %vm444_vm1, %v2236_v56 }
 0x241   : > { %v2763_v44 = vmul.f32 %v2732_v26, %v2577_v4  ;;  %v2454_v37 = vmul.f32 %v13398_v60, %v2422_v6 }
 0x242   : > { %v1820_v51 = vpop.f32.mrf.mxu2 }
 0x243   : > { %2794 = vst.msk [vmem:[#allocation2 + $0x88] sm:$0xff] %vm267_vm7, %v2763_v44  ;;  %v2516_v55 = vand.u32 2147483647, %v2454_v37  ;;  %vm2609_vm10 = vcmp.gt.f32.partialorder %v2454_v37, 0.0  ;;  %vm2671_vm11 = vcmp.lt.f32.partialorder %v2454_v37, 0.0  ;;  %v1885_v21 = vadd.f32 %v1820_v51, %v1732_v28  ;;  %v1670_v29 = vpop.f32.mrf.mxu1 }
 0x244   : > { %v2640_v1 = vsel %vm2609_vm10, 1.0, %v12417_v12  ;;  %v2702_v20 = vsel %vm2671_vm11, 1.0, %v12417_v12  ;;  %v2092_v11 = vpop.f32.mrf.mxu3  ;;  %v1733_v14 = vadd.f32 %v1670_v29, %v13127_v24 }
 0x245   : > { %v2547_v63 = vsub.f32 %v2516_v55, %v2485_v0  ;;  %v2154_v13 = vadd.f32 %v2089_v8, %v1885_v21  ;;  %v2361_v48 = vpop.f32.mrf.mxu0  ;;  %v2733_v34 = vsub.f32 %v2640_v1, %v2702_v20  ;;  %v2488_v21 = vld [vmem:[%s17620_s3 + $0x80] sm:$0xff] }
 0x247   : > { %v2578_v54 = vmax.f32 %v2547_v63, 0.0  ;;  %v2423_v9 = vadd.f32 %v2358_v10, %v2154_v13 }
 0x249   : > { %v2764_v57 = vmul.f32 %v2733_v34, %v2578_v54  ;;  %v2455_v58 = vmul.f32 %v13398_v60, %v2423_v9 }
 0x24a   : > { %v1823_v25 = vpop.f32.mrf.mxu2 }
 0x24b   : > { %2795 = vst.msk [vmem:[#allocation2 + $0x90] sm:$0xff] %vm267_vm7, %v2764_v57  ;;  %v2517_v7 = vand.u32 2147483647, %v2455_v58  ;;  %vm2610_vm12 = vcmp.gt.f32.partialorder %v2455_v58, 0.0  ;;  %vm2672_vm13 = vcmp.lt.f32.partialorder %v2455_v58, 0.0  ;;  %v1886_v47 = vadd.f32 %v1823_v25, %v1733_v14  ;;  %v1673_v2 = vpop.f32.mrf.mxu1 }
 0x24c   : > { %v2641_v52 = vsel %vm2610_vm12, 1.0, %v12417_v12  ;;  %v2703_v31 = vsel %vm2672_vm13, 1.0, %v12417_v12  ;;  %v2095_v19 = vpop.f32.mrf.mxu3  ;;  %v1734_v41 = vadd.f32 %v1673_v2, %v13140_v46 }
 0x24d   : > { %v2548_v24 = vsub.f32 %v2517_v7, %v2486_v33  ;;  %v2155_v38 = vadd.f32 %v2092_v11, %v1886_v47  ;;  %v2364_v49 = vpop.f32.mrf.mxu0  ;;  %v2734_v50 = vsub.f32 %v2641_v52, %v2703_v31  ;;  %v2489_v7 = vld [vmem:[%s17620_s3 + $0x88] sm:$0xff] }
 0x24f   : > { %v2579_v42 = vmax.f32 %v2548_v24, 0.0  ;;  %v2424_v23 = vadd.f32 %v2361_v48, %v2155_v38 }
 0x251   : > { %v2765_v27 = vmul.f32 %v2734_v50, %v2579_v42  ;;  %v2456_v18 = vmul.f32 %v13398_v60, %v2424_v23 }
 0x252   : > { %v1826_v22 = vpop.f32.mrf.mxu2 }
 0x253   : > { %2796 = vst.msk [vmem:[#allocation2 + $0x98] sm:$0xff] %vm267_vm7, %v2765_v27  ;;  %v2518_v8 = vand.u32 2147483647, %v2456_v18  ;;  %vm2611_vm14 = vcmp.gt.f32.partialorder %v2456_v18, 0.0  ;;  %vm2673_vm15 = vcmp.lt.f32.partialorder %v2456_v18, 0.0  ;;  %v1887_v30 = vadd.f32 %v1826_v22, %v1734_v41  ;;  %v1676_v43 = vpop.f32.mrf.mxu1  ;;  %v2490_v22 = vld [vmem:[%s17620_s3 + $0x90] sm:$0xff] }
 0x254   : > { %v2642_v10 = vsel %vm2611_vm14, 1.0, %v12417_v12  ;;  %v2704_v56 = vsel %vm2673_vm15, 1.0, %v12417_v12  ;;  %v2098_v4 = vpop.f32.mrf.mxu3  ;;  %v1735_v51 = vadd.f32 %v1676_v43, %v13151_v17 }
 0x255   : > { %v2549_v46 = vsub.f32 %v2518_v8, %v2487_v16  ;;  %v2156_v26 = vadd.f32 %v2095_v19, %v1887_v30  ;;  %v2367_v6 = vpop.f32.mrf.mxu0  ;;  %v2735_v28 = vsub.f32 %v2642_v10, %v2704_v56 }
 0x257   : > { %v2580_v44 = vmax.f32 %v2549_v46, 0.0  ;;  %v2425_v37 = vadd.f32 %v2364_v49, %v2156_v26 }
 0x259   : > { %v2766_v0 = vmul.f32 %v2735_v28, %v2580_v44  ;;  %v2457_v55 = vmul.f32 %v13398_v60, %v2425_v37 }
 0x25a   : > { %v1829_v29 = vpop.f32.mrf.mxu2 }
 0x25b   : > { %2797 = vst.msk [vmem:[#allocation2 + $0xa0] sm:$0xff] %vm267_vm7, %v2766_v0  ;;  %v2519_v1 = vand.u32 2147483647, %v2457_v55  ;;  %vm2612_vm8 = vcmp.gt.f32.partialorder %v2457_v55, 0.0  ;;  %vm2674_vm9 = vcmp.lt.f32.partialorder %v2457_v55, 0.0  ;;  %v1888_v20 = vadd.f32 %v1829_v29, %v1735_v51  ;;  %v1679_v11 = vpop.f32.mrf.mxu1 }
 0x25c   : > { %v2643_v63 = vsel %vm2612_vm8, 1.0, %v12417_v12  ;;  %v2705_v13 = vsel %vm2674_vm9, 1.0, %v12417_v12  ;;  %v2101_v48 = vpop.f32.mrf.mxu3  ;;  %v1736_v33 = vadd.f32 %v1679_v11, %v13162_v59 }
 0x25d   : > { %v2550_v17 = vsub.f32 %v2519_v1, %v2488_v21  ;;  %v2157_v54 = vadd.f32 %v2098_v4, %v1888_v20  ;;  %v2370_v34 = vpop.f32.mrf.mxu0  ;;  %v2736_v57 = vsub.f32 %v2643_v63, %v2705_v13  ;;  %v2491_v21 = vld [vmem:[%s17620_s3 + $0x98] sm:$0xff] }
 0x25f   : > { %v2581_v9 = vmax.f32 %v2550_v17, 0.0  ;;  %v2426_v14 = vadd.f32 %v2367_v6, %v2157_v54 }
 0x261   : > { %v2767_v58 = vmul.f32 %v2736_v57, %v2581_v9  ;;  %v2458_v25 = vmul.f32 %v13398_v60, %v2426_v14 }
 0x262   : > { %v1832_v47 = vpop.f32.mrf.mxu2 }
 0x263   : > { %2798 = vst.msk [vmem:[#allocation2 + $0xa8] sm:$0xff] %vm267_vm7, %v2767_v58  ;;  %v2520_v2 = vand.u32 2147483647, %v2458_v25  ;;  %vm2613_vm10 = vcmp.gt.f32.partialorder %v2458_v25, 0.0  ;;  %vm2675_vm11 = vcmp.lt.f32.partialorder %v2458_v25, 0.0  ;;  %v1889_v52 = vadd.f32 %v1832_v47, %v1736_v33  ;;  %v1682_v31 = vpop.f32.mrf.mxu1  ;;  %v2492_v25 = vld [vmem:[%s17620_s3 + $0xa0] sm:$0xff] }
 0x264   : > { %v2644_v19 = vsel %vm2613_vm10, 1.0, %v12417_v12  ;;  %v2706_v24 = vsel %vm2675_vm11, 1.0, %v12417_v12  ;;  %v2104_v38 = vpop.f32.mrf.mxu3  ;;  %v1737_v18 = vadd.f32 %v1682_v31, %v13173_v61 }
 0x265   : > { %v2551_v59 = vsub.f32 %v2520_v2, %v2489_v7  ;;  %v2158_v49 = vadd.f32 %v2101_v48, %v1889_v52  ;;  %v2373_v42 = vpop.f32.mrf.mxu0  ;;  %v2737_v23 = vsub.f32 %v2644_v19, %v2706_v24 }
 0x267   : > { %v2582_v50 = vmax.f32 %v2551_v59, 0.0  ;;  %v2427_v27 = vadd.f32 %v2370_v34, %v2158_v49 }
 0x269   : > { %v2768_v41 = vmul.f32 %v2737_v23, %v2582_v50  ;;  %v2459_v16 = vmul.f32 %v13398_v60, %v2427_v27 }
 0x26a   : > { %v1835_v8 = vpop.f32.mrf.mxu2 }
 0x26b   : > { %2799 = vst.msk [vmem:[#allocation2 + $0xb0] sm:$0xff] %vm267_vm7, %v2768_v41  ;;  %v2521_v30 = vand.u32 2147483647, %v2459_v16  ;;  %vm2614_vm12 = vcmp.gt.f32.partialorder %v2459_v16, 0.0  ;;  %vm2676_vm13 = vcmp.lt.f32.partialorder %v2459_v16, 0.0  ;;  %v1890_v43 = vadd.f32 %v1835_v8, %v1737_v18  ;;  %v1685_v10 = vpop.f32.mrf.mxu1  ;;  %v2493_v18 = vld [vmem:[%s17620_s3 + $0xa8] sm:$0xff] }
 0x26c   : > { %v2645_v56 = vsel %vm2614_vm12, 1.0, %v12417_v12  ;;  %v2707_v4 = vsel %vm2676_vm13, 1.0, %v12417_v12  ;;  %v2107_v46 = vpop.f32.mrf.mxu3  ;;  %v1738_v51 = vadd.f32 %v1685_v10, %v13184_v53 }
 0x26d   : > { %v2552_v61 = vsub.f32 %v2521_v30, %v2490_v22  ;;  %v2159_v26 = vadd.f32 %v2104_v38, %v1890_v43  ;;  %v2376_v6 = vpop.f32.mrf.mxu0  ;;  %v2738_v28 = vsub.f32 %v2645_v56, %v2707_v4 }
 0x26f   : > { %v2583_v44 = vmax.f32 %v2552_v61, 0.0  ;;  %v2428_v37 = vadd.f32 %v2373_v42, %v2159_v26 }
 0x271   : > { %v2769_v0 = vmul.f32 %v2738_v28, %v2583_v44  ;;  %v2460_v55 = vmul.f32 %v13398_v60, %v2428_v37 }
 0x272   : > { %v1838_v29 = vpop.f32.mrf.mxu2 }
 0x273   : > { %2800 = vst.msk [vmem:[#allocation2 + $0xb8] sm:$0xff] %vm267_vm7, %v2769_v0  ;;  %v2522_v1 = vand.u32 2147483647, %v2460_v55  ;;  %vm2615_vm14 = vcmp.gt.f32.partialorder %v2460_v55, 0.0  ;;  %vm2677_vm15 = vcmp.lt.f32.partialorder %v2460_v55, 0.0  ;;  %v1891_v20 = vadd.f32 %v1838_v29, %v1738_v51  ;;  %v1688_v11 = vpop.f32.mrf.mxu1  ;;  %v2494_v0 = vld [vmem:[%s17620_s3 + $0xb0] sm:$0xff] }
 0x274   : > { %v2646_v63 = vsel %vm2615_vm14, 1.0, %v12417_v12  ;;  %v2708_v13 = vsel %vm2677_vm15, 1.0, %v12417_v12  ;;  %v2110_v48 = vpop.f32.mrf.mxu3  ;;  %v1739_v58 = vadd.f32 %v1688_v11, %v13195_v32 }
 0x275   : > { %v2553_v53 = vsub.f32 %v2522_v1, %v2491_v21  ;;  %v2160_v17 = vadd.f32 %v2107_v46, %v1891_v20  ;;  %v2379_v54 = vpop.f32.mrf.mxu0  ;;  %v2739_v9 = vsub.f32 %v2646_v63, %v2708_v13 }
 0x277   : > { %v2584_v34 = vmax.f32 %v2553_v53, 0.0  ;;  %v2429_v57 = vadd.f32 %v2376_v6, %v2160_v17 }
 0x279   : > { %v2770_v14 = vmul.f32 %v2739_v9, %v2584_v34  ;;  %v2461_v33 = vmul.f32 %v13398_v60, %v2429_v57  ;;  %v2495_v57 = vld [vmem:[%s17620_s3 + $0xb8] sm:$0xff] }
 0x27a   : > { %v1841_v7 = vpop.f32.mrf.mxu2 }
 0x27b   : > { %2801 = vst.msk [vmem:[#allocation2 + $0xc0] sm:$0xff] %vm267_vm7, %v2770_v14  ;;  %v2523_v47 = vand.u32 2147483647, %v2461_v33  ;;  %vm2616_vm8 = vcmp.gt.f32.partialorder %v2461_v33, 0.0  ;;  %vm2678_vm9 = vcmp.lt.f32.partialorder %v2461_v33, 0.0  ;;  %v1892_v2 = vadd.f32 %v1841_v7, %v1739_v58  ;;  %v1691_v52 = vpop.f32.mrf.mxu1 }
 0x27c   : > { %v2647_v31 = vsel %vm2616_vm8, 1.0, %v12417_v12  ;;  %v2709_v19 = vsel %vm2678_vm9, 1.0, %v12417_v12  ;;  %v2113_v24 = vpop.f32.mrf.mxu3  ;;  %v1740_v27 = vadd.f32 %v1691_v52, %v13206_v39 }
 0x27d   : > { %v2554_v32 = vsub.f32 %v2523_v47, %v2492_v25  ;;  %v2161_v38 = vadd.f32 %v2110_v48, %v1892_v2  ;;  %v2382_v59 = vpop.f32.mrf.mxu0  ;;  %v2740_v42 = vsub.f32 %v2647_v31, %v2709_v19 }
 0x27f   : > { %v2585_v49 = vmax.f32 %v2554_v32, 0.0  ;;  %v2430_v50 = vadd.f32 %v2379_v54, %v2161_v38 }
 0x281   : > { %v2771_v23 = vmul.f32 %v2740_v42, %v2585_v49  ;;  %v2462_v41 = vmul.f32 %v13398_v60, %v2430_v50  ;;  %v2496_v42 = vld [vmem:[%s17620_s3 + $0xc0] sm:$0xff] }
 0x282   : > { %v1844_v16 = vpop.f32.mrf.mxu2 }
 0x283   : > { %2802 = vst.msk [vmem:[#allocation2 + $0xc8] sm:$0xff] %vm267_vm7, %v2771_v23  ;;  %v2524_v22 = vand.u32 2147483647, %v2462_v41  ;;  %vm2617_vm10 = vcmp.gt.f32.partialorder %v2462_v41, 0.0  ;;  %vm2679_vm11 = vcmp.lt.f32.partialorder %v2462_v41, 0.0  ;;  %v1893_v8 = vadd.f32 %v1844_v16, %v1740_v27  ;;  %v1694_v30 = vpop.f32.mrf.mxu1 }
 0x284   : > { %v2648_v43 = vsel %vm2617_vm10, 1.0, %v12417_v12  ;;  %v2710_v10 = vsel %vm2679_vm11, 1.0, %v12417_v12  ;;  %v2116_v56 = vpop.f32.mrf.mxu3  ;;  %v1741_v28 = vadd.f32 %v1694_v30, %v13217_v36 }
 0x285   : > { %v2555_v39 = vsub.f32 %v2524_v22, %v2493_v18  ;;  %v2162_v4 = vadd.f32 %v2113_v24, %v1893_v8  ;;  %v2385_v46 = vpop.f32.mrf.mxu0  ;;  %v2741_v26 = vsub.f32 %v2648_v43, %v2710_v10 }
 0x287   : > { %v2586_v61 = vmax.f32 %v2555_v39, 0.0  ;;  %v2431_v6 = vadd.f32 %v2382_v59, %v2162_v4 }
 0x289   : > { %v2772_v44 = vmul.f32 %v2741_v26, %v2586_v61  ;;  %v2463_v37 = vmul.f32 %v13398_v60, %v2431_v6  ;;  %v2497_v61 = vld [vmem:[%s17620_s3 + $0xc8] sm:$0xff] }
 0x28a   : > { %v1847_v51 = vpop.f32.mrf.mxu2 }
 0x28b   : > { %2803 = vst.msk [vmem:[#allocation2 + $0xd0] sm:$0xff] %vm267_vm7, %v2772_v44  ;;  %v2525_v55 = vand.u32 2147483647, %v2463_v37  ;;  %vm2618_vm12 = vcmp.gt.f32.partialorder %v2463_v37, 0.0  ;;  %vm2680_vm13 = vcmp.lt.f32.partialorder %v2463_v37, 0.0  ;;  %v1894_v21 = vadd.f32 %v1847_v51, %v1741_v28  ;;  %v1697_v29 = vpop.f32.mrf.mxu1 }
 0x28c   : > { %v2649_v1 = vsel %vm2618_vm12, 1.0, %v12417_v12  ;;  %v2711_v20 = vsel %vm2680_vm13, 1.0, %v12417_v12  ;;  %v2119_v11 = vpop.f32.mrf.mxu3  ;;  %v1742_v34 = vadd.f32 %v1697_v29, %v13228_v62 }
 0x28d   : > { %v2556_v36 = vsub.f32 %v2525_v55, %v2494_v0  ;;  %v2163_v63 = vadd.f32 %v2116_v56, %v1894_v21  ;;  %v2388_v13 = vpop.f32.mrf.mxu0  ;;  %v2742_v53 = vsub.f32 %v2649_v1, %v2711_v20 }
 0x28f   : > { %v2587_v48 = vmax.f32 %v2556_v36, 0.0  ;;  %v2432_v17 = vadd.f32 %v2385_v46, %v2163_v63 }
 0x291   : > { %v2773_v54 = vmul.f32 %v2742_v53, %v2587_v48  ;;  %v2464_v9 = vmul.f32 %v13398_v60, %v2432_v17 }
 0x292   : > { %v1850_v14 = vpop.f32.mrf.mxu2 }
 0x293   : > { %2804 = vst.msk [vmem:[#allocation2 + $0xd8] sm:$0xff] %vm267_vm7, %v2773_v54  ;;  %v2526_v58 = vand.u32 2147483647, %v2464_v9  ;;  %vm2619_vm14 = vcmp.gt.f32.partialorder %v2464_v9, 0.0  ;;  %vm2681_vm15 = vcmp.lt.f32.partialorder %v2464_v9, 0.0  ;;  %v1895_v33 = vadd.f32 %v1850_v14, %v1742_v34  ;;  %v1700_v25 = vpop.f32.mrf.mxu1 }
 0x294   : > { %v2650_v7 = vsel %vm2619_vm14, 1.0, %v12417_v12  ;;  %v2712_v47 = vsel %vm2681_vm15, 1.0, %v12417_v12  ;;  %v2122_v2 = vpop.f32.mrf.mxu3  ;;  %v1743_v59 = vadd.f32 %v1700_v25, %v13239_v15 }
 0x295   : > { %v2557_v62 = vsub.f32 %v2526_v58, %v2495_v57  ;;  %v2164_v52 = vadd.f32 %v2119_v11, %v1895_v33  ;;  %v2391_v31 = vpop.f32.mrf.mxu0  ;;  %v2743_v24 = vsub.f32 %v2650_v7, %v2712_v47 }
 0x297   : > { %v2588_v19 = vmax.f32 %v2557_v62, 0.0  ;;  %v2433_v32 = vadd.f32 %v2388_v13, %v2164_v52  ;;  %v2498_v13 = vld [vmem:[%s17620_s3 + $0xd0] sm:$0xff]  ;;  %v2499_v52 = vld [vmem:[%s17620_s3 + $0xd8] sm:$0xff] }
 0x299   : > { %v2774_v38 = vmul.f32 %v2743_v24, %v2588_v19  ;;  %v2465_v49 = vmul.f32 %v13398_v60, %v2433_v32 }
 0x29a   : > { %v1853_v50 = vpop.f32.mrf.mxu2 }
 0x29b   : > { %2805 = vst.msk [vmem:[#allocation2 + $0xe0] sm:$0xff] %vm267_vm7, %v2774_v38  ;;  %v2527_v23 = vand.u32 2147483647, %v2465_v49  ;;  %vm2620_vm8 = vcmp.gt.f32.partialorder %v2465_v49, 0.0  ;;  %vm2682_vm9 = vcmp.lt.f32.partialorder %v2465_v49, 0.0  ;;  %v1896_v27 = vadd.f32 %v1853_v50, %v1743_v59  ;;  %v1703_v41 = vpop.f32.mrf.mxu1 }
 0x29c   : > { %v2651_v18 = vsel %vm2620_vm8, 1.0, %v12417_v12  ;;  %v2713_v16 = vsel %vm2682_vm9, 1.0, %v12417_v12  ;;  %v2125_v22 = vpop.f32.mrf.mxu3  ;;  %v1744_v4 = vadd.f32 %v1703_v41, %v13250_v35 }
 0x29d   : > { %v2558_v15 = vsub.f32 %v2527_v23, %v2496_v42  ;;  %v2165_v8 = vadd.f32 %v2122_v2, %v1896_v27  ;;  %v2394_v30 = vpop.f32.mrf.mxu0  ;;  %v2744_v10 = vsub.f32 %v2651_v18, %v2713_v16 }
 0x29f   : > { %v2589_v43 = vmax.f32 %v2558_v15, 0.0  ;;  %v2434_v56 = vadd.f32 %v2391_v31, %v2165_v8 }
 0x2a1   : > { %v2775_v39 = vmul.f32 %v2744_v10, %v2589_v43  ;;  %v2466_v46 = vmul.f32 %v13398_v60, %v2434_v56 }
 0x2a2   : > { %v1856_v26 = vpop.f32.mrf.mxu2 }
 0x2a3   : > { %2806 = vst.msk [vmem:[#allocation2 + $0xe8] sm:$0xff] %vm267_vm7, %v2775_v39  ;;  %v2528_v6 = vand.u32 2147483647, %v2466_v46  ;;  %vm2621_vm10 = vcmp.gt.f32.partialorder %v2466_v46, 0.0  ;;  %vm2683_vm11 = vcmp.lt.f32.partialorder %v2466_v46, 0.0  ;;  %v1897_v44 = vadd.f32 %v1856_v26, %v1744_v4  ;;  %v1706_v28 = vpop.f32.mrf.mxu1 }
 0x2a4   : > { %v2652_v37 = vsel %vm2621_vm10, 1.0, %v12417_v12  ;;  %v2714_v0 = vsel %vm2683_vm11, 1.0, %v12417_v12  ;;  %v2128_v51 = vpop.f32.mrf.mxu3  ;;  %v1745_v36 = vadd.f32 %v1706_v28, %v13266_v40 }
 0x2a5   : > { %v2559_v35 = vsub.f32 %v2528_v6, %v2497_v61  ;;  %v2166_v55 = vadd.f32 %v2125_v22, %v1897_v44  ;;  %v2397_v21 = vpop.f32.mrf.mxu0  ;;  %v2745_v1 = vsub.f32 %v2652_v37, %v2714_v0  ;;  %v2500_v22 = vld [vmem:[%s17620_s3 + $0xe0] sm:$0xff]  ;;  %v2501_v37 = vld [vmem:[%s17620_s3 + $0xe8] sm:$0xff] }
 0x2a7   : > { %v2590_v29 = vmax.f32 %v2559_v35, 0.0  ;;  %v2435_v20 = vadd.f32 %v2394_v30, %v2166_v55 }
 0x2a9   : > { %v2776_v11 = vmul.f32 %v2745_v1, %v2590_v29  ;;  %v2467_v63 = vmul.f32 %v13398_v60, %v2435_v20 }
 0x2aa   : > { %v1859_v48 = vpop.f32.mrf.mxu2 }
 0x2ab   : > { %2807 = vst.msk [vmem:[#allocation2 + $0xf0] sm:$0xff] %vm267_vm7, %v2776_v11  ;;  %v2529_v53 = vand.u32 2147483647, %v2467_v63  ;;  %vm2622_vm12 = vcmp.gt.f32.partialorder %v2467_v63, 0.0  ;;  %vm2684_vm13 = vcmp.lt.f32.partialorder %v2467_v63, 0.0  ;;  %v1898_v17 = vadd.f32 %v1859_v48, %v1745_v36  ;;  %v1709_v54 = vpop.f32.mrf.mxu1 }
 0x2ac   : > { %v2653_v34 = vsel %vm2622_vm12, 1.0, %v12417_v12  ;;  %v2715_v9 = vsel %vm2684_vm13, 1.0, %v12417_v12  ;;  %v2131_v14 = vpop.f32.mrf.mxu3  ;;  %v1746_v2 = vadd.f32 %v1709_v54, %v13298_v5 }
 0x2ad   : > { %v2560_v57 = vsub.f32 %v2529_v53, %v2498_v13  ;;  %v2167_v40 = vadd.f32 %v2128_v51, %v1898_v17  ;;  %v2746_v33 = vsub.f32 %v2653_v34, %v2715_v9  ;;  %v2400_v7 = vpop.f32.mrf.mxu0  ;;  %v2502_v53 = vld [vmem:[%s17620_s3 + $0xf0] sm:$0xff] }
 0x2af   : > { %v2591_v58 = vmax.f32 %v2560_v57, 0.0  ;;  %v2436_v25 = vadd.f32 %v2397_v21, %v2167_v40 }
 0x2b1   : > { %v2777_v47 = vmul.f32 %v2746_v33, %v2591_v58  ;;  %v2468_v62 = vmul.f32 %v13398_v60, %v2436_v25 }
 0x2b2   : > { %v1862_v31 = vpop.f32.mrf.mxu2 }
 0x2b3   : > { %2808 = vst.msk [vmem:[#allocation2 + $0xf8] sm:$0xff] %vm267_vm7, %v2777_v47  ;;  %v2530_v19 = vand.u32 2147483647, %v2468_v62  ;;  %vm2623_vm14 = vcmp.gt.f32.partialorder %v2468_v62, 0.0  ;;  %vm2685_vm15 = vcmp.lt.f32.partialorder %v2468_v62, 0.0  ;;  %v1899_v24 = vadd.f32 %v1862_v31, %v1746_v2  ;;  %v1712_v59 = vpop.f32.mrf.mxu1 }
 0x2b4   : > { %v2654_v32 = vsel %vm2623_vm14, 1.0, %v12417_v12  ;;  %v2716_v38 = vsel %vm2685_vm15, 1.0, %v12417_v12  ;;  %v2134_v27 = vpop.f32.mrf.mxu3  ;;  %v1747_v18 = vadd.f32 %v1712_v59, %v13332_v45 }
 0x2b5   : > { %v2561_v49 = vsub.f32 %v2530_v19, %v2499_v52  ;;  %v2168_v5 = vadd.f32 %v2131_v14, %v1899_v24  ;;  %v2747_v50 = vsub.f32 %v2654_v32, %v2716_v38  ;;  %v2403_v8 = vpop.f32.mrf.mxu0 }
 0x2b7   : > { %v2592_v42 = vmax.f32 %v2561_v49, 0.0  ;;  %v2437_v23 = vadd.f32 %v2400_v7, %v2168_v5 }
 0x2b9   : > { %v2778_v41 = vmul.f32 %v2747_v50, %v2592_v42  ;;  %v2469_v16 = vmul.f32 %v13398_v60, %v2437_v23 }
 0x2ba   : > { %v1865_v15 = vpop.f32.mrf.mxu2 }
 0x2bb   : > { %2809 = vst.msk [vmem:[#allocation2 + $0x100] sm:$0xff] %vm267_vm7, %v2778_v41  ;;  %v2531_v30 = vand.u32 2147483647, %v2469_v16  ;;  %vm2624_vm8 = vcmp.gt.f32.partialorder %v2469_v16, 0.0  ;;  %vm2686_vm9 = vcmp.lt.f32.partialorder %v2469_v16, 0.0  ;;  %v1900_v43 = vadd.f32 %v1865_v15, %v1747_v18  ;;  %v1715_v4 = vpop.f32.mrf.mxu1 }
 0x2bc   : > { %v2655_v10 = vsel %vm2624_vm8, 1.0, %v12417_v12  ;;  %v2717_v56 = vsel %vm2686_vm9, 1.0, %v12417_v12  ;;  %v1748_v44 = vadd.f32 %v1715_v4, %v13367_v3  ;;  %v2137_v51 = vpop.f32.mrf.mxu3 }
 0x2bd   : > { %v2562_v39 = vsub.f32 %v2531_v30, %v2500_v22  ;;  %v2169_v45 = vadd.f32 %v2134_v27, %v1900_v43  ;;  %v2748_v61 = vsub.f32 %v2655_v10, %v2717_v56  ;;  %v2406_v1 = vpop.f32.mrf.mxu0 }
 0x2bf   : > { %v2593_v46 = vmax.f32 %v2562_v39, 0.0  ;;  %v2438_v26 = vadd.f32 %v2403_v8, %v2169_v45 }
 0x2c1   : > { %v2779_v6 = vmul.f32 %v2748_v61, %v2593_v46  ;;  %v2470_v28 = vmul.f32 %v13398_v60, %v2438_v26 }
 0x2c2   : > { %v1868_v0 = vpop.f32.mrf.mxu2 }
 0x2c3   : > { %2810 = vst.msk [vmem:[#allocation2 + $0x108] sm:$0xff] %vm267_vm7, %v2779_v6  ;;  %v2532_v35 = vand.u32 2147483647, %v2470_v28  ;;  %vm2625_vm10 = vcmp.gt.f32.partialorder %v2470_v28, 0.0  ;;  %vm2687_vm11 = vcmp.lt.f32.partialorder %v2470_v28, 0.0  ;;  %v1901_v55 = vadd.f32 %v1868_v0, %v1748_v44 }
 0x2c4   : > { %v2656_v21 = vsel %vm2625_vm10, 1.0, %v12417_v12  ;;  %v2718_v29 = vsel %vm2687_vm11, 1.0, %v12417_v12 }
 0x2c5   : > { %v2563_v3 = vsub.f32 %v2532_v35, %v2501_v37  ;;  %v2170_v20 = vadd.f32 %v2137_v51, %v1901_v55  ;;  %v2749_v36 = vsub.f32 %v2656_v21, %v2718_v29 }
 0x2c7   : > { %v2594_v11 = vmax.f32 %v2563_v3, 0.0  ;;  %v2439_v63 = vadd.f32 %v2406_v1, %v2170_v20 }
 0x2c9   : > { %v2780_v13 = vmul.f32 %v2749_v36, %v2594_v11  ;;  %v2471_v48 = vmul.f32 %v13398_v60, %v2439_v63 }
 0x2cb   : > { %2811 = vst.msk [vmem:[#allocation2 + $0x110] sm:$0xff] %vm267_vm7, %v2780_v13  ;;  %v2533_v17 = vand.u32 2147483647, %v2471_v48  ;;  %vm2626_vm12 = vcmp.gt.f32.partialorder %v2471_v48, 0.0  ;;  %vm2688_vm13 = vcmp.lt.f32.partialorder %v2471_v48, 0.0 }
 0x2cc   : > { %v2657_v54 = vsel %vm2626_vm12, 1.0, %v12417_v12  ;;  %v2719_v34 = vsel %vm2688_vm13, 1.0, %v12417_v12 }
 0x2cd   : > { %v2564_v9 = vsub.f32 %v2533_v17, %v2502_v53  ;;  %v2750_v40 = vsub.f32 %v2657_v54, %v2719_v34 }
 0x2cf   : > { %v2595_v57 = vmax.f32 %v2564_v9, 0.0 }
 0x2d1   : > { %v2781_v14 = vmul.f32 %v2750_v40, %v2595_v57 }
 0x2d3   : > { %2812 = vst.msk [vmem:[#allocation2 + $0x118] sm:$0xff] %vm267_vm7, %v2781_v14 }
 0x2d4 LB: >> { %v11329_v58 = vld [vmem:[%s17619_s2 + $0x38] sm:$0xff]  ;;  %v11328_v33 = vld [vmem:[%s17619_s2 + $0x30] sm:$0xff]  ;;  %v11327_v7 = vld [vmem:[%s17619_s2 + $0x28] sm:$0xff]  ;;  %s2818_s29 = sadd.s32 1, %s12415_s29   ;;  %s12415_s29 = sphi %s13876_s29, %s2818_s29  }
 0x2d5   : >> { %v2858_v12 = vld [vmem:[%s17619_s2 + $0x18] sm:$0xff]  ;;  %3020 = vmatpush.msra.mxu0 %v11329_v58  ;;  %12330 = vmatpush.msra.mxu3 %v11329_v58  ;;  %v2857_v25 = vld [vmem:[%s17619_s2 + $0x10] sm:$0xff]  ;;  %v2856_v47 = vld [vmem:[%s17619_s2 + $0x8] sm:$0xff]  ;;  %p2815_p4 = scmp.ge.s32.totalorder %s2818_s29, 2  }
 0x2d6   : >> { %3253 = vmatpush.msra.mxu1 %v2858_v12  ;;  %v11405_v2 = vld [vmem:[%s17619_s2 + $0x58] sm:$0xff]  ;;  %v11326_v62 = vld [vmem:[%s17619_s2 + $0x20] sm:$0xff]  ;;  %v2860_v32 = vld [vmem:[#allocation2 + $0xb] sm:$0xff] }
 0x2d7   : >> { %3021 = vmatpush.msra.mxu0 %v11328_v33  ;;  %12331 = vmatpush.msra.mxu3 %v11328_v33  ;;  %v2855_v52 = vld [vmem:[%s17619_s2] sm:$0xff]  ;;  %v2820_v59 = vld [vmem:[#allocation2 + $0xa] sm:$0xff]  ;;  %v2861_v49 = vld [vmem:[#allocation2 + $0x13] sm:$0xff] }
 0x2d8   : >> { %3254 = vmatpush.msra.mxu1 %v2857_v25  ;;  %12338 = vmatpush.msra.mxu2 %v11405_v2  ;;  %v2859_v31 = vld [vmem:[#allocation2 + $0x3] sm:$0xff]  ;;  %v2821_v5 = vld [vmem:[#allocation2 + $0x12] sm:$0xff]  ;;  %v2862_v50 = vld [vmem:[#allocation2 + $0x1b] sm:$0xff] }
 0x2d9   : >> { %3022 = vmatpush.msra.mxu0 %v11327_v7  ;;  %12332 = vmatpush.msra.mxu3 %v11327_v7  ;;  %v2819_v24 = vld [vmem:[#allocation2 + $0x2] sm:$0xff]  ;;  %v2841_v42 = vld [vmem:[#allocation2 + $0xb2] sm:$0xff]  ;;  %v2822_v23 = vld [vmem:[#allocation2 + $0x1a] sm:$0xff] }
 0x2da   : >> { %3255 = vmatpush.msra.mxu1 %v2856_v47  ;;  %v2893_v19 = vld [vmem:[#allocation2 + $0x113] sm:$0xff]  ;;  %v2894_v38 = vld [vmem:[#allocation2 + $0x11b] sm:$0x3f]  ;;  %v2863_v41 = vld [vmem:[#allocation2 + $0x23] sm:$0xff] }
 0x2db   : >> { %3023 = vmatpush.msra.mxu0 %v11326_v62  ;;  %12333 = vmatpush.msra.mxu3 %v11326_v62  ;;  %v2842_v27 = vld [vmem:[#allocation2 + $0xba] sm:$0xff]  ;;  %v2823_v18 = vld [vmem:[#allocation2 + $0x22] sm:$0xff]  ;;  %v11404_v22 = vld [vmem:[%s17619_s2 + $0x50] sm:$0xff] }
 0x2dc   : >> { %3256 = vmatpush.msra.mxu1 %v2855_v52  ;;  %11330 = vmatmul.msk.f32.vlgmr.msra.gmra.mxu0 %vm267_vm7, %v2859_v31  ;;  %v2843_v16 = vld [vmem:[#allocation2 + $0xc2] sm:$0xff]  ;;  %v2864_v15 = vld [vmem:[#allocation2 + $0x2b] sm:$0xff]  ;;  %v2865_v43 = vld [vmem:[#allocation2 + $0x33] sm:$0xff] }
 0x2dd   : >> { %11364 = vmatmul.msk.f32.vlgmr.msra.gmra.mxu3 %vm267_vm7, %v2893_v19  ;;  %11366 = vmatmul.msk.f32.vlgmr.msra.gmra.mxu1 %vm267_vm7, %v2819_v24  ;;  %v2824_v8 = vld [vmem:[#allocation2 + $0x2a] sm:$0xff]  ;;  %v2825_v10 = vld [vmem:[#allocation2 + $0x32] sm:$0xff]  ;;  %v2866_v45 = vld [vmem:[#allocation2 + $0x3b] sm:$0xff] }
 0x2de   : >> { %3527 = vmatpush.msrb.mxu0 %v11405_v2  ;;  %12334 = vmatpush.msrb.mxu3 %v2858_v12  ;;  %v2844_v30 = vld [vmem:[#allocation2 + $0xca] sm:$0xff]  ;;  %v2845_v56 = vld [vmem:[#allocation2 + $0xd2] sm:$0xff]  ;;  %v2826_v4 = vld [vmem:[#allocation2 + $0x3a] sm:$0xff] }
 0x2df   : >> { %12339 = vmatpush.msra.mxu2 %v11404_v22  ;;  %v11403_v39 = vld [vmem:[%s17619_s2 + $0x48] sm:$0xff]  ;;  %v2846_v46 = vld [vmem:[#allocation2 + $0xda] sm:$0xff]  ;;  %v2829_v29 = vld [vmem:[#allocation2 + $0x52] sm:$0xff] }
 0x2e0   : >> { %12335 = vmatpush.msrb.mxu3 %v2857_v25  ;;  %3528 = vmatpush.msrb.mxu0 %v11404_v22  ;;  %v11402_v61 = vld [vmem:[%s17619_s2 + $0x40] sm:$0xff]  ;;  %v13941_v26 = vld [vmem:[#allocation2 + $0x74] sm:$0xff]  ;;  %v2868_v0 = vld [vmem:[#allocation2 + $0x4b] sm:$0xff] }
 0x2e1   : >> { %12340 = vmatpush.msra.mxu2 %v11403_v39  ;;  %v2867_v6 = vld [vmem:[#allocation2 + $0x43] sm:$0xff]  ;;  %v2869_v21 = vld [vmem:[#allocation2 + $0x53] sm:$0xff]  ;;  %v2870_v20 = vld [vmem:[#allocation2 + $0x5b] sm:$0xff] }
 0x2e2   : >> { %12336 = vmatpush.msrb.mxu3 %v2856_v47  ;;  %3529 = vmatpush.msrb.mxu0 %v11403_v39  ;;  %v2827_v44 = vld [vmem:[#allocation2 + $0x42] sm:$0xff]  ;;  %v2828_v51 = vld [vmem:[#allocation2 + $0x4a] sm:$0xff]  ;;  %v2849_v1 = vld [vmem:[#allocation2 + $0xf2] sm:$0xff] }
 0x2e3   : >> { %12341 = vmatpush.msra.mxu2 %v11402_v61  ;;  %v2847_v28 = vld [vmem:[#allocation2 + $0xe2] sm:$0xff]  ;;  %v2848_v35 = vld [vmem:[#allocation2 + $0xea] sm:$0xff]  ;;  %v2830_v11 = vld [vmem:[#allocation2 + $0x5a] sm:$0xff] }
 0x2e4   : >> { %11331 = vmatmul.msk.f32.gmra.mxu0 %vm267_vm7, %v2860_v32  ;;  %12337 = vmatpush.msrb.mxu3 %v2855_v52  ;;  %v13948_v37 = vld [vmem:[#allocation2 + $0x7c] sm:$0xff]  ;;  %v13955_v55 = vld [vmem:[#allocation2 + $0x84] sm:$0xff]  ;;  %v13962_v3 = vld [vmem:[#allocation2 + $0x8c] sm:$0xff] }
 0x2e5   : >> { %11365 = vmatmul.msk.f32.gmra.mxu3 %vm267_vm7, %v2894_v38  ;;  %11367 = vmatmul.msk.f32.gmra.mxu1 %vm267_vm7, %v2820_v59  ;;  %v2850_v36 = vld [vmem:[#allocation2 + $0xfa] sm:$0xff]  ;;  %v11444_v48 = vld [vmem:[%s17619_s2 + $0x70] sm:$0xff]  ;;  %v2871_v53 = vld [vmem:[#allocation2 + $0x63] sm:$0xff] }
 0x2e6   : >> { %3530 = vmatpush.msrb.mxu0 %v11402_v61  ;;  %11420 = vmatmul.msk.f32.vlgmr.msra.gmra.mxu2 %vm267_vm7, %v13941_v26  ;;  %v11445_v63 = vld [vmem:[%s17619_s2 + $0x78] sm:$0xff]  ;;  %v11443_v17 = vld [vmem:[%s17619_s2 + $0x68] sm:$0xff]  ;;  %v11442_v9 = vld [vmem:[%s17619_s2 + $0x60] sm:$0xff] }
 0x2e7   : >> { %v13972_v13 = vld [vmem:[#allocation2 + $0x94] sm:$0xff]  ;;  %3837 = vmatpush.msra.mxu3 %v11445_v63  ;;  %v2831_v54 = vld [vmem:[#allocation2 + $0x62] sm:$0xff]  ;;  %v2872_v40 = vld [vmem:[#allocation2 + $0x6b] sm:$0xff] }
 0x2e8   : >> { %v2851_v34 = vld [vmem:[#allocation2 + $0x102] sm:$0xff]  ;;  %v2832_v14 = vld [vmem:[#allocation2 + $0x6a] sm:$0xff]  ;;  %v2873_v33 = vld [vmem:[#allocation2 + $0x73] sm:$0xff] }
 0x2e9   : >> { %3838 = vmatpush.msra.mxu3 %v11444_v48  ;;  %v13988_v57 = vld [vmem:[#allocation2 + $0x9c] sm:$0xff]  ;;  %v2852_v58 = vld [vmem:[#allocation2 + $0x10a] sm:$0xff]  ;;  %v2833_v25 = vld [vmem:[#allocation2 + $0x72] sm:$0xff] }
 0x2ea   : >> { %v13995_v12 = vld [vmem:[#allocation2 + $0xa4] sm:$0xff]  ;;  %v2853_v7 = vld [vmem:[#allocation2 + $0x112] sm:$0xff]  ;;  %v2874_v2 = vld [vmem:[#allocation2 + $0x7b] sm:$0xff] }
 0x2eb   : >> { %3839 = vmatpush.msra.mxu3 %v11443_v17  ;;  %v14002_v47 = vld [vmem:[#allocation2 + $0xac] sm:$0xff]  ;;  %v2834_v62 = vld [vmem:[#allocation2 + $0x7a] sm:$0xff]  ;;  %v2875_v24 = vld [vmem:[#allocation2 + $0x83] sm:$0xff] }
 0x2ec   : >> { %11332 = vmatmul.msk.f32.gmra.mxu0 %vm267_vm7, %v2861_v49  ;;  %v2854_v52 = vld [vmem:[#allocation2 + $0x11a] sm:$0x3f]  ;;  %v2835_v32 = vld [vmem:[#allocation2 + $0x82] sm:$0xff]  ;;  %v2837_v22 = vld [vmem:[#allocation2 + $0x92] sm:$0xff] }
 0x2ed   : >> { %11368 = vmatmul.msk.f32.gmra.mxu1 %vm267_vm7, %v2821_v5  ;;  %11388 = vmatmul.msk.f32.vlgmr.msrb.gmra.mxu3 %vm267_vm7, %v2841_v42  ;;  %v14009_v31 = vld [vmem:[#allocation2 + $0xb4] sm:$0xff]  ;;  %v14021_v59 = vld [vmem:[#allocation2 + $0xbc] sm:$0xff]  ;;  %v2876_v42 = vld [vmem:[#allocation2 + $0x8b] sm:$0xff] }
 0x2ee   : >> { %11421 = vmatmul.msk.f32.gmra.mxu2 %vm267_vm7, %v13948_v37  ;;  %3840 = vmatpush.msra.mxu3 %v11442_v9  ;;  %v14015_v38 = vld [vmem:[#allocation2 + $0x14] sm:$0xff]  ;;  %v14057_v39 = vld [vmem:[#allocation2 + $0x2c] sm:$0xff]  ;;  %v2879_v61 = vld [vmem:[#allocation2 + $0xa3] sm:$0xff] }
 0x2ef   : >> { %v14099_v63 = vld [vmem:[#allocation2 + $0x44] sm:$0xff]  ;;  %v14104_v48 = vld [vmem:[#allocation2 + $0xec] sm:$0xff]  ;;  %v14117_v9 = vld [vmem:[#allocation2 + $0xf4] sm:$0xff] }
 0x2f4   : >> { %11333 = vmatmul.msk.f32.gmra.mxu0 %vm267_vm7, %v2862_v50  ;;  %v2836_v50 = vld [vmem:[#allocation2 + $0x8a] sm:$0xff] }
 0x2f5   : >> { %11369 = vmatmul.msk.f32.gmra.mxu1 %vm267_vm7, %v2822_v23  ;;  %11389 = vmatmul.msk.f32.gmra.mxu3 %vm267_vm7, %v2842_v27  ;;  %v14029_v23 = vld [vmem:[#allocation2 + $0x1c] sm:$0xff]  ;;  %v14035_v27 = vld [vmem:[#allocation2 + $0xc4] sm:$0xff] }
 0x2f6   : >> { %11422 = vmatmul.msk.f32.gmra.mxu2 %vm267_vm7, %v13955_v55 }
 0x2fc   : >> { %11334 = vmatmul.msk.f32.gmra.mxu0 %vm267_vm7, %v2863_v41 }
 0x2fd   : >> { %11370 = vmatmul.msk.f32.gmra.mxu1 %vm267_vm7, %v2823_v18  ;;  %11390 = vmatmul.msk.f32.gmra.mxu3 %vm267_vm7, %v2843_v16  ;;  %v2877_v16 = vld [vmem:[#allocation2 + $0x93] sm:$0xff] }
 0x2fe   : >> { %11423 = vmatmul.msk.f32.gmra.mxu2 %vm267_vm7, %v13962_v3 }
 0x304   : >> { %11335 = vmatmul.msk.f32.gmra.mxu0 %vm267_vm7, %v2864_v15  ;;  %v14043_v15 = vld [vmem:[#allocation2 + $0x24] sm:$0xff] }
 0x305   : >> { %11371 = vmatmul.msk.f32.gmra.mxu1 %vm267_vm7, %v2824_v8  ;;  %11391 = vmatmul.msk.f32.gmra.mxu3 %vm267_vm7, %v2844_v30  ;;  %v14049_v8 = vld [vmem:[#allocation2 + $0xcc] sm:$0xff] }
 0x306   : >> { %11424 = vmatmul.msk.f32.gmra.mxu2 %vm267_vm7, %v13972_v13 }
 0x30c   : >> { %11336 = vmatmul.msk.f32.gmra.mxu0 %vm267_vm7, %v2865_v43 }
 0x30d   : >> { %11372 = vmatmul.msk.f32.gmra.mxu1 %vm267_vm7, %v2825_v10  ;;  %11392 = vmatmul.msk.f32.gmra.mxu3 %vm267_vm7, %v2845_v56  ;;  %v2878_v10 = vld [vmem:[#allocation2 + $0x9b] sm:$0xff] }
 0x30e   : >> { %11425 = vmatmul.msk.f32.gmra.mxu2 %vm267_vm7, %v13988_v57  ;;  %v2838_v56 = vld [vmem:[#allocation2 + $0x9a] sm:$0xff] }
 0x314   : >> { %11337 = vmatmul.msk.f32.gmra.mxu0 %vm267_vm7, %v2866_v45  ;;  %v14063_v45 = vld [vmem:[#allocation2 + $0xd4] sm:$0xff] }
 0x315   : >> { %11373 = vmatmul.msk.f32.gmra.mxu1 %vm267_vm7, %v2826_v4  ;;  %11393 = vmatmul.msk.f32.gmra.mxu3 %vm267_vm7, %v2846_v46 }
 0x316   : >> { %11426 = vmatmul.msk.f32.gmra.mxu2 %vm267_vm7, %v13995_v12 }
 0x31c   : >> { %11338 = vmatmul.msk.f32.gmra.mxu0 %vm267_vm7, %v2867_v6  ;;  %v2839_v6 = vld [vmem:[#allocation2 + $0xa2] sm:$0xff] }
 0x31d   : >> { %11374 = vmatmul.msk.f32.gmra.mxu1 %vm267_vm7, %v2827_v44  ;;  %11394 = vmatmul.msk.f32.gmra.mxu3 %vm267_vm7, %v2847_v28  ;;  %v14071_v44 = vld [vmem:[#allocation2 + $0x34] sm:$0xff]  ;;  %v14077_v28 = vld [vmem:[#allocation2 + $0xdc] sm:$0xff] }
 0x31e   : >> { %11427 = vmatmul.msk.f32.gmra.mxu2 %vm267_vm7, %v14002_v47 }
 0x324   : >> { %11339 = vmatmul.msk.f32.gmra.mxu0 %vm267_vm7, %v2868_v0 }
 0x325   : >> { %11375 = vmatmul.msk.f32.gmra.mxu1 %vm267_vm7, %v2828_v51  ;;  %11395 = vmatmul.msk.f32.gmra.mxu3 %vm267_vm7, %v2848_v35  ;;  %v2880_v35 = vld [vmem:[#allocation2 + $0xab] sm:$0xff] }
 0x326   : >> { %11428 = vmatmul.msk.f32.gmra.mxu2 %vm267_vm7, %v14009_v31 }
 0x32c   : >> { %11340 = vmatmul.msk.f32.gmra.mxu0 %vm267_vm7, %v2869_v21  ;;  %v2840_v21 = vld [vmem:[#allocation2 + $0xaa] sm:$0xff] }
 0x32d   : >> { %11376 = vmatmul.msk.f32.gmra.mxu1 %vm267_vm7, %v2829_v29  ;;  %11396 = vmatmul.msk.f32.gmra.mxu3 %vm267_vm7, %v2849_v1  ;;  %v14085_v29 = vld [vmem:[#allocation2 + $0x3c] sm:$0xff]  ;;  %v14091_v1 = vld [vmem:[#allocation2 + $0xe4] sm:$0xff] }
 0x32e   : >> { %11429 = vmatmul.msk.f32.gmra.mxu2 %vm267_vm7, %v14021_v59 }
 0x334   : >> { %11341 = vmatmul.msk.f32.gmra.mxu0 %vm267_vm7, %v2870_v20 }
 0x335   : >> { %11377 = vmatmul.msk.f32.gmra.mxu1 %vm267_vm7, %v2830_v11  ;;  %11397 = vmatmul.msk.f32.gmra.mxu3 %vm267_vm7, %v2850_v36  ;;  %v2881_v36 = vld [vmem:[#allocation2 + $0xb3] sm:$0xff] }
 0x336   : >> { %11430 = vmatmul.msk.f32.gmra.mxu2 %vm267_vm7, %v14035_v27 }
 0x33c   : >> { %11342 = vmatmul.msk.f32.gmra.mxu0 %vm267_vm7, %v2871_v53 }
 0x33d   : >> { %11378 = vmatmul.msk.f32.gmra.mxu1 %vm267_vm7, %v2831_v54  ;;  %11398 = vmatmul.msk.f32.gmra.mxu3 %vm267_vm7, %v2851_v34  ;;  %v2882_v54 = vld [vmem:[#allocation2 + $0xbb] sm:$0xff]  ;;  %v14112_v34 = vld [vmem:[#allocation2 + $0x4c] sm:$0xff] }
 0x33e   : >> { %11431 = vmatmul.msk.f32.gmra.mxu2 %vm267_vm7, %v14049_v8 }
 0x344   : >> { %11343 = vmatmul.msk.f32.gmra.mxu0 %vm267_vm7, %v2872_v40 }
 0x345   : >> { %11379 = vmatmul.msk.f32.gmra.mxu1 %vm267_vm7, %v2832_v14  ;;  %11399 = vmatmul.msk.f32.gmra.mxu3 %vm267_vm7, %v2852_v58  ;;  %v2883_v58 = vld [vmem:[#allocation2 + $0xc3] sm:$0xff] }
 0x346   : >> { %11432 = vmatmul.msk.f32.gmra.mxu2 %vm267_vm7, %v14063_v45 }
 0x34c   : >> { %11344 = vmatmul.msk.f32.gmra.mxu0 %vm267_vm7, %v2873_v33  ;;  %v14125_v33 = vld [vmem:[#allocation2 + $0x54] sm:$0xff] }
 0x34d   : >> { %11380 = vmatmul.msk.f32.gmra.mxu1 %vm267_vm7, %v2833_v25  ;;  %11400 = vmatmul.msk.f32.gmra.mxu3 %vm267_vm7, %v2853_v7  ;;  %v14130_v25 = vld [vmem:[#allocation2 + $0xfc] sm:$0xff] }
 0x34e   : >> { %11433 = vmatmul.msk.f32.gmra.mxu2 %vm267_vm7, %v14077_v28 }
 0x354   : >> { %11345 = vmatmul.msk.f32.gmra.mxu0 %vm267_vm7, %v2874_v2 }
 0x355   : >> { %11381 = vmatmul.msk.f32.gmra.mxu1 %vm267_vm7, %v2834_v62  ;;  %11401 = vmatmul.msk.f32.gmra.mxu3 %vm267_vm7, %v2854_v52  ;;  %v2884_v62 = vld [vmem:[#allocation2 + $0xcb] sm:$0xff]  ;;  %v14138_v52 = vld [vmem:[#allocation2 + $0x5c] sm:$0xff] }
 0x356   : >> { %11434 = vmatmul.msk.f32.gmra.mxu2 %vm267_vm7, %v14091_v1 }
 0x359   : >> { %v14013_v19 = vpop.f32.mrf.mxu0 }
 0x35c   : >> { %11346 = vmatmul.msk.f32.gmra.mxu0 %vm267_vm7, %v2875_v24  ;;  %v14143_v24 = vld [vmem:[#allocation2 + $0x104] sm:$0xff] }
 0x35d   : >> { %11382 = vmatmul.msk.f32.gmra.mxu1 %vm267_vm7, %v2835_v32  ;;  %11446 = vmatmul.msk.f32.vlgmr.msra.gmra.mxu3 %vm267_vm7, %v14015_v38 }
 0x35e   : >> { %11435 = vmatmul.msk.f32.gmra.mxu2 %vm267_vm7, %v14104_v48 }
 0x360   : >> { %v14025_v49 = vpop.f32.mrf.mxu3 }
 0x361   : >> { %v14027_v5 = vpop.f32.mrf.mxu0 }
 0x364   : >> { %11347 = vmatmul.msk.f32.gmra.mxu0 %vm267_vm7, %v2876_v42 }
 0x365   : >> { %11383 = vmatmul.msk.f32.gmra.mxu1 %vm267_vm7, %v2836_v50  ;;  %11447 = vmatmul.msk.f32.gmra.mxu3 %vm267_vm7, %v14029_v23  ;;  %v2885_v50 = vld [vmem:[#allocation2 + $0xd3] sm:$0xff] }
 0x366   : >> { %11436 = vmatmul.msk.f32.gmra.mxu2 %vm267_vm7, %v14117_v9 }
 0x368   : >> { %v14039_v41 = vpop.f32.mrf.mxu3 }
 0x369   : >> { %v14041_v18 = vpop.f32.mrf.mxu0 }
 0x36c   : >> { %11348 = vmatmul.msk.f32.gmra.mxu0 %vm267_vm7, %v2877_v16  ;;  %v14151_v16 = vld [vmem:[#allocation2 + $0x64] sm:$0xff] }
 0x36d   : >> { %11384 = vmatmul.msk.f32.gmra.mxu1 %vm267_vm7, %v2837_v22  ;;  %11448 = vmatmul.msk.f32.gmra.mxu3 %vm267_vm7, %v14043_v15  ;;  %v14156_v22 = vld [vmem:[#allocation2 + $0x10c] sm:$0xff] }
 0x36e   : >> { %11437 = vmatmul.msk.f32.gmra.mxu2 %vm267_vm7, %v14130_v25 }
 0x370   : >> { %v14053_v30 = vpop.f32.mrf.mxu3 }
 0x371   : >> { %17675 = vst [vmem:[#allocation11_spill] sm:$0xff] %v14053_v30  ;;  %v14055_v43 = vpop.f32.mrf.mxu0 }
 0x374   : >> { %11349 = vmatmul.msk.f32.gmra.mxu0 %vm267_vm7, %v2878_v10 }
 0x375   : >> { %11385 = vmatmul.msk.f32.gmra.mxu1 %vm267_vm7, %v2838_v56  ;;  %11449 = vmatmul.msk.f32.gmra.mxu3 %vm267_vm7, %v14057_v39 }
 0x376   : >> { %11438 = vmatmul.msk.f32.gmra.mxu2 %vm267_vm7, %v14143_v24 }
 0x378   : >> { %v14067_v4 = vpop.f32.mrf.mxu3 }
 0x379   : >> { %17676 = vst [vmem:[#allocation12_spill] sm:$0xff] %v14067_v4  ;;  %v14069_v46 = vpop.f32.mrf.mxu0 }
 0x37c   : >> { %11350 = vmatmul.msk.f32.gmra.mxu0 %vm267_vm7, %v2879_v61  ;;  %v2886_v61 = vld [vmem:[#allocation2 + $0xdb] sm:$0xff] }
 0x37d   : >> { %11386 = vmatmul.msk.f32.gmra.mxu1 %vm267_vm7, %v2839_v6  ;;  %11450 = vmatmul.msk.f32.gmra.mxu3 %vm267_vm7, %v14071_v44  ;;  %v14164_v6 = vld [vmem:[#allocation2 + $0x6c] sm:$0xff] }
 0x37e   : >> { %11439 = vmatmul.msk.f32.gmra.mxu2 %vm267_vm7, %v14156_v22 }
 0x380   : >> { %v14081_v0 = vpop.f32.mrf.mxu3 }
 0x381   : >> { %17677 = vst [vmem:[#allocation13_spill] sm:$0xff] %v14081_v0  ;;  %v14083_v51 = vpop.f32.mrf.mxu0 }
 0x384   : >> { %11351 = vmatmul.msk.f32.gmra.mxu0 %vm267_vm7, %v2880_v35  ;;  %v14169_v35 = vld [vmem:[#allocation2 + $0x114] sm:$0xff] }
 0x385   : >> { %11387 = vmatmul.msk.f32.gmra.mxu1 %vm267_vm7, %v2840_v21  ;;  %11451 = vmatmul.msk.f32.gmra.mxu3 %vm267_vm7, %v14085_v29 }
 0x386   : >> { %11440 = vmatmul.msk.f32.gmra.mxu2 %vm267_vm7, %v14169_v35 }
 0x388   : >> { %v14095_v20 = vpop.f32.mrf.mxu3 }
 0x389   : >> { %17678 = vst [vmem:[#allocation14_spill] sm:$0xff] %v14095_v20  ;;  %v14097_v11 = vpop.f32.mrf.mxu0 }
 0x38c   : >> { %11352 = vmatmul.msk.f32.gmra.mxu0 %vm267_vm7, %v2881_v36 }
 0x38d   : >> { %11452 = vmatmul.msk.f32.gmra.mxu3 %vm267_vm7, %v14099_v63 }
 0x390   : >> { %v14108_v53 = vpop.f32.mrf.mxu3 }
 0x391   : >> { %17679 = vst [vmem:[#allocation15_spill] sm:$0xff] %v14108_v53  ;;  %v14110_v17 = vpop.f32.mrf.mxu0 }
 0x394   : >> { %11353 = vmatmul.msk.f32.gmra.mxu0 %vm267_vm7, %v2882_v54  ;;  %v2887_v54 = vld [vmem:[#allocation2 + $0xe3] sm:$0xff] }
 0x395   : >> { %11453 = vmatmul.msk.f32.gmra.mxu3 %vm267_vm7, %v14112_v34 }
 0x398   : >> { %v14121_v40 = vpop.f32.mrf.mxu3 }
 0x399   : >> { %17680 = vst [vmem:[#allocation16_spill] sm:$0xff] %v14121_v40  ;;  %v14123_v14 = vpop.f32.mrf.mxu0  ;;  %v3367_v40 = vld [vmem:[#allocation2 + $0xc] sm:$0xff] }
 0x39c   : >> { %11354 = vmatmul.msk.f32.gmra.mxu0 %vm267_vm7, %v2883_v58  ;;  %v3401_v58 = vld [vmem:[#allocation2 + $0x11c] sm:$0x3f] }
 0x39d   : >> { %11454 = vmatmul.msk.f32.gmra.mxu3 %vm267_vm7, %v14125_v33  ;;  %11441 = vmatmul.msk.f32.gmra.mxu2 %vm267_vm7, %v3401_v58 }
 0x3a0   : >> { %v14134_v7 = vpop.f32.mrf.mxu3 }
 0x3a1   : >> { %17681 = vst [vmem:[#allocation17_spill] sm:$0xff] %v14134_v7  ;;  %v14136_v2 = vpop.f32.mrf.mxu0  ;;  %v14228_v7 = vpop.f32.mrf.mxu2 }
 0x3a2   : >> { %17696 = vst [vmem:[#allocation32_spill] sm:$0xff] %v14228_v7  ;;  %v4616_v7 = vld [vmem:[#allocation2 + $0x76] sm:$0xff] }
 0x3a4   : >> { %11355 = vmatmul.msk.f32.gmra.mxu0 %vm267_vm7, %v2884_v62 }
 0x3a5   : >> { %11455 = vmatmul.msk.f32.gmra.mxu3 %vm267_vm7, %v14138_v52 }
 0x3a8   : >> { %v14147_v32 = vpop.f32.mrf.mxu3 }
 0x3a9   : >> { %17682 = vst [vmem:[#allocation18_spill] sm:$0xff] %v14147_v32  ;;  %v14149_v42 = vpop.f32.mrf.mxu0  ;;  %v14240_v20 = vpop.f32.mrf.mxu2 }
 0x3aa   : >> { %17683 = vst [vmem:[#allocation19_spill] sm:$0xff] %v14149_v42  ;;  %v4928_v42 = vld [vmem:[#allocation2 + $0x87] sm:$0xff] }
 0x3ab   : >> { %17698 = vst [vmem:[#allocation34_spill] sm:$0xff] %v14240_v20  ;;  %v4614_v20 = vld [vmem:[#allocation2 + $0x66] sm:$0xff] }
 0x3ac   : >> { %11356 = vmatmul.msk.f32.gmra.mxu0 %vm267_vm7, %v2885_v50 }
 0x3ad   : >> { %11456 = vmatmul.msk.f32.gmra.mxu3 %vm267_vm7, %v14151_v16 }
 0x3b0   : >> { %v14160_v10 = vpop.f32.mrf.mxu3 }
 0x3b1   : >> { %17684 = vst [vmem:[#allocation20_spill] sm:$0xff] %v14160_v10  ;;  %v14162_v56 = vpop.f32.mrf.mxu0  ;;  %v2892_v10 = vld [vmem:[#allocation2 + $0x10b] sm:$0xff]  ;;  %v14254_v0 = vpop.f32.mrf.mxu2 }
 0x3b2   : >> { %17685 = vst [vmem:[#allocation21_spill] sm:$0xff] %v14162_v56 }
 0x3b3   : >> { %17700 = vst [vmem:[#allocation36_spill] sm:$0xff] %v14254_v0 }
 0x3b4   : >> { %11357 = vmatmul.msk.f32.gmra.mxu0 %vm267_vm7, %v2886_v61  ;;  %v2888_v61 = vld [vmem:[#allocation2 + $0xeb] sm:$0xff] }
 0x3b5   : >> { %11457 = vmatmul.msk.f32.gmra.mxu3 %vm267_vm7, %v14164_v6 }
 0x3b8   : >> { %v14173_v21 = vpop.f32.mrf.mxu3 }
 0x3b9   : >> { %17686 = vst [vmem:[#allocation22_spill] sm:$0xff] %v14173_v21  ;;  %v14175_v36 = vpop.f32.mrf.mxu0  ;;  %v14271_v30 = vpop.f32.mrf.mxu2 }
 0x3ba   : >> { %17687 = vst [vmem:[#allocation23_spill] sm:$0xff] %v14175_v36  ;;  %v4623_v36 = vld [vmem:[#allocation2 + $0xae] sm:$0xff] }
 0x3bb   : >> { %17702 = vst [vmem:[#allocation38_spill] sm:$0xff] %v14271_v30  ;;  %v3709_v30 = vld [vmem:[#allocation2 + $0x11c] sm:$0xff] }
 0x3bc   : >> { %11358 = vmatmul.msk.f32.gmra.mxu0 %vm267_vm7, %v2887_v54  ;;  %v2889_v54 = vld [vmem:[#allocation2 + $0xf3] sm:$0xff] }
 0x3bd   : >> { %11458 = vmatmul.msk.f32.gmra.mxu3 %vm267_vm7, %v13941_v26  ;;  %v11485_v26 = vld [vmem:[%s17619_s2 + $0x98] sm:$0xff] }
 0x3be   : >> { %4147 = vmatpush.msra.mxu0 %v11485_v26 }
 0x3c0   : >> { %v14181_v62 = vpop.f32.mrf.mxu3 }
 0x3c1   : >> { %17688 = vst [vmem:[#allocation24_spill] sm:$0xff] %v14181_v62  ;;  %v14183_v50 = vpop.f32.mrf.mxu0 }
 0x3c2   : >> { %17689 = vst [vmem:[#allocation25_spill] sm:$0xff] %v14183_v50 }
 0x3c4   : >> { %11359 = vmatmul.msk.f32.gmra.mxu0 %vm267_vm7, %v2888_v61 }
 0x3c5   : >> { %11459 = vmatmul.msk.f32.gmra.mxu3 %vm267_vm7, %v13948_v37  ;;  %v2890_v37 = vld [vmem:[#allocation2 + $0xfb] sm:$0xff] }
 0x3c8   : >> { %v14188_v60 = vpop.f32.mrf.mxu3 }
 0x3c9   : >> { %17690 = vst [vmem:[#allocation26_spill] sm:$0xff] %v14188_v60  ;;  %v14190_v21 = vpop.f32.mrf.mxu0 }
 0x3ca   : >> { %17691 = vst [vmem:[#allocation27_spill] sm:$0xff] %v14190_v21  ;;  %v4619_v21 = vld [vmem:[#allocation2 + $0x8e] sm:$0xff] }
 0x3cc   : >> { %11360 = vmatmul.msk.f32.gmra.mxu0 %vm267_vm7, %v2889_v54 }
 0x3cd   : >> { %11460 = vmatmul.msk.f32.gmra.mxu3 %vm267_vm7, %v13955_v55  ;;  %v2891_v55 = vld [vmem:[#allocation2 + $0x103] sm:$0xff] }
 0x3d0   : >> { %v14198_v58 = vpop.f32.mrf.mxu3 }
 0x3d1   : >> { %v14200_v61 = vpop.f32.mrf.mxu0 }
 0x3d2   : >> { %17692 = vst [vmem:[#allocation28_spill] sm:$0xff] %v14200_v61  ;;  %v4615_v61 = vld [vmem:[#allocation2 + $0x6e] sm:$0xff] }
 0x3d4   : >> { %11361 = vmatmul.msk.f32.gmra.mxu0 %vm267_vm7, %v2890_v37  ;;  %v11484_v37 = vld [vmem:[%s17619_s2 + $0x90] sm:$0xff] }
 0x3d5   : >> { %11461 = vmatmul.msk.f32.gmra.mxu3 %vm267_vm7, %v13962_v3  ;;  %4148 = vmatpush.msra.mxu0 %v11484_v37 }
 0x3d8   : >> { %v14205_v60 = vpop.f32.mrf.mxu3 }
 0x3d9   : >> { %v14207_v54 = vpop.f32.mrf.mxu0 }
 0x3da   : >> { %17693 = vst [vmem:[#allocation29_spill] sm:$0xff] %v14207_v54 }
 0x3dc   : >> { %11362 = vmatmul.msk.f32.gmra.mxu0 %vm267_vm7, %v2891_v55  ;;  %v14224_v55 = vpop.f32.mrf.mxu1 }
 0x3dd   : >> { %11462 = vmatmul.msk.f32.gmra.mxu3 %vm267_vm7, %v13972_v13  ;;  %v3366_v13 = vld [vmem:[#allocation2 + $0x4] sm:$0xff]  ;;  %v3259_v56 = vadd.f32 %v14224_v55, %v14013_v19 }
 0x3e0   : >> { %v14212_v26 = vpop.f32.mrf.mxu3 }
 0x3e1   : >> { %v14214_v62 = vpop.f32.mrf.mxu0 }
 0x3e2   : >> { %17694 = vst [vmem:[#allocation30_spill] sm:$0xff] %v14214_v62  ;;  %v4611_v62 = vld [vmem:[#allocation2 + $0x4e] sm:$0xff] }
 0x3e4   : >> { %11363 = vmatmul.msk.f32.gmra.mxu0 %vm267_vm7, %v2892_v10  ;;  %v14237_v53 = vpop.f32.mrf.mxu1 }
 0x3e5   : >> { %11463 = vmatmul.msk.f32.gmra.mxu3 %vm267_vm7, %v13988_v57  ;;  %v3262_v55 = vadd.f32 %v14237_v53, %v14027_v5 }
 0x3e8   : >> { %v14219_v3 = vpop.f32.mrf.mxu3 }
 0x3e9   : >> { %v14226_v32 = vpop.f32.mrf.mxu0 }
 0x3ea   : >> { %17695 = vst [vmem:[#allocation31_spill] sm:$0xff] %v14226_v32 }
 0x3ec   : >> { %11406 = vmatmul.msk.f32.vlgmr.msrb.gmra.mxu0 %vm267_vm7, %v3366_v13 }
 0x3ed   : >> { %11464 = vmatmul.msk.f32.gmra.mxu3 %vm267_vm7, %v13995_v12  ;;  %v14250_v12 = vpop.f32.mrf.mxu1 }
 0x3f0   : >> { %v14233_v57 = vpop.f32.mrf.mxu3 }
 0x3f1   : >> { %v14235_v10 = vpop.f32.mrf.mxu0 }
 0x3f2   : >> { %17697 = vst [vmem:[#allocation33_spill] sm:$0xff] %v14235_v10 }
 0x3f4   : >> { %11407 = vmatmul.msk.f32.gmra.mxu0 %vm267_vm7, %v3367_v40 }
 0x3f5   : >> { %11465 = vmatmul.msk.f32.gmra.mxu3 %vm267_vm7, %v14002_v47  ;;  %v11483_v47 = vld [vmem:[%s17619_s2 + $0x88] sm:$0xff] }
 0x3f6   : >> { %4149 = vmatpush.msra.mxu0 %v11483_v47  ;;  %v14285_v47 = vpop.f32.mrf.mxu2 }
 0x3f7   : >> { %17705 = vst [vmem:[#allocation41_spill] sm:$0xff] %v14285_v47 }
 0x3f8   : >> { %v14244_v37 = vpop.f32.mrf.mxu3 }
 0x3f9   : >> { %v14246_v13 = vpop.f32.mrf.mxu0 }
 0x3fa   : >> { %17699 = vst [vmem:[#allocation35_spill] sm:$0xff] %v14246_v13 }
 0x3fc   : >> { %11408 = vmatmul.msk.f32.gmra.mxu0 %vm267_vm7, %v14015_v38  ;;  %v14267_v38 = vpop.f32.mrf.mxu1 }
 0x3fd   : >> { %11466 = vmatmul.msk.f32.gmra.mxu3 %vm267_vm7, %v14009_v31 }
 0x400   : >> { %v14256_v40 = vpop.f32.mrf.mxu3 }
 0x401   : >> { %v14258_v4 = vpop.f32.mrf.mxu0 }
 0x402   : >> { %17701 = vst [vmem:[#allocation37_spill] sm:$0xff] %v14258_v4 }
 0x404   : >> { %11409 = vmatmul.msk.f32.gmra.mxu0 %vm267_vm7, %v14029_v23  ;;  %v14281_v23 = vpop.f32.mrf.mxu1 }
 0x405   : >> { %11467 = vmatmul.msk.f32.gmra.mxu3 %vm267_vm7, %v14021_v59 }
 0x408   : >> { %v14269_v31 = vpop.f32.mrf.mxu3 }
 0x409   : >> { %v14273_v13 = vpop.f32.mrf.mxu0 }
 0x40a   : >> { %17703 = vst [vmem:[#allocation39_spill] sm:$0xff] %v14273_v13 }
 0x40c   : >> { %11410 = vmatmul.msk.f32.gmra.mxu0 %vm267_vm7, %v14043_v15  ;;  %v11565_v15 = vld [vmem:[%s17619_s2 + $0xd8] sm:$0xff]  ;;  %v14301_v10 = vpop.f32.mrf.mxu1 }
 0x40d   : >> { %11468 = vmatmul.msk.f32.gmra.mxu3 %vm267_vm7, %v14035_v27  ;;  %4767 = vmatpush.msrb.mxu2 %v11565_v15  ;;  %v11482_v15 = vld [vmem:[%s17619_s2 + $0x80] sm:$0xff] }
 0x40e   : >> { %4150 = vmatpush.msra.mxu0 %v11482_v15 }
 0x410   : >> { %v14279_v59 = vpop.f32.mrf.mxu3 }
 0x411   : >> { %v14283_v4 = vpop.f32.mrf.mxu0 }
 0x412   : >> { %17704 = vst [vmem:[#allocation40_spill] sm:$0xff] %v14283_v4  ;;  %v11525_v4 = vld [vmem:[%s17619_s2 + $0xb8] sm:$0xff] }
 0x413   : >> { %4457 = vmatpush.msrb.mxu1 %v11525_v4 }
 0x414   : >> { %11411 = vmatmul.msk.f32.gmra.mxu0 %vm267_vm7, %v14057_v39  ;;  %v14318_v4 = vpop.f32.mrf.mxu1 }
 0x415   : >> { %11469 = vmatmul.msk.f32.gmra.mxu3 %vm267_vm7, %v14049_v8  ;;  %v14305_v8 = vpop.f32.mrf.mxu2 }
 0x416   : >> { %17707 = vst [vmem:[#allocation43_spill] sm:$0xff] %v14305_v8 }
 0x418   : >> { %v14294_v27 = vpop.f32.mrf.mxu3 }
 0x419   : >> { %v14296_v13 = vpop.f32.mrf.mxu0 }
 0x41a   : >> { %17706 = vst [vmem:[#allocation42_spill] sm:$0xff] %v14296_v13 }
 0x41c   : >> { %11412 = vmatmul.msk.f32.gmra.mxu0 %vm267_vm7, %v14071_v44  ;;  %v14332_v15 = vpop.f32.mrf.mxu1 }
 0x41d   : >> { %11470 = vmatmul.msk.f32.gmra.mxu3 %vm267_vm7, %v14063_v45  ;;  %v14322_v44 = vpop.f32.mrf.mxu2 }
 0x41e   : >> { %17709 = vst [vmem:[#allocation45_spill] sm:$0xff] %v14322_v44 }
 0x420   : >> { %v14309_v39 = vpop.f32.mrf.mxu3 }
 0x421   : >> { %v14314_v13 = vpop.f32.mrf.mxu0 }
 0x422   : >> { %17708 = vst [vmem:[#allocation44_spill] sm:$0xff] %v14314_v13 }
 0x424   : >> { %11413 = vmatmul.msk.f32.gmra.mxu0 %vm267_vm7, %v14085_v29 }
 0x425   : >> { %11471 = vmatmul.msk.f32.gmra.mxu3 %vm267_vm7, %v14077_v28  ;;  %v14336_v13 = vpop.f32.mrf.mxu2  ;;  %v11605_v28 = vld [vmem:[%s17619_s2 + $0xf8] sm:$0xff] }
 0x426   : >> { %17712 = vst [vmem:[#allocation48_spill] sm:$0xff] %v14336_v13  ;;  %5077 = vmatpush.msrb.mxu3 %v11605_v28  ;;  %v11562_v28 = vld [vmem:[%s17619_s2 + $0xc0] sm:$0xff]  ;;  %v11523_v13 = vld [vmem:[%s17619_s2 + $0xa8] sm:$0xff] }
 0x428   : >> { %v14324_v45 = vpop.f32.mrf.mxu3 }
 0x429   : >> { %v14326_v8 = vpop.f32.mrf.mxu0 }
 0x42a   : >> { %17710 = vst [vmem:[#allocation46_spill] sm:$0xff] %v14326_v8  ;;  %v11524_v8 = vld [vmem:[%s17619_s2 + $0xb0] sm:$0xff] }
 0x42b   : >> { %4458 = vmatpush.msrb.mxu1 %v11524_v8  ;;  %v11645_v8 = vld [vmem:[%s17619_s2 + $0x118] sm:$0xff] }
 0x42c   : >> { %11414 = vmatmul.msk.f32.gmra.mxu0 %vm267_vm7, %v14099_v63  ;;  %v11563_v63 = vld [vmem:[%s17619_s2 + $0xc8] sm:$0xff] }
 0x42d   : >> { %11472 = vmatmul.msk.f32.gmra.mxu3 %vm267_vm7, %v14091_v1  ;;  %v11564_v1 = vld [vmem:[%s17619_s2 + $0xd0] sm:$0xff]  ;;  %4459 = vmatpush.msrb.mxu1 %v11523_v13 }
 0x42e   : >> { %4768 = vmatpush.msrb.mxu2 %v11564_v1  ;;  %v4606_v1 = vld [vmem:[#allocation2 + $0x26] sm:$0xff]  ;;  %5387 = vmatpush.msrb.mxu0 %v11645_v8  ;;  %v4607_v13 = vld [vmem:[#allocation2 + $0x2e] sm:$0xff]  ;;  %v4297_v8 = vld [vmem:[#allocation2 + $0x1e] sm:$0xff] }
 0x430   : >> { %v14334_v29 = vpop.f32.mrf.mxu3  ;;  %4769 = vmatpush.msrb.mxu2 %v11563_v63  ;;  %v14368_v63 = vpop.f32.mrf.mxu2 }
 0x431   : >> { %17711 = vst [vmem:[#allocation47_spill] sm:$0xff] %v14334_v29  ;;  %v14338_v47 = vpop.f32.mrf.mxu0  ;;  %v4625_v29 = vld [vmem:[#allocation2 + $0xbe] sm:$0xff] }
 0x432   : >> { %17713 = vst [vmem:[#allocation49_spill] sm:$0xff] %v14338_v47  ;;  %4770 = vmatpush.msrb.mxu2 %v11562_v28  ;;  %v11522_v28 = vld [vmem:[%s17619_s2 + $0xa0] sm:$0xff] }
 0x433   : >> { %17716 = vst [vmem:[#allocation52_spill] sm:$0xff] %v14368_v63  ;;  %11566 = vmatmul.msk.f32.vlgmr.msrb.gmra.mxu2 %vm267_vm7, %v4606_v1  ;;  %4460 = vmatpush.msrb.mxu1 %v11522_v28 }
 0x434   : >> { %11415 = vmatmul.msk.f32.gmra.mxu0 %vm267_vm7, %v14112_v34  ;;  %v14355_v34 = vpop.f32.mrf.mxu1 }
 0x435   : >> { %11473 = vmatmul.msk.f32.gmra.mxu3 %vm267_vm7, %v14104_v48 }
 0x438   : >> { %v14353_v47 = vpop.f32.mrf.mxu3 }
 0x439   : >> { %17714 = vst [vmem:[#allocation50_spill] sm:$0xff] %v14353_v47  ;;  %v14357_v48 = vpop.f32.mrf.mxu0 }
 0x43a   : >> { %17715 = vst [vmem:[#allocation51_spill] sm:$0xff] %v14357_v48  ;;  %v4296_v48 = vld [vmem:[#allocation2 + $0x16] sm:$0xff] }
 0x43b   : >> { %11526 = vmatmul.msk.f32.vlgmr.msrb.gmra.mxu1 %vm267_vm7, %v4296_v48  ;;  %11567 = vmatmul.msk.f32.gmra.mxu2 %vm267_vm7, %v4607_v13 }
 0x43c   : >> { %11416 = vmatmul.msk.f32.gmra.mxu0 %vm267_vm7, %v14125_v33  ;;  %v14386_v44 = vpop.f32.mrf.mxu1 }
 0x43d   : >> { %11474 = vmatmul.msk.f32.gmra.mxu3 %vm267_vm7, %v14117_v9  ;;  %v14391_v9 = vpop.f32.mrf.mxu2 }
 0x43e   : >> { %17719 = vst [vmem:[#allocation55_spill] sm:$0xff] %v14391_v9  ;;  %v3986_v9 = vld [vmem:[#allocation2 + $0x15] sm:$0xff] }
 0x440   : >> { %v14382_v63 = vpop.f32.mrf.mxu3 }
 0x441   : >> { %17717 = vst [vmem:[#allocation53_spill] sm:$0xff] %v14382_v63  ;;  %v14384_v33 = vpop.f32.mrf.mxu0 }
 0x442   : >> { %17718 = vst [vmem:[#allocation54_spill] sm:$0xff] %v14384_v33  ;;  %v4608_v33 = vld [vmem:[#allocation2 + $0x36] sm:$0xff] }
 0x443   : >> { %11527 = vmatmul.msk.f32.gmra.mxu1 %vm267_vm7, %v4297_v8  ;;  %11568 = vmatmul.msk.f32.gmra.mxu2 %vm267_vm7, %v4608_v33 }
 0x444   : >> { %11417 = vmatmul.msk.f32.gmra.mxu0 %vm267_vm7, %v14138_v52  ;;  %v14403_v32 = vpop.f32.mrf.mxu1 }
 0x445   : >> { %11475 = vmatmul.msk.f32.gmra.mxu3 %vm267_vm7, %v14130_v25  ;;  %17722 = vst [vmem:[#allocation58_spill] sm:$0xff] %v14403_v32  ;;  %v14407_v52 = vpop.f32.mrf.mxu2 }
 0x446   : >> { %17723 = vst [vmem:[#allocation59_spill] sm:$0xff] %v14407_v52 }
 0x448   : >> { %v14396_v48 = vpop.f32.mrf.mxu3 }
 0x449   : >> { %17720 = vst [vmem:[#allocation56_spill] sm:$0xff] %v14396_v48  ;;  %v14398_v28 = vpop.f32.mrf.mxu0 }
 0x44a   : >> { %17721 = vst [vmem:[#allocation57_spill] sm:$0xff] %v14398_v28  ;;  %v4609_v28 = vld [vmem:[#allocation2 + $0x3e] sm:$0xff] }
 0x44b   : >> { %11528 = vmatmul.msk.f32.gmra.mxu1 %vm267_vm7, %v4606_v1  ;;  %11569 = vmatmul.msk.f32.gmra.mxu2 %vm267_vm7, %v4609_v28 }
 0x44c   : >> { %11418 = vmatmul.msk.f32.gmra.mxu0 %vm267_vm7, %v14151_v16  ;;  %v14419_v16 = vpop.f32.mrf.mxu1 }
 0x44d   : >> { %11476 = vmatmul.msk.f32.gmra.mxu3 %vm267_vm7, %v14143_v24  ;;  %17726 = vst [vmem:[#allocation62_spill] sm:$0xff] %v14419_v16  ;;  %v11604_v24 = vld [vmem:[%s17619_s2 + $0xf0] sm:$0xff] }
 0x44e   : >> { %5078 = vmatpush.msrb.mxu3 %v11604_v24  ;;  %v4624_v16 = vld [vmem:[#allocation2 + $0xb6] sm:$0xff] }
 0x450   : >> { %v14410_v25 = vpop.f32.mrf.mxu3 }
 0x451   : >> { %17724 = vst [vmem:[#allocation60_spill] sm:$0xff] %v14410_v25  ;;  %v14412_v8 = vpop.f32.mrf.mxu0  ;;  %v4917_v25 = vld [vmem:[#allocation2 + $0x2f] sm:$0xff] }
 0x452   : >> { %17725 = vst [vmem:[#allocation61_spill] sm:$0xff] %v14412_v8  ;;  %v14427_v8 = vpop.f32.mrf.mxu2 }
 0x453   : >> { %11529 = vmatmul.msk.f32.gmra.mxu1 %vm267_vm7, %v4607_v13  ;;  %17728 = vst [vmem:[#allocation64_spill] sm:$0xff] %v14427_v8  ;;  %v11602_v13 = vld [vmem:[%s17619_s2 + $0xe0] sm:$0xff] }
 0x454   : >> { %11419 = vmatmul.msk.f32.gmra.mxu0 %vm267_vm7, %v14164_v6  ;;  %v4610_v6 = vld [vmem:[#allocation2 + $0x46] sm:$0xff]  ;;  %v3987_v8 = vld [vmem:[#allocation2 + $0x1d] sm:$0xff] }
 0x455   : >> { %11477 = vmatmul.msk.f32.gmra.mxu3 %vm267_vm7, %v14156_v22  ;;  %v11603_v22 = vld [vmem:[%s17619_s2 + $0xe8] sm:$0xff]  ;;  %11570 = vmatmul.msk.f32.gmra.mxu2 %vm267_vm7, %v4610_v6 }
 0x456   : >> { %5079 = vmatpush.msrb.mxu3 %v11603_v22 }
 0x458   : >> { %v14425_v1 = vpop.f32.mrf.mxu3  ;;  %5080 = vmatpush.msrb.mxu3 %v11602_v13  ;;  %v3710_v13 = vld [vmem:[#allocation2 + $0x124] sm:$0xff] }
 0x459   : >> { %17727 = vst [vmem:[#allocation63_spill] sm:$0xff] %v14425_v1  ;;  %v14429_v52 = vpop.f32.mrf.mxu0  ;;  %v4613_v1 = vld [vmem:[#allocation2 + $0x5e] sm:$0xff] }
 0x45a   : >> { %17729 = vst [vmem:[#allocation65_spill] sm:$0xff] %v14429_v52  ;;  %v14444_v52 = vpop.f32.mrf.mxu1  ;;  %v14448_v0 = vpop.f32.mrf.mxu2 }
 0x45b   : >> { %11530 = vmatmul.msk.f32.gmra.mxu1 %vm267_vm7, %v4608_v33  ;;  %17731 = vst [vmem:[#allocation67_spill] sm:$0xff] %v14444_v52 }
 0x45c   : >> { %11486 = vmatmul.msk.f32.vlgmr.msra.gmra.mxu0 %vm267_vm7, %v3986_v9  ;;  %17733 = vst [vmem:[#allocation69_spill] sm:$0xff] %v14448_v0  ;;  %v3988_v9 = vld [vmem:[#allocation2 + $0x25] sm:$0xff] }
 0x45d   : >> { %11478 = vmatmul.msk.f32.gmra.mxu3 %vm267_vm7, %v14169_v35  ;;  %11571 = vmatmul.msk.f32.gmra.mxu2 %vm267_vm7, %v4611_v62 }
 0x460   : >> { %v14442_v24 = vpop.f32.mrf.mxu3 }
 0x461   : >> { %17730 = vst [vmem:[#allocation66_spill] sm:$0xff] %v14442_v24  ;;  %v14446_v22 = vpop.f32.mrf.mxu0 }
 0x462   : >> { %17732 = vst [vmem:[#allocation68_spill] sm:$0xff] %v14446_v22  ;;  %v4612_v22 = vld [vmem:[#allocation2 + $0x56] sm:$0xff]  ;;  %v14458_v24 = vpop.f32.mrf.mxu1  ;;  %v14462_v0 = vpop.f32.mrf.mxu2 }
 0x463   : >> { %11531 = vmatmul.msk.f32.gmra.mxu1 %vm267_vm7, %v4609_v28  ;;  %17735 = vst [vmem:[#allocation71_spill] sm:$0xff] %v14458_v24  ;;  %v4620_v24 = vld [vmem:[#allocation2 + $0x96] sm:$0xff] }
 0x464   : >> { %11487 = vmatmul.msk.f32.gmra.mxu0 %vm267_vm7, %v3987_v8  ;;  %17736 = vst [vmem:[#allocation72_spill] sm:$0xff] %v14462_v0  ;;  %v3989_v8 = vld [vmem:[#allocation2 + $0x2d] sm:$0xff]  ;;  %v3990_v0 = vld [vmem:[#allocation2 + $0x35] sm:$0xff] }
 0x465   : >> { %11479 = vmatmul.msk.f32.gmra.mxu3 %vm267_vm7, %v3709_v30  ;;  %11572 = vmatmul.msk.f32.gmra.mxu2 %vm267_vm7, %v4612_v22 }
 0x468   : >> { %v14454_v35 = vpop.f32.mrf.mxu3 }
 0x469   : >> { %17734 = vst [vmem:[#allocation70_spill] sm:$0xff] %v14454_v35  ;;  %v14456_v33 = vpop.f32.mrf.mxu0  ;;  %v3711_v35 = vld [vmem:[#allocation2 + $0x12c] sm:$0x3f] }
 0x46a   : >> { %v14472_v54 = vpop.f32.mrf.mxu1 }
 0x46b   : >> { %11532 = vmatmul.msk.f32.gmra.mxu1 %vm267_vm7, %v4610_v6  ;;  %17738 = vst [vmem:[#allocation74_spill] sm:$0xff] %v14472_v54  ;;  %v4618_v54 = vld [vmem:[#allocation2 + $0x86] sm:$0xff] }
 0x46c   : >> { %11488 = vmatmul.msk.f32.gmra.mxu0 %vm267_vm7, %v3988_v9  ;;  %v14475_v9 = vpop.f32.mrf.mxu2 }
 0x46d   : >> { %11480 = vmatmul.msk.f32.gmra.mxu3 %vm267_vm7, %v3710_v13  ;;  %11573 = vmatmul.msk.f32.gmra.mxu2 %vm267_vm7, %v4613_v1  ;;  %17739 = vst [vmem:[#allocation75_spill] sm:$0xff] %v14475_v9 }
 0x470   : >> { %v14466_v30 = vpop.f32.mrf.mxu3 }
 0x471   : >> { %17737 = vst [vmem:[#allocation73_spill] sm:$0xff] %v14466_v30  ;;  %v14468_v28 = vpop.f32.mrf.mxu0  ;;  %v4916_v30 = vld [vmem:[#allocation2 + $0x27] sm:$0xff] }
 0x473   : >> { %11533 = vmatmul.msk.f32.gmra.mxu1 %vm267_vm7, %v4611_v62 }
 0x474   : >> { %11489 = vmatmul.msk.f32.gmra.mxu0 %vm267_vm7, %v3989_v8  ;;  %v14485_v8 = vpop.f32.mrf.mxu1  ;;  %v14490_v62 = vpop.f32.mrf.mxu2 }
 0x475   : >> { %11481 = vmatmul.msk.f32.gmra.mxu3 %vm267_vm7, %v3711_v35  ;;  %11574 = vmatmul.msk.f32.gmra.mxu2 %vm267_vm7, %v4614_v20  ;;  %17741 = vst [vmem:[#allocation77_spill] sm:$0xff] %v14485_v8  ;;  %v4918_v8 = vld [vmem:[#allocation2 + $0x37] sm:$0xff] }
 0x476   : >> { %17743 = vst [vmem:[#allocation79_spill] sm:$0xff] %v14490_v62 }
 0x478   : >> { %v14478_v6 = vpop.f32.mrf.mxu3 }
 0x479   : >> { %17740 = vst [vmem:[#allocation76_spill] sm:$0xff] %v14478_v6  ;;  %v14480_v13 = vpop.f32.mrf.mxu0  ;;  %v3991_v6 = vld [vmem:[#allocation2 + $0x3d] sm:$0xff] }
 0x47b   : >> { %11534 = vmatmul.msk.f32.gmra.mxu1 %vm267_vm7, %v4612_v22 }
 0x47c   : >> { %11490 = vmatmul.msk.f32.gmra.mxu0 %vm267_vm7, %v3990_v0  ;;  %v11644_v0 = vld [vmem:[%s17619_s2 + $0x110] sm:$0xff]  ;;  %v14507_v48 = vpop.f32.mrf.mxu2 }
 0x47d   : >> { %11606 = vmatmul.msk.f32.vlgmr.msrb.gmra.mxu3 %vm267_vm7, %v4916_v30  ;;  %11575 = vmatmul.msk.f32.gmra.mxu2 %vm267_vm7, %v4615_v61  ;;  %v14503_v30 = vpop.f32.mrf.mxu1  ;;  %17746 = vst [vmem:[#allocation82_spill] sm:$0xff] %v14507_v48 }
 0x47e   : >> { %5388 = vmatpush.msrb.mxu0 %v11644_v0  ;;  %17745 = vst [vmem:[#allocation81_spill] sm:$0xff] %v14503_v30  ;;  %v4919_v0 = vld [vmem:[#allocation2 + $0x3f] sm:$0xff] }
 0x480   : >> { %v14488_v35 = vpop.f32.mrf.mxu3 }
 0x481   : >> { %17742 = vst [vmem:[#allocation78_spill] sm:$0xff] %v14488_v35  ;;  %v14492_v9 = vpop.f32.mrf.mxu0  ;;  %v3992_v35 = vld [vmem:[#allocation2 + $0x45] sm:$0xff] }
 0x483   : >> { %11535 = vmatmul.msk.f32.gmra.mxu1 %vm267_vm7, %v4613_v1 }
 0x484   : >> { %11491 = vmatmul.msk.f32.gmra.mxu0 %vm267_vm7, %v3991_v6  ;;  %v3993_v6 = vld [vmem:[#allocation2 + $0x4d] sm:$0xff]  ;;  %v14521_v48 = vpop.f32.mrf.mxu2 }
 0x485   : >> { %11607 = vmatmul.msk.f32.gmra.mxu3 %vm267_vm7, %v4917_v25  ;;  %11576 = vmatmul.msk.f32.gmra.mxu2 %vm267_vm7, %v4616_v7  ;;  %v14517_v30 = vpop.f32.mrf.mxu1  ;;  %17749 = vst [vmem:[#allocation85_spill] sm:$0xff] %v14521_v48  ;;  %v3995_v48 = vld [vmem:[#allocation2 + $0x5d] sm:$0xff] }
 0x486   : >> { %17748 = vst [vmem:[#allocation84_spill] sm:$0xff] %v14517_v30 }
 0x488   : >> { %v14501_v22 = vpop.f32.mrf.mxu3 }
 0x489   : >> { %17744 = vst [vmem:[#allocation80_spill] sm:$0xff] %v14501_v22  ;;  %v14505_v62 = vpop.f32.mrf.mxu0  ;;  %v4617_v22 = vld [vmem:[#allocation2 + $0x7e] sm:$0xff] }
 0x48b   : >> { %11536 = vmatmul.msk.f32.gmra.mxu1 %vm267_vm7, %v4614_v20 }
 0x48c   : >> { %11492 = vmatmul.msk.f32.gmra.mxu0 %vm267_vm7, %v3992_v35  ;;  %v3994_v35 = vld [vmem:[#allocation2 + $0x55] sm:$0xff] }
 0x48d   : >> { %11608 = vmatmul.msk.f32.gmra.mxu3 %vm267_vm7, %v4918_v8  ;;  %11577 = vmatmul.msk.f32.gmra.mxu2 %vm267_vm7, %v4617_v22  ;;  %v14531_v30 = vpop.f32.mrf.mxu1 }
 0x48e   : >> { %17751 = vst [vmem:[#allocation87_spill] sm:$0xff] %v14531_v30  ;;  %v4922_v30 = vld [vmem:[#allocation2 + $0x57] sm:$0xff] }
 0x490   : >> { %v14513_v25 = vpop.f32.mrf.mxu3 }
 0x491   : >> { %17747 = vst [vmem:[#allocation83_spill] sm:$0xff] %v14513_v25  ;;  %v14515_v1 = vpop.f32.mrf.mxu0  ;;  %v4920_v25 = vld [vmem:[#allocation2 + $0x47] sm:$0xff] }
 0x493   : >> { %11537 = vmatmul.msk.f32.gmra.mxu1 %vm267_vm7, %v4615_v61 }
 0x494   : >> { %11493 = vmatmul.msk.f32.gmra.mxu0 %vm267_vm7, %v3993_v6  ;;  %v14534_v6 = vpop.f32.mrf.mxu2 }
 0x495   : >> { %11609 = vmatmul.msk.f32.gmra.mxu3 %vm267_vm7, %v4919_v0  ;;  %11578 = vmatmul.msk.f32.gmra.mxu2 %vm267_vm7, %v4618_v54  ;;  %17752 = vst [vmem:[#allocation88_spill] sm:$0xff] %v14534_v6 }
 0x498   : >> { %v14525_v20 = vpop.f32.mrf.mxu3 }
 0x499   : >> { %17750 = vst [vmem:[#allocation86_spill] sm:$0xff] %v14525_v20  ;;  %v14527_v8 = vpop.f32.mrf.mxu0  ;;  %v4921_v20 = vld [vmem:[#allocation2 + $0x4f] sm:$0xff] }
 0x49b   : >> { %11538 = vmatmul.msk.f32.gmra.mxu1 %vm267_vm7, %v4616_v7 }
 0x49c   : >> { %11494 = vmatmul.msk.f32.gmra.mxu0 %vm267_vm7, %v3994_v35  ;;  %v14544_v35 = vpop.f32.mrf.mxu1  ;;  %v14549_v7 = vpop.f32.mrf.mxu2 }
 0x49d   : >> { %11610 = vmatmul.msk.f32.gmra.mxu3 %vm267_vm7, %v4920_v25  ;;  %11579 = vmatmul.msk.f32.gmra.mxu2 %vm267_vm7, %v4619_v21  ;;  %17754 = vst [vmem:[#allocation90_spill] sm:$0xff] %v14544_v35  ;;  %v4621_v35 = vld [vmem:[#allocation2 + $0x9e] sm:$0xff] }
 0x49e   : >> { %17756 = vst [vmem:[#allocation92_spill] sm:$0xff] %v14549_v7  ;;  %v3997_v7 = vld [vmem:[#allocation2 + $0x6d] sm:$0xff] }
 0x4a0   : >> { %v14537_v61 = vpop.f32.mrf.mxu3 }
 0x4a1   : >> { %17753 = vst [vmem:[#allocation89_spill] sm:$0xff] %v14537_v61  ;;  %v14539_v0 = vpop.f32.mrf.mxu0  ;;  %v3996_v61 = vld [vmem:[#allocation2 + $0x65] sm:$0xff] }
 0x4a3   : >> { %11539 = vmatmul.msk.f32.gmra.mxu1 %vm267_vm7, %v4617_v22 }
 0x4a4   : >> { %11495 = vmatmul.msk.f32.gmra.mxu0 %vm267_vm7, %v3995_v48  ;;  %v14559_v22 = vpop.f32.mrf.mxu1  ;;  %v14563_v50 = vpop.f32.mrf.mxu2 }
 0x4a5   : >> { %11611 = vmatmul.msk.f32.gmra.mxu3 %vm267_vm7, %v4921_v20  ;;  %11580 = vmatmul.msk.f32.gmra.mxu2 %vm267_vm7, %v4620_v24  ;;  %17758 = vst [vmem:[#allocation94_spill] sm:$0xff] %v14559_v22  ;;  %v4622_v22 = vld [vmem:[#allocation2 + $0xa6] sm:$0xff] }
 0x4a8   : >> { %v14547_v25 = vpop.f32.mrf.mxu3 }
 0x4a9   : >> { %17755 = vst [vmem:[#allocation91_spill] sm:$0xff] %v14547_v25  ;;  %v14551_v6 = vpop.f32.mrf.mxu0  ;;  %v4923_v25 = vld [vmem:[#allocation2 + $0x5f] sm:$0xff] }
 0x4ab   : >> { %11540 = vmatmul.msk.f32.gmra.mxu1 %vm267_vm7, %v4618_v54 }
 0x4ac   : >> { %11496 = vmatmul.msk.f32.gmra.mxu0 %vm267_vm7, %v3996_v61  ;;  %v3998_v61 = vld [vmem:[#allocation2 + $0x75] sm:$0xff]  ;;  %v14573_v63 = vpop.f32.mrf.mxu1  ;;  %v14577_v52 = vpop.f32.mrf.mxu2 }
 0x4ad   : >> { %11612 = vmatmul.msk.f32.gmra.mxu3 %vm267_vm7, %v4922_v30  ;;  %11581 = vmatmul.msk.f32.gmra.mxu2 %vm267_vm7, %v4621_v35  ;;  %17761 = vst [vmem:[#allocation97_spill] sm:$0xff] %v14573_v63  ;;  %v4000_v63 = vld [vmem:[#allocation2 + $0x85] sm:$0xff] }
 0x4b0   : >> { %v14557_v48 = vpop.f32.mrf.mxu3 }
 0x4b1   : >> { %17757 = vst [vmem:[#allocation93_spill] sm:$0xff] %v14557_v48  ;;  %v14561_v20 = vpop.f32.mrf.mxu0  ;;  %v4924_v48 = vld [vmem:[#allocation2 + $0x67] sm:$0xff] }
 0x4b3   : >> { %11541 = vmatmul.msk.f32.gmra.mxu1 %vm267_vm7, %v4619_v21 }
 0x4b4   : >> { %11497 = vmatmul.msk.f32.gmra.mxu0 %vm267_vm7, %v3997_v7  ;;  %v3999_v7 = vld [vmem:[#allocation2 + $0x7d] sm:$0xff] }
 0x4b5   : >> { %11613 = vmatmul.msk.f32.gmra.mxu3 %vm267_vm7, %v4923_v25  ;;  %11582 = vmatmul.msk.f32.gmra.mxu2 %vm267_vm7, %v4622_v22 }
 0x4b8   : >> { %v14569_v54 = vpop.f32.mrf.mxu3  ;;  %v4462_v47 = vpop.f32.mrf.mxu1 }
 0x4b9   : >> { %17759 = vst [vmem:[#allocation95_spill] sm:$0xff] %v14569_v54  ;;  %v14571_v30 = vpop.f32.mrf.mxu0  ;;  %v4925_v54 = vld [vmem:[#allocation2 + $0x6f] sm:$0xff] }
 0x4ba   : >> { %17760 = vst [vmem:[#allocation96_spill] sm:$0xff] %v14571_v30  ;;  %v4002_v30 = vld [vmem:[#allocation2 + $0x95] sm:$0xff] }
 0x4bb   : >> { %11542 = vmatmul.msk.f32.gmra.mxu1 %vm267_vm7, %v4620_v24 }
 0x4bc   : >> { %11498 = vmatmul.msk.f32.gmra.mxu0 %vm267_vm7, %v3998_v61  ;;  %v4772_v61 = vpop.f32.mrf.mxu2 }
 0x4bd   : >> { %11614 = vmatmul.msk.f32.gmra.mxu3 %vm267_vm7, %v4924_v48  ;;  %11583 = vmatmul.msk.f32.gmra.mxu2 %vm267_vm7, %v4623_v36  ;;  %v5608_v48 = vld [vmem:[%s17618_s1] sm:$0xff] }
 0x4be   : >> { %5954 = vmatpush.msra.mxu2 %v5608_v48 }
 0x4c0   : >> { %v14581_v21 = vpop.f32.mrf.mxu3 }
 0x4c1   : >> { %17762 = vst [vmem:[#allocation98_spill] sm:$0xff] %v14581_v21  ;;  %v14583_v25 = vpop.f32.mrf.mxu0 }
 0x4c2   : >> { %17763 = vst [vmem:[#allocation99_spill] sm:$0xff] %v14583_v25  ;;  %v4926_v25 = vld [vmem:[#allocation2 + $0x77] sm:$0xff] }
 0x4c3   : >> { %11543 = vmatmul.msk.f32.gmra.mxu1 %vm267_vm7, %v4621_v35  ;;  %v11643_v35 = vld [vmem:[%s17619_s2 + $0x108] sm:$0xff] }
 0x4c4   : >> { %11499 = vmatmul.msk.f32.gmra.mxu0 %vm267_vm7, %v3999_v7  ;;  %v11682_v7 = vld [vmem:[%s17618_s1 + $0x8] sm:$0xff]  ;;  %v4775_v48 = vpop.f32.mrf.mxu2 }
 0x4c5   : >> { %11615 = vmatmul.msk.f32.gmra.mxu3 %vm267_vm7, %v4925_v54  ;;  %5782 = vmatpush.msra.mxu1 %v11682_v7  ;;  %v4465_v54 = vpop.f32.mrf.mxu1  ;;  %v4001_v7 = vld [vmem:[#allocation2 + $0x8d] sm:$0xff] }
 0x4c6   : >> { %11584 = vmatmul.msk.f32.gmra.mxu2 %vm267_vm7, %v4624_v16  ;;  %5389 = vmatpush.msrb.mxu0 %v11643_v35 }
 0x4c8   : >> { %v14592_v24 = vpop.f32.mrf.mxu3 }
 0x4c9   : >> { %17764 = vst [vmem:[#allocation100_spill] sm:$0xff] %v14592_v24  ;;  %v14594_v21 = vpop.f32.mrf.mxu0 }
 0x4ca   : >> { %17765 = vst [vmem:[#allocation101_spill] sm:$0xff] %v14594_v21 }
 0x4cb   : >> { %11544 = vmatmul.msk.f32.gmra.mxu1 %vm267_vm7, %v4622_v22 }
 0x4cc   : >> { %11500 = vmatmul.msk.f32.gmra.mxu0 %vm267_vm7, %v4000_v63  ;;  %v4927_v63 = vld [vmem:[#allocation2 + $0x7f] sm:$0xff]  ;;  %v4778_v19 = vpop.f32.mrf.mxu2 }
 0x4cd   : >> { %11616 = vmatmul.msk.f32.gmra.mxu3 %vm267_vm7, %v4926_v25  ;;  %v3640_v25 = vadd.f32 %v14456_v33, %v3259_v56  ;;  %v4468_v35 = vpop.f32.mrf.mxu1  ;;  %v4626_v56 = vld [vmem:[#allocation2 + $0xc6] sm:$0xff]  ;;  %v3641_v33 = vadd.f32 %v14468_v28, %v3262_v55  ;;  %v3268_v55 = vadd.f32 %v14267_v38, %v14055_v43 }
 0x4ce   : >> { %11585 = vmatmul.msk.f32.gmra.mxu2 %vm267_vm7, %v4625_v29 }
 0x4cf   : >> { %v3951_v5 = vadd.f32 %v14219_v3, %v3641_v33 }
 0x4d0   : >> { %v14606_v24 = vpop.f32.mrf.mxu3 }
 0x4d1   : >> { %17766 = vst [vmem:[#allocation102_spill] sm:$0xff] %v14606_v24  ;;  %v14608_v21 = vpop.f32.mrf.mxu0  ;;  %v3950_v24 = vadd.f32 %v14212_v26, %v3640_v25  ;;  %v4004_v25 = vld [vmem:[#allocation2 + $0xa5] sm:$0xff] }
 0x4d2   : >> { %17767 = vst [vmem:[#allocation103_spill] sm:$0xff] %v14608_v21 }
 0x4d3   : >> { %11545 = vmatmul.msk.f32.gmra.mxu1 %vm267_vm7, %v4623_v36 }
 0x4d4   : >> { %11501 = vmatmul.msk.f32.gmra.mxu0 %vm267_vm7, %v4001_v7 }
 0x4d5   : >> { %11617 = vmatmul.msk.f32.gmra.mxu3 %vm267_vm7, %v4927_v63  ;;  %v3265_v63 = vadd.f32 %v14250_v12, %v14041_v18 }
 0x4d6   : >> { %11586 = vmatmul.msk.f32.gmra.mxu2 %vm267_vm7, %v4626_v56 }
 0x4d8   : >> { %v14617_v22 = vpop.f32.mrf.mxu3 }
 0x4d9   : >> { %17768 = vst [vmem:[#allocation104_spill] sm:$0xff] %v14617_v22  ;;  %v4152_v21 = vpop.f32.mrf.mxu0 }
 0x4da   : >> { %v4260_v32 = vadd.f32 %v4152_v21, %v3950_v24  ;;  %v4003_v21 = vld [vmem:[#allocation2 + $0x9d] sm:$0xff]  ;;  %v4471_v24 = vpop.f32.mrf.mxu1 }
 0x4db   : >> { %11546 = vmatmul.msk.f32.gmra.mxu1 %vm267_vm7, %v4624_v16 }
 0x4dc   : >> { %v4570_v7 = vadd.f32 %v4462_v47, %v4260_v32  ;;  %11502 = vmatmul.msk.f32.gmra.mxu0 %vm267_vm7, %v4002_v30  ;;  %v4929_v32 = vld [vmem:[#allocation2 + $0x8f] sm:$0xff]  ;;  %v4781_v30 = vpop.f32.mrf.mxu2 }
 0x4dd   : >> { %11618 = vmatmul.msk.f32.gmra.mxu3 %vm267_vm7, %v4928_v42  ;;  %v4627_v47 = vld [vmem:[#allocation2 + $0xce] sm:$0xff]  ;;  %v3642_v42 = vadd.f32 %v14480_v13, %v3265_v63  ;;  %v4930_v13 = vld [vmem:[#allocation2 + $0x97] sm:$0xff] }
 0x4de   : >> { %v14626_v36 = vadd.f32 %v4772_v61, %v4570_v7  ;;  %11587 = vmatmul.msk.f32.gmra.mxu2 %vm267_vm7, %v4627_v47  ;;  %v3361_v7 = vadd.f32 %v14198_v58, %v14025_v49  ;;  %v4005_v63 = vld [vmem:[#allocation2 + $0xad] sm:$0xff] }
 0x4df   : >> { %v3952_v18 = vadd.f32 %v14233_v57, %v3642_v42 }
 0x4e0   : >> { %v14629_v26 = vpop.f32.mrf.mxu3  ;;  %v3674_v43 = vadd.f32 %v14563_v50, %v3361_v7  ;;  %v4007_v7 = vld [vmem:[#allocation2 + $0xbd] sm:$0xff] }
 0x4e1   : >> { %17769 = vst [vmem:[#allocation105_spill] sm:$0xff] %v14629_v26  ;;  %v4155_v53 = vpop.f32.mrf.mxu0  ;;  %v5240_v26 = vld [vmem:[#allocation2 + $0x98] sm:$0xff] }
 0x4e2   : >> { %v4261_v28 = vadd.f32 %v4155_v53, %v3951_v5  ;;  %v4474_v5 = vpop.f32.mrf.mxu1 }
 0x4e3   : >> { %11547 = vmatmul.msk.f32.gmra.mxu1 %vm267_vm7, %v4625_v29  ;;  %v3643_v29 = vadd.f32 %v14492_v9, %v3268_v55  ;;  %v3271_v9 = vadd.f32 %v14281_v23, %v14069_v46  ;;  %v4630_v55 = vld [vmem:[#allocation2 + $0xe6] sm:$0xff] }
 0x4e4   : >> { %v4571_v61 = vadd.f32 %v4465_v54, %v4261_v28  ;;  %11503 = vmatmul.msk.f32.gmra.mxu0 %vm267_vm7, %v4003_v21  ;;  %v4628_v54 = vld [vmem:[#allocation2 + $0xd6] sm:$0xff]  ;;  %v4784_v57 = vpop.f32.mrf.mxu2  ;;  %v4931_v28 = vld [vmem:[#allocation2 + $0x9f] sm:$0xff] }
 0x4e5   : >> { %11619 = vmatmul.msk.f32.gmra.mxu3 %vm267_vm7, %v4929_v32  ;;  %v3953_v49 = vadd.f32 %v14244_v37, %v3643_v29  ;;  %v4629_v32 = vld [vmem:[#allocation2 + $0xde] sm:$0xff]  ;;  %v3644_v50 = vadd.f32 %v14505_v62, %v3271_v9  ;;  %v4006_v62 = vld [vmem:[#allocation2 + $0xb5] sm:$0xff] }
 0x4e6   : >> { %v14638_v3 = vadd.f32 %v4775_v48, %v4571_v61  ;;  %11588 = vmatmul.msk.f32.gmra.mxu2 %vm267_vm7, %v4628_v54  ;;  %v4934_v9 = vld [vmem:[#allocation2 + $0xb7] sm:$0xff] }
 0x4e8   : >> { %v14641_v16 = vpop.f32.mrf.mxu3 }
 0x4e9   : >> { %17770 = vst [vmem:[#allocation106_spill] sm:$0xff] %v14641_v16  ;;  %v4158_v12 = vpop.f32.mrf.mxu0 }
 0x4ea   : >> { %v4262_v33 = vadd.f32 %v4158_v12, %v3952_v18  ;;  %v4477_v37 = vpop.f32.mrf.mxu1 }
 0x4eb   : >> { %11548 = vmatmul.msk.f32.gmra.mxu1 %vm267_vm7, %v4626_v56 }
 0x4ec   : >> { %v4572_v48 = vadd.f32 %v4468_v35, %v4262_v33  ;;  %11504 = vmatmul.msk.f32.gmra.mxu0 %vm267_vm7, %v4004_v25  ;;  %v4787_v23 = vpop.f32.mrf.mxu2  ;;  %v4932_v25 = vld [vmem:[#allocation2 + $0xa7] sm:$0xff] }
 0x4ed   : >> { %11620 = vmatmul.msk.f32.gmra.mxu3 %vm267_vm7, %v4930_v13 }
 0x4ee   : >> { %v14652_v53 = vadd.f32 %v4778_v19, %v4572_v48  ;;  %v3364_v19 = vadd.f32 %v14205_v60, %v14039_v41  ;;  %11589 = vmatmul.msk.f32.gmra.mxu2 %vm267_vm7, %v4629_v32  ;;  %v3954_v60 = vadd.f32 %v14256_v40, %v3644_v50  ;;  %v4933_v48 = vld [vmem:[#allocation2 + $0xaf] sm:$0xff] }
 0x4f0   : >> { %v3944_v38 = vpop.f32.mrf.mxu3  ;;  %v3675_v46 = vadd.f32 %v14577_v52, %v3364_v19 }
 0x4f1   : >> { %v14657_v58 = vadd.f32 %v3944_v38, %v3674_v43  ;;  %v4161_v21 = vpop.f32.mrf.mxu0  ;;  %v4631_v43 = vld [vmem:[#allocation2 + $0xee] sm:$0xff] }
 0x4f2   : >> { %v4263_v35 = vadd.f32 %v4161_v21, %v3953_v49  ;;  %v4008_v49 = vld [vmem:[#allocation2 + $0xc5] sm:$0xff] }
 0x4f3   : >> { %17771 = vst [vmem:[#allocation107_spill] sm:$0xff] %v14657_v58  ;;  %11549 = vmatmul.msk.f32.gmra.mxu1 %vm267_vm7, %v4627_v47  ;;  %v4480_v47 = vpop.f32.mrf.mxu1 }
 0x4f4   : >> { %v4573_v56 = vadd.f32 %v4471_v24, %v4263_v35  ;;  %11505 = vmatmul.msk.f32.gmra.mxu0 %vm267_vm7, %v4005_v63  ;;  %v3274_v24 = vadd.f32 %v14301_v10, %v14083_v51  ;;  %v4790_v29 = vpop.f32.mrf.mxu2  ;;  %v4632_v35 = vld [vmem:[#allocation2 + $0xf6] sm:$0xff] }
 0x4f5   : >> { %11621 = vmatmul.msk.f32.gmra.mxu3 %vm267_vm7, %v4931_v28 }
 0x4f6   : >> { %v14667_v42 = vadd.f32 %v4781_v30, %v4573_v56  ;;  %11590 = vmatmul.msk.f32.gmra.mxu2 %vm267_vm7, %v4630_v55  ;;  %v3645_v52 = vadd.f32 %v14515_v1, %v3274_v24  ;;  %v3277_v1 = vadd.f32 %v14318_v4, %v14097_v11  ;;  %v4009_v56 = vld [vmem:[#allocation2 + $0xcd] sm:$0xff] }
 0x4f8   : >> { %v3947_v61 = vpop.f32.mrf.mxu3  ;;  %v3955_v51 = vadd.f32 %v14269_v31, %v3645_v52  ;;  %v4936_v52 = vld [vmem:[#allocation2 + $0xc7] sm:$0xff] }
 0x4f9   : >> { %v14672_v41 = vadd.f32 %v3947_v61, %v3675_v46  ;;  %v4164_v18 = vpop.f32.mrf.mxu0  ;;  %v4935_v46 = vld [vmem:[#allocation2 + $0xbf] sm:$0xff] }
 0x4fa   : >> { %v4264_v12 = vadd.f32 %v4164_v18, %v3954_v60 }
 0x4fb   : >> { %17772 = vst [vmem:[#allocation108_spill] sm:$0xff] %v14672_v41  ;;  %11550 = vmatmul.msk.f32.gmra.mxu1 %vm267_vm7, %v4628_v54  ;;  %v4483_v21 = vpop.f32.mrf.mxu1  ;;  %v5239_v41 = vld [vmem:[#allocation2 + $0x90] sm:$0xff] }
 0x4fc   : >> { %v4574_v30 = vadd.f32 %v4474_v5, %v4264_v12  ;;  %11506 = vmatmul.msk.f32.gmra.mxu0 %vm267_vm7, %v4006_v62  ;;  %v4793_v28 = vpop.f32.mrf.mxu2  ;;  %v4010_v12 = vld [vmem:[#allocation2 + $0xd5] sm:$0xff] }
 0x4fd   : >> { %11622 = vmatmul.msk.f32.gmra.mxu3 %vm267_vm7, %v4932_v25  ;;  %v3286_v25 = vadd.f32 %v14386_v44, %v14136_v2 }
 0x4fe   : >> { %v14680_v40 = vadd.f32 %v4784_v57, %v4574_v30  ;;  %11591 = vmatmul.msk.f32.gmra.mxu2 %vm267_vm7, %v4631_v43  ;;  %v3646_v57 = vadd.f32 %v14527_v8, %v3277_v1  ;;  %v3280_v8 = vadd.f32 %v14332_v15, %v14110_v17  ;;  %v4634_v30 = vld [vmem:[#allocation2 + $0x106] sm:$0xff]  ;;  %v17774_v1 = vld [vmem:[#allocation58_spill] sm:$0xff] }
 0x500   : >> { %v5082_v33 = vpop.f32.mrf.mxu3  ;;  %v3956_v38 = vadd.f32 %v14279_v59, %v3646_v57  ;;  %v4635_v57 = vld [vmem:[#allocation2 + $0x10e] sm:$0xff] }
 0x501   : >> { %v14685_v10 = vadd.f32 %v5082_v33, %v14626_v36  ;;  %v4167_v13 = vpop.f32.mrf.mxu0 }
 0x502   : >> { %v4265_v5 = vadd.f32 %v4167_v13, %v3955_v51 }
 0x503   : >> { %11551 = vmatmul.msk.f32.gmra.mxu1 %vm267_vm7, %v4629_v32  ;;  %v3647_v32 = vadd.f32 %v14539_v0, %v3280_v8  ;;  %v3283_v0 = vadd.f32 %v14355_v34, %v14123_v14  ;;  %v4486_v61 = vpop.f32.mrf.mxu1 }
 0x504   : >> { %v4575_v54 = vadd.f32 %v4477_v37, %v4265_v5  ;;  %11507 = vmatmul.msk.f32.gmra.mxu0 %vm267_vm7, %v4007_v7 }
 0x505   : >> { %11623 = vmatmul.msk.f32.gmra.mxu3 %vm267_vm7, %v4933_v48  ;;  %v3957_v17 = vadd.f32 %v14294_v27, %v3647_v32  ;;  %v3648_v60 = vadd.f32 %v14551_v6, %v3283_v0  ;;  %v4796_v27 = vpop.f32.mrf.mxu2  ;;  %v17778_v32 = vld [vmem:[#allocation62_spill] sm:$0xff] }
 0x506   : >> { %v14693_v31 = vadd.f32 %v4787_v23, %v4575_v54  ;;  %11592 = vmatmul.msk.f32.gmra.mxu2 %vm267_vm7, %v4632_v35  ;;  %v4633_v23 = vld [vmem:[#allocation2 + $0xfe] sm:$0xff]  ;;  %v17775_v54 = vld [vmem:[#allocation96_spill] sm:$0xff] }
 0x507   : >> { %v3958_v34 = vadd.f32 %v14309_v39, %v3648_v60 }
 0x508   : >> { %v5085_v36 = vpop.f32.mrf.mxu3 }
 0x509   : >> { %v14698_v11 = vadd.f32 %v5085_v36, %v14638_v3  ;;  %v4170_v4 = vpop.f32.mrf.mxu0 }
 0x50a   : >> { %v4266_v63 = vadd.f32 %v4170_v4, %v3956_v38 }
 0x50b   : >> { %11552 = vmatmul.msk.f32.gmra.mxu1 %vm267_vm7, %v4630_v55  ;;  %v4489_v39 = vpop.f32.mrf.mxu1 }
 0x50c   : >> { %v4576_v19 = vadd.f32 %v4480_v47, %v4266_v63  ;;  %11508 = vmatmul.msk.f32.gmra.mxu0 %vm267_vm7, %v4008_v49  ;;  %v3649_v47 = vadd.f32 %v14561_v20, %v3286_v25  ;;  %v17773_v20 = vld [vmem:[#allocation19_spill] sm:$0xff] }
 0x50d   : >> { %11624 = vmatmul.msk.f32.gmra.mxu3 %vm267_vm7, %v4934_v9  ;;  %v4799_v51 = vpop.f32.mrf.mxu2  ;;  %v3289_v5 = vadd.f32 %v17774_v1, %v17773_v20  ;;  %v17776_v49 = vld [vmem:[#allocation47_spill] sm:$0xff] }
 0x50e   : >> { %v14706_v59 = vadd.f32 %v4790_v29, %v4576_v19  ;;  %11593 = vmatmul.msk.f32.gmra.mxu2 %vm267_vm7, %v4633_v23  ;;  %v3959_v2 = vadd.f32 %v14324_v45, %v3649_v47  ;;  %v4011_v29 = vld [vmem:[#allocation2 + $0xdd] sm:$0xff]  ;;  %v4012_v9 = vld [vmem:[#allocation2 + $0xe5] sm:$0xff]  ;;  %v4014_v47 = vld [vmem:[#allocation2 + $0xf5] sm:$0xff] }
 0x50f   : >> { %v3650_v36 = vadd.f32 %v17775_v54, %v3289_v5 }
 0x510   : >> { %v5088_v3 = vpop.f32.mrf.mxu3 }
 0x511   : >> { %v14711_v15 = vadd.f32 %v5088_v3, %v14652_v53  ;;  %v4173_v50 = vpop.f32.mrf.mxu0  ;;  %v11642_v53 = vld [vmem:[%s17619_s2 + $0x100] sm:$0xff] }
 0x512   : >> { %v4267_v37 = vadd.f32 %v4173_v50, %v3957_v17  ;;  %5390 = vmatpush.msrb.mxu0 %v11642_v53  ;;  %v4938_v17 = vld [vmem:[#allocation2 + $0xd7] sm:$0xff]  ;;  %v4013_v53 = vld [vmem:[#allocation2 + $0xed] sm:$0xff] }
 0x513   : >> { %11553 = vmatmul.msk.f32.gmra.mxu1 %vm267_vm7, %v4631_v43  ;;  %v4937_v43 = vld [vmem:[#allocation2 + $0xcf] sm:$0xff] }
 0x514   : >> { %v4577_v18 = vadd.f32 %v4483_v21, %v4267_v37  ;;  %11509 = vmatmul.msk.f32.gmra.mxu0 %vm267_vm7, %v4009_v56  ;;  %v3960_v21 = vadd.f32 %v17776_v49, %v3650_v36  ;;  %v4636_v50 = vld [vmem:[#allocation2 + $0x116] sm:$0xff]  ;;  %v17779_v56 = vld [vmem:[#allocation99_spill] sm:$0xff] }
 0x515   : >> { %11625 = vmatmul.msk.f32.gmra.mxu3 %vm267_vm7, %v4935_v46 }
 0x516   : >> { %v14722_v62 = vadd.f32 %v4793_v28, %v4577_v18  ;;  %11594 = vmatmul.msk.f32.gmra.mxu2 %vm267_vm7, %v4634_v30  ;;  %v17777_v28 = vld [vmem:[#allocation21_spill] sm:$0xff] }
 0x517   : >> { %v3292_v19 = vadd.f32 %v17778_v32, %v17777_v28  ;;  %v4019_v32 = vld [vmem:[#allocation2 + $0x11d] sm:$0xff] }
 0x518   : >> { %v5091_v14 = vpop.f32.mrf.mxu3 }
 0x519   : >> { %v14727_v6 = vadd.f32 %v5091_v14, %v14667_v42  ;;  %v4176_v24 = vpop.f32.mrf.mxu0  ;;  %v3651_v0 = vadd.f32 %v17779_v56, %v3292_v19  ;;  %v4945_v19 = vld [vmem:[#allocation2 + $0x10f] sm:$0xff] }
 0x51a   : >> { %v4268_v55 = vadd.f32 %v4176_v24, %v3958_v34  ;;  %v4939_v34 = vld [vmem:[#allocation2 + $0xdf] sm:$0xff] }
 0x51b   : >> { %11554 = vmatmul.msk.f32.gmra.mxu1 %vm267_vm7, %v4632_v35  ;;  %v4802_v35 = vpop.f32.mrf.mxu2  ;;  %v4637_v24 = vld [vmem:[#allocation2 + $0x11e] sm:$0xff] }
 0x51c   : >> { %v4578_v33 = vadd.f32 %v4486_v61, %v4268_v55  ;;  %11510 = vmatmul.msk.f32.gmra.mxu0 %vm267_vm7, %v4010_v12 }
 0x51d   : >> { %11626 = vmatmul.msk.f32.gmra.mxu3 %vm267_vm7, %v4936_v52 }
 0x51e   : >> { %v14735_v42 = vadd.f32 %v4796_v27, %v4578_v33  ;;  %11595 = vmatmul.msk.f32.gmra.mxu2 %vm267_vm7, %v4635_v57  ;;  %v4940_v33 = vld [vmem:[#allocation2 + $0xe7] sm:$0xff] }
 0x520   : >> { %v5094_v13 = vpop.f32.mrf.mxu3 }
 0x521   : >> { %v14740_v44 = vadd.f32 %v5094_v13, %v14680_v40  ;;  %v4179_v7 = vpop.f32.mrf.mxu0  ;;  %v4492_v40 = vpop.f32.mrf.mxu1 }
 0x522   : >> { %v4269_v48 = vadd.f32 %v4179_v7, %v3959_v2  ;;  %v4941_v7 = vld [vmem:[#allocation2 + $0xef] sm:$0xff] }
 0x523   : >> { %11555 = vmatmul.msk.f32.gmra.mxu1 %vm267_vm7, %v4633_v23  ;;  %v17780_v23 = vld [vmem:[#allocation50_spill] sm:$0xff]  ;;  %v4805_v12 = vpop.f32.mrf.mxu2 }
 0x524   : >> { %v4579_v38 = vadd.f32 %v4489_v39, %v4269_v48  ;;  %11511 = vmatmul.msk.f32.gmra.mxu0 %vm267_vm7, %v4011_v29  ;;  %v3961_v61 = vadd.f32 %v17780_v23, %v3651_v0  ;;  %v4638_v39 = vld [vmem:[#allocation2 + $0x126] sm:$0xff]  ;;  %v4639_v29 = vld [vmem:[#allocation2 + $0x12e] sm:$0xff]  ;;  %v4942_v48 = vld [vmem:[#allocation2 + $0xf7] sm:$0xff] }
 0x525   : >> { %11627 = vmatmul.msk.f32.gmra.mxu3 %vm267_vm7, %v4937_v43  ;;  %v4640_v43 = vld [vmem:[#allocation2 + $0x136] sm:$0xff]  ;;  %v4021_v0 = vld [vmem:[#allocation2 + $0x12d] sm:$0x3f] }
 0x526   : >> { %v4889_v45 = vadd.f32 %v4799_v51, %v4579_v38  ;;  %11596 = vmatmul.msk.f32.gmra.mxu2 %vm267_vm7, %v4636_v50  ;;  %v4017_v38 = vld [vmem:[#allocation2 + $0x10d] sm:$0xff] }
 0x527   : >> { %v4948_v23 = vld [vmem:[#allocation2 + $0x127] sm:$0xff] }
 0x528   : >> { %v5097_v4 = vpop.f32.mrf.mxu3 }
 0x529   : >> { %v14751_v8 = vadd.f32 %v5097_v4, %v14693_v31  ;;  %v4182_v63 = vpop.f32.mrf.mxu0  ;;  %v4495_v27 = vpop.f32.mrf.mxu1  ;;  %v4331_v4 = vld [vmem:[#allocation2 + $0x12e] sm:$0x3f] }
 0x52a   : >> { %v4270_v3 = vadd.f32 %v4182_v63, %v3960_v21 }
 0x52b   : >> { %11556 = vmatmul.msk.f32.gmra.mxu1 %vm267_vm7, %v4634_v30 }
 0x52c   : >> { %v4580_v37 = vadd.f32 %v4492_v40, %v4270_v3  ;;  %11512 = vmatmul.msk.f32.gmra.mxu0 %vm267_vm7, %v4012_v9  ;;  %v4641_v40 = vld [vmem:[#allocation2 + $0x13e] sm:$0x3f]  ;;  %v4018_v9 = vld [vmem:[#allocation2 + $0x115] sm:$0xff] }
 0x52d   : >> { %11628 = vmatmul.msk.f32.gmra.mxu3 %vm267_vm7, %v4938_v17  ;;  %v4020_v17 = vld [vmem:[#allocation2 + $0x125] sm:$0xff] }
 0x52e   : >> { %v4890_v31 = vadd.f32 %v4802_v35, %v4580_v37  ;;  %11597 = vmatmul.msk.f32.gmra.mxu2 %vm267_vm7, %v4637_v24  ;;  %v4944_v35 = vld [vmem:[#allocation2 + $0x107] sm:$0xff]  ;;  %v4947_v37 = vld [vmem:[#allocation2 + $0x11f] sm:$0xff] }
 0x530   : >> { %v5100_v46 = vpop.f32.mrf.mxu3 }
 0x531   : >> { %v14762_v60 = vadd.f32 %v5100_v46, %v14706_v59  ;;  %v4185_v18 = vpop.f32.mrf.mxu0  ;;  %v5226_v46 = vld [vmem:[#allocation2 + $0x28] sm:$0xff] }
 0x532   : >> { %v4271_v14 = vadd.f32 %v4185_v18, %v3961_v61  ;;  %v5227_v18 = vld [vmem:[#allocation2 + $0x30] sm:$0xff] }
 0x533   : >> { %11557 = vmatmul.msk.f32.gmra.mxu1 %vm267_vm7, %v4635_v57 }
 0x534   : >> { %v4581_v25 = vadd.f32 %v4495_v27, %v4271_v14  ;;  %11513 = vmatmul.msk.f32.gmra.mxu0 %vm267_vm7, %v4013_v53  ;;  %v4949_v27 = vld [vmem:[#allocation2 + $0x12f] sm:$0xff]  ;;  %v5228_v14 = vld [vmem:[#allocation2 + $0x38] sm:$0xff] }
 0x535   : >> { %11629 = vmatmul.msk.f32.gmra.mxu3 %vm267_vm7, %v4939_v34  ;;  %v4950_v34 = vld [vmem:[#allocation2 + $0x137] sm:$0xff] }
 0x536   : >> { %v4891_v55 = vadd.f32 %v4805_v12, %v4581_v25  ;;  %11598 = vmatmul.msk.f32.gmra.mxu2 %vm267_vm7, %v4638_v39  ;;  %v5229_v12 = vld [vmem:[#allocation2 + $0x40] sm:$0xff] }
 0x537   : >> { %v4951_v25 = vld [vmem:[#allocation2 + $0x13f] sm:$0x3f] }
 0x538   : >> { %v5103_v52 = vpop.f32.mrf.mxu3 }
 0x539   : >> { %v14769_v59 = vadd.f32 %v5103_v52, %v14722_v62  ;;  %v14771_v30 = vpop.f32.mrf.mxu0  ;;  %v4015_v62 = vld [vmem:[#allocation2 + $0xfd] sm:$0xff]  ;;  %v14838_v52 = vpop.f32.mrf.mxu1 }
 0x53b   : >> { %11558 = vmatmul.msk.f32.gmra.mxu1 %vm267_vm7, %v4636_v50  ;;  %v4946_v50 = vld [vmem:[#allocation2 + $0x117] sm:$0xff] }
 0x53c   : >> { %11514 = vmatmul.msk.f32.gmra.mxu0 %vm267_vm7, %v4014_v47 }
 0x53d   : >> { %11630 = vmatmul.msk.f32.gmra.mxu3 %vm267_vm7, %v4940_v33  ;;  %v5230_v33 = vld [vmem:[#allocation2 + $0x48] sm:$0xff] }
 0x53e   : >> { %11599 = vmatmul.msk.f32.gmra.mxu2 %vm267_vm7, %v4639_v29 }
 0x540   : >> { %v5106_v51 = vpop.f32.mrf.mxu3 }
 0x541   : >> { %v14778_v13 = vadd.f32 %v5106_v51, %v14735_v42  ;;  %v14780_v2 = vpop.f32.mrf.mxu0  ;;  %v4016_v42 = vld [vmem:[#allocation2 + $0x105] sm:$0xff]  ;;  %v14849_v29 = vpop.f32.mrf.mxu1 }
 0x543   : >> { %11559 = vmatmul.msk.f32.gmra.mxu1 %vm267_vm7, %v4637_v24 }
 0x544   : >> { %11515 = vmatmul.msk.f32.gmra.mxu0 %vm267_vm7, %v4015_v62 }
 0x545   : >> { %11631 = vmatmul.msk.f32.gmra.mxu3 %vm267_vm7, %v4941_v7  ;;  %v5231_v7 = vld [vmem:[#allocation2 + $0x50] sm:$0xff] }
 0x546   : >> { %11600 = vmatmul.msk.f32.gmra.mxu2 %vm267_vm7, %v4640_v43  ;;  %v5232_v43 = vld [vmem:[#allocation2 + $0x58] sm:$0xff] }
 0x548   : >> { %v5109_v20 = vpop.f32.mrf.mxu3 }
 0x549   : >> { %v14786_v1 = vadd.f32 %v5109_v20, %v4889_v45  ;;  %v14788_v5 = vpop.f32.mrf.mxu0  ;;  %v4943_v45 = vld [vmem:[#allocation2 + $0xff] sm:$0xff] }
 0x54b   : >> { %11560 = vmatmul.msk.f32.gmra.mxu1 %vm267_vm7, %v4638_v39 }
 0x54c   : >> { %11516 = vmatmul.msk.f32.gmra.mxu0 %vm267_vm7, %v4016_v42 }
 0x54d   : >> { %11632 = vmatmul.msk.f32.gmra.mxu3 %vm267_vm7, %v4942_v48 }
 0x54e   : >> { %11601 = vmatmul.msk.f32.gmra.mxu2 %vm267_vm7, %v4641_v40  ;;  %v5233_v40 = vld [vmem:[#allocation2 + $0x60] sm:$0xff] }
 0x550   : >> { %v5112_v57 = vpop.f32.mrf.mxu3 }
 0x551   : >> { %v14794_v54 = vadd.f32 %v5112_v57, %v4890_v31  ;;  %v14796_v36 = vpop.f32.mrf.mxu0  ;;  %v14858_v57 = vpop.f32.mrf.mxu1 }
 0x553   : >> { %11561 = vmatmul.msk.f32.gmra.mxu1 %vm267_vm7, %v4331_v4 }
 0x554   : >> { %11517 = vmatmul.msk.f32.gmra.mxu0 %vm267_vm7, %v4017_v38 }
 0x555   : >> { %11633 = vmatmul.msk.f32.gmra.mxu3 %vm267_vm7, %v4943_v45 }
 0x558   : >> { %v5115_v49 = vpop.f32.mrf.mxu3 }
 0x559   : >> { %v14802_v21 = vadd.f32 %v5115_v49, %v4891_v55  ;;  %v14804_v63 = vpop.f32.mrf.mxu0  ;;  %v14834_v55 = vpop.f32.mrf.mxu2 }
 0x55a   : >> { %v14868_v49 = vpop.f32.mrf.mxu1 }
 0x55c   : >> { %11518 = vmatmul.msk.f32.gmra.mxu0 %vm267_vm7, %v4018_v9 }
 0x55d   : >> { %11634 = vmatmul.msk.f32.gmra.mxu3 %vm267_vm7, %v4944_v35  ;;  %v5234_v35 = vld [vmem:[#allocation2 + $0x68] sm:$0xff] }
 0x560   : >> { %v14845_v51 = vpop.f32.mrf.mxu3 }
 0x561   : >> { %v14808_v28 = vpop.f32.mrf.mxu0  ;;  %v14843_v39 = vpop.f32.mrf.mxu2 }
 0x564   : >> { %11519 = vmatmul.msk.f32.gmra.mxu0 %vm267_vm7, %v4019_v32  ;;  %v11745_v32 = vld [vmem:[%s17618_s1 + $0x10] sm:$0xff] }
 0x565   : >> { %11635 = vmatmul.msk.f32.gmra.mxu3 %vm267_vm7, %v4945_v19 }
 0x566   : >> { %6190 = vmatpush.msra.mxu3 %v11745_v32 }
 0x568   : >> { %v14854_v42 = vpop.f32.mrf.mxu3 }
 0x569   : >> { %v14812_v3 = vpop.f32.mrf.mxu0  ;;  %v14852_v20 = vpop.f32.mrf.mxu2 }
 0x56c   : >> { %11520 = vmatmul.msk.f32.gmra.mxu0 %vm267_vm7, %v4020_v17 }
 0x56d   : >> { %11636 = vmatmul.msk.f32.gmra.mxu3 %vm267_vm7, %v4946_v50  ;;  %v14880_v50 = vpop.f32.mrf.mxu1 }
 0x570   : >> { %v14865_v4 = vpop.f32.mrf.mxu3 }
 0x571   : >> { %v14816_v56 = vpop.f32.mrf.mxu0  ;;  %v14861_v38 = vpop.f32.mrf.mxu2 }
 0x574   : >> { %11521 = vmatmul.msk.f32.gmra.mxu0 %vm267_vm7, %v4021_v0 }
 0x575   : >> { %11637 = vmatmul.msk.f32.gmra.mxu3 %vm267_vm7, %v4947_v37  ;;  %v5235_v37 = vld [vmem:[#allocation2 + $0x70] sm:$0xff] }
 0x578   : >> { %v14877_v17 = vpop.f32.mrf.mxu3 }
 0x579   : >> { %v14820_v31 = vpop.f32.mrf.mxu0  ;;  %v14875_v19 = vpop.f32.mrf.mxu2 }
 0x57c   : >> { %11646 = vmatmul.msk.f32.vlgmr.msrb.gmra.mxu0 %vm267_vm7, %v5226_v46 }
 0x57d   : >> { %11638 = vmatmul.msk.f32.gmra.mxu3 %vm267_vm7, %v4948_v23 }
 0x580   : >> { %v14887_v23 = vpop.f32.mrf.mxu3 }
 0x581   : >> { %v14824_v61 = vpop.f32.mrf.mxu0  ;;  %v14885_v46 = vpop.f32.mrf.mxu2 }
 0x584   : >> { %11647 = vmatmul.msk.f32.gmra.mxu0 %vm267_vm7, %v5227_v18 }
 0x585   : >> { %11639 = vmatmul.msk.f32.gmra.mxu3 %vm267_vm7, %v4949_v27  ;;  %v5236_v27 = vld [vmem:[#allocation2 + $0x78] sm:$0xff] }
 0x589   : >> { %v14828_v53 = vpop.f32.mrf.mxu0 }
 0x58a   : >> { %17781 = vst [vmem:[#allocation19_spill] sm:$0xff] %v14828_v53 }
 0x58c   : >> { %11648 = vmatmul.msk.f32.gmra.mxu0 %vm267_vm7, %v5228_v14  ;;  %v14891_v14 = vpop.f32.mrf.mxu1 }
 0x58d   : >> { %11640 = vmatmul.msk.f32.gmra.mxu3 %vm267_vm7, %v4950_v34  ;;  %v14894_v34 = vpop.f32.mrf.mxu2 }
 0x591   : >> { %v14832_v24 = vpop.f32.mrf.mxu0 }
 0x592   : >> { %17782 = vst [vmem:[#allocation58_spill] sm:$0xff] %v14832_v24  ;;  %v5243_v24 = vld [vmem:[#allocation2 + $0xb0] sm:$0xff] }
 0x594   : >> { %11649 = vmatmul.msk.f32.gmra.mxu0 %vm267_vm7, %v5229_v12  ;;  %v14896_v12 = vpop.f32.mrf.mxu3 }
 0x595   : >> { %11641 = vmatmul.msk.f32.gmra.mxu3 %vm267_vm7, %v4951_v25 }
 0x599   : >> { %v14840_v47 = vpop.f32.mrf.mxu0 }
 0x59a   : >> { %17783 = vst [vmem:[#allocation96_spill] sm:$0xff] %v14840_v47 }
 0x59c   : >> { %11650 = vmatmul.msk.f32.gmra.mxu0 %vm267_vm7, %v5230_v33  ;;  %v5237_v33 = vld [vmem:[#allocation2 + $0x80] sm:$0xff]  ;;  %v14907_v32 = vpop.f32.mrf.mxu3 }
 0x5a1   : >> { %v14847_v62 = vpop.f32.mrf.mxu0 }
 0x5a2   : >> { %17784 = vst [vmem:[#allocation47_spill] sm:$0xff] %v14847_v62 }
 0x5a4   : >> { %11651 = vmatmul.msk.f32.gmra.mxu0 %vm267_vm7, %v5231_v7  ;;  %v14900_v7 = vpop.f32.mrf.mxu1  ;;  %v14916_v16 = vpop.f32.mrf.mxu3 }
 0x5a9   : >> { %v14856_v48 = vpop.f32.mrf.mxu0 }
 0x5aa   : >> { %17785 = vst [vmem:[#allocation21_spill] sm:$0xff] %v14856_v48 }
 0x5ac   : >> { %11652 = vmatmul.msk.f32.gmra.mxu0 %vm267_vm7, %v5232_v43  ;;  %v14903_v43 = vpop.f32.mrf.mxu2 }
 0x5b1   : >> { %v14863_v45 = vpop.f32.mrf.mxu0 }
 0x5b2   : >> { %17786 = vst [vmem:[#allocation62_spill] sm:$0xff] %v14863_v45  ;;  %v5242_v45 = vld [vmem:[#allocation2 + $0xa8] sm:$0xff] }
 0x5b4   : >> { %11653 = vmatmul.msk.f32.gmra.mxu0 %vm267_vm7, %v5233_v40  ;;  %v14914_v58 = vpop.f32.mrf.mxu2 }
 0x5b9   : >> { %v14870_v9 = vpop.f32.mrf.mxu0 }
 0x5ba   : >> { %17787 = vst [vmem:[#allocation99_spill] sm:$0xff] %v14870_v9  ;;  %v5536_v9 = vld [vmem:[%s12483_s14] sm:$0xff] }
 0x5bc   : >> { %11654 = vmatmul.msk.f32.gmra.mxu0 %vm267_vm7, %v5234_v35  ;;  %v5238_v35 = vld [vmem:[#allocation2 + $0x88] sm:$0xff] }
 0x5c1   : >> { %v14882_v0 = vpop.f32.mrf.mxu0 }
 0x5c2   : >> { %17788 = vst [vmem:[#allocation50_spill] sm:$0xff] %v14882_v0 }
 0x5c4   : >> { %11655 = vmatmul.msk.f32.gmra.mxu0 %vm267_vm7, %v5235_v37  ;;  %v14910_v37 = vpop.f32.mrf.mxu1 }
 0x5c9   : >> { %v14889_v18 = vpop.f32.mrf.mxu0 }
 0x5ca   : >> { %17789 = vst [vmem:[#allocation109_spill] sm:$0xff] %v14889_v18 }
 0x5cc   : >> { %11656 = vmatmul.msk.f32.gmra.mxu0 %vm267_vm7, %v5236_v27 }
 0x5d1   : >> { %v14898_v25 = vpop.f32.mrf.mxu0 }
 0x5d2   : >> { %17790 = vst [vmem:[#allocation110_spill] sm:$0xff] %v14898_v25  ;;  %v14930_v25 = vpop.f32.mrf.mxu2 }
 0x5d3   : >> { %17794 = vst [vmem:[#allocation114_spill] sm:$0xff] %v14930_v25 }
 0x5d4   : >> { %11657 = vmatmul.msk.f32.gmra.mxu0 %vm267_vm7, %v5237_v33  ;;  %v11809_v33 = vld [vmem:[%s17618_s1 + $0x20] sm:$0xff] }
 0x5d5   : >> { %6609 = vmatpush.msrb.mxu2 %v11809_v33  ;;  %v5241_v33 = vld [vmem:[#allocation2 + $0xa0] sm:$0xff] }
 0x5d9   : >> { %v14905_v40 = vpop.f32.mrf.mxu0 }
 0x5da   : >> { %17791 = vst [vmem:[#allocation111_spill] sm:$0xff] %v14905_v40  ;;  %v14922_v40 = vpop.f32.mrf.mxu1 }
 0x5dc   : >> { %11658 = vmatmul.msk.f32.gmra.mxu0 %vm267_vm7, %v5238_v35 }
 0x5e1   : >> { %v14912_v27 = vpop.f32.mrf.mxu0 }
 0x5e2   : >> { %17792 = vst [vmem:[#allocation112_spill] sm:$0xff] %v14912_v27  ;;  %v11777_v27 = vld [vmem:[%s17618_s1 + $0x18] sm:$0xff]  ;;  %v14936_v18 = vpop.f32.mrf.mxu1 }
 0x5e3   : >> { %6342 = vmatpush.msrb.mxu1 %v11777_v27  ;;  %17796 = vst [vmem:[#allocation116_spill] sm:$0xff] %v14936_v18  ;;  %v5538_v18 = vld [vmem:[%s12483_s14 + $0x10] sm:$0xff] }
 0x5e4   : >> { %11659 = vmatmul.msk.f32.gmra.mxu0 %vm267_vm7, %v5239_v41  ;;  %v14932_v41 = vpop.f32.mrf.mxu3 }
 0x5e9   : >> { %v14924_v35 = vpop.f32.mrf.mxu0 }
 0x5ea   : >> { %17793 = vst [vmem:[#allocation113_spill] sm:$0xff] %v14924_v35  ;;  %v14939_v35 = vpop.f32.mrf.mxu2  ;;  %v14945_v27 = vpop.f32.mrf.mxu1 }
 0x5eb   : >> { %17797 = vst [vmem:[#allocation117_spill] sm:$0xff] %v14939_v35 }
 0x5ec   : >> { %11660 = vmatmul.msk.f32.gmra.mxu0 %vm267_vm7, %v5240_v26  ;;  %v14941_v26 = vpop.f32.mrf.mxu3  ;;  %17799 = vst [vmem:[#allocation119_spill] sm:$0xff] %v14945_v27 }
 0x5ed   : >> { %17798 = vst [vmem:[#allocation118_spill] sm:$0xff] %v14941_v26 }
 0x5f1   : >> { %v14934_v22 = vpop.f32.mrf.mxu0 }
 0x5f2   : >> { %17795 = vst [vmem:[#allocation115_spill] sm:$0xff] %v14934_v22  ;;  %v14949_v22 = vpop.f32.mrf.mxu2 }
 0x5f3   : >> { %17800 = vst [vmem:[#allocation120_spill] sm:$0xff] %v14949_v22 }
 0x5f4   : >> { %11661 = vmatmul.msk.f32.gmra.mxu0 %vm267_vm7, %v5241_v33  ;;  %v5537_v33 = vld [vmem:[%s12483_s14 + $0x8] sm:$0xff]  ;;  %v14952_v35 = vpop.f32.mrf.mxu3 }
 0x5f5   : >> { %17801 = vst [vmem:[#allocation121_spill] sm:$0xff] %v14952_v35 }
 0x5f9   : >> { %v5392_v0 = vpop.f32.mrf.mxu0 }
 0x5fa   : >> { %v5500_v48 = vadd.f32 %v5392_v0, %v14685_v10  ;;  %v14956_v10 = vpop.f32.mrf.mxu1 }
 0x5fb   : >> { %17802 = vst [vmem:[#allocation122_spill] sm:$0xff] %v14956_v10  ;;  %v5539_v10 = vld [vmem:[%s12483_s14 + $0x18] sm:$0xff] }
 0x5fc   : >> { %v5572_v62 = vsub.f32 %v5500_v48, %v5536_v9  ;;  %11662 = vmatmul.msk.f32.gmra.mxu0 %vm267_vm7, %v5242_v45 }
 0x5fe   : >> { %11714 = vmatmul.msk.f32.vlgmr.msra.gmra.mxu2 %vm444_vm1, %v5572_v62  ;;  %v5642_v48 = vrot.slane %v5572_v62, 1  ;;  %v6050_v9 = vrot.slane %v5572_v62, 2 }
 0x601   : >> { %v5395_v47 = vpop.f32.mrf.mxu0 }
 0x602   : >> { %v5501_v26 = vadd.f32 %v5395_v47, %v14698_v11  ;;  %v5244_v11 = vld [vmem:[#allocation2 + $0xb8] sm:$0xff]  ;;  %v14965_v47 = vpop.f32.mrf.mxu2 }
 0x603   : >> { %17803 = vst [vmem:[#allocation123_spill] sm:$0xff] %v14965_v47 }
 0x604   : >> { %v5573_v53 = vsub.f32 %v5501_v26, %v5537_v33  ;;  %11663 = vmatmul.msk.f32.gmra.mxu0 %vm267_vm7, %v5243_v24  ;;  %v14967_v26 = vpop.f32.mrf.mxu3 }
 0x605   : >> { %17804 = vst [vmem:[#allocation124_spill] sm:$0xff] %v14967_v26 }
 0x606   : >> { %11715 = vmatmul.msk.f32.gmra.mxu2 %vm444_vm1, %v5573_v53  ;;  %v5643_v45 = vrot.slane %v5573_v53, 1  ;;  %v6051_v0 = vrot.slane %v5573_v53, 2 }
 0x608   : >> { %v5644_v22 = vsel %vm380_vm0, %v5642_v48, %v5643_v45  ;;  %v6052_v27 = vsel %vm791_vm2, %v6050_v9, %v6051_v0  ;;  %v14971_v48 = vpop.f32.mrf.mxu1 }
 0x609   : >> { %v5398_v25 = vpop.f32.mrf.mxu0  ;;  %11683 = vmatmul.msk.f32.vlgmr.msra.gmra.mxu1 %vm444_vm1, %v5644_v22  ;;  %11746 = vmatmul.msk.f32.vlgmr.msra.gmra.mxu3 %vm444_vm1, %v6052_v27  ;;  %17805 = vst [vmem:[#allocation125_spill] sm:$0xff] %v14971_v48 }
 0x60a   : >> { %v5502_v24 = vadd.f32 %v5398_v25, %v14711_v15  ;;  %v5245_v15 = vld [vmem:[#allocation2 + $0xc0] sm:$0xff] }
 0x60c   : >> { %v5574_v62 = vsub.f32 %v5502_v24, %v5538_v18  ;;  %11664 = vmatmul.msk.f32.gmra.mxu0 %vm267_vm7, %v5244_v11  ;;  %v14980_v11 = vpop.f32.mrf.mxu2 }
 0x60d   : >> { %17806 = vst [vmem:[#allocation126_spill] sm:$0xff] %v14980_v11 }
 0x60e   : >> { %11716 = vmatmul.msk.f32.gmra.mxu2 %vm444_vm1, %v5574_v62  ;;  %v5645_v53 = vrot.slane %v5574_v62, 1  ;;  %v6053_v33 = vrot.slane %v5574_v62, 2  ;;  %v6469_v24 = vrot.slane %v5574_v62, 3  ;;  %v6736_v47 = vrot.slane %v5574_v62, 4 }
 0x610   : >> { %v5646_v22 = vsel %vm380_vm0, %v5643_v45, %v5645_v53  ;;  %v6054_v27 = vsel %vm791_vm2, %v6051_v0, %v6053_v33  ;;  %v14982_v45 = vpop.f32.mrf.mxu3 }
 0x611   : >> { %v5401_v9 = vpop.f32.mrf.mxu0  ;;  %11684 = vmatmul.msk.f32.gmra.mxu1 %vm444_vm1, %v5646_v22  ;;  %11747 = vmatmul.msk.f32.gmra.mxu3 %vm444_vm1, %v6054_v27  ;;  %17807 = vst [vmem:[#allocation127_spill] sm:$0xff] %v14982_v45 }
 0x612   : >> { %v5503_v18 = vadd.f32 %v5401_v9, %v14727_v6 }
 0x614   : >> { %v5575_v25 = vsub.f32 %v5503_v18, %v5539_v10  ;;  %11665 = vmatmul.msk.f32.gmra.mxu0 %vm267_vm7, %v5245_v15  ;;  %v5540_v15 = vld [vmem:[%s12483_s14 + $0x20] sm:$0xff]  ;;  %v5246_v18 = vld [vmem:[#allocation2 + $0xc8] sm:$0xff]  ;;  %v15004_v11 = vpop.f32.mrf.mxu2 }
 0x615   : >> { %17812 = vst [vmem:[#allocation132_spill] sm:$0xff] %v15004_v11 }
 0x616   : >> { %11717 = vmatmul.msk.f32.gmra.mxu2 %vm444_vm1, %v5575_v25  ;;  %v5647_v0 = vrot.slane %v5575_v25, 1  ;;  %v6055_v48 = vrot.slane %v5575_v25, 2  ;;  %v6470_v22 = vrot.slane %v5575_v25, 3  ;;  %v6737_v26 = vrot.slane %v5575_v25, 4  ;;  %v14999_v25 = vpop.f32.mrf.mxu1 }
 0x617   : >> { %17811 = vst [vmem:[#allocation131_spill] sm:$0xff] %v14999_v25 }
 0x618   : >> { %v5648_v27 = vsel %vm380_vm0, %v5645_v53, %v5647_v0  ;;  %v14987_v6 = vsel %vm791_vm2, %v6053_v33, %v6055_v48  ;;  %v14990_v10 = vsel %vm1213_vm3, %v6469_v24, %v6470_v22  ;;  %v14993_v9 = vsel %vm1482_vm5, %v6736_v47, %v6737_v26 }
 0x619   : >> { %17808 = vst [vmem:[#allocation128_spill] sm:$0xff] %v14987_v6  ;;  %v5404_v62 = vpop.f32.mrf.mxu0  ;;  %11685 = vmatmul.msk.f32.gmra.mxu1 %vm444_vm1, %v5648_v27  ;;  %11748 = vmatmul.msk.f32.gmra.mxu3 %vm444_vm1, %v14987_v6  ;;  %v15006_v27 = vpop.f32.mrf.mxu3 }
 0x61a   : >> { %17809 = vst [vmem:[#allocation129_spill] sm:$0xff] %v14990_v10  ;;  %v5504_v53 = vadd.f32 %v5404_v62, %v14740_v44 }
 0x61b   : >> { %17810 = vst [vmem:[#allocation130_spill] sm:$0xff] %v14993_v9 }
 0x61c   : >> { %v5576_v33 = vsub.f32 %v5504_v53, %v5540_v15  ;;  %11666 = vmatmul.msk.f32.gmra.mxu0 %vm267_vm7, %v5246_v18  ;;  %17813 = vst [vmem:[#allocation133_spill] sm:$0xff] %v15006_v27  ;;  %v5541_v18 = vld [vmem:[%s12483_s14 + $0x28] sm:$0xff]  ;;  %v5247_v53 = vld [vmem:[#allocation2 + $0xd0] sm:$0xff] }
 0x61e   : >> { %11718 = vmatmul.msk.f32.gmra.mxu2 %vm444_vm1, %v5576_v33  ;;  %v5649_v47 = vrot.slane %v5576_v33, 1  ;;  %v6057_v24 = vrot.slane %v5576_v33, 2  ;;  %v6739_v9 = vrot.slane %v5576_v33, 4  ;;  %v6472_v10 = vrot.slane %v5576_v33, 3 }
 0x61f   : >> { %v7422_v27 = vrot.slane %v5576_v33, 6  ;;  %v7155_v45 = vrot.slane %v5576_v33, 5  ;;  %v5248_v33 = vld [vmem:[#allocation2 + $0xd8] sm:$0xff] }
 0x620   : >> { %v5650_v6 = vsel %vm380_vm0, %v5647_v0, %v5649_v47  ;;  %v15010_v25 = vsel %vm791_vm2, %v6055_v48, %v6057_v24  ;;  %v15013_v44 = vsel %vm1213_vm3, %v6470_v22, %v6472_v10  ;;  %v15016_v62 = vsel %vm1482_vm5, %v6737_v26, %v6739_v9  ;;  %v15023_v0 = vpop.f32.mrf.mxu1 }
 0x621   : >> { %17814 = vst [vmem:[#allocation134_spill] sm:$0xff] %v15010_v25  ;;  %v5407_v15 = vpop.f32.mrf.mxu0  ;;  %11686 = vmatmul.msk.f32.gmra.mxu1 %vm444_vm1, %v5650_v6  ;;  %11749 = vmatmul.msk.f32.gmra.mxu3 %vm444_vm1, %v15010_v25 }
 0x622   : >> { %17815 = vst [vmem:[#allocation135_spill] sm:$0xff] %v15013_v44  ;;  %v5505_v11 = vadd.f32 %v5407_v15, %v14751_v8 }
 0x623   : >> { %17816 = vst [vmem:[#allocation136_spill] sm:$0xff] %v15016_v62 }
 0x624   : >> { %17817 = vst [vmem:[#allocation137_spill] sm:$0xff] %v15023_v0  ;;  %v5577_v48 = vsub.f32 %v5505_v11, %v5541_v18  ;;  %11667 = vmatmul.msk.f32.gmra.mxu0 %vm267_vm7, %v5247_v53  ;;  %v15037_v18 = vpop.f32.mrf.mxu2  ;;  %v5542_v0 = vld [vmem:[%s12483_s14 + $0x30] sm:$0xff] }
 0x625   : >> { %17821 = vst [vmem:[#allocation141_spill] sm:$0xff] %v15037_v18 }
 0x626   : >> { %11719 = vmatmul.msk.f32.gmra.mxu2 %vm444_vm1, %v5577_v48  ;;  %v5651_v26 = vrot.slane %v5577_v48, 1  ;;  %v6059_v22 = vrot.slane %v5577_v48, 2  ;;  %v6741_v62 = vrot.slane %v5577_v48, 4  ;;  %v6474_v44 = vrot.slane %v5577_v48, 3 }
 0x627   : >> { %v7423_v6 = vrot.slane %v5577_v48, 6  ;;  %v7156_v35 = vrot.slane %v5577_v48, 5 }
 0x628   : >> { %v5652_v25 = vsel %vm380_vm0, %v5649_v47, %v5651_v26  ;;  %v15029_v8 = vsel %vm791_vm2, %v6057_v24, %v6059_v22  ;;  %v15032_v11 = vsel %vm1482_vm5, %v6739_v9, %v6741_v62  ;;  %v15035_v15 = vsel %vm1213_vm3, %v6472_v10, %v6474_v44  ;;  %v15049_v9 = vpop.f32.mrf.mxu3 }
 0x629   : >> { %17818 = vst [vmem:[#allocation138_spill] sm:$0xff] %v15029_v8  ;;  %v5410_v53 = vpop.f32.mrf.mxu0  ;;  %11687 = vmatmul.msk.f32.gmra.mxu1 %vm444_vm1, %v5652_v25  ;;  %11750 = vmatmul.msk.f32.gmra.mxu3 %vm444_vm1, %v15029_v8  ;;  %v15044_v47 = vsel %vm2173_vm6, %v7422_v27, %v7423_v6  ;;  %v15047_v24 = vsel %vm1904_vm4, %v7155_v45, %v7156_v35 }
 0x62a   : >> { %17819 = vst [vmem:[#allocation139_spill] sm:$0xff] %v15032_v11  ;;  %v5506_v10 = vadd.f32 %v5410_v53, %v14762_v60 }
 0x62b   : >> { %17820 = vst [vmem:[#allocation140_spill] sm:$0xff] %v15035_v15  ;;  %v15053_v15 = vpop.f32.mrf.mxu1 }
 0x62c   : >> { %17822 = vst [vmem:[#allocation142_spill] sm:$0xff] %v15044_v47  ;;  %v5578_v48 = vsub.f32 %v5506_v10, %v5542_v0  ;;  %11668 = vmatmul.msk.f32.gmra.mxu0 %vm267_vm7, %v5248_v33  ;;  %v5543_v33 = vld [vmem:[%s12483_s14 + $0x38] sm:$0xff]  ;;  %v5249_v10 = vld [vmem:[#allocation2 + $0xe0] sm:$0xff] }
 0x62d   : >> { %17823 = vst [vmem:[#allocation143_spill] sm:$0xff] %v15047_v24 }
 0x62e   : >> { %17824 = vst [vmem:[#allocation144_spill] sm:$0xff] %v15049_v9  ;;  %11720 = vmatmul.msk.f32.gmra.mxu2 %vm444_vm1, %v5578_v48  ;;  %v5653_v25 = vrot.slane %v5578_v48, 1  ;;  %v6061_v8 = vrot.slane %v5578_v48, 2  ;;  %v6743_v18 = vrot.slane %v5578_v48, 4  ;;  %v6476_v27 = vrot.slane %v5578_v48, 3 }
 0x62f   : >> { %17825 = vst [vmem:[#allocation145_spill] sm:$0xff] %v15053_v15  ;;  %v7425_v47 = vrot.slane %v5578_v48, 6  ;;  %v7158_v11 = vrot.slane %v5578_v48, 5 }
 0x630   : >> { %v5654_v45 = vsel %vm380_vm0, %v5651_v26, %v5653_v25  ;;  %v15058_v24 = vsel %vm791_vm2, %v6059_v22, %v6061_v8  ;;  %v15061_v60 = vsel %vm1482_vm5, %v6741_v62, %v6743_v18  ;;  %v15064_v0 = vsel %vm1213_vm3, %v6474_v44, %v6476_v27  ;;  %v15077_v22 = vpop.f32.mrf.mxu2  ;;  %v15079_v44 = vpop.f32.mrf.mxu3 }
 0x631   : >> { %17826 = vst [vmem:[#allocation146_spill] sm:$0xff] %v15058_v24  ;;  %v5413_v53 = vpop.f32.mrf.mxu0  ;;  %11688 = vmatmul.msk.f32.gmra.mxu1 %vm444_vm1, %v5654_v45  ;;  %11751 = vmatmul.msk.f32.gmra.mxu3 %vm444_vm1, %v15058_v24  ;;  %v15071_v48 = vsel %vm2173_vm6, %v7423_v6, %v7425_v47  ;;  %v15074_v26 = vsel %vm1904_vm4, %v7156_v35, %v7158_v11 }
 0x632   : >> { %17827 = vst [vmem:[#allocation147_spill] sm:$0xff] %v15064_v0  ;;  %v5507_v62 = vadd.f32 %v5413_v53, %v14769_v59 }
 0x633   : >> { %17828 = vst [vmem:[#allocation148_spill] sm:$0xff] %v15071_v48  ;;  %v15083_v35 = vpop.f32.mrf.mxu1 }
 0x634   : >> { %17829 = vst [vmem:[#allocation149_spill] sm:$0xff] %v15074_v26  ;;  %v5579_v0 = vsub.f32 %v5507_v62, %v5543_v33  ;;  %11669 = vmatmul.msk.f32.gmra.mxu0 %vm267_vm7, %v5249_v10  ;;  %v5544_v62 = vld [vmem:[%s12483_s14 + $0x40] sm:$0xff] }
 0x635   : >> { %17830 = vst [vmem:[#allocation150_spill] sm:$0xff] %v15077_v22 }
 0x636   : >> { %17831 = vst [vmem:[#allocation151_spill] sm:$0xff] %v15079_v44  ;;  %11721 = vmatmul.msk.f32.gmra.mxu2 %vm444_vm1, %v5579_v0  ;;  %v5655_v45 = vrot.slane %v5579_v0, 1  ;;  %v6063_v24 = vrot.slane %v5579_v0, 2  ;;  %v6745_v15 = vrot.slane %v5579_v0, 4  ;;  %v6478_v6 = vrot.slane %v5579_v0, 3 }
 0x637   : >> { %v7427_v48 = vrot.slane %v5579_v0, 6  ;;  %v7160_v9 = vrot.slane %v5579_v0, 5  ;;  %17832 = vst [vmem:[#allocation152_spill] sm:$0xff] %v15083_v35  ;;  %v5250_v0 = vld [vmem:[#allocation2 + $0xe8] sm:$0xff] }
 0x638   : >> { %v5656_v59 = vsel %vm380_vm0, %v5653_v25, %v5655_v45  ;;  %v15087_v53 = vsel %vm791_vm2, %v6061_v8, %v6063_v24  ;;  %v15090_v26 = vsel %vm1482_vm5, %v6743_v18, %v6745_v15  ;;  %v15093_v33 = vsel %vm1213_vm3, %v6476_v27, %v6478_v6  ;;  %v15107_v27 = vpop.f32.mrf.mxu2 }
 0x639   : >> { %17833 = vst [vmem:[#allocation153_spill] sm:$0xff] %v15087_v53  ;;  %v5416_v10 = vpop.f32.mrf.mxu0  ;;  %11689 = vmatmul.msk.f32.gmra.mxu1 %vm444_vm1, %v5656_v59  ;;  %11752 = vmatmul.msk.f32.gmra.mxu3 %vm444_vm1, %v15087_v53  ;;  %v15100_v22 = vsel %vm2173_vm6, %v7425_v47, %v7427_v48  ;;  %v15103_v8 = vsel %vm1904_vm4, %v7158_v11, %v7160_v9 }
 0x63a   : >> { %17834 = vst [vmem:[#allocation154_spill] sm:$0xff] %v15090_v26  ;;  %v5508_v18 = vadd.f32 %v5416_v10, %v14778_v13 }
 0x63b   : >> { %17835 = vst [vmem:[#allocation155_spill] sm:$0xff] %v15093_v33  ;;  %v15109_v33 = vpop.f32.mrf.mxu3 }
 0x63c   : >> { %17836 = vst [vmem:[#allocation156_spill] sm:$0xff] %v15100_v22  ;;  %v5580_v25 = vsub.f32 %v5508_v18, %v5544_v62  ;;  %11670 = vmatmul.msk.f32.gmra.mxu0 %vm267_vm7, %v5250_v0  ;;  %v5545_v18 = vld [vmem:[%s12483_s14 + $0x48] sm:$0xff] }
 0x63d   : >> { %17837 = vst [vmem:[#allocation157_spill] sm:$0xff] %v15103_v8  ;;  %v5251_v8 = vld [vmem:[#allocation2 + $0xf0] sm:$0xff] }
 0x63e   : >> { %17838 = vst [vmem:[#allocation158_spill] sm:$0xff] %v15107_v27  ;;  %11722 = vmatmul.msk.f32.gmra.mxu2 %vm444_vm1, %v5580_v25  ;;  %v5657_v59 = vrot.slane %v5580_v25, 1  ;;  %v6065_v53 = vrot.slane %v5580_v25, 2  ;;  %v6747_v35 = vrot.slane %v5580_v25, 4  ;;  %v6480_v47 = vrot.slane %v5580_v25, 3  ;;  %v17847_v27 = vld [vmem:[#allocation67_spill] sm:$0xff] }
 0x63f   : >> { %17839 = vst [vmem:[#allocation159_spill] sm:$0xff] %v15109_v33  ;;  %v7429_v22 = vrot.slane %v5580_v25, 6  ;;  %v7162_v44 = vrot.slane %v5580_v25, 5 }
 0x640   : >> { %v5658_v11 = vsel %vm380_vm0, %v5655_v45, %v5657_v59  ;;  %v15114_v13 = vsel %vm791_vm2, %v6063_v24, %v6065_v53  ;;  %v15117_v10 = vsel %vm1482_vm5, %v6745_v15, %v6747_v35  ;;  %v15120_v62 = vsel %vm1213_vm3, %v6478_v6, %v6480_v47  ;;  %v15132_v45 = vpop.f32.mrf.mxu1 }
 0x641   : >> { %17840 = vst [vmem:[#allocation160_spill] sm:$0xff] %v15114_v13  ;;  %v5419_v0 = vpop.f32.mrf.mxu0  ;;  %11690 = vmatmul.msk.f32.gmra.mxu1 %vm444_vm1, %v5658_v11  ;;  %11753 = vmatmul.msk.f32.gmra.mxu3 %vm444_vm1, %v15114_v13  ;;  %v15127_v25 = vsel %vm2173_vm6, %v7427_v48, %v7429_v22  ;;  %v15130_v24 = vsel %vm1904_vm4, %v7160_v9, %v7162_v44 }
 0x642   : >> { %17841 = vst [vmem:[#allocation161_spill] sm:$0xff] %v15117_v10  ;;  %v5509_v15 = vadd.f32 %v5419_v0, %v14786_v1  ;;  %v17848_v10 = vld [vmem:[#allocation101_spill] sm:$0xff] }
 0x643   : >> { %17842 = vst [vmem:[#allocation162_spill] sm:$0xff] %v15120_v62  ;;  %v17846_v62 = vld [vmem:[#allocation23_spill] sm:$0xff]  ;;  %v15142_v1 = vpop.f32.mrf.mxu3 }
 0x644   : >> { %17843 = vst [vmem:[#allocation163_spill] sm:$0xff] %v15127_v25  ;;  %v5581_v6 = vsub.f32 %v5509_v15, %v5545_v18  ;;  %11671 = vmatmul.msk.f32.gmra.mxu0 %vm267_vm7, %v5251_v8  ;;  %v3295_v11 = vadd.f32 %v17847_v27, %v17846_v62  ;;  %v5546_v15 = vld [vmem:[%s12483_s14 + $0x50] sm:$0xff] }
 0x645   : >> { %17844 = vst [vmem:[#allocation164_spill] sm:$0xff] %v15130_v24  ;;  %v15140_v24 = vpop.f32.mrf.mxu2 }
 0x646   : >> { %17845 = vst [vmem:[#allocation165_spill] sm:$0xff] %v15132_v45  ;;  %11723 = vmatmul.msk.f32.gmra.mxu2 %vm444_vm1, %v5581_v6  ;;  %v5659_v13 = vrot.slane %v5581_v6, 1  ;;  %v6067_v33 = vrot.slane %v5581_v6, 2  ;;  %v6749_v48 = vrot.slane %v5581_v6, 4  ;;  %v6482_v25 = vrot.slane %v5581_v6, 3 }
 0x647   : >> { %v3652_v9 = vadd.f32 %v17848_v10, %v3295_v11  ;;  %17849 = vst [vmem:[#allocation23_spill] sm:$0xff] %v15140_v24  ;;  %v7431_v45 = vrot.slane %v5581_v6, 6  ;;  %v7164_v26 = vrot.slane %v5581_v6, 5  ;;  %v5252_v10 = vld [vmem:[#allocation2 + $0xf8] sm:$0xff]  ;;  %v17858_v24 = vld [vmem:[#allocation71_spill] sm:$0xff] }
 0x648   : >> { %17850 = vst [vmem:[#allocation67_spill] sm:$0xff] %v15142_v1  ;;  %v5660_v8 = vsel %vm380_vm0, %v5657_v59, %v5659_v13  ;;  %v15146_v0 = vsel %vm791_vm2, %v6065_v53, %v6067_v33  ;;  %v15149_v27 = vsel %vm1482_vm5, %v6747_v35, %v6749_v48  ;;  %v15152_v62 = vsel %vm1213_vm3, %v6480_v47, %v6482_v25  ;;  %v17855_v59 = vld [vmem:[#allocation53_spill] sm:$0xff]  ;;  %v15166_v47 = vpop.f32.mrf.mxu1 }
 0x649   : >> { %17851 = vst [vmem:[#allocation101_spill] sm:$0xff] %v15146_v0  ;;  %v5422_v18 = vpop.f32.mrf.mxu0  ;;  %11691 = vmatmul.msk.f32.gmra.mxu1 %vm444_vm1, %v5660_v8  ;;  %11754 = vmatmul.msk.f32.gmra.mxu3 %vm444_vm1, %v15146_v0  ;;  %v15159_v6 = vsel %vm2173_vm6, %v7429_v22, %v7431_v45  ;;  %v15162_v53 = vsel %vm1904_vm4, %v7162_v44, %v7164_v26  ;;  %v17857_v8 = vld [vmem:[#allocation25_spill] sm:$0xff] }
 0x64a   : >> { %17852 = vst [vmem:[#allocation166_spill] sm:$0xff] %v15152_v62  ;;  %v5510_v35 = vadd.f32 %v5422_v18, %v14794_v54  ;;  %v3962_v11 = vadd.f32 %v17855_v59, %v3652_v9  ;;  %v3298_v1 = vadd.f32 %v17858_v24, %v17857_v8  ;;  %v17859_v54 = vld [vmem:[#allocation103_spill] sm:$0xff] }
 0x64b   : >> { %17853 = vst [vmem:[#allocation167_spill] sm:$0xff] %v15159_v6 }
 0x64c   : >> { %17854 = vst [vmem:[#allocation168_spill] sm:$0xff] %v15162_v53  ;;  %v5582_v62 = vsub.f32 %v5510_v35, %v5546_v15  ;;  %11672 = vmatmul.msk.f32.gmra.mxu0 %vm267_vm7, %v5252_v10  ;;  %v4272_v0 = vadd.f32 %v14771_v30, %v3962_v11  ;;  %v3653_v18 = vadd.f32 %v17859_v54, %v3298_v1  ;;  %v17865_v1 = vld [vmem:[#allocation27_spill] sm:$0xff]  ;;  %v17867_v54 = vld [vmem:[#allocation56_spill] sm:$0xff] }
 0x64d   : >> { %17856 = vst [vmem:[#allocation53_spill] sm:$0xff] %v15166_v47  ;;  %v15185_v11 = vpop.f32.mrf.mxu2  ;;  %v5547_v47 = vld [vmem:[%s12483_s14 + $0x58] sm:$0xff] }
 0x64e   : >> { %11724 = vmatmul.msk.f32.gmra.mxu2 %vm444_vm1, %v5582_v62  ;;  %v5661_v22 = vrot.slane %v5582_v62, 1  ;;  %v6069_v44 = vrot.slane %v5582_v62, 2  ;;  %v6751_v53 = vrot.slane %v5582_v62, 4  ;;  %v6484_v6 = vrot.slane %v5582_v62, 3  ;;  %17862 = vst [vmem:[#allocation103_spill] sm:$0xff] %v15185_v11  ;;  %v17868_v11 = vld [vmem:[#allocation32_spill] sm:$0xff] }
 0x64f   : >> { %v7433_v9 = vrot.slane %v5582_v62, 6  ;;  %v7166_v59 = vrot.slane %v5582_v62, 5  ;;  %v4582_v35 = vadd.f32 %v14838_v52, %v4272_v0  ;;  %v17866_v0 = vld [vmem:[#allocation74_spill] sm:$0xff] }
 0x650   : >> { %v5662_v15 = vsel %vm380_vm0, %v5659_v13, %v5661_v22  ;;  %v15176_v10 = vsel %vm791_vm2, %v6067_v33, %v6069_v44  ;;  %v15179_v24 = vsel %vm1482_vm5, %v6749_v48, %v6751_v53  ;;  %v15182_v30 = vsel %vm1213_vm3, %v6482_v25, %v6484_v6  ;;  %v5253_v13 = vld [vmem:[#allocation2 + $0x100] sm:$0xff]  ;;  %v15197_v25 = vpop.f32.mrf.mxu3 }
 0x651   : >> { %17860 = vst [vmem:[#allocation25_spill] sm:$0xff] %v15176_v10  ;;  %v5425_v8 = vpop.f32.mrf.mxu0  ;;  %11692 = vmatmul.msk.f32.gmra.mxu1 %vm444_vm1, %v5662_v15  ;;  %11755 = vmatmul.msk.f32.gmra.mxu3 %vm444_vm1, %v15176_v10  ;;  %v15192_v33 = vsel %vm2173_vm6, %v7431_v45, %v7433_v9  ;;  %v15195_v48 = vsel %vm1904_vm4, %v7164_v26, %v7166_v59 }
 0x652   : >> { %17861 = vst [vmem:[#allocation71_spill] sm:$0xff] %v15182_v30  ;;  %v5511_v52 = vadd.f32 %v5425_v8, %v14802_v21  ;;  %v3301_v62 = vadd.f32 %v17866_v0, %v17865_v1  ;;  %v3963_v30 = vadd.f32 %v17867_v54, %v3653_v18  ;;  %v4892_v10 = vadd.f32 %v14834_v55, %v4582_v35  ;;  %v5548_v54 = vld [vmem:[%s12483_s14 + $0x60] sm:$0xff] }
 0x653   : >> { %17863 = vst [vmem:[#allocation169_spill] sm:$0xff] %v15192_v33  ;;  %v15206_v33 = vpop.f32.mrf.mxu1 }
 0x654   : >> { %17864 = vst [vmem:[#allocation170_spill] sm:$0xff] %v15195_v48  ;;  %v5583_v15 = vsub.f32 %v5511_v52, %v5547_v47  ;;  %11673 = vmatmul.msk.f32.gmra.mxu0 %vm267_vm7, %v5253_v13  ;;  %v4273_v45 = vadd.f32 %v14780_v2, %v3963_v30  ;;  %v3654_v1 = vadd.f32 %v17868_v11, %v3301_v62  ;;  %v17875_v62 = vld [vmem:[#allocation60_spill] sm:$0xff] }
 0x655   : >> { %v5202_v18 = vadd.f32 %v14845_v51, %v4892_v10  ;;  %v5254_v51 = vld [vmem:[#allocation2 + $0x108] sm:$0xff] }
 0x656   : >> { %11725 = vmatmul.msk.f32.gmra.mxu2 %vm444_vm1, %v5583_v15  ;;  %v5663_v26 = vrot.slane %v5583_v15, 1  ;;  %v6071_v48 = vrot.slane %v5583_v15, 2  ;;  %v6753_v21 = vrot.slane %v5583_v15, 4  ;;  %v6486_v8 = vrot.slane %v5583_v15, 3  ;;  %v17873_v10 = vld [vmem:[#allocation28_spill] sm:$0xff] }
 0x657   : >> { %v7435_v47 = vrot.slane %v5583_v15, 6  ;;  %v7168_v52 = vrot.slane %v5583_v15, 5  ;;  %v4583_v35 = vadd.f32 %v14849_v29, %v4273_v45  ;;  %v3964_v29 = vadd.f32 %v17875_v62, %v3654_v1  ;;  %v15235_v15 = vpop.f32.mrf.mxu2 }
 0x658   : >> { %v5664_v13 = vsel %vm380_vm0, %v5661_v22, %v5663_v26  ;;  %v15213_v55 = vsel %vm791_vm2, %v6069_v44, %v6071_v48  ;;  %v15216_v2 = vsel %vm1482_vm5, %v6751_v53, %v6753_v21  ;;  %v15219_v30 = vsel %vm1213_vm3, %v6484_v6, %v6486_v8  ;;  %v17874_v6 = vld [vmem:[#allocation77_spill] sm:$0xff]  ;;  %v15237_v45 = vpop.f32.mrf.mxu3 }
 0x659   : >> { %17869 = vst [vmem:[#allocation27_spill] sm:$0xff] %v15213_v55  ;;  %v5428_v0 = vpop.f32.mrf.mxu0  ;;  %11693 = vmatmul.msk.f32.gmra.mxu1 %vm444_vm1, %v5664_v13  ;;  %11756 = vmatmul.msk.f32.gmra.mxu3 %vm444_vm1, %v15213_v55  ;;  %v15227_v22 = vsel %vm2173_vm6, %v7433_v9, %v7435_v47  ;;  %v15230_v44 = vsel %vm1904_vm4, %v7166_v59, %v7168_v52 }
 0x65a   : >> { %17870 = vst [vmem:[#allocation74_spill] sm:$0xff] %v15219_v30  ;;  %v5512_v53 = vadd.f32 %v5428_v0, %v5202_v18  ;;  %v3304_v11 = vadd.f32 %v17874_v6, %v17873_v10  ;;  %v4893_v55 = vadd.f32 %v14843_v39, %v4583_v35  ;;  %v4274_v9 = vadd.f32 %v14788_v5, %v3964_v29  ;;  %v17876_v6 = vld [vmem:[#allocation34_spill] sm:$0xff]  ;;  %v5549_v29 = vld [vmem:[%s12483_s14 + $0x68] sm:$0xff]  ;;  %v17999_v30 = vld [vmem:[#allocation21_spill] sm:$0xff] }
 0x65b   : >> { %17871 = vst [vmem:[#allocation56_spill] sm:$0xff] %v15227_v22 }
 0x65c   : >> { %17872 = vst [vmem:[#allocation32_spill] sm:$0xff] %v15230_v44  ;;  %v5584_v13 = vsub.f32 %v5512_v53, %v5548_v54  ;;  %11674 = vmatmul.msk.f32.gmra.mxu0 %vm267_vm7, %v5254_v51  ;;  %v3655_v1 = vadd.f32 %v17876_v6, %v3304_v11  ;;  %v5203_v62 = vadd.f32 %v14854_v42, %v4893_v55  ;;  %v15245_v54 = vpop.f32.mrf.mxu1  ;;  %v5255_v42 = vld [vmem:[#allocation2 + $0x110] sm:$0xff]  ;;  %v17883_v6 = vld [vmem:[#allocation63_spill] sm:$0xff] }
 0x65d   : >> { %v4584_v53 = vadd.f32 %v14858_v57, %v4274_v9  ;;  %v17881_v55 = vld [vmem:[#allocation29_spill] sm:$0xff] }
 0x65e   : >> { %11726 = vmatmul.msk.f32.gmra.mxu2 %vm444_vm1, %v5584_v13  ;;  %v5665_v59 = vrot.slane %v5584_v13, 1  ;;  %v6073_v18 = vrot.slane %v5584_v13, 2  ;;  %v6755_v0 = vrot.slane %v5584_v13, 4  ;;  %v6488_v10 = vrot.slane %v5584_v13, 3 }
 0x65f   : >> { %v7437_v44 = vrot.slane %v5584_v13, 6  ;;  %v7170_v22 = vrot.slane %v5584_v13, 5  ;;  %v3965_v57 = vadd.f32 %v17883_v6, %v3655_v1 }
 0x660   : >> { %v5666_v51 = vsel %vm380_vm0, %v5663_v26, %v5665_v59  ;;  %v15249_v39 = vsel %vm791_vm2, %v6071_v48, %v6073_v18  ;;  %v15252_v5 = vsel %vm1482_vm5, %v6753_v21, %v6755_v0  ;;  %v15255_v35 = vsel %vm1213_vm3, %v6486_v8, %v6488_v10  ;;  %v17882_v8 = vld [vmem:[#allocation81_spill] sm:$0xff] }
 0x661   : >> { %17877 = vst [vmem:[#allocation28_spill] sm:$0xff] %v15249_v39  ;;  %v5431_v11 = vpop.f32.mrf.mxu0  ;;  %11694 = vmatmul.msk.f32.gmra.mxu1 %vm444_vm1, %v5666_v51  ;;  %11757 = vmatmul.msk.f32.gmra.mxu3 %vm444_vm1, %v15249_v39  ;;  %v15263_v26 = vsel %vm2173_vm6, %v7435_v47, %v7437_v44  ;;  %v15266_v48 = vsel %vm1904_vm4, %v7168_v52, %v7170_v22  ;;  %v15276_v47 = vpop.f32.mrf.mxu3 }
 0x662   : >> { %17878 = vst [vmem:[#allocation77_spill] sm:$0xff] %v15255_v35  ;;  %v5513_v21 = vadd.f32 %v5431_v11, %v5203_v62  ;;  %v3307_v13 = vadd.f32 %v17882_v8, %v17881_v55  ;;  %v4894_v51 = vadd.f32 %v14852_v20, %v4584_v53  ;;  %v4275_v39 = vadd.f32 %v14796_v36, %v3965_v57  ;;  %v15274_v35 = vpop.f32.mrf.mxu2  ;;  %v17884_v8 = vld [vmem:[#allocation36_spill] sm:$0xff] }
 0x663   : >> { %17879 = vst [vmem:[#allocation60_spill] sm:$0xff] %v15263_v26  ;;  %v5550_v26 = vld [vmem:[%s12483_s14 + $0x70] sm:$0xff] }
 0x664   : >> { %17880 = vst [vmem:[#allocation34_spill] sm:$0xff] %v15266_v48  ;;  %v5585_v9 = vsub.f32 %v5513_v21, %v5549_v29  ;;  %11675 = vmatmul.msk.f32.gmra.mxu0 %vm267_vm7, %v5255_v42  ;;  %v3656_v1 = vadd.f32 %v17884_v8, %v3307_v13  ;;  %v5204_v29 = vadd.f32 %v14865_v4, %v4894_v51  ;;  %v5256_v4 = vld [vmem:[#allocation2 + $0x118] sm:$0xff] }
 0x665   : >> { %v4585_v57 = vadd.f32 %v14868_v49, %v4275_v39  ;;  %v17889_v13 = vld [vmem:[#allocation30_spill] sm:$0xff] }
 0x666   : >> { %11727 = vmatmul.msk.f32.gmra.mxu2 %vm444_vm1, %v5585_v9  ;;  %v5667_v52 = vrot.slane %v5585_v9, 1  ;;  %v6075_v62 = vrot.slane %v5585_v9, 2  ;;  %v6757_v11 = vrot.slane %v5585_v9, 4  ;;  %v6490_v55 = vrot.slane %v5585_v9, 3  ;;  %v17891_v39 = vld [vmem:[#allocation66_spill] sm:$0xff] }
 0x667   : >> { %v7439_v42 = vrot.slane %v5585_v9, 6  ;;  %v7172_v21 = vrot.slane %v5585_v9, 5  ;;  %v17890_v9 = vld [vmem:[#allocation84_spill] sm:$0xff]  ;;  %v3966_v51 = vadd.f32 %v17891_v39, %v3656_v1  ;;  %v5551_v39 = vld [vmem:[%s12483_s14 + $0x78] sm:$0xff] }
 0x668   : >> { %v5668_v20 = vsel %vm380_vm0, %v5665_v59, %v5667_v52  ;;  %v15283_v36 = vsel %vm791_vm2, %v6073_v18, %v6075_v62  ;;  %v15286_v53 = vsel %vm1482_vm5, %v6755_v0, %v6757_v11  ;;  %v15289_v6 = vsel %vm1213_vm3, %v6488_v10, %v6490_v55  ;;  %v15302_v0 = vpop.f32.mrf.mxu1 }
 0x669   : >> { %17885 = vst [vmem:[#allocation29_spill] sm:$0xff] %v15283_v36  ;;  %v5434_v48 = vpop.f32.mrf.mxu0  ;;  %11695 = vmatmul.msk.f32.gmra.mxu1 %vm444_vm1, %v5668_v20  ;;  %11758 = vmatmul.msk.f32.gmra.mxu3 %vm444_vm1, %v15283_v36  ;;  %v15297_v59 = vsel %vm2173_vm6, %v7437_v44, %v7439_v42  ;;  %v15300_v18 = vsel %vm1904_vm4, %v7170_v22, %v7172_v21 }
 0x66a   : >> { %17886 = vst [vmem:[#allocation81_spill] sm:$0xff] %v15289_v6  ;;  %v5514_v10 = vadd.f32 %v5434_v48, %v5204_v29  ;;  %v3310_v49 = vadd.f32 %v17890_v9, %v17889_v13  ;;  %v4895_v20 = vadd.f32 %v14861_v38, %v4585_v57  ;;  %v4276_v36 = vadd.f32 %v14804_v63, %v3966_v51  ;;  %v17892_v48 = vld [vmem:[#allocation38_spill] sm:$0xff]  ;;  %v15313_v9 = vpop.f32.mrf.mxu2  ;;  %v5257_v51 = vld [vmem:[#allocation2 + $0x120] sm:$0xff] }
 0x66b   : >> { %17887 = vst [vmem:[#allocation63_spill] sm:$0xff] %v15297_v59  ;;  %v17986_v6 = vld [vmem:[#allocation47_spill] sm:$0xff] }
 0x66c   : >> { %17888 = vst [vmem:[#allocation36_spill] sm:$0xff] %v15300_v18  ;;  %v5586_v8 = vsub.f32 %v5514_v10, %v5550_v26  ;;  %11676 = vmatmul.msk.f32.gmra.mxu0 %vm267_vm7, %v5256_v4  ;;  %v3657_v29 = vadd.f32 %v17892_v48, %v3310_v49  ;;  %v5205_v13 = vadd.f32 %v14877_v17, %v4895_v20  ;;  %v15315_v4 = vpop.f32.mrf.mxu3  ;;  %v17899_v48 = vld [vmem:[#allocation70_spill] sm:$0xff] }
 0x66d   : >> { %v4586_v49 = vadd.f32 %v14880_v50, %v4276_v36 }
 0x66e   : >> { %11728 = vmatmul.msk.f32.gmra.mxu2 %vm444_vm1, %v5586_v8  ;;  %v5669_v44 = vrot.slane %v5586_v8, 1  ;;  %v6077_v22 = vrot.slane %v5586_v8, 2  ;;  %v6759_v18 = vrot.slane %v5586_v8, 4  ;;  %v6492_v59 = vrot.slane %v5586_v8, 3 }
 0x66f   : >> { %v7441_v26 = vrot.slane %v5586_v8, 6  ;;  %v7174_v1 = vrot.slane %v5586_v8, 5  ;;  %v17897_v8 = vld [vmem:[#allocation31_spill] sm:$0xff]  ;;  %v3967_v50 = vadd.f32 %v17899_v48, %v3657_v29 }
 0x670   : >> { %v5670_v38 = vsel %vm380_vm0, %v5667_v52, %v5669_v44  ;;  %v15319_v63 = vsel %vm791_vm2, %v6075_v62, %v6077_v22  ;;  %v15322_v57 = vsel %vm1482_vm5, %v6757_v11, %v6759_v18  ;;  %v15325_v10 = vsel %vm1213_vm3, %v6490_v55, %v6492_v59  ;;  %v17898_v55 = vld [vmem:[#allocation87_spill] sm:$0xff]  ;;  %v15341_v36 = vpop.f32.mrf.mxu1 }
 0x671   : >> { %17893 = vst [vmem:[#allocation30_spill] sm:$0xff] %v15319_v63  ;;  %v5437_v17 = vpop.f32.mrf.mxu0  ;;  %11696 = vmatmul.msk.f32.gmra.mxu1 %vm444_vm1, %v5670_v38  ;;  %11759 = vmatmul.msk.f32.gmra.mxu3 %vm444_vm1, %v15319_v63  ;;  %v15333_v52 = vsel %vm2173_vm6, %v7439_v42, %v7441_v26  ;;  %v15336_v62 = vsel %vm1904_vm4, %v7172_v21, %v7174_v1 }
 0x672   : >> { %17894 = vst [vmem:[#allocation84_spill] sm:$0xff] %v15325_v10  ;;  %v5515_v11 = vadd.f32 %v5437_v17, %v5205_v13  ;;  %v3313_v20 = vadd.f32 %v17898_v55, %v17897_v8  ;;  %v4896_v38 = vadd.f32 %v14875_v19, %v4586_v49  ;;  %v4277_v63 = vadd.f32 %v14808_v28, %v3967_v50  ;;  %v17907_v50 = vld [vmem:[#allocation73_spill] sm:$0xff] }
 0x673   : >> { %17895 = vst [vmem:[#allocation66_spill] sm:$0xff] %v15333_v52 }
 0x674   : >> { %17896 = vst [vmem:[#allocation38_spill] sm:$0xff] %v15336_v62  ;;  %v5587_v10 = vsub.f32 %v5515_v11, %v5551_v39  ;;  %11677 = vmatmul.msk.f32.gmra.mxu0 %vm267_vm7, %v5257_v51  ;;  %v17900_v62 = vld [vmem:[#allocation41_spill] sm:$0xff]  ;;  %v5206_v29 = vadd.f32 %v14887_v23, %v4896_v38  ;;  %v4587_v49 = vadd.f32 %v14891_v14, %v4277_v63  ;;  %v15360_v11 = vpop.f32.mrf.mxu2  ;;  %v5258_v23 = vld [vmem:[#allocation2 + $0x128] sm:$0xff]  ;;  %v17906_v63 = vld [vmem:[#allocation90_spill] sm:$0xff] }
 0x675   : >> { %v3658_v8 = vadd.f32 %v17900_v62, %v3313_v20  ;;  %v5552_v20 = vld [vmem:[%s12483_s14 + $0x80] sm:$0xff]  ;;  %v17905_v14 = vld [vmem:[#allocation33_spill] sm:$0xff] }
 0x676   : >> { %11729 = vmatmul.msk.f32.gmra.mxu2 %vm444_vm1, %v5587_v10  ;;  %v5671_v42 = vrot.slane %v5587_v10, 1  ;;  %v6079_v21 = vrot.slane %v5587_v10, 2  ;;  %v6761_v13 = vrot.slane %v5587_v10, 4  ;;  %v6494_v17 = vrot.slane %v5587_v10, 3 }
 0x677   : >> { %v7443_v55 = vrot.slane %v5587_v10, 6  ;;  %v7176_v48 = vrot.slane %v5587_v10, 5  ;;  %v3316_v10 = vadd.f32 %v17906_v63, %v17905_v14  ;;  %v3968_v38 = vadd.f32 %v17907_v50, %v3658_v8  ;;  %v17908_v63 = vld [vmem:[#allocation43_spill] sm:$0xff] }
 0x678   : >> { %v5672_v39 = vsel %vm380_vm0, %v5669_v44, %v5671_v42  ;;  %v15351_v51 = vsel %vm791_vm2, %v6077_v22, %v6079_v21  ;;  %v15354_v28 = vsel %vm1482_vm5, %v6759_v18, %v6761_v13  ;;  %v15357_v19 = vsel %vm1213_vm3, %v6492_v59, %v6494_v17  ;;  %v15372_v59 = vpop.f32.mrf.mxu3 }
 0x679   : >> { %17901 = vst [vmem:[#allocation31_spill] sm:$0xff] %v15351_v51  ;;  %v5440_v62 = vpop.f32.mrf.mxu0  ;;  %11697 = vmatmul.msk.f32.gmra.mxu1 %vm444_vm1, %v5672_v39  ;;  %11760 = vmatmul.msk.f32.gmra.mxu3 %vm444_vm1, %v15351_v51  ;;  %v15367_v44 = vsel %vm2173_vm6, %v7441_v26, %v7443_v55  ;;  %v15370_v18 = vsel %vm1904_vm4, %v7174_v1, %v7176_v48  ;;  %v11873_v39 = vld [vmem:[%s17618_s1 + $0x30] sm:$0xff]  ;;  %v5553_v51 = vld [vmem:[%s12483_s14 + $0x88] sm:$0xff] }
 0x67a   : >> { %17902 = vst [vmem:[#allocation87_spill] sm:$0xff] %v15357_v19  ;;  %v5516_v22 = vadd.f32 %v5440_v62, %v5206_v29  ;;  %v4897_v26 = vadd.f32 %v14885_v46, %v4587_v49  ;;  %v4278_v1 = vadd.f32 %v14812_v3, %v3968_v38  ;;  %7028 = vmatpush.msra.mxu0 %v11873_v39 }
 0x67b   : >> { %17903 = vst [vmem:[#allocation70_spill] sm:$0xff] %v15367_v44  ;;  %v3659_v50 = vadd.f32 %v17908_v63, %v3316_v10  ;;  %v17914_v10 = vld [vmem:[#allocation94_spill] sm:$0xff] }
 0x67c   : >> { %17904 = vst [vmem:[#allocation41_spill] sm:$0xff] %v15370_v18  ;;  %v5588_v52 = vsub.f32 %v5516_v22, %v5552_v20  ;;  %11678 = vmatmul.msk.f32.gmra.mxu0 %vm267_vm7, %v5258_v23  ;;  %v15383_v18 = vpop.f32.mrf.mxu1  ;;  %v5207_v20 = vadd.f32 %v14896_v12, %v4897_v26  ;;  %v4588_v39 = vadd.f32 %v14900_v7, %v4278_v1  ;;  %v17915_v7 = vld [vmem:[#allocation76_spill] sm:$0xff] }
 0x67d   : >> { %v3969_v1 = vadd.f32 %v17915_v7, %v3659_v50 }
 0x67e   : >> { %11730 = vmatmul.msk.f32.gmra.mxu2 %vm444_vm1, %v5588_v52  ;;  %v5673_v29 = vrot.slane %v5588_v52, 1  ;;  %v6081_v62 = vrot.slane %v5588_v52, 2  ;;  %v6763_v8 = vrot.slane %v5588_v52, 4  ;;  %v6496_v14 = vrot.slane %v5588_v52, 3 }
 0x67f   : >> { %v7445_v22 = vrot.slane %v5588_v52, 6  ;;  %v7178_v23 = vrot.slane %v5588_v52, 5  ;;  %v5259_v52 = vld [vmem:[#allocation2 + $0x130] sm:$0xff] }
 0x680   : >> { %v5674_v46 = vsel %vm380_vm0, %v5671_v42, %v5673_v29  ;;  %v15390_v3 = vsel %vm791_vm2, %v6079_v21, %v6081_v62  ;;  %v15393_v49 = vsel %vm1482_vm5, %v6761_v13, %v6763_v8  ;;  %v15396_v38 = vsel %vm1213_vm3, %v6494_v17, %v6496_v14  ;;  %v17913_v17 = vld [vmem:[#allocation35_spill] sm:$0xff]  ;;  %v15412_v63 = vpop.f32.mrf.mxu3 }
 0x681   : >> { %17909 = vst [vmem:[#allocation33_spill] sm:$0xff] %v15390_v3  ;;  %v5443_v44 = vpop.f32.mrf.mxu0  ;;  %11698 = vmatmul.msk.f32.gmra.mxu1 %vm444_vm1, %v5674_v46  ;;  %v5956_v12 = vpop.f32.mrf.mxu2  ;;  %11761 = vmatmul.msk.f32.gmra.mxu3 %vm444_vm1, %v15390_v3  ;;  %v15404_v42 = vsel %vm2173_vm6, %v7443_v55, %v7445_v22  ;;  %v15407_v21 = vsel %vm1904_vm4, %v7176_v48, %v7178_v23 }
 0x682   : >> { %17910 = vst [vmem:[#allocation90_spill] sm:$0xff] %v15396_v38  ;;  %v5517_v13 = vadd.f32 %v5443_v44, %v5207_v20  ;;  %v3319_v26 = vadd.f32 %v17914_v10, %v17913_v17  ;;  %v4898_v3 = vadd.f32 %v14894_v34, %v4588_v39  ;;  %v4279_v38 = vadd.f32 %v14816_v56, %v3969_v1  ;;  %v17916_v17 = vld [vmem:[#allocation45_spill] sm:$0xff] }
 0x683   : >> { %17911 = vst [vmem:[#allocation73_spill] sm:$0xff] %v15404_v42  ;;  %v5554_v42 = vld [vmem:[%s12483_s14 + $0x90] sm:$0xff] }
 0x684   : >> { %17912 = vst [vmem:[#allocation43_spill] sm:$0xff] %v15407_v21  ;;  %v5589_v46 = vsub.f32 %v5517_v13, %v5553_v51  ;;  %11679 = vmatmul.msk.f32.gmra.mxu0 %vm267_vm7, %v5259_v52  ;;  %v3660_v10 = vadd.f32 %v17916_v17, %v3319_v26  ;;  %v5208_v50 = vadd.f32 %v14907_v32, %v4898_v3  ;;  %v17922_v26 = vld [vmem:[#allocation97_spill] sm:$0xff] }
 0x685   : >> { %v4589_v13 = vadd.f32 %v14910_v37, %v4279_v38  ;;  %v17923_v37 = vld [vmem:[#allocation78_spill] sm:$0xff] }
 0x686   : >> { %v5784_v55 = vpop.f32.mrf.mxu1  ;;  %11731 = vmatmul.msk.f32.gmra.mxu2 %vm444_vm1, %v5589_v46  ;;  %v5675_v48 = vrot.slane %v5589_v46, 1  ;;  %v6083_v44 = vrot.slane %v5589_v46, 2  ;;  %v6765_v20 = vrot.slane %v5589_v46, 4  ;;  %v6498_v21 = vrot.slane %v5589_v46, 3 }
 0x687   : >> { %v7447_v7 = vrot.slane %v5589_v46, 6  ;;  %v7180_v51 = vrot.slane %v5589_v46, 5  ;;  %v3970_v38 = vadd.f32 %v17923_v37, %v3660_v10  ;;  %v5957_v17 = vadd.f32 %v5956_v12, %v5784_v55  ;;  %v17925_v10 = vld [vmem:[#allocation48_spill] sm:$0xff] }
 0x688   : >> { %v5676_v52 = vsel %vm380_vm0, %v5673_v29, %v5675_v48  ;;  %v15422_v34 = vsel %vm791_vm2, %v6081_v62, %v6083_v44  ;;  %v15425_v56 = vsel %vm1482_vm5, %v6763_v8, %v6765_v20  ;;  %v15428_v39 = vsel %vm1213_vm3, %v6496_v14, %v6498_v21  ;;  %v5260_v29 = vld [vmem:[#allocation2 + $0x138] sm:$0xff]  ;;  %v17921_v14 = vld [vmem:[#allocation37_spill] sm:$0xff] }
 0x689   : >> { %17917 = vst [vmem:[#allocation35_spill] sm:$0xff] %v15422_v34  ;;  %v5446_v1 = vpop.f32.mrf.mxu0  ;;  %11699 = vmatmul.msk.f32.gmra.mxu1 %vm444_vm1, %v5676_v52  ;;  %v5959_v32 = vpop.f32.mrf.mxu2  ;;  %11762 = vmatmul.msk.f32.gmra.mxu3 %vm444_vm1, %v15422_v34  ;;  %v15436_v62 = vsel %vm2173_vm6, %v7445_v22, %v7447_v7  ;;  %v15439_v8 = vsel %vm1904_vm4, %v7178_v23, %v7180_v51 }
 0x68a   : >> { %17918 = vst [vmem:[#allocation94_spill] sm:$0xff] %v15428_v39  ;;  %v5518_v3 = vadd.f32 %v5446_v1, %v5208_v50  ;;  %v3322_v46 = vadd.f32 %v17922_v26, %v17921_v14  ;;  %v4899_v34 = vadd.f32 %v14903_v43, %v4589_v13  ;;  %v4280_v19 = vadd.f32 %v14820_v31, %v3970_v38  ;;  %v5555_v38 = vld [vmem:[%s12483_s14 + $0x98] sm:$0xff] }
 0x68b   : >> { %17919 = vst [vmem:[#allocation76_spill] sm:$0xff] %v15436_v62 }
 0x68c   : >> { %17920 = vst [vmem:[#allocation45_spill] sm:$0xff] %v15439_v8  ;;  %v5590_v39 = vsub.f32 %v5518_v3, %v5554_v42  ;;  %11680 = vmatmul.msk.f32.gmra.mxu0 %vm267_vm7, %v5260_v29  ;;  %v6192_v52 = vpop.f32.mrf.mxu3  ;;  %v3661_v12 = vadd.f32 %v17925_v10, %v3322_v46  ;;  %v5209_v42 = vadd.f32 %v14916_v16, %v4899_v34 }
 0x68d   : >> { %v15447_v22 = vadd.f32 %v6192_v52, %v5957_v17  ;;  %v4590_v26 = vadd.f32 %v14922_v40, %v4280_v19  ;;  %v17932_v40 = vld [vmem:[#allocation80_spill] sm:$0xff] }
 0x68e   : >> { %v5787_v62 = vpop.f32.mrf.mxu1  ;;  %11732 = vmatmul.msk.f32.gmra.mxu2 %vm444_vm1, %v5590_v39  ;;  %v5677_v23 = vrot.slane %v5590_v39, 1  ;;  %v6085_v50 = vrot.slane %v5590_v39, 2  ;;  %v6767_v1 = vrot.slane %v5590_v39, 4  ;;  %v6500_v14 = vrot.slane %v5590_v39, 3 }
 0x68f   : >> { %17924 = vst [vmem:[#allocation37_spill] sm:$0xff] %v15447_v22  ;;  %v7449_v55 = vrot.slane %v5590_v39, 6  ;;  %v7182_v29 = vrot.slane %v5590_v39, 5  ;;  %v17931_v39 = vld [vmem:[#allocation11_spill] sm:$0xff]  ;;  %v3971_v19 = vadd.f32 %v17932_v40, %v3661_v12  ;;  %v5960_v17 = vadd.f32 %v5959_v32, %v5787_v62  ;;  %v17934_v12 = vld [vmem:[#allocation52_spill] sm:$0xff] }
 0x690   : >> { %v5678_v43 = vsel %vm380_vm0, %v5675_v48, %v5677_v23  ;;  %v15454_v31 = vsel %vm791_vm2, %v6083_v44, %v6085_v50  ;;  %v15457_v13 = vsel %vm1482_vm5, %v6765_v20, %v6767_v1  ;;  %v15460_v3 = vsel %vm1213_vm3, %v6498_v21, %v6500_v14  ;;  %v5261_v48 = vld [vmem:[#allocation2 + $0x140] sm:$0x3f] }
 0x691   : >> { %17926 = vst [vmem:[#allocation97_spill] sm:$0xff] %v15454_v31  ;;  %v5449_v37 = vpop.f32.mrf.mxu0  ;;  %11700 = vmatmul.msk.f32.gmra.mxu1 %vm444_vm1, %v5678_v43  ;;  %v5962_v16 = vpop.f32.mrf.mxu2  ;;  %11763 = vmatmul.msk.f32.gmra.mxu3 %vm444_vm1, %v15454_v31  ;;  %v15468_v44 = vsel %vm2173_vm6, %v7447_v7, %v7449_v55  ;;  %v15471_v20 = vsel %vm1904_vm4, %v7180_v51, %v7182_v29  ;;  %v17930_v21 = vld [vmem:[#allocation39_spill] sm:$0xff]  ;;  %v17971_v31 = vld [vmem:[#allocation120_spill] sm:$0xff] }
 0x692   : >> { %17927 = vst [vmem:[#allocation78_spill] sm:$0xff] %v15460_v3  ;;  %v5519_v34 = vadd.f32 %v5449_v37, %v5209_v42  ;;  %v3325_v46 = vadd.f32 %v17931_v39, %v17930_v21  ;;  %v4900_v43 = vadd.f32 %v14914_v58, %v4590_v26  ;;  %v4281_v8 = vadd.f32 %v14824_v61, %v3971_v19  ;;  %v17937_v39 = vld [vmem:[#allocation116_spill] sm:$0xff]  ;;  %v17985_v3 = vld [vmem:[#allocation123_spill] sm:$0xff] }
 0x693   : >> { %17928 = vst [vmem:[#allocation48_spill] sm:$0xff] %v15468_v44 }
 0x694   : >> { %17929 = vst [vmem:[#allocation171_spill] sm:$0xff] %v15471_v20  ;;  %v5591_v52 = vsub.f32 %v5519_v34, %v5555_v38  ;;  %11681 = vmatmul.msk.f32.gmra.mxu0 %vm267_vm7, %v5261_v48  ;;  %v6195_v10 = vpop.f32.mrf.mxu3  ;;  %v3662_v32 = vadd.f32 %v17934_v12, %v3325_v46  ;;  %v5210_v62 = vadd.f32 %v14932_v41, %v4900_v43  ;;  %v17940_v46 = vld [vmem:[#allocation40_spill] sm:$0xff]  ;;  %v17944_v20 = vld [vmem:[#allocation114_spill] sm:$0xff] }
 0x695   : >> { %v15479_v7 = vadd.f32 %v6195_v10, %v5960_v17  ;;  %v4591_v40 = vadd.f32 %v17937_v39, %v4281_v8  ;;  %v5556_v17 = vld [vmem:[%s12483_s14 + $0xa0] sm:$0xff] }
 0x696   : >> { %v5790_v44 = vpop.f32.mrf.mxu1  ;;  %11733 = vmatmul.msk.f32.gmra.mxu2 %vm444_vm1, %v5591_v52  ;;  %v5679_v51 = vrot.slane %v5591_v52, 1  ;;  %v6087_v42 = vrot.slane %v5591_v52, 2  ;;  %v6769_v37 = vrot.slane %v5591_v52, 4  ;;  %v6502_v21 = vrot.slane %v5591_v52, 3  ;;  %v17942_v10 = vld [vmem:[#allocation83_spill] sm:$0xff] }
 0x697   : >> { %17933 = vst [vmem:[#allocation39_spill] sm:$0xff] %v15479_v7  ;;  %v7451_v38 = vrot.slane %v5591_v52, 6  ;;  %v7184_v48 = vrot.slane %v5591_v52, 5  ;;  %v3972_v8 = vadd.f32 %v17942_v10, %v3662_v32  ;;  %v5963_v43 = vadd.f32 %v5962_v16, %v5790_v44  ;;  %v17947_v16 = vld [vmem:[#allocation55_spill] sm:$0xff] }
 0x698   : >> { %v5680_v58 = vsel %vm380_vm0, %v5677_v23, %v5679_v51  ;;  %v15486_v61 = vsel %vm791_vm2, %v6085_v50, %v6087_v42  ;;  %v15489_v26 = vsel %vm1482_vm5, %v6767_v1, %v6769_v37  ;;  %v15492_v34 = vsel %vm1213_vm3, %v6500_v14, %v6502_v21  ;;  %v17941_v14 = vld [vmem:[#allocation12_spill] sm:$0xff] }
 0x699   : >> { %17935 = vst [vmem:[#allocation11_spill] sm:$0xff] %v15486_v61  ;;  %v5452_v19 = vpop.f32.mrf.mxu0  ;;  %11701 = vmatmul.msk.f32.gmra.mxu1 %vm444_vm1, %v5680_v58  ;;  %v5965_v41 = vpop.f32.mrf.mxu2  ;;  %11764 = vmatmul.msk.f32.gmra.mxu3 %vm444_vm1, %v15486_v61  ;;  %v15500_v23 = vsel %vm2173_vm6, %v7449_v55, %v7451_v38  ;;  %v15503_v50 = vsel %vm1904_vm4, %v7182_v29, %v7184_v48  ;;  %v17943_v58 = vld [vmem:[#allocation139_spill] sm:$0xff] }
 0x69a   : >> { %17936 = vst [vmem:[#allocation80_spill] sm:$0xff] %v15492_v34  ;;  %v5520_v1 = vadd.f32 %v5452_v19, %v5210_v62  ;;  %v3328_v52 = vadd.f32 %v17941_v14, %v17940_v46  ;;  %v4901_v7 = vadd.f32 %v17944_v20, %v4591_v40  ;;  %v17945_v61 = vld [vmem:[#allocation19_spill] sm:$0xff]  ;;  %v17972_v34 = vld [vmem:[#allocation96_spill] sm:$0xff] }
 0x69b   : >> { %17938 = vst [vmem:[#allocation52_spill] sm:$0xff] %v15500_v23  ;;  %v4282_v55 = vadd.f32 %v17945_v61, %v3972_v8 }
 0x69c   : >> { %17939 = vst [vmem:[#allocation116_spill] sm:$0xff] %v15503_v50  ;;  %v5592_v12 = vsub.f32 %v5520_v1, %v5556_v17  ;;  %v6198_v39 = vpop.f32.mrf.mxu3  ;;  %11874 = vmatmul.msk.f32.vlgmr.msra.gmra.mxu0 %vm444_vm1, %v17943_v58  ;;  %v3663_v44 = vadd.f32 %v17947_v16, %v3328_v52  ;;  %v17948_v17 = vld [vmem:[#allocation118_spill] sm:$0xff] }
 0x69d   : >> { %v15512_v23 = vadd.f32 %v6198_v39, %v5963_v43  ;;  %v5211_v1 = vadd.f32 %v17948_v17, %v4901_v7  ;;  %v17951_v43 = vld [vmem:[#allocation119_spill] sm:$0xff]  ;;  %v17954_v52 = vld [vmem:[#allocation42_spill] sm:$0xff] }
 0x69e   : >> { %v5793_v29 = vpop.f32.mrf.mxu1  ;;  %11734 = vmatmul.msk.f32.gmra.mxu2 %vm444_vm1, %v5592_v12  ;;  %v5681_v62 = vrot.slane %v5592_v12, 1  ;;  %v6089_v19 = vrot.slane %v5592_v12, 2  ;;  %v6771_v46 = vrot.slane %v5592_v12, 4  ;;  %v6504_v32 = vrot.slane %v5592_v12, 3  ;;  %v17956_v16 = vld [vmem:[#allocation86_spill] sm:$0xff] }
 0x69f   : >> { %17946 = vst [vmem:[#allocation40_spill] sm:$0xff] %v15512_v23  ;;  %v7453_v14 = vrot.slane %v5592_v12, 6  ;;  %v7186_v10 = vrot.slane %v5592_v12, 5  ;;  %v4592_v39 = vadd.f32 %v17951_v43, %v4282_v55  ;;  %v5557_v23 = vld [vmem:[%s12483_s14 + $0xa8] sm:$0xff]  ;;  %v3973_v55 = vadd.f32 %v17956_v16, %v3663_v44 }
 0x6a0   : >> { %v5682_v20 = vsel %vm380_vm0, %v5679_v51, %v5681_v62  ;;  %v15519_v61 = vsel %vm791_vm2, %v6087_v42, %v6089_v19  ;;  %v15522_v40 = vsel %vm1482_vm5, %v6769_v37, %v6771_v46  ;;  %v15525_v8 = vsel %vm1213_vm3, %v6502_v21, %v6504_v32  ;;  %v17955_v21 = vld [vmem:[#allocation13_spill] sm:$0xff] }
 0x6a1   : >> { %17949 = vst [vmem:[#allocation12_spill] sm:$0xff] %v15519_v61  ;;  %v5455_v50 = vpop.f32.mrf.mxu0  ;;  %11702 = vmatmul.msk.f32.gmra.mxu1 %vm444_vm1, %v5682_v20  ;;  %v5968_v7 = vpop.f32.mrf.mxu2  ;;  %11765 = vmatmul.msk.f32.gmra.mxu3 %vm444_vm1, %v15519_v61  ;;  %v15533_v51 = vsel %vm2173_vm6, %v7451_v38, %v7453_v14  ;;  %v15536_v42 = vsel %vm1904_vm4, %v7184_v48, %v7186_v10  ;;  %v17957_v20 = vld [vmem:[#allocation117_spill] sm:$0xff] }
 0x6a2   : >> { %17950 = vst [vmem:[#allocation83_spill] sm:$0xff] %v15525_v8  ;;  %v5521_v37 = vadd.f32 %v5455_v50, %v5211_v1  ;;  %v3331_v12 = vadd.f32 %v17955_v21, %v17954_v52  ;;  %v5966_v17 = vadd.f32 %v5965_v41, %v5793_v29  ;;  %v4902_v61 = vadd.f32 %v17957_v20, %v4592_v39  ;;  %v17958_v8 = vld [vmem:[#allocation58_spill] sm:$0xff]  ;;  %v17960_v41 = vld [vmem:[#allocation59_spill] sm:$0xff]  ;;  %v17961_v29 = vld [vmem:[#allocation121_spill] sm:$0xff] }
 0x6a3   : >> { %17952 = vst [vmem:[#allocation139_spill] sm:$0xff] %v15533_v51  ;;  %v4283_v38 = vadd.f32 %v17958_v8, %v3973_v55 }
 0x6a4   : >> { %17953 = vst [vmem:[#allocation114_spill] sm:$0xff] %v15536_v42  ;;  %v5593_v43 = vsub.f32 %v5521_v37, %v5557_v23  ;;  %v6201_v22 = vpop.f32.mrf.mxu3  ;;  %11875 = vmatmul.msk.f32.gmra.mxu0 %vm444_vm1, %v15061_v60  ;;  %v3664_v23 = vadd.f32 %v17960_v41, %v3331_v12  ;;  %v5212_v37 = vadd.f32 %v17961_v29, %v4902_v61  ;;  %v17967_v12 = vld [vmem:[#allocation44_spill] sm:$0xff]  ;;  %v17969_v41 = vld [vmem:[#allocation89_spill] sm:$0xff] }
 0x6a5   : >> { %v15545_v51 = vadd.f32 %v6201_v22, %v5966_v17  ;;  %v17964_v17 = vld [vmem:[#allocation122_spill] sm:$0xff] }
 0x6a6   : >> { %v5796_v48 = vpop.f32.mrf.mxu1  ;;  %11735 = vmatmul.msk.f32.gmra.mxu2 %vm444_vm1, %v5593_v43  ;;  %v5683_v50 = vrot.slane %v5593_v43, 1  ;;  %v6091_v1 = vrot.slane %v5593_v43, 2  ;;  %v6773_v52 = vrot.slane %v5593_v43, 4  ;;  %v6506_v44 = vrot.slane %v5593_v43, 3 }
 0x6a7   : >> { %17959 = vst [vmem:[#allocation19_spill] sm:$0xff] %v15545_v51  ;;  %v7455_v21 = vrot.slane %v5593_v43, 6  ;;  %v7188_v16 = vrot.slane %v5593_v43, 5  ;;  %v4593_v20 = vadd.f32 %v17964_v17, %v4283_v38  ;;  %v5558_v51 = vld [vmem:[%s12483_s14 + $0xb0] sm:$0xff]  ;;  %v3974_v38 = vadd.f32 %v17969_v41, %v3664_v23 }
 0x6a8   : >> { %v5684_v39 = vsel %vm380_vm0, %v5681_v62, %v5683_v50  ;;  %v15552_v8 = vsel %vm791_vm2, %v6089_v19, %v6091_v1  ;;  %v15555_v22 = vsel %vm1482_vm5, %v6771_v46, %v6773_v52  ;;  %v15558_v55 = vsel %vm1213_vm3, %v6504_v32, %v6506_v44  ;;  %v17968_v32 = vld [vmem:[#allocation14_spill] sm:$0xff] }
 0x6a9   : >> { %17962 = vst [vmem:[#allocation55_spill] sm:$0xff] %v15552_v8  ;;  %v5458_v42 = vpop.f32.mrf.mxu0  ;;  %11703 = vmatmul.msk.f32.gmra.mxu1 %vm444_vm1, %v5684_v39  ;;  %v5971_v61 = vpop.f32.mrf.mxu2  ;;  %11766 = vmatmul.msk.f32.gmra.mxu3 %vm444_vm1, %v15552_v8  ;;  %v15566_v62 = vsel %vm2173_vm6, %v7453_v14, %v7455_v21  ;;  %v15569_v19 = vsel %vm1904_vm4, %v7186_v10, %v7188_v16  ;;  %v17970_v39 = vld [vmem:[#allocation154_spill] sm:$0xff] }
 0x6aa   : >> { %17963 = vst [vmem:[#allocation118_spill] sm:$0xff] %v15558_v55  ;;  %v5522_v46 = vadd.f32 %v5458_v42, %v5212_v37  ;;  %v3334_v43 = vadd.f32 %v17968_v32, %v17967_v12  ;;  %v5969_v29 = vadd.f32 %v5968_v7, %v5796_v48  ;;  %v4903_v8 = vadd.f32 %v17971_v31, %v4593_v20  ;;  %v17974_v7 = vld [vmem:[#allocation64_spill] sm:$0xff] }
 0x6ab   : >> { %17965 = vst [vmem:[#allocation119_spill] sm:$0xff] %v15566_v62  ;;  %v4284_v14 = vadd.f32 %v17972_v34, %v3974_v38  ;;  %v17975_v48 = vld [vmem:[#allocation124_spill] sm:$0xff]  ;;  %v17978_v38 = vld [vmem:[#allocation125_spill] sm:$0xff] }
 0x6ac   : >> { %17966 = vst [vmem:[#allocation42_spill] sm:$0xff] %v15569_v19  ;;  %v5594_v17 = vsub.f32 %v5522_v46, %v5558_v51  ;;  %v6204_v55 = vpop.f32.mrf.mxu3  ;;  %11876 = vmatmul.msk.f32.gmra.mxu0 %vm444_vm1, %v17970_v39  ;;  %v3665_v51 = vadd.f32 %v17974_v7, %v3334_v43  ;;  %v5213_v46 = vadd.f32 %v17975_v48, %v4903_v8  ;;  %v17981_v43 = vld [vmem:[#allocation46_spill] sm:$0xff]  ;;  %v17983_v7 = vld [vmem:[#allocation91_spill] sm:$0xff] }
 0x6ad   : >> { %v15578_v62 = vadd.f32 %v6204_v55, %v5969_v29  ;;  %v4594_v29 = vadd.f32 %v17978_v38, %v4284_v14 }
 0x6ae   : >> { %v5799_v10 = vpop.f32.mrf.mxu1  ;;  %11736 = vmatmul.msk.f32.gmra.mxu2 %vm444_vm1, %v5594_v17  ;;  %v5685_v42 = vrot.slane %v5594_v17, 1  ;;  %v6093_v37 = vrot.slane %v5594_v17, 2  ;;  %v6775_v12 = vrot.slane %v5594_v17, 4  ;;  %v6508_v23 = vrot.slane %v5594_v17, 3 }
 0x6af   : >> { %17973 = vst [vmem:[#allocation13_spill] sm:$0xff] %v15578_v62  ;;  %v7457_v32 = vrot.slane %v5594_v17, 6  ;;  %v7190_v41 = vrot.slane %v5594_v17, 5  ;;  %v5559_v62 = vld [vmem:[%s12483_s14 + $0xb8] sm:$0xff]  ;;  %v3975_v14 = vadd.f32 %v17983_v7, %v3665_v51  ;;  %v5972_v48 = vadd.f32 %v5971_v61, %v5799_v10  ;;  %v17988_v61 = vld [vmem:[#allocation69_spill] sm:$0xff]  ;;  %v17989_v10 = vld [vmem:[#allocation127_spill] sm:$0xff] }
 0x6b0   : >> { %v5686_v31 = vsel %vm380_vm0, %v5683_v50, %v5685_v42  ;;  %v15585_v34 = vsel %vm791_vm2, %v6091_v1, %v6093_v37  ;;  %v15588_v55 = vsel %vm1482_vm5, %v6773_v52, %v6775_v12  ;;  %v15591_v20 = vsel %vm1213_vm3, %v6506_v44, %v6508_v23  ;;  %v17982_v44 = vld [vmem:[#allocation15_spill] sm:$0xff] }
 0x6b1   : >> { %17976 = vst [vmem:[#allocation86_spill] sm:$0xff] %v15585_v34  ;;  %v5461_v19 = vpop.f32.mrf.mxu0  ;;  %11704 = vmatmul.msk.f32.gmra.mxu1 %vm444_vm1, %v5686_v31  ;;  %v5974_v8 = vpop.f32.mrf.mxu2  ;;  %11767 = vmatmul.msk.f32.gmra.mxu3 %vm444_vm1, %v15585_v34  ;;  %v15599_v50 = vsel %vm2173_vm6, %v7455_v21, %v7457_v32  ;;  %v15602_v1 = vsel %vm1904_vm4, %v7188_v16, %v7190_v41  ;;  %v17984_v31 = vld [vmem:[#allocation161_spill] sm:$0xff] }
 0x6b2   : >> { %17977 = vst [vmem:[#allocation117_spill] sm:$0xff] %v15591_v20  ;;  %v5523_v52 = vadd.f32 %v5461_v19, %v5213_v46  ;;  %v3337_v17 = vadd.f32 %v17982_v44, %v17981_v43  ;;  %v4904_v34 = vadd.f32 %v17985_v3, %v4594_v29  ;;  %v4285_v21 = vadd.f32 %v17986_v6, %v3975_v14  ;;  %v17992_v14 = vld [vmem:[#allocation131_spill] sm:$0xff] }
 0x6b3   : >> { %17979 = vst [vmem:[#allocation58_spill] sm:$0xff] %v15599_v50 }
 0x6b4   : >> { %17980 = vst [vmem:[#allocation59_spill] sm:$0xff] %v15602_v1  ;;  %v5595_v38 = vsub.f32 %v5523_v52, %v5559_v62  ;;  %v6207_v20 = vpop.f32.mrf.mxu3  ;;  %11877 = vmatmul.msk.f32.gmra.mxu0 %vm444_vm1, %v17984_v31  ;;  %v3666_v62 = vadd.f32 %v17988_v61, %v3337_v17  ;;  %v5214_v52 = vadd.f32 %v17989_v10, %v4904_v34  ;;  %v17995_v17 = vld [vmem:[#allocation49_spill] sm:$0xff] }
 0x6b5   : >> { %v15611_v50 = vadd.f32 %v6207_v20, %v5972_v48  ;;  %v4595_v48 = vadd.f32 %v17992_v14, %v4285_v21  ;;  %v17997_v61 = vld [vmem:[#allocation93_spill] sm:$0xff] }
 0x6b6   : >> { %v5802_v16 = vpop.f32.mrf.mxu1  ;;  %11737 = vmatmul.msk.f32.gmra.mxu2 %vm444_vm1, %v5595_v38  ;;  %v5687_v19 = vrot.slane %v5595_v38, 1  ;;  %v6095_v46 = vrot.slane %v5595_v38, 2  ;;  %v6777_v43 = vrot.slane %v5595_v38, 4  ;;  %v6510_v51 = vrot.slane %v5595_v38, 3 }
 0x6b7   : >> { %17987 = vst [vmem:[#allocation121_spill] sm:$0xff] %v15611_v50  ;;  %v7459_v44 = vrot.slane %v5595_v38, 6  ;;  %v7192_v7 = vrot.slane %v5595_v38, 5  ;;  %v5560_v50 = vld [vmem:[%s12483_s14 + $0xc0] sm:$0xff]  ;;  %v3976_v21 = vadd.f32 %v17997_v61, %v3666_v62  ;;  %v5975_v10 = vadd.f32 %v5974_v8, %v5802_v16  ;;  %v18001_v8 = vld [vmem:[#allocation72_spill] sm:$0xff]  ;;  %v18002_v16 = vld [vmem:[#allocation133_spill] sm:$0xff] }
 0x6b8   : >> { %v5688_v3 = vsel %vm380_vm0, %v5685_v42, %v5687_v19  ;;  %v15618_v6 = vsel %vm791_vm2, %v6093_v37, %v6095_v46  ;;  %v15621_v20 = vsel %vm1482_vm5, %v6775_v12, %v6777_v43  ;;  %v15624_v29 = vsel %vm1213_vm3, %v6508_v23, %v6510_v51  ;;  %v17996_v23 = vld [vmem:[#allocation16_spill] sm:$0xff] }
 0x6b9   : >> { %17990 = vst [vmem:[#allocation122_spill] sm:$0xff] %v15618_v6  ;;  %v5464_v1 = vpop.f32.mrf.mxu0  ;;  %11705 = vmatmul.msk.f32.gmra.mxu1 %vm444_vm1, %v5688_v3  ;;  %v5977_v34 = vpop.f32.mrf.mxu2  ;;  %11768 = vmatmul.msk.f32.gmra.mxu3 %vm444_vm1, %v15618_v6  ;;  %v15632_v42 = vsel %vm2173_vm6, %v7457_v32, %v7459_v44  ;;  %v15635_v37 = vsel %vm1904_vm4, %v7190_v41, %v7192_v7  ;;  %v17998_v3 = vld [vmem:[#allocation126_spill] sm:$0xff] }
 0x6ba   : >> { %17991 = vst [vmem:[#allocation44_spill] sm:$0xff] %v15624_v29  ;;  %v5524_v12 = vadd.f32 %v5464_v1, %v5214_v52  ;;  %v3340_v38 = vadd.f32 %v17996_v23, %v17995_v17  ;;  %v4905_v6 = vadd.f32 %v17998_v3, %v4595_v48  ;;  %v4286_v32 = vadd.f32 %v17999_v30, %v3976_v21 }
 0x6bb   : >> { %17993 = vst [vmem:[#allocation14_spill] sm:$0xff] %v15632_v42 }
 0x6bc   : >> { %17994 = vst [vmem:[#allocation89_spill] sm:$0xff] %v15635_v37  ;;  %v5596_v14 = vsub.f32 %v5524_v12, %v5560_v50  ;;  %v6210_v29 = vpop.f32.mrf.mxu3  ;;  %11878 = vmatmul.msk.f32.gmra.mxu0 %vm444_vm1, %v15149_v27  ;;  %v3667_v50 = vadd.f32 %v18001_v8, %v3340_v38  ;;  %v5215_v12 = vadd.f32 %v18002_v16, %v4905_v6  ;;  %v18009_v38 = vld [vmem:[#allocation51_spill] sm:$0xff] }
 0x6bd   : >> { %v15644_v42 = vadd.f32 %v6210_v29, %v5975_v10  ;;  %v18006_v10 = vld [vmem:[#allocation137_spill] sm:$0xff]  ;;  %v18011_v8 = vld [vmem:[#allocation95_spill] sm:$0xff] }
 0x6be   : >> { %v5805_v41 = vpop.f32.mrf.mxu1  ;;  %11738 = vmatmul.msk.f32.gmra.mxu2 %vm444_vm1, %v5596_v14  ;;  %v5689_v1 = vrot.slane %v5596_v14, 1  ;;  %v6097_v52 = vrot.slane %v5596_v14, 2  ;;  %v6779_v17 = vrot.slane %v5596_v14, 4  ;;  %v6512_v62 = vrot.slane %v5596_v14, 3 }
 0x6bf   : >> { %18000 = vst [vmem:[#allocation154_spill] sm:$0xff] %v15644_v42  ;;  %v7461_v23 = vrot.slane %v5596_v14, 6  ;;  %v7194_v61 = vrot.slane %v5596_v14, 5  ;;  %v4596_v3 = vadd.f32 %v18006_v10, %v4286_v32  ;;  %v5561_v42 = vld [vmem:[%s12483_s14 + $0xc8] sm:$0xff]  ;;  %v3977_v32 = vadd.f32 %v18011_v8, %v3667_v50 }
 0x6c0   : >> { %v5690_v48 = vsel %vm380_vm0, %v5687_v19, %v5689_v1  ;;  %v15651_v30 = vsel %vm791_vm2, %v6095_v46, %v6097_v52  ;;  %v15654_v29 = vsel %vm1482_vm5, %v6777_v43, %v6779_v17  ;;  %v15657_v21 = vsel %vm1213_vm3, %v6510_v51, %v6512_v62  ;;  %v18010_v51 = vld [vmem:[#allocation17_spill] sm:$0xff] }
 0x6c1   : >> { %18003 = vst [vmem:[#allocation120_spill] sm:$0xff] %v15651_v30  ;;  %v5467_v37 = vpop.f32.mrf.mxu0  ;;  %11706 = vmatmul.msk.f32.gmra.mxu1 %vm444_vm1, %v5690_v48  ;;  %v5980_v6 = vpop.f32.mrf.mxu2  ;;  %11769 = vmatmul.msk.f32.gmra.mxu3 %vm444_vm1, %v15651_v30  ;;  %v15665_v19 = vsel %vm2173_vm6, %v7459_v44, %v7461_v23  ;;  %v15668_v46 = vsel %vm1904_vm4, %v7192_v7, %v7194_v61  ;;  %v18012_v48 = vld [vmem:[#allocation132_spill] sm:$0xff] }
 0x6c2   : >> { %18004 = vst [vmem:[#allocation96_spill] sm:$0xff] %v15654_v29  ;;  %v5525_v43 = vadd.f32 %v5467_v37, %v5215_v12  ;;  %v3343_v14 = vadd.f32 %v18010_v51, %v18009_v38  ;;  %v5978_v16 = vadd.f32 %v5977_v34, %v5805_v41  ;;  %v4906_v30 = vadd.f32 %v18012_v48, %v4596_v3  ;;  %v18013_v29 = vld [vmem:[#allocation62_spill] sm:$0xff]  ;;  %v18015_v34 = vld [vmem:[#allocation75_spill] sm:$0xff]  ;;  %v18016_v41 = vld [vmem:[#allocation144_spill] sm:$0xff] }
 0x6c3   : >> { %18005 = vst [vmem:[#allocation64_spill] sm:$0xff] %v15657_v21  ;;  %v4287_v44 = vadd.f32 %v18013_v29, %v3977_v32 }
 0x6c4   : >> { %18007 = vst [vmem:[#allocation124_spill] sm:$0xff] %v15665_v19  ;;  %v5597_v10 = vsub.f32 %v5525_v43, %v5561_v42  ;;  %v6213_v21 = vpop.f32.mrf.mxu3  ;;  %11879 = vmatmul.msk.f32.gmra.mxu0 %vm444_vm1, %v15179_v24  ;;  %v3668_v42 = vadd.f32 %v18015_v34, %v3343_v14  ;;  %v5216_v43 = vadd.f32 %v18016_v41, %v4906_v30  ;;  %v18023_v14 = vld [vmem:[#allocation54_spill] sm:$0xff] }
 0x6c5   : >> { %18008 = vst [vmem:[#allocation125_spill] sm:$0xff] %v15668_v46  ;;  %v15677_v19 = vadd.f32 %v6213_v21, %v5978_v16  ;;  %v18020_v16 = vld [vmem:[#allocation145_spill] sm:$0xff]  ;;  %v18025_v34 = vld [vmem:[#allocation98_spill] sm:$0xff] }
 0x6c6   : >> { %v5808_v7 = vpop.f32.mrf.mxu1  ;;  %11739 = vmatmul.msk.f32.gmra.mxu2 %vm444_vm1, %v5597_v10  ;;  %v5691_v37 = vrot.slane %v5597_v10, 1  ;;  %v6099_v12 = vrot.slane %v5597_v10, 2  ;;  %v6781_v38 = vrot.slane %v5597_v10, 4  ;;  %v6514_v50 = vrot.slane %v5597_v10, 3 }
 0x6c7   : >> { %18014 = vst [vmem:[#allocation46_spill] sm:$0xff] %v15677_v19  ;;  %v7463_v51 = vrot.slane %v5597_v10, 6  ;;  %v7196_v8 = vrot.slane %v5597_v10, 5  ;;  %v4597_v48 = vadd.f32 %v18020_v16, %v4287_v44  ;;  %v5562_v19 = vld [vmem:[%s12483_s14 + $0xd0] sm:$0xff]  ;;  %v3978_v44 = vadd.f32 %v18025_v34, %v3668_v42  ;;  %v18029_v42 = vld [vmem:[#allocation79_spill] sm:$0xff] }
 0x6c8   : >> { %v5692_v3 = vsel %vm380_vm0, %v5689_v1, %v5691_v37  ;;  %v15684_v29 = vsel %vm791_vm2, %v6097_v52, %v6099_v12  ;;  %v15687_v21 = vsel %vm1482_vm5, %v6779_v17, %v6781_v38  ;;  %v15690_v32 = vsel %vm1213_vm3, %v6512_v62, %v6514_v50  ;;  %v18024_v62 = vld [vmem:[#allocation18_spill] sm:$0xff] }
 0x6c9   : >> { %18017 = vst [vmem:[#allocation15_spill] sm:$0xff] %v15684_v29  ;;  %v5470_v46 = vpop.f32.mrf.mxu0  ;;  %11707 = vmatmul.msk.f32.gmra.mxu1 %vm444_vm1, %v5692_v3  ;;  %v5983_v30 = vpop.f32.mrf.mxu2  ;;  %11770 = vmatmul.msk.f32.gmra.mxu3 %vm444_vm1, %v15684_v29  ;;  %v15698_v1 = vsel %vm2173_vm6, %v7461_v23, %v7463_v51  ;;  %v15701_v52 = vsel %vm1904_vm4, %v7194_v61, %v7196_v8  ;;  %v18026_v29 = vld [vmem:[#allocation141_spill] sm:$0xff]  ;;  %v18027_v23 = vld [vmem:[#allocation99_spill] sm:$0xff] }
 0x6ca   : >> { %18018 = vst [vmem:[#allocation91_spill] sm:$0xff] %v15687_v21  ;;  %v5526_v17 = vadd.f32 %v5470_v46, %v5216_v43  ;;  %v3346_v10 = vadd.f32 %v18024_v62, %v18023_v14  ;;  %v5981_v41 = vadd.f32 %v5980_v6, %v5808_v7 }
 0x6cb   : >> { %18019 = vst [vmem:[#allocation161_spill] sm:$0xff] %v15690_v32  ;;  %v4907_v32 = vadd.f32 %v18026_v29, %v4597_v48  ;;  %v18030_v29 = vld [vmem:[#allocation151_spill] sm:$0xff] }
 0x6cc   : >> { %18021 = vst [vmem:[#allocation123_spill] sm:$0xff] %v15698_v1  ;;  %v15706_v16 = vsub.f32 %v5526_v17, %v5562_v19  ;;  %v6216_v3 = vpop.f32.mrf.mxu3  ;;  %11880 = vmatmul.msk.f32.gmra.mxu0 %vm444_vm1, %v15216_v2  ;;  %v4288_v1 = vadd.f32 %v18027_v23, %v3978_v44  ;;  %v3669_v43 = vadd.f32 %v18029_v42, %v3346_v10  ;;  %v5563_v42 = vld [vmem:[%s12483_s14 + $0xd8] sm:$0xff] }
 0x6cd   : >> { %18022 = vst [vmem:[#allocation47_spill] sm:$0xff] %v15701_v52  ;;  %v15712_v21 = vadd.f32 %v6216_v3, %v5981_v41  ;;  %v5217_v48 = vadd.f32 %v18030_v29, %v4907_v32  ;;  %v18034_v3 = vld [vmem:[#allocation152_spill] sm:$0xff] }
 0x6ce   : >> { %v5811_v61 = vpop.f32.mrf.mxu1  ;;  %11740 = vmatmul.msk.f32.gmra.mxu2 %vm444_vm1, %v15706_v16  ;;  %v5693_v46 = vrot.slane %v15706_v16, 1  ;;  %v6101_v6 = vrot.slane %v15706_v16, 2  ;;  %v6783_v19 = vrot.slane %v15706_v16, 4  ;;  %v6516_v7 = vrot.slane %v15706_v16, 3  ;;  %v18039_v52 = vld [vmem:[#allocation100_spill] sm:$0xff] }
 0x6cf   : >> { %18028 = vst [vmem:[#allocation69_spill] sm:$0xff] %v15712_v21  ;;  %v7465_v17 = vrot.slane %v15706_v16, 6  ;;  %v7198_v14 = vrot.slane %v15706_v16, 5  ;;  %v4598_v23 = vadd.f32 %v18034_v3, %v4288_v1  ;;  %v18037_v16 = vld [vmem:[#allocation57_spill] sm:$0xff]  ;;  %v3979_v1 = vadd.f32 %v18039_v52, %v3669_v43  ;;  %v18043_v43 = vld [vmem:[#allocation82_spill] sm:$0xff] }
 0x6d0   : >> { %v5694_v62 = vsel %vm380_vm0, %v5691_v37, %v5693_v46  ;;  %v15726_v34 = vsel %vm791_vm2, %v6099_v12, %v6101_v6  ;;  %v15729_v44 = vsel %vm1482_vm5, %v6781_v38, %v6783_v19  ;;  %v15732_v41 = vsel %vm1213_vm3, %v6514_v50, %v6516_v7  ;;  %v18038_v50 = vld [vmem:[#allocation20_spill] sm:$0xff] }
 0x6d1   : >> { %18031 = vst [vmem:[#allocation127_spill] sm:$0xff] %v15726_v34  ;;  %v5473_v10 = vpop.f32.mrf.mxu0  ;;  %11708 = vmatmul.msk.f32.gmra.mxu1 %vm444_vm1, %v5694_v62  ;;  %v5986_v32 = vpop.f32.mrf.mxu2  ;;  %11771 = vmatmul.msk.f32.gmra.mxu3 %vm444_vm1, %v15726_v34  ;;  %v15740_v37 = vsel %vm2173_vm6, %v7463_v51, %v7465_v17  ;;  %v15743_v12 = vsel %vm1904_vm4, %v7196_v8, %v7198_v14  ;;  %v18040_v34 = vld [vmem:[#allocation150_spill] sm:$0xff] }
 0x6d2   : >> { %18032 = vst [vmem:[#allocation131_spill] sm:$0xff] %v15729_v44  ;;  %v5527_v38 = vadd.f32 %v5473_v10, %v5217_v48  ;;  %v3349_v29 = vadd.f32 %v18038_v50, %v18037_v16  ;;  %v5984_v3 = vadd.f32 %v5983_v30, %v5811_v61  ;;  %v18041_v51 = vld [vmem:[#allocation50_spill] sm:$0xff] }
 0x6d3   : >> { %18033 = vst [vmem:[#allocation49_spill] sm:$0xff] %v15732_v41  ;;  %v4908_v41 = vadd.f32 %v18040_v34, %v4598_v23  ;;  %v18044_v34 = vld [vmem:[#allocation159_spill] sm:$0xff] }
 0x6d4   : >> { %18035 = vst [vmem:[#allocation16_spill] sm:$0xff] %v15740_v37  ;;  %v15748_v21 = vsub.f32 %v5527_v38, %v5563_v42  ;;  %v6219_v62 = vpop.f32.mrf.mxu3  ;;  %11881 = vmatmul.msk.f32.gmra.mxu0 %vm444_vm1, %v15252_v5  ;;  %v4289_v37 = vadd.f32 %v18041_v51, %v3979_v1  ;;  %v3670_v10 = vadd.f32 %v18043_v43, %v3349_v29  ;;  %v11841_v42 = vld [vmem:[%s17618_s1 + $0x28] sm:$0xff]  ;;  %v5564_v43 = vld [vmem:[%s12483_s14 + $0xe0] sm:$0xff] }
 0x6d5   : >> { %18036 = vst [vmem:[#allocation93_spill] sm:$0xff] %v15743_v12  ;;  %v15754_v44 = vadd.f32 %v6219_v62, %v5984_v3  ;;  %v5218_v23 = vadd.f32 %v18044_v34, %v4908_v41  ;;  %6876 = vmatpush.msrb.mxu3 %v11841_v42  ;;  %v18048_v41 = vld [vmem:[#allocation165_spill] sm:$0xff]  ;;  %v18053_v12 = vld [vmem:[#allocation102_spill] sm:$0xff] }
 0x6d6   : >> { %v5814_v8 = vpop.f32.mrf.mxu1  ;;  %11741 = vmatmul.msk.f32.gmra.mxu2 %vm444_vm1, %v15748_v21  ;;  %v5695_v48 = vrot.slane %v15748_v21, 1  ;;  %v6103_v30 = vrot.slane %v15748_v21, 2  ;;  %v6785_v52 = vrot.slane %v15748_v21, 4  ;;  %v6518_v61 = vrot.slane %v15748_v21, 3 }
 0x6d7   : >> { %18042 = vst [vmem:[#allocation126_spill] sm:$0xff] %v15754_v44  ;;  %v7467_v38 = vrot.slane %v15748_v21, 6  ;;  %v7200_v16 = vrot.slane %v15748_v21, 5  ;;  %v4599_v62 = vadd.f32 %v18048_v41, %v4289_v37  ;;  %v3980_v37 = vadd.f32 %v18053_v12, %v3670_v10 }
 0x6d8   : >> { %v5696_v50 = vsel %vm380_vm0, %v5693_v46, %v5695_v48  ;;  %v15771_v1 = vsel %vm791_vm2, %v6101_v6, %v6103_v30  ;;  %v15774_v3 = vsel %vm1482_vm5, %v6783_v19, %v6785_v52  ;;  %v15777_v29 = vsel %vm1213_vm3, %v6516_v7, %v6518_v61  ;;  %v18051_v19 = vld [vmem:[#allocation61_spill] sm:$0xff]  ;;  %v18052_v7 = vld [vmem:[#allocation22_spill] sm:$0xff] }
 0x6d9   : >> { %18045 = vst [vmem:[#allocation21_spill] sm:$0xff] %v15771_v1  ;;  %v5476_v51 = vpop.f32.mrf.mxu0  ;;  %11709 = vmatmul.msk.f32.gmra.mxu1 %vm444_vm1, %v5696_v50  ;;  %v5989_v34 = vpop.f32.mrf.mxu2  ;;  %11772 = vmatmul.msk.f32.gmra.mxu3 %vm444_vm1, %v15771_v1  ;;  %v15785_v21 = vsel %vm2173_vm6, %v7465_v17, %v7467_v38  ;;  %v15788_v46 = vsel %vm1904_vm4, %v7198_v14, %v7200_v16  ;;  %v18054_v1 = vld [vmem:[#allocation158_spill] sm:$0xff]  ;;  %v18055_v17 = vld [vmem:[#allocation109_spill] sm:$0xff]  ;;  %v11937_v14 = vld [vmem:[%s17618_s1 + $0x40] sm:$0xff] }
 0x6da   : >> { %18046 = vst [vmem:[#allocation72_spill] sm:$0xff] %v15774_v3  ;;  %v5528_v6 = vadd.f32 %v5476_v51, %v5218_v23  ;;  %v3352_v42 = vadd.f32 %v18052_v7, %v18051_v19  ;;  %v5987_v41 = vadd.f32 %v5986_v32, %v5814_v8  ;;  %v18058_v51 = vld [vmem:[#allocation67_spill] sm:$0xff]  ;;  %7562 = vmatpush.msra.mxu2 %v11937_v14 }
 0x6db   : >> { %18047 = vst [vmem:[#allocation133_spill] sm:$0xff] %v15777_v29  ;;  %v4909_v29 = vadd.f32 %v18054_v1, %v4599_v62  ;;  %v18057_v1 = vld [vmem:[#allocation85_spill] sm:$0xff] }
 0x6dc   : >> { %18049 = vst [vmem:[#allocation137_spill] sm:$0xff] %v15785_v21  ;;  %v15793_v44 = vsub.f32 %v5528_v6, %v5564_v43  ;;  %v6222_v50 = vpop.f32.mrf.mxu3  ;;  %11882 = vmatmul.msk.f32.gmra.mxu0 %vm444_vm1, %v15286_v53  ;;  %v4290_v21 = vadd.f32 %v18055_v17, %v3980_v37  ;;  %v3671_v62 = vadd.f32 %v18057_v1, %v3352_v42  ;;  %v18061_v17 = vld [vmem:[#allocation53_spill] sm:$0xff] }
 0x6dd   : >> { %18050 = vst [vmem:[#allocation51_spill] sm:$0xff] %v15788_v46  ;;  %v15799_v3 = vadd.f32 %v6222_v50, %v5987_v41  ;;  %v5219_v43 = vadd.f32 %v18058_v51, %v4909_v29  ;;  %v5565_v29 = vld [vmem:[%s12483_s14 + $0xe8] sm:$0xff] }
 0x6de   : >> { %v5817_v23 = vpop.f32.mrf.mxu1  ;;  %11742 = vmatmul.msk.f32.gmra.mxu2 %vm444_vm1, %v15793_v44  ;;  %v5697_v32 = vrot.slane %v15793_v44, 1  ;;  %v6105_v12 = vrot.slane %v15793_v44, 2  ;;  %v6787_v8 = vrot.slane %v15793_v44, 4  ;;  %v6520_v10 = vrot.slane %v15793_v44, 3  ;;  %v18066_v46 = vld [vmem:[#allocation104_spill] sm:$0xff] }
 0x6df   : >> { %18056 = vst [vmem:[#allocation17_spill] sm:$0xff] %v15799_v3  ;;  %v7469_v6 = vrot.slane %v15793_v44, 6  ;;  %v7202_v19 = vrot.slane %v15793_v44, 5  ;;  %v4600_v42 = vadd.f32 %v18061_v17, %v4290_v21  ;;  %v3981_v21 = vadd.f32 %v18066_v46, %v3671_v62 }
 0x6e0   : >> { %v5698_v7 = vsel %vm380_vm0, %v5695_v48, %v5697_v32  ;;  %v15816_v37 = vsel %vm791_vm2, %v6103_v30, %v6105_v12  ;;  %v15819_v41 = vsel %vm1482_vm5, %v6785_v52, %v6787_v8  ;;  %v15822_v50 = vsel %vm1213_vm3, %v6518_v61, %v6520_v10  ;;  %v18064_v52 = vld [vmem:[#allocation65_spill] sm:$0xff]  ;;  %v18065_v61 = vld [vmem:[#allocation24_spill] sm:$0xff] }
 0x6e1   : >> { %18059 = vst [vmem:[#allocation95_spill] sm:$0xff] %v15816_v37  ;;  %v5479_v1 = vpop.f32.mrf.mxu0  ;;  %11710 = vmatmul.msk.f32.gmra.mxu1 %vm444_vm1, %v5698_v7  ;;  %v5992_v14 = vpop.f32.mrf.mxu2  ;;  %11773 = vmatmul.msk.f32.gmra.mxu3 %vm444_vm1, %v15816_v37  ;;  %v15830_v44 = vsel %vm2173_vm6, %v7467_v38, %v7469_v6  ;;  %v15833_v48 = vsel %vm1904_vm4, %v7200_v16, %v7202_v19  ;;  %v11905_v38 = vld [vmem:[%s17618_s1 + $0x38] sm:$0xff] }
 0x6e2   : >> { %18060 = vst [vmem:[#allocation132_spill] sm:$0xff] %v15822_v50  ;;  %v5529_v30 = vadd.f32 %v5479_v1, %v5219_v43  ;;  %v3355_v51 = vadd.f32 %v18065_v61, %v18064_v52  ;;  %v5990_v17 = vadd.f32 %v5989_v34, %v5817_v23  ;;  %7295 = vmatpush.msra.mxu1 %v11905_v38  ;;  %v18079_v50 = vld [vmem:[#allocation111_spill] sm:$0xff] }
 0x6e3   : >> { %18062 = vst [vmem:[#allocation62_spill] sm:$0xff] %v15830_v44  ;;  %v18067_v44 = vld [vmem:[#allocation23_spill] sm:$0xff] }
 0x6e4   : >> { %18063 = vst [vmem:[#allocation75_spill] sm:$0xff] %v15833_v48  ;;  %v15838_v3 = vsub.f32 %v5529_v30, %v5565_v29  ;;  %v6225_v7 = vpop.f32.mrf.mxu3  ;;  %11883 = vmatmul.msk.f32.gmra.mxu0 %vm444_vm1, %v15322_v57  ;;  %v4910_v16 = vadd.f32 %v18067_v44, %v4600_v42  ;;  %v18068_v48 = vld [vmem:[#allocation110_spill] sm:$0xff]  ;;  %v18070_v29 = vld [vmem:[#allocation88_spill] sm:$0xff] }
 0x6e5   : >> { %v4291_v43 = vadd.f32 %v18068_v48, %v3981_v21  ;;  %v15847_v1 = vadd.f32 %v6225_v7, %v5990_v17  ;;  %v3672_v42 = vadd.f32 %v18070_v29, %v3355_v51  ;;  %v5566_v29 = vld [vmem:[%s12483_s14 + $0xf0] sm:$0xff] }
 0x6e6   : >> { %v5820_v52 = vpop.f32.mrf.mxu1  ;;  %11743 = vmatmul.msk.f32.gmra.mxu2 %vm444_vm1, %v15838_v3  ;;  %v5699_v34 = vrot.slane %v15838_v3, 1  ;;  %v6107_v46 = vrot.slane %v15838_v3, 2  ;;  %v6789_v23 = vrot.slane %v15838_v3, 4  ;;  %v6522_v62 = vrot.slane %v15838_v3, 3 }
 0x6e7   : >> { %18069 = vst [vmem:[#allocation144_spill] sm:$0xff] %v15847_v1  ;;  %v5220_v44 = vadd.f32 %v15197_v25, %v4910_v16  ;;  %v7471_v48 = vrot.slane %v15838_v3, 6  ;;  %v7204_v30 = vrot.slane %v15838_v3, 5  ;;  %v4601_v38 = vadd.f32 %v15206_v33, %v4291_v43  ;;  %v18077_v1 = vld [vmem:[#allocation105_spill] sm:$0xff] }
 0x6e8   : >> { %v5700_v61 = vsel %vm380_vm0, %v5697_v32, %v5699_v34  ;;  %v15861_v21 = vsel %vm791_vm2, %v6105_v12, %v6107_v46  ;;  %v15864_v17 = vsel %vm1482_vm5, %v6787_v8, %v6789_v23  ;;  %v15867_v7 = vsel %vm1213_vm3, %v6520_v10, %v6522_v62  ;;  %v18075_v8 = vld [vmem:[#allocation68_spill] sm:$0xff]  ;;  %v18076_v10 = vld [vmem:[#allocation26_spill] sm:$0xff] }
 0x6e9   : >> { %18071 = vst [vmem:[#allocation145_spill] sm:$0xff] %v15861_v21  ;;  %v5482_v51 = vpop.f32.mrf.mxu0  ;;  %11711 = vmatmul.msk.f32.gmra.mxu1 %vm444_vm1, %v5700_v61  ;;  %v5995_v25 = vpop.f32.mrf.mxu2  ;;  %11774 = vmatmul.msk.f32.gmra.mxu3 %vm444_vm1, %v15861_v21  ;;  %v15875_v3 = vsel %vm2173_vm6, %v7469_v6, %v7471_v48  ;;  %v15878_v32 = vsel %vm1904_vm4, %v7202_v19, %v7204_v30  ;;  %v18078_v61 = vld [vmem:[#allocation103_spill] sm:$0xff] }
 0x6ea   : >> { %18072 = vst [vmem:[#allocation54_spill] sm:$0xff] %v15867_v7  ;;  %v5530_v12 = vadd.f32 %v5482_v51, %v5220_v44  ;;  %v3358_v16 = vadd.f32 %v18076_v10, %v18075_v8  ;;  %v3982_v33 = vadd.f32 %v18077_v1, %v3672_v42  ;;  %v5993_v43 = vadd.f32 %v5992_v14, %v5820_v52  ;;  %v18080_v14 = vld [vmem:[#allocation92_spill] sm:$0xff] }
 0x6eb   : >> { %18073 = vst [vmem:[#allocation18_spill] sm:$0xff] %v15875_v3  ;;  %v4911_v21 = vadd.f32 %v18078_v61, %v4601_v38  ;;  %v5567_v61 = vld [vmem:[%s12483_s14 + $0xf8] sm:$0xff] }
 0x6ec   : >> { %18074 = vst [vmem:[#allocation98_spill] sm:$0xff] %v15878_v32  ;;  %v5602_v37 = vsub.f32 %v5530_v12, %v5566_v29  ;;  %v6228_v7 = vpop.f32.mrf.mxu3  ;;  %11884 = vmatmul.msk.f32.gmra.mxu0 %vm444_vm1, %v15354_v28  ;;  %v4292_v6 = vadd.f32 %v18079_v50, %v3982_v33  ;;  %v3673_v52 = vadd.f32 %v18080_v14, %v3358_v16  ;;  %v18084_v14 = vld [vmem:[#allocation112_spill] sm:$0xff] }
 0x6ed   : >> { %v15887_v3 = vadd.f32 %v6228_v7, %v5993_v43  ;;  %v5221_v42 = vadd.f32 %v15237_v45, %v4911_v21 }
 0x6ee   : >> { %v5823_v19 = vpop.f32.mrf.mxu1  ;;  %11744 = vmatmul.msk.f32.gmra.mxu2 %vm444_vm1, %v5602_v37  ;;  %v5701_v44 = vrot.slane %v5602_v37, 1  ;;  %v6109_v51 = vrot.slane %v5602_v37, 2  ;;  %v6791_v8 = vrot.slane %v5602_v37, 4  ;;  %v6524_v1 = vrot.slane %v5602_v37, 3 }
 0x6ef   : >> { %v7473_v29 = vrot.slane %v5602_v37, 6  ;;  %v7206_v12 = vrot.slane %v5602_v37, 5  ;;  %v4602_v33 = vadd.f32 %v15245_v54, %v4292_v6  ;;  %v5996_v21 = vadd.f32 %v5995_v25, %v5823_v19 }
 0x6f0   : >> { %v5702_v38 = vsel %vm380_vm0, %v5699_v34, %v5701_v44  ;;  %v15894_v50 = vsel %vm791_vm2, %v6107_v46, %v6109_v51  ;;  %v15897_v7 = vsel %vm1482_vm5, %v6789_v23, %v6791_v8  ;;  %v15900_v10 = vsel %vm1213_vm3, %v6522_v62, %v6524_v1  ;;  %v18083_v23 = vld [vmem:[#allocation106_spill] sm:$0xff] }
 0x6f1   : >> { %v5485_v43 = vpop.f32.mrf.mxu0  ;;  %11712 = vmatmul.msk.f32.gmra.mxu1 %vm444_vm1, %v5702_v38  ;;  %v5998_v45 = vpop.f32.mrf.mxu2  ;;  %11775 = vmatmul.msk.f32.gmra.mxu3 %vm444_vm1, %v15894_v50  ;;  %v15908_v37 = vsel %vm2173_vm6, %v7471_v48, %v7473_v29  ;;  %v15911_v34 = vsel %vm1904_vm4, %v7204_v30, %v7206_v12  ;;  %v3983_v62 = vadd.f32 %v18083_v23, %v3673_v52 }
 0x6f2   : >> { %18081 = vst [vmem:[#allocation141_spill] sm:$0xff] %v15908_v37  ;;  %v5531_v46 = vadd.f32 %v5485_v43, %v5221_v42  ;;  %v4912_v6 = vadd.f32 %v15235_v15, %v4602_v33  ;;  %v18085_v37 = vld [vmem:[#allocation129_spill] sm:$0xff] }
 0x6f3   : >> { %18082 = vst [vmem:[#allocation99_spill] sm:$0xff] %v15911_v34  ;;  %v4293_v38 = vadd.f32 %v18084_v14, %v3983_v62  ;;  %v18088_v14 = vld [vmem:[#allocation113_spill] sm:$0xff] }
 0x6f4   : >> { %v5603_v16 = vsub.f32 %v5531_v46, %v5567_v61  ;;  %v6231_v54 = vpop.f32.mrf.mxu3  ;;  %11885 = vmatmul.msk.f32.gmra.mxu0 %vm444_vm1, %v15393_v49  ;;  %v5222_v19 = vadd.f32 %v15276_v47, %v4912_v6  ;;  %v18087_v6 = vld [vmem:[#allocation107_spill] sm:$0xff] }
 0x6f5   : >> { %v15918_v32 = vadd.f32 %v6231_v54, %v5996_v21  ;;  %v5568_v21 = vld [vmem:[%s12483_s14 + $0x100] sm:$0xff] }
 0x6f6   : >> { %v5826_v48 = vpop.f32.mrf.mxu1  ;;  %11810 = vmatmul.msk.f32.vlgmr.msrb.gmra.mxu2 %vm444_vm1, %v18085_v37  ;;  %v5703_v30 = vrot.slane %v5603_v16, 1  ;;  %v6111_v42 = vrot.slane %v5603_v16, 2  ;;  %v6793_v52 = vrot.slane %v5603_v16, 4  ;;  %v6526_v25 = vrot.slane %v5603_v16, 3 }
 0x6f7   : >> { %v7475_v43 = vrot.slane %v5603_v16, 6  ;;  %v7208_v61 = vrot.slane %v5603_v16, 5  ;;  %v4603_v37 = vadd.f32 %v15302_v0, %v4293_v38  ;;  %v5999_v16 = vadd.f32 %v5998_v45, %v5826_v48 }
 0x6f8   : >> { %v5704_v46 = vsel %vm380_vm0, %v5701_v44, %v5703_v30  ;;  %v15925_v15 = vsel %vm791_vm2, %v6109_v51, %v6111_v42  ;;  %v15928_v33 = vsel %vm1482_vm5, %v6791_v8, %v6793_v52  ;;  %v15931_v23 = vsel %vm1213_vm3, %v6524_v1, %v6526_v25 }
 0x6f9   : >> { %v5488_v62 = vpop.f32.mrf.mxu0  ;;  %11713 = vmatmul.msk.f32.gmra.mxu1 %vm444_vm1, %v5704_v46  ;;  %v6001_v47 = vpop.f32.mrf.mxu2  ;;  %11776 = vmatmul.msk.f32.gmra.mxu3 %vm444_vm1, %v15925_v15  ;;  %v15939_v44 = vsel %vm2173_vm6, %v7473_v29, %v7475_v43  ;;  %v15942_v51 = vsel %vm1904_vm4, %v7206_v12, %v7208_v61  ;;  %v4913_v0 = vadd.f32 %v15274_v35, %v4603_v37  ;;  %v18089_v46 = vld [vmem:[#allocation135_spill] sm:$0xff]  ;;  %vm10874_vm0 = vcmask (%p2815_p4), 62464  }
 0x6fa   : >> { %18086 = vst [vmem:[#allocation79_spill] sm:$0xff] %v15942_v51  ;;  %v5532_v8 = vadd.f32 %v5488_v62, %v5222_v19  ;;  %v4294_v38 = vadd.f32 %v18088_v14, %v18087_v6  ;;  %v5569_v14 = vld [vmem:[%s12483_s14 + $0x108] sm:$0xff] }
 0x6fb   : >> { %v5223_v62 = vadd.f32 %v15315_v4, %v4913_v0  ;;  %v18091_v51 = vld [vmem:[#allocation128_spill] sm:$0xff]  ;;  %v18092_v4 = vld [vmem:[#allocation130_spill] sm:$0xff] }
 0x6fc   : >> { %v5604_v1 = vsub.f32 %v5532_v8, %v5568_v21  ;;  %v6234_v54 = vpop.f32.mrf.mxu3  ;;  %11886 = vmatmul.msk.f32.gmra.mxu0 %vm444_vm1, %v15425_v56 }
 0x6fd   : >> { %v15949_v30 = vadd.f32 %v6234_v54, %v5999_v16  ;;  %v4604_v54 = vadd.f32 %v15341_v36, %v4294_v38  ;;  %v18095_v38 = vld [vmem:[#allocation115_spill] sm:$0xff] }
 0x6fe   : >> { %v5829_v29 = vpop.f32.mrf.mxu1  ;;  %11811 = vmatmul.msk.f32.gmra.mxu2 %vm444_vm1, %v18089_v46  ;;  %v6795_v12 = vrot.slane %v5604_v1, 4  ;;  %v6528_v19 = vrot.slane %v5604_v1, 3  ;;  %v6319_v45 = vrot.slane %v5604_v1, 2  ;;  %v7477_v48 = vrot.slane %v5604_v1, 6 }
 0x6ff   : >> { %v7210_v21 = vrot.slane %v5604_v1, 5  ;;  %v4914_v36 = vadd.f32 %v15313_v9, %v4604_v54 }
 0x700   : >> { %v15955_v8 = vsel %vm1482_vm5, %v6793_v52, %v6795_v12  ;;  %v15958_v35 = vsel %vm1213_vm3, %v6526_v25, %v6528_v19  ;;  %v15961_v37 = vsel %vm791_vm2, %v6111_v42, %v6319_v45  ;;  %v15964_v16 = vsel %vm2173_vm6, %v7475_v43, %v7477_v48  ;;  %v18094_v43 = vld [vmem:[#allocation108_spill] sm:$0xff] }
 0x701   : >> { %18090 = vst [vmem:[#allocation151_spill] sm:$0xff] %v15964_v16  ;;  %v5491_v6 = vpop.f32.mrf.mxu0  ;;  %v6004_v46 = vpop.f32.mrf.mxu2  ;;  %11778 = vmatmul.msk.f32.vlgmr.msrb.gmra.mxu1 %vm444_vm1, %v18091_v51  ;;  %11842 = vmatmul.msk.f32.vlgmr.msrb.gmra.mxu3 %vm444_vm1, %v18092_v4  ;;  %v15973_v52 = vsel %vm1904_vm4, %v7208_v61, %v7210_v21  ;;  %v6002_v42 = vadd.f32 %v6001_v47, %v5829_v29  ;;  %v18096_v4 = vld [vmem:[#allocation140_spill] sm:$0xff] }
 0x702   : >> { %18093 = vst [vmem:[#allocation152_spill] sm:$0xff] %v15973_v52  ;;  %v5533_v25 = vadd.f32 %v5491_v6, %v5223_v62  ;;  %v4295_v16 = vadd.f32 %v18095_v38, %v18094_v43  ;;  %v5224_v6 = vadd.f32 %v15372_v59, %v4914_v36  ;;  %v5570_v43 = vld [vmem:[%s12483_s14 + $0x110] sm:$0xff]  ;;  %v18099_v59 = vld [vmem:[#allocation136_spill] sm:$0xff]  ;;  %v18101_v52 = vld [vmem:[#allocation147_spill] sm:$0xff] }
 0x704   : >> { %v5605_v1 = vsub.f32 %v5533_v25, %v5569_v14  ;;  %v6237_v0 = vpop.f32.mrf.mxu3  ;;  %11887 = vmatmul.msk.f32.gmra.mxu0 %vm444_vm1, %v15457_v13 }
 0x705   : >> { %v15980_v51 = vadd.f32 %v6237_v0, %v6002_v42 }
 0x706   : >> { %v5832_v34 = vpop.f32.mrf.mxu1  ;;  %11812 = vmatmul.msk.f32.gmra.mxu2 %vm444_vm1, %v18096_v4  ;;  %v6797_v61 = vrot.slane %v5605_v1, 4  ;;  %v6530_v62 = vrot.slane %v5605_v1, 3  ;;  %v6321_v47 = vrot.slane %v5605_v1, 2  ;;  %v7479_v29 = vrot.slane %v5605_v1, 6  ;;  %v18098_v4 = vld [vmem:[#allocation134_spill] sm:$0xff] }
 0x707   : >> { %v7212_v14 = vrot.slane %v5605_v1, 5 }
 0x708   : >> { %v15986_v25 = vsel %vm1482_vm5, %v6795_v12, %v6797_v61  ;;  %v15989_v9 = vsel %vm1213_vm3, %v6528_v19, %v6530_v62  ;;  %v15992_v54 = vsel %vm791_vm2, %v6319_v45, %v6321_v47  ;;  %v15995_v42 = vsel %vm2173_vm6, %v7477_v48, %v7479_v29 }
 0x709   : >> { %18097 = vst [vmem:[#allocation57_spill] sm:$0xff] %v15995_v42  ;;  %v5494_v0 = vpop.f32.mrf.mxu0  ;;  %v6007_v38 = vpop.f32.mrf.mxu2  ;;  %11779 = vmatmul.msk.f32.gmra.mxu1 %vm444_vm1, %v18098_v4  ;;  %11843 = vmatmul.msk.f32.gmra.mxu3 %vm444_vm1, %v18099_v59  ;;  %v16003_v12 = vsel %vm1904_vm4, %v7210_v21, %v7212_v14  ;;  %v4605_v19 = vadd.f32 %v15383_v18, %v4295_v16 }
 0x70a   : >> { %18100 = vst [vmem:[#allocation20_spill] sm:$0xff] %v16003_v12  ;;  %v5534_v1 = vadd.f32 %v5494_v0, %v5224_v6  ;;  %v6005_v45 = vadd.f32 %v6004_v46, %v5832_v34 }
 0x70b   : >> { %v4915_v47 = vadd.f32 %v15360_v11, %v4605_v19  ;;  %v5571_v11 = vld [vmem:[%s12483_s14 + $0x118] sm:$0x3f] }
 0x70c   : >> { %v5606_v36 = vsub.f32 %v5534_v1, %v5570_v43  ;;  %v6240_v48 = vpop.f32.mrf.mxu3  ;;  %11888 = vmatmul.msk.f32.gmra.mxu0 %vm444_vm1, %v15489_v26  ;;  %v18104_v43 = vld [vmem:[#allocation138_spill] sm:$0xff]  ;;  %v18105_v1 = vld [vmem:[#allocation155_spill] sm:$0xff] }
 0x70d   : >> { %v16008_v62 = vadd.f32 %v6240_v48, %v6005_v45  ;;  %v5225_v18 = vadd.f32 %v15412_v63, %v4915_v47 }
 0x70e   : >> { %v5835_v4 = vpop.f32.mrf.mxu1  ;;  %11813 = vmatmul.msk.f32.gmra.mxu2 %vm444_vm1, %v18101_v52  ;;  %v7005_v21 = vrot.slane %v5606_v36, 4  ;;  %v7481_v59 = vrot.slane %v5606_v36, 6  ;;  %v7214_v12 = vrot.slane %v5606_v36, 5 }
 0x70f   : >> { %v6008_v63 = vadd.f32 %v6007_v38, %v5835_v4 }
 0x710   : >> { %v16015_v34 = vsel %vm1482_vm5, %v6797_v61, %v7005_v21  ;;  %v16018_v16 = vsel %vm2173_vm6, %v7479_v29, %v7481_v59  ;;  %v16021_v46 = vsel %vm1904_vm4, %v7212_v14, %v7214_v12 }
 0x711   : >> { %18102 = vst [vmem:[#allocation100_spill] sm:$0xff] %v16018_v16  ;;  %v5497_v6 = vpop.f32.mrf.mxu0  ;;  %v6010_v0 = vpop.f32.mrf.mxu2  ;;  %11780 = vmatmul.msk.f32.gmra.mxu1 %vm444_vm1, %v18104_v43  ;;  %11844 = vmatmul.msk.f32.gmra.mxu3 %vm444_vm1, %v17943_v58 }
 0x712   : >> { %18103 = vst [vmem:[#allocation150_spill] sm:$0xff] %v16021_v46  ;;  %v5535_v52 = vadd.f32 %v5497_v6, %v5225_v18  ;;  %v18108_v18 = vld [vmem:[#allocation146_spill] sm:$0xff] }
 0x714   : >> { %v5607_v19 = vsub.f32 %v5535_v52, %v5571_v11  ;;  %v6243_v61 = vpop.f32.mrf.mxu3  ;;  %11889 = vmatmul.msk.f32.gmra.mxu0 %vm444_vm1, %v15522_v40  ;;  %v18110_v52 = vld [vmem:[#allocation153_spill] sm:$0xff] }
 0x715   : >> { %v16030_v29 = vadd.f32 %v6243_v61, %v6008_v63  ;;  %v18111_v61 = vld [vmem:[#allocation166_spill] sm:$0xff] }
 0x716   : >> { %v5838_v14 = vpop.f32.mrf.mxu1  ;;  %11814 = vmatmul.msk.f32.gmra.mxu2 %vm444_vm1, %v18105_v1  ;;  %v7007_v45 = vrot.slane %v5607_v19, 4  ;;  %v7483_v36 = vrot.slane %v5607_v19, 6  ;;  %v7216_v48 = vrot.slane %v5607_v19, 5  ;;  %v18112_v1 = vld [vmem:[#allocation160_spill] sm:$0xff] }
 0x717   : >> { %v6011_v6 = vadd.f32 %v6010_v0, %v5838_v14 }
 0x718   : >> { %v16035_v47 = vsel %vm1482_vm5, %v7005_v21, %v7007_v45  ;;  %v16038_v58 = vsel %vm2173_vm6, %v7481_v59, %v7483_v36  ;;  %v16041_v38 = vsel %vm1904_vm4, %v7214_v12, %v7216_v48  ;;  %v18109_v59 = vld [vmem:[#allocation162_spill] sm:$0xff] }
 0x719   : >> { %18106 = vst [vmem:[#allocation50_spill] sm:$0xff] %v16038_v58  ;;  %v6013_v4 = vpop.f32.mrf.mxu2  ;;  %11781 = vmatmul.msk.f32.gmra.mxu1 %vm444_vm1, %v18108_v18  ;;  %11845 = vmatmul.msk.f32.gmra.mxu3 %vm444_vm1, %v15061_v60  ;;  %v18139_v58 = vld [vmem:[#allocation11_spill] sm:$0xff] }
 0x71a   : >> { %18107 = vst [vmem:[#allocation82_spill] sm:$0xff] %v16041_v38  ;;  %v18134_v38 = vld [vmem:[#allocation35_spill] sm:$0xff] }
 0x71c   : >> { %v6246_v11 = vpop.f32.mrf.mxu3  ;;  %11890 = vmatmul.msk.f32.gmra.mxu0 %vm444_vm1, %v15555_v22 }
 0x71d   : >> { %v16049_v21 = vadd.f32 %v6246_v11, %v6011_v6  ;;  %v18114_v6 = vld [vmem:[#allocation101_spill] sm:$0xff] }
 0x71e   : >> { %v5841_v43 = vpop.f32.mrf.mxu1  ;;  %11815 = vmatmul.msk.f32.gmra.mxu2 %vm444_vm1, %v18109_v59 }
 0x71f   : >> { %v6014_v63 = vadd.f32 %v6013_v4, %v5841_v43  ;;  %v18113_v4 = vld [vmem:[#allocation71_spill] sm:$0xff]  ;;  %v18115_v43 = vld [vmem:[#allocation96_spill] sm:$0xff] }
 0x721   : >> { %v6016_v12 = vpop.f32.mrf.mxu2  ;;  %11782 = vmatmul.msk.f32.gmra.mxu1 %vm444_vm1, %v18110_v52  ;;  %11846 = vmatmul.msk.f32.gmra.mxu3 %vm444_vm1, %v17970_v39  ;;  %v18116_v52 = vld [vmem:[#allocation74_spill] sm:$0xff] }
 0x724   : >> { %v6249_v60 = vpop.f32.mrf.mxu3  ;;  %11891 = vmatmul.msk.f32.gmra.mxu0 %vm444_vm1, %v15588_v55 }
 0x725   : >> { %v16059_v0 = vadd.f32 %v6249_v60, %v6014_v63  ;;  %v18117_v60 = vld [vmem:[#allocation25_spill] sm:$0xff] }
 0x726   : >> { %v5844_v19 = vpop.f32.mrf.mxu1  ;;  %11816 = vmatmul.msk.f32.gmra.mxu2 %vm444_vm1, %v18111_v61  ;;  %v18118_v61 = vld [vmem:[#allocation91_spill] sm:$0xff] }
 0x727   : >> { %v6017_v45 = vadd.f32 %v6016_v12, %v5844_v19 }
 0x729   : >> { %v6019_v14 = vpop.f32.mrf.mxu2  ;;  %11783 = vmatmul.msk.f32.gmra.mxu1 %vm444_vm1, %v18112_v1  ;;  %11847 = vmatmul.msk.f32.gmra.mxu3 %vm444_vm1, %v17984_v31 }
 0x72c   : >> { %v6252_v39 = vpop.f32.mrf.mxu3  ;;  %11892 = vmatmul.msk.f32.gmra.mxu0 %vm444_vm1, %v15621_v20 }
 0x72d   : >> { %v16069_v36 = vadd.f32 %v6252_v39, %v6017_v45  ;;  %v18119_v45 = vld [vmem:[#allocation77_spill] sm:$0xff] }
 0x72e   : >> { %v5847_v48 = vpop.f32.mrf.mxu1  ;;  %11817 = vmatmul.msk.f32.gmra.mxu2 %vm444_vm1, %v18113_v4 }
 0x72f   : >> { %v6020_v11 = vadd.f32 %v6019_v14, %v5847_v48  ;;  %v18120_v48 = vld [vmem:[#allocation27_spill] sm:$0xff] }
 0x731   : >> { %v6022_v18 = vpop.f32.mrf.mxu2  ;;  %11784 = vmatmul.msk.f32.gmra.mxu1 %vm444_vm1, %v18114_v6  ;;  %11848 = vmatmul.msk.f32.gmra.mxu3 %vm444_vm1, %v15149_v27 }
 0x734   : >> { %v6255_v31 = vpop.f32.mrf.mxu3  ;;  %11893 = vmatmul.msk.f32.gmra.mxu0 %vm444_vm1, %v18115_v43 }
 0x735   : >> { %v16079_v59 = vadd.f32 %v6255_v31, %v6020_v11  ;;  %v18122_v31 = vld [vmem:[#allocation81_spill] sm:$0xff] }
 0x736   : >> { %v5850_v12 = vpop.f32.mrf.mxu1  ;;  %11818 = vmatmul.msk.f32.gmra.mxu2 %vm444_vm1, %v18116_v52  ;;  %v18123_v52 = vld [vmem:[#allocation28_spill] sm:$0xff] }
 0x737   : >> { %v6023_v19 = vadd.f32 %v6022_v18, %v5850_v12  ;;  %v18121_v18 = vld [vmem:[#allocation131_spill] sm:$0xff] }
 0x739   : >> { %v6025_v63 = vpop.f32.mrf.mxu2  ;;  %11785 = vmatmul.msk.f32.gmra.mxu1 %vm444_vm1, %v18117_v60  ;;  %11849 = vmatmul.msk.f32.gmra.mxu3 %vm444_vm1, %v15179_v24 }
 0x73c   : >> { %v6258_v27 = vpop.f32.mrf.mxu3  ;;  %11894 = vmatmul.msk.f32.gmra.mxu0 %vm444_vm1, %v18118_v61 }
 0x73d   : >> { %v16089_v14 = vadd.f32 %v6258_v27, %v6023_v19 }
 0x73e   : >> { %v5853_v1 = vpop.f32.mrf.mxu1  ;;  %11819 = vmatmul.msk.f32.gmra.mxu2 %vm444_vm1, %v18119_v45  ;;  %v16113_v45 = vpop.f32.mrf.mxu0 }
 0x73f   : >> { %v6026_v4 = vadd.f32 %v6025_v63, %v5853_v1  ;;  %v18124_v63 = vld [vmem:[#allocation72_spill] sm:$0xff] }
 0x740   : >> { %v18125_v1 = vld [vmem:[#allocation84_spill] sm:$0xff] }
 0x741   : >> { %v6028_v39 = vpop.f32.mrf.mxu2  ;;  %11786 = vmatmul.msk.f32.gmra.mxu1 %vm444_vm1, %v18120_v48  ;;  %11850 = vmatmul.msk.f32.gmra.mxu3 %vm444_vm1, %v15216_v2 }
 0x744   : >> { %v6261_v24 = vpop.f32.mrf.mxu3  ;;  %11895 = vmatmul.msk.f32.gmra.mxu0 %vm444_vm1, %v18121_v18 }
 0x745   : >> { %v16099_v6 = vadd.f32 %v6261_v24, %v6026_v4  ;;  %v18126_v4 = vld [vmem:[#allocation29_spill] sm:$0xff] }
 0x746   : >> { %v5856_v11 = vpop.f32.mrf.mxu1  ;;  %11820 = vmatmul.msk.f32.gmra.mxu2 %vm444_vm1, %v18122_v31  ;;  %v18127_v31 = vld [vmem:[#allocation87_spill] sm:$0xff] }
 0x747   : >> { %v6029_v60 = vadd.f32 %v6028_v39, %v5856_v11 }
 0x749   : >> { %v6031_v12 = vpop.f32.mrf.mxu2  ;;  %11787 = vmatmul.msk.f32.gmra.mxu1 %vm444_vm1, %v18123_v52  ;;  %11851 = vmatmul.msk.f32.gmra.mxu3 %vm444_vm1, %v15252_v5 }
 0x74c   : >> { %v6264_v2 = vpop.f32.mrf.mxu3  ;;  %11896 = vmatmul.msk.f32.gmra.mxu0 %vm444_vm1, %v18124_v63 }
 0x74d   : >> { %v16109_v19 = vadd.f32 %v6264_v2, %v6029_v60  ;;  %v18128_v60 = vld [vmem:[#allocation30_spill] sm:$0xff]  ;;  %v16129_v2 = vpop.f32.mrf.mxu0 }
 0x74e   : >> { %v5859_v27 = vpop.f32.mrf.mxu1  ;;  %11821 = vmatmul.msk.f32.gmra.mxu2 %vm444_vm1, %v18125_v1 }
 0x74f   : >> { %v6032_v5 = vadd.f32 %v6031_v12, %v5859_v27 }
 0x751   : >> { %v6034_v48 = vpop.f32.mrf.mxu2  ;;  %11788 = vmatmul.msk.f32.gmra.mxu1 %vm444_vm1, %v18126_v4  ;;  %11852 = vmatmul.msk.f32.gmra.mxu3 %vm444_vm1, %v15286_v53  ;;  %v18129_v4 = vld [vmem:[#allocation90_spill] sm:$0xff] }
 0x754   : >> { %v6267_v39 = vpop.f32.mrf.mxu3  ;;  %11897 = vmatmul.msk.f32.gmra.mxu0 %vm444_vm1, %v15819_v41 }
 0x755   : >> { %v16121_v24 = vadd.f32 %v6267_v39, %v6032_v5  ;;  %v18130_v39 = vld [vmem:[#allocation31_spill] sm:$0xff] }
 0x756   : >> { %v5862_v11 = vpop.f32.mrf.mxu1  ;;  %11822 = vmatmul.msk.f32.gmra.mxu2 %vm444_vm1, %v18127_v31  ;;  %v16141_v31 = vpop.f32.mrf.mxu0 }
 0x757   : >> { %v6035_v53 = vadd.f32 %v6034_v48, %v5862_v11 }
 0x759   : >> { %v6037_v52 = vpop.f32.mrf.mxu2  ;;  %11789 = vmatmul.msk.f32.gmra.mxu1 %vm444_vm1, %v18128_v60  ;;  %11853 = vmatmul.msk.f32.gmra.mxu3 %vm444_vm1, %v15322_v57 }
 0x75c   : >> { %v6270_v12 = vpop.f32.mrf.mxu3  ;;  %11898 = vmatmul.msk.f32.gmra.mxu0 %vm444_vm1, %v15864_v17 }
 0x75d   : >> { %v16133_v27 = vadd.f32 %v6270_v12, %v6035_v53  ;;  %v18131_v53 = vld [vmem:[#allocation94_spill] sm:$0xff] }
 0x75e   : >> { %v5865_v1 = vpop.f32.mrf.mxu1  ;;  %11823 = vmatmul.msk.f32.gmra.mxu2 %vm444_vm1, %v18129_v4  ;;  %v18132_v4 = vld [vmem:[#allocation33_spill] sm:$0xff] }
 0x75f   : >> { %v6038_v57 = vadd.f32 %v6037_v52, %v5865_v1 }
 0x761   : >> { %v6040_v5 = vpop.f32.mrf.mxu2  ;;  %11790 = vmatmul.msk.f32.gmra.mxu1 %vm444_vm1, %v18130_v39  ;;  %11854 = vmatmul.msk.f32.gmra.mxu3 %vm444_vm1, %v15354_v28  ;;  %v16157_v39 = vpop.f32.mrf.mxu0 }
 0x764   : >> { %v6273_v48 = vpop.f32.mrf.mxu3  ;;  %11899 = vmatmul.msk.f32.gmra.mxu0 %vm444_vm1, %v15897_v7 }
 0x765   : >> { %v16145_v11 = vadd.f32 %v6273_v48, %v6038_v57  ;;  %v18133_v48 = vld [vmem:[#allocation78_spill] sm:$0xff] }
 0x766   : >> { %v5868_v60 = vpop.f32.mrf.mxu1  ;;  %11824 = vmatmul.msk.f32.gmra.mxu2 %vm444_vm1, %v18131_v53 }
 0x767   : >> { %v6041_v28 = vadd.f32 %v6040_v5, %v5868_v60 }
 0x769   : >> { %v6043_v12 = vpop.f32.mrf.mxu2  ;;  %11791 = vmatmul.msk.f32.gmra.mxu1 %vm444_vm1, %v18132_v4  ;;  %11855 = vmatmul.msk.f32.gmra.mxu3 %vm444_vm1, %v15393_v49 }
 0x76c   : >> { %v6276_v52 = vpop.f32.mrf.mxu3  ;;  %11900 = vmatmul.msk.f32.gmra.mxu0 %vm444_vm1, %v15928_v33 }
 0x76d   : >> { %v16155_v1 = vadd.f32 %v6276_v52, %v6041_v28  ;;  %v18135_v28 = vld [vmem:[#allocation80_spill] sm:$0xff]  ;;  %v16171_v52 = vpop.f32.mrf.mxu0 }
 0x76e   : >> { %v5871_v57 = vpop.f32.mrf.mxu1  ;;  %11825 = vmatmul.msk.f32.gmra.mxu2 %vm444_vm1, %v18133_v48  ;;  %v18136_v48 = vld [vmem:[#allocation97_spill] sm:$0xff] }
 0x76f   : >> { %v6044_v49 = vadd.f32 %v6043_v12, %v5871_v57 }
 0x771   : >> { %v6046_v53 = vpop.f32.mrf.mxu2  ;;  %11792 = vmatmul.msk.f32.gmra.mxu1 %vm444_vm1, %v18134_v38  ;;  %11856 = vmatmul.msk.f32.gmra.mxu3 %vm444_vm1, %v15425_v56 }
 0x774   : >> { %v6279_v5 = vpop.f32.mrf.mxu3  ;;  %11901 = vmatmul.msk.f32.gmra.mxu0 %vm444_vm1, %v15955_v8 }
 0x775   : >> { %v16167_v60 = vadd.f32 %v6279_v5, %v6044_v49  ;;  %v18137_v5 = vld [vmem:[#allocation83_spill] sm:$0xff] }
 0x776   : >> { %v5874_v4 = vpop.f32.mrf.mxu1  ;;  %11826 = vmatmul.msk.f32.gmra.mxu2 %vm444_vm1, %v18135_v28  ;;  %v18138_v28 = vld [vmem:[#allocation37_spill] sm:$0xff] }
 0x777   : >> { %v6047_v56 = vadd.f32 %v6046_v53, %v5874_v4  ;;  %v16188_v53 = vpop.f32.mrf.mxu0 }
 0x779   : >> { %11793 = vmatmul.msk.f32.gmra.mxu1 %vm444_vm1, %v18136_v48  ;;  %v6611_v38 = vpop.f32.mrf.mxu2  ;;  %11857 = vmatmul.msk.f32.gmra.mxu3 %vm444_vm1, %v15457_v13 }
 0x77c   : >> { %v6282_v12 = vpop.f32.mrf.mxu3  ;;  %11902 = vmatmul.msk.f32.gmra.mxu0 %vm444_vm1, %v15986_v25 }
 0x77d   : >> { %v16179_v57 = vadd.f32 %v6282_v12, %v6047_v56 }
 0x77e   : >> { %v6344_v49 = vpop.f32.mrf.mxu1  ;;  %11827 = vmatmul.msk.f32.gmra.mxu2 %vm444_vm1, %v18137_v5  ;;  %v18140_v5 = vld [vmem:[#allocation118_spill] sm:$0xff] }
 0x77f   : >> { %v6437_v46 = vadd.f32 %v6344_v49, %v18138_v28  ;;  %v18141_v49 = vld [vmem:[#allocation39_spill] sm:$0xff] }
 0x781   : >> { %11794 = vmatmul.msk.f32.gmra.mxu1 %vm444_vm1, %v18139_v58  ;;  %v6614_v48 = vpop.f32.mrf.mxu2  ;;  %11858 = vmatmul.msk.f32.gmra.mxu3 %vm444_vm1, %v15489_v26  ;;  %v6704_v13 = vadd.f32 %v6611_v38, %v6437_v46  ;;  %v18142_v58 = vld [vmem:[#allocation12_spill] sm:$0xff]  ;;  %v16201_v46 = vpop.f32.mrf.mxu0 }
 0x784   : >> { %v6878_v4 = vpop.f32.mrf.mxu3  ;;  %11903 = vmatmul.msk.f32.gmra.mxu0 %vm444_vm1, %v16015_v34 }
 0x785   : >> { %v16192_v56 = vadd.f32 %v6878_v4, %v6704_v13  ;;  %v18143_v4 = vld [vmem:[#allocation117_spill] sm:$0xff] }
 0x786   : >> { %v6347_v12 = vpop.f32.mrf.mxu1  ;;  %11828 = vmatmul.msk.f32.gmra.mxu2 %vm444_vm1, %v18140_v5 }
 0x787   : >> { %v6438_v28 = vadd.f32 %v6347_v12, %v18141_v49  ;;  %v18144_v12 = vld [vmem:[#allocation40_spill] sm:$0xff]  ;;  %v18145_v49 = vld [vmem:[#allocation55_spill] sm:$0xff] }
 0x789   : >> { %11795 = vmatmul.msk.f32.gmra.mxu1 %vm444_vm1, %v18142_v58  ;;  %v6617_v16 = vpop.f32.mrf.mxu2  ;;  %11859 = vmatmul.msk.f32.gmra.mxu3 %vm444_vm1, %v15522_v40  ;;  %v6705_v26 = vadd.f32 %v6614_v48, %v6438_v28 }
 0x78c   : >> { %v6881_v38 = vpop.f32.mrf.mxu3  ;;  %11904 = vmatmul.msk.f32.gmra.mxu0 %vm444_vm1, %v16035_v47 }
 0x78d   : >> { %v16205_v34 = vadd.f32 %v6881_v38, %v6705_v26  ;;  %v18146_v26 = vld [vmem:[#allocation44_spill] sm:$0xff]  ;;  %v18147_v38 = vld [vmem:[#allocation19_spill] sm:$0xff] }
 0x78e   : >> { %v6350_v13 = vpop.f32.mrf.mxu1  ;;  %11829 = vmatmul.msk.f32.gmra.mxu2 %vm444_vm1, %v18143_v4  ;;  %v18148_v4 = vld [vmem:[#allocation86_spill] sm:$0xff] }
 0x78f   : >> { %v6439_v5 = vadd.f32 %v6350_v13, %v18144_v12 }
 0x791   : >> { %11796 = vmatmul.msk.f32.gmra.mxu1 %vm444_vm1, %v18145_v49  ;;  %v6620_v58 = vpop.f32.mrf.mxu2  ;;  %11860 = vmatmul.msk.f32.gmra.mxu3 %vm444_vm1, %v15555_v22  ;;  %v6706_v40 = vadd.f32 %v6617_v16, %v6439_v5  ;;  %v18149_v5 = vld [vmem:[#allocation64_spill] sm:$0xff] }
 0x794   : >> { %v6884_v48 = vpop.f32.mrf.mxu3 }
 0x795   : >> { %v16214_v28 = vadd.f32 %v6884_v48, %v6706_v40  ;;  %v18150_v40 = vld [vmem:[#allocation13_spill] sm:$0xff] }
 0x796   : >> { %v6353_v47 = vpop.f32.mrf.mxu1  ;;  %11830 = vmatmul.msk.f32.gmra.mxu2 %vm444_vm1, %v18146_v26  ;;  %v18151_v26 = vld [vmem:[#allocation122_spill] sm:$0xff] }
 0x797   : >> { %v6440_v42 = vadd.f32 %v6353_v47, %v18147_v38 }
 0x799   : >> { %11797 = vmatmul.msk.f32.gmra.mxu1 %vm444_vm1, %v18148_v4  ;;  %v6623_v13 = vpop.f32.mrf.mxu2  ;;  %11861 = vmatmul.msk.f32.gmra.mxu3 %vm444_vm1, %v15588_v55  ;;  %v6707_v12 = vadd.f32 %v6620_v58, %v6440_v42  ;;  %v18152_v58 = vld [vmem:[#allocation161_spill] sm:$0xff] }
 0x79c   : >> { %v6887_v49 = vpop.f32.mrf.mxu3 }
 0x79d   : >> { %v16223_v22 = vadd.f32 %v6887_v49, %v6707_v12  ;;  %v18153_v12 = vld [vmem:[#allocation121_spill] sm:$0xff] }
 0x79e   : >> { %v6356_v16 = vpop.f32.mrf.mxu1  ;;  %11831 = vmatmul.msk.f32.gmra.mxu2 %vm444_vm1, %v18149_v5  ;;  %v18154_v5 = vld [vmem:[#allocation120_spill] sm:$0xff] }
 0x79f   : >> { %v6441_v48 = vadd.f32 %v6356_v16, %v18150_v40 }
 0x7a1   : >> { %11798 = vmatmul.msk.f32.gmra.mxu1 %vm444_vm1, %v18151_v26  ;;  %v6626_v47 = vpop.f32.mrf.mxu2  ;;  %11862 = vmatmul.msk.f32.gmra.mxu3 %vm444_vm1, %v15621_v20  ;;  %v6708_v38 = vadd.f32 %v6623_v13, %v6441_v48  ;;  %v18155_v48 = vld [vmem:[#allocation49_spill] sm:$0xff] }
 0x7a4   : >> { %v6890_v4 = vpop.f32.mrf.mxu3 }
 0x7a5   : >> { %v16232_v55 = vadd.f32 %v6890_v4, %v6708_v38  ;;  %v18156_v38 = vld [vmem:[#allocation154_spill] sm:$0xff] }
 0x7a6   : >> { %v6359_v42 = vpop.f32.mrf.mxu1  ;;  %11832 = vmatmul.msk.f32.gmra.mxu2 %vm444_vm1, %v18152_v58  ;;  %v18157_v58 = vld [vmem:[#allocation15_spill] sm:$0xff] }
 0x7a7   : >> { %v6442_v49 = vadd.f32 %v6359_v42, %v18153_v12 }
 0x7a9   : >> { %11799 = vmatmul.msk.f32.gmra.mxu1 %vm444_vm1, %v18154_v5  ;;  %v6629_v16 = vpop.f32.mrf.mxu2  ;;  %11863 = vmatmul.msk.f32.gmra.mxu3 %vm444_vm1, %v18115_v43  ;;  %v6709_v40 = vadd.f32 %v6626_v47, %v6442_v49  ;;  %v18158_v49 = vld [vmem:[#allocation133_spill] sm:$0xff] }
 0x7ac   : >> { %v6893_v26 = vpop.f32.mrf.mxu3 }
 0x7ad   : >> { %v16241_v20 = vadd.f32 %v6893_v26, %v6709_v40  ;;  %v18159_v40 = vld [vmem:[#allocation46_spill] sm:$0xff] }
 0x7ae   : >> { %v6362_v13 = vpop.f32.mrf.mxu1  ;;  %11833 = vmatmul.msk.f32.gmra.mxu2 %vm444_vm1, %v18155_v48  ;;  %v18160_v48 = vld [vmem:[#allocation127_spill] sm:$0xff] }
 0x7af   : >> { %v6443_v4 = vadd.f32 %v6362_v13, %v18156_v38 }
 0x7b1   : >> { %11800 = vmatmul.msk.f32.gmra.mxu1 %vm444_vm1, %v18157_v58  ;;  %v6632_v42 = vpop.f32.mrf.mxu2  ;;  %11864 = vmatmul.msk.f32.gmra.mxu3 %vm444_vm1, %v18118_v61  ;;  %v6710_v12 = vadd.f32 %v6629_v16, %v6443_v4  ;;  %v18161_v16 = vld [vmem:[#allocation132_spill] sm:$0xff]  ;;  %v18162_v4 = vld [vmem:[#allocation69_spill] sm:$0xff] }
 0x7b4   : >> { %v6896_v5 = vpop.f32.mrf.mxu3 }
 0x7b5   : >> { %v16250_v43 = vadd.f32 %v6896_v5, %v6710_v12  ;;  %v18163_v12 = vld [vmem:[#allocation21_spill] sm:$0xff] }
 0x7b6   : >> { %v6365_v47 = vpop.f32.mrf.mxu1  ;;  %11834 = vmatmul.msk.f32.gmra.mxu2 %vm444_vm1, %v18158_v49 }
 0x7b7   : >> { %v6444_v26 = vadd.f32 %v6365_v47, %v18159_v40  ;;  %v18164_v40 = vld [vmem:[#allocation54_spill] sm:$0xff] }
 0x7b9   : >> { %11801 = vmatmul.msk.f32.gmra.mxu1 %vm444_vm1, %v18160_v48  ;;  %v6635_v13 = vpop.f32.mrf.mxu2  ;;  %11865 = vmatmul.msk.f32.gmra.mxu3 %vm444_vm1, %v18121_v18  ;;  %v16259_v38 = vadd.f32 %v6632_v42, %v6444_v26  ;;  %v18165_v18 = vld [vmem:[#allocation126_spill] sm:$0xff]  ;;  %v18166_v26 = vld [vmem:[#allocation95_spill] sm:$0xff] }
 0x7be   : >> { %v6368_v61 = vpop.f32.mrf.mxu1  ;;  %11835 = vmatmul.msk.f32.gmra.mxu2 %vm444_vm1, %v18161_v16 }
 0x7bf   : >> { %v6445_v58 = vadd.f32 %v6368_v61, %v18162_v4  ;;  %v18168_v4 = vld [vmem:[#allocation145_spill] sm:$0xff] }
 0x7c1   : >> { %11802 = vmatmul.msk.f32.gmra.mxu1 %vm444_vm1, %v18163_v12  ;;  %v6638_v5 = vpop.f32.mrf.mxu2  ;;  %11866 = vmatmul.msk.f32.gmra.mxu3 %vm444_vm1, %v18124_v63  ;;  %v16268_v47 = vadd.f32 %v6635_v13, %v6445_v58  ;;  %v18167_v63 = vld [vmem:[#allocation17_spill] sm:$0xff] }
 0x7c6   : >> { %v6371_v49 = vpop.f32.mrf.mxu1  ;;  %11836 = vmatmul.msk.f32.gmra.mxu2 %vm444_vm1, %v18164_v40 }
 0x7c7   : >> { %v6446_v42 = vadd.f32 %v6371_v49, %v18165_v18 }
 0x7c9   : >> { %11803 = vmatmul.msk.f32.gmra.mxu1 %vm444_vm1, %v18166_v26  ;;  %v6641_v48 = vpop.f32.mrf.mxu2  ;;  %11867 = vmatmul.msk.f32.gmra.mxu3 %vm444_vm1, %v15819_v41  ;;  %v16277_v61 = vadd.f32 %v6638_v5, %v6446_v42  ;;  %v18169_v41 = vld [vmem:[#allocation144_spill] sm:$0xff]  ;;  %v18170_v26 = vld [vmem:[#allocation142_spill] sm:$0xff] }
 0x7ce   : >> { %v6374_v16 = vpop.f32.mrf.mxu1  ;;  %11837 = vmatmul.msk.f32.gmra.mxu2 %vm444_vm1, %v15900_v10 }
 0x7cf   : >> { %v6447_v13 = vadd.f32 %v6374_v16, %v18167_v63  ;;  %v18172_v63 = vld [vmem:[#allocation143_spill] sm:$0xff] }
 0x7d1   : >> { %11804 = vmatmul.msk.f32.gmra.mxu1 %vm444_vm1, %v18168_v4  ;;  %v6644_v58 = vpop.f32.mrf.mxu2  ;;  %11868 = vmatmul.msk.f32.gmra.mxu3 %vm444_vm1, %v15864_v17  ;;  %v16286_v12 = vadd.f32 %v6641_v48, %v6447_v13  ;;  %v18171_v48 = vld [vmem:[#allocation148_spill] sm:$0xff] }
 0x7d6   : >> { %v6377_v49 = vpop.f32.mrf.mxu1  ;;  %11838 = vmatmul.msk.f32.gmra.mxu2 %vm444_vm1, %v15931_v23 }
 0x7d7   : >> { %v6448_v5 = vadd.f32 %v6377_v49, %v18169_v41 }
 0x7d9   : >> { %11805 = vmatmul.msk.f32.gmra.mxu1 %vm444_vm1, %v15894_v50  ;;  %v6647_v10 = vpop.f32.mrf.mxu2  ;;  %11869 = vmatmul.msk.f32.gmra.mxu3 %vm444_vm1, %v15897_v7  ;;  %v16295_v40 = vadd.f32 %v6644_v58, %v6448_v5  ;;  %v18174_v58 = vld [vmem:[#allocation149_spill] sm:$0xff] }
 0x7de   : >> { %v6380_v18 = vpop.f32.mrf.mxu1  ;;  %11839 = vmatmul.msk.f32.gmra.mxu2 %vm444_vm1, %v15958_v35 }
 0x7df   : >> { %v6449_v17 = vadd.f32 %v6380_v18, %v15887_v3  ;;  %v18176_v18 = vld [vmem:[#allocation157_spill] sm:$0xff] }
 0x7e1   : >> { %11806 = vmatmul.msk.f32.gmra.mxu1 %vm444_vm1, %v15925_v15  ;;  %v6650_v23 = vpop.f32.mrf.mxu2  ;;  %11870 = vmatmul.msk.f32.gmra.mxu3 %vm444_vm1, %v15928_v33  ;;  %v16304_v50 = vadd.f32 %v6647_v10, %v6449_v17 }
 0x7e6   : >> { %v6383_v42 = vpop.f32.mrf.mxu1  ;;  %11840 = vmatmul.msk.f32.gmra.mxu2 %vm444_vm1, %v15989_v9 }
 0x7e7   : >> { %v6450_v7 = vadd.f32 %v6383_v42, %v15918_v32 }
 0x7e9   : >> { %11807 = vmatmul.msk.f32.gmra.mxu1 %vm444_vm1, %v15961_v37  ;;  %v6653_v35 = vpop.f32.mrf.mxu2  ;;  %11871 = vmatmul.msk.f32.gmra.mxu3 %vm444_vm1, %v15955_v8  ;;  %v16313_v3 = vadd.f32 %v6650_v23, %v6450_v7 }
 0x7ee   : >> { %v6386_v15 = vpop.f32.mrf.mxu1  ;;  %11938 = vmatmul.msk.f32.vlgmr.msra.gmra.mxu2 %vm444_vm1, %v18170_v26 }
 0x7ef   : >> { %v6451_v33 = vadd.f32 %v6386_v15, %v15949_v30 }
 0x7f1   : >> { %11808 = vmatmul.msk.f32.gmra.mxu1 %vm444_vm1, %v15992_v54  ;;  %v6656_v9 = vpop.f32.mrf.mxu2  ;;  %11872 = vmatmul.msk.f32.gmra.mxu3 %vm444_vm1, %v15986_v25  ;;  %v16322_v32 = vadd.f32 %v6653_v35, %v6451_v33  ;;  %v18173_v54 = vld [vmem:[#allocation156_spill] sm:$0xff] }
 0x7f2   : >> { %v18178_v35 = vld [vmem:[#allocation164_spill] sm:$0xff] }
 0x7f6   : >> { %v6389_v37 = vpop.f32.mrf.mxu1  ;;  %11939 = vmatmul.msk.f32.gmra.mxu2 %vm444_vm1, %v18171_v48 }
 0x7f7   : >> { %v6452_v8 = vadd.f32 %v6389_v37, %v15980_v51  ;;  %v18175_v51 = vld [vmem:[#allocation163_spill] sm:$0xff]  ;;  %v18180_v37 = vld [vmem:[#allocation168_spill] sm:$0xff] }
 0x7f9   : >> { %v6659_v16 = vpop.f32.mrf.mxu2  ;;  %11906 = vmatmul.msk.f32.vlgmr.msra.gmra.mxu1 %vm444_vm1, %v18172_v63  ;;  %v16329_v30 = vadd.f32 %v6656_v9, %v6452_v8 }
 0x7fe   : >> { %v6392_v13 = vpop.f32.mrf.mxu1  ;;  %11940 = vmatmul.msk.f32.gmra.mxu2 %vm444_vm1, %v18173_v54 }
 0x7ff   : >> { %v6453_v25 = vadd.f32 %v6392_v13, %v16008_v62  ;;  %v18177_v62 = vld [vmem:[#allocation167_spill] sm:$0xff]  ;;  %v18182_v13 = vld [vmem:[#allocation170_spill] sm:$0xff] }
 0x801   : >> { %v6662_v4 = vpop.f32.mrf.mxu2  ;;  %11907 = vmatmul.msk.f32.gmra.mxu1 %vm444_vm1, %v18174_v58  ;;  %v16336_v49 = vadd.f32 %v6659_v16, %v6453_v25 }
 0x806   : >> { %v6395_v41 = vpop.f32.mrf.mxu1  ;;  %11941 = vmatmul.msk.f32.gmra.mxu2 %vm444_vm1, %v18175_v51 }
 0x807   : >> { %v6454_v5 = vadd.f32 %v6395_v41, %v16030_v29  ;;  %v18179_v29 = vld [vmem:[#allocation169_spill] sm:$0xff]  ;;  %v18184_v41 = vld [vmem:[#allocation32_spill] sm:$0xff] }
 0x809   : >> { %v6665_v10 = vpop.f32.mrf.mxu2  ;;  %11908 = vmatmul.msk.f32.gmra.mxu1 %vm444_vm1, %v18176_v18  ;;  %v16343_v17 = vadd.f32 %v6662_v4, %v6454_v5 }
 0x80e   : >> { %v6398_v23 = vpop.f32.mrf.mxu1  ;;  %11942 = vmatmul.msk.f32.gmra.mxu2 %vm444_vm1, %v18177_v62 }
 0x80f   : >> { %v6455_v42 = vadd.f32 %v6398_v23, %v16049_v21  ;;  %v18181_v21 = vld [vmem:[#allocation56_spill] sm:$0xff]  ;;  %v18186_v23 = vld [vmem:[#allocation34_spill] sm:$0xff] }
 0x811   : >> { %v6668_v7 = vpop.f32.mrf.mxu2  ;;  %11909 = vmatmul.msk.f32.gmra.mxu1 %vm444_vm1, %v18178_v35  ;;  %v16350_v15 = vadd.f32 %v6665_v10, %v6455_v42 }
 0x816   : >> { %v6401_v26 = vpop.f32.mrf.mxu1  ;;  %11943 = vmatmul.msk.f32.gmra.mxu2 %vm444_vm1, %v18179_v29 }
 0x817   : >> { %v6456_v33 = vadd.f32 %v6401_v26, %v16059_v0  ;;  %v18183_v0 = vld [vmem:[#allocation60_spill] sm:$0xff] }
 0x818   : >> { %v18188_v26 = vld [vmem:[#allocation36_spill] sm:$0xff] }
 0x819   : >> { %v6671_v9 = vpop.f32.mrf.mxu2  ;;  %11910 = vmatmul.msk.f32.gmra.mxu1 %vm444_vm1, %v18180_v37  ;;  %v16357_v48 = vadd.f32 %v6668_v7, %v6456_v33 }
 0x81e   : >> { %v6404_v8 = vpop.f32.mrf.mxu1  ;;  %11944 = vmatmul.msk.f32.gmra.mxu2 %vm444_vm1, %v18181_v21 }
 0x81f   : >> { %v6457_v16 = vadd.f32 %v6404_v8, %v16069_v36  ;;  %v18185_v36 = vld [vmem:[#allocation63_spill] sm:$0xff]  ;;  %v18190_v8 = vld [vmem:[#allocation38_spill] sm:$0xff] }
 0x821   : >> { %v6674_v63 = vpop.f32.mrf.mxu2  ;;  %11911 = vmatmul.msk.f32.gmra.mxu1 %vm444_vm1, %v18182_v13  ;;  %v16364_v54 = vadd.f32 %v6671_v9, %v6457_v16 }
 0x826   : >> { %v6407_v25 = vpop.f32.mrf.mxu1  ;;  %11945 = vmatmul.msk.f32.gmra.mxu2 %vm444_vm1, %v18183_v0 }
 0x827   : >> { %v6458_v4 = vadd.f32 %v6407_v25, %v16079_v59  ;;  %v18187_v59 = vld [vmem:[#allocation66_spill] sm:$0xff]  ;;  %v18192_v25 = vld [vmem:[#allocation41_spill] sm:$0xff] }
 0x829   : >> { %v6677_v58 = vpop.f32.mrf.mxu2  ;;  %11912 = vmatmul.msk.f32.gmra.mxu1 %vm444_vm1, %v18184_v41  ;;  %v16371_v51 = vadd.f32 %v6674_v63, %v6458_v4 }
 0x82e   : >> { %v6410_v5 = vpop.f32.mrf.mxu1  ;;  %11946 = vmatmul.msk.f32.gmra.mxu2 %vm444_vm1, %v18185_v36 }
 0x82f   : >> { %v6459_v10 = vadd.f32 %v6410_v5, %v16089_v14  ;;  %v18189_v14 = vld [vmem:[#allocation70_spill] sm:$0xff]  ;;  %v18194_v5 = vld [vmem:[#allocation43_spill] sm:$0xff] }
 0x831   : >> { %v6680_v18 = vpop.f32.mrf.mxu2  ;;  %11913 = vmatmul.msk.f32.gmra.mxu1 %vm444_vm1, %v18186_v23  ;;  %v16378_v62 = vadd.f32 %v6677_v58, %v6459_v10 }
 0x836   : >> { %v6413_v42 = vpop.f32.mrf.mxu1  ;;  %11947 = vmatmul.msk.f32.gmra.mxu2 %vm444_vm1, %v18187_v59 }
 0x837   : >> { %v6460_v7 = vadd.f32 %v6413_v42, %v16099_v6  ;;  %v18191_v6 = vld [vmem:[#allocation73_spill] sm:$0xff] }
 0x838   : >> { %v18196_v42 = vld [vmem:[#allocation45_spill] sm:$0xff] }
 0x839   : >> { %v6683_v35 = vpop.f32.mrf.mxu2  ;;  %11914 = vmatmul.msk.f32.gmra.mxu1 %vm444_vm1, %v18188_v26  ;;  %v16385_v29 = vadd.f32 %v6680_v18, %v6460_v7 }
 0x83e   : >> { %v6416_v33 = vpop.f32.mrf.mxu1  ;;  %11948 = vmatmul.msk.f32.gmra.mxu2 %vm444_vm1, %v18189_v14 }
 0x83f   : >> { %v6461_v9 = vadd.f32 %v6416_v33, %v16109_v19  ;;  %v18193_v19 = vld [vmem:[#allocation76_spill] sm:$0xff]  ;;  %v18198_v33 = vld [vmem:[#allocation171_spill] sm:$0xff] }
 0x841   : >> { %v6686_v37 = vpop.f32.mrf.mxu2  ;;  %11915 = vmatmul.msk.f32.gmra.mxu1 %vm444_vm1, %v18190_v8  ;;  %v16392_v21 = vadd.f32 %v6683_v35, %v6461_v9 }
 0x846   : >> { %v6419_v16 = vpop.f32.mrf.mxu1  ;;  %11949 = vmatmul.msk.f32.gmra.mxu2 %vm444_vm1, %v18191_v6 }
 0x847   : >> { %v6462_v63 = vadd.f32 %v6419_v16, %v16121_v24  ;;  %v18195_v24 = vld [vmem:[#allocation48_spill] sm:$0xff] }
 0x848   : >> { %v18200_v16 = vld [vmem:[#allocation116_spill] sm:$0xff] }
 0x849   : >> { %v6689_v13 = vpop.f32.mrf.mxu2  ;;  %11916 = vmatmul.msk.f32.gmra.mxu1 %vm444_vm1, %v18192_v25  ;;  %v16399_v0 = vadd.f32 %v6686_v37, %v6462_v63  ;;  %v18202_v25 = vld [vmem:[#allocation114_spill] sm:$0xff] }
 0x84e   : >> { %v6422_v4 = vpop.f32.mrf.mxu1  ;;  %11950 = vmatmul.msk.f32.gmra.mxu2 %vm444_vm1, %v18193_v19 }
 0x84f   : >> { %v6463_v58 = vadd.f32 %v6422_v4, %v16133_v27  ;;  %v18197_v27 = vld [vmem:[#allocation52_spill] sm:$0xff] }
 0x851   : >> { %v6692_v41 = vpop.f32.mrf.mxu2  ;;  %11917 = vmatmul.msk.f32.gmra.mxu1 %vm444_vm1, %v18194_v5  ;;  %v16406_v36 = vadd.f32 %v6689_v13, %v6463_v58  ;;  %v16440_v5 = vpop.f32.mrf.mxu3 }
 0x856   : >> { %v6425_v10 = vpop.f32.mrf.mxu1  ;;  %11951 = vmatmul.msk.f32.gmra.mxu2 %vm444_vm1, %v18195_v24 }
 0x857   : >> { %v6464_v18 = vadd.f32 %v6425_v10, %v16145_v11  ;;  %v18199_v11 = vld [vmem:[#allocation139_spill] sm:$0xff] }
 0x859   : >> { %v6695_v23 = vpop.f32.mrf.mxu2  ;;  %11918 = vmatmul.msk.f32.gmra.mxu1 %vm444_vm1, %v18196_v42  ;;  %v16413_v59 = vadd.f32 %v6692_v41, %v6464_v18  ;;  %v18203_v41 = vld [vmem:[#allocation58_spill] sm:$0xff]  ;;  %v18205_v42 = vld [vmem:[#allocation4_spill] sm:$0xff] }
 0x85a   : >> { %v18204_v18 = vld [vmem:[#allocation42_spill] sm:$0xff] }
 0x85e   : >> { %v6428_v7 = vpop.f32.mrf.mxu1  ;;  %11952 = vmatmul.msk.f32.gmra.mxu2 %vm444_vm1, %v18197_v27 }
 0x85f   : >> { %v6465_v35 = vadd.f32 %v6428_v7, %v16155_v1  ;;  %v18201_v1 = vld [vmem:[#allocation119_spill] sm:$0xff] }
 0x861   : >> { %v6698_v26 = vpop.f32.mrf.mxu2  ;;  %11919 = vmatmul.msk.f32.gmra.mxu1 %vm444_vm1, %v18198_v33  ;;  %v16420_v14 = vadd.f32 %v6695_v23, %v6465_v35  ;;  %v7688_v23 = vld [vmem:[#allocation2 + $0x28] sm:$0xff]  ;;  %v7124_v35 = vadd.f32 %v16129_v2, %v16205_v34  ;;  %v18206_v33 = vld [vmem:[#allocation14_spill] sm:$0xff]  ;;  %v16456_v2 = vpop.f32.mrf.mxu3 }
 0x866   : >> { %v6431_v9 = vpop.f32.mrf.mxu1  ;;  %11953 = vmatmul.msk.f32.gmra.mxu2 %vm444_vm1, %v18199_v11 }
 0x867   : >> { %v6466_v37 = vadd.f32 %v6431_v9, %v16167_v60  ;;  %v7123_v60 = vadd.f32 %v16113_v45, %v16192_v56  ;;  %v16447_v45 = vpop.f32.mrf.mxu0  ;;  %v7781_v56 = vld [vmem:[%s17620_s3] sm:$0xff] }
 0x869   : >> { %v6701_v8 = vpop.f32.mrf.mxu2  ;;  %11920 = vmatmul.msk.f32.gmra.mxu1 %vm444_vm1, %v18200_v16  ;;  %v16427_v6 = vadd.f32 %v6698_v26, %v6466_v37  ;;  %v12418_v37 = vmov 0.0  }
 0x86e   : >> { %v6434_v63 = vpop.f32.mrf.mxu1  ;;  %11954 = vmatmul.msk.f32.gmra.mxu2 %vm444_vm1, %v18201_v1  ;;  %v18207_v1 = vld [vmem:[#allocation59_spill] sm:$0xff] }
 0x86f   : >> { %v6467_v13 = vadd.f32 %v6434_v63, %v16179_v57 }
 0x871   : >> { %11921 = vmatmul.msk.f32.gmra.mxu1 %vm444_vm1, %v18202_v25  ;;  %v7564_v4 = vpop.f32.mrf.mxu2  ;;  %v16434_v19 = vadd.f32 %v6701_v8, %v6467_v13  ;;  %v7689_v25 = vld [vmem:[#allocation2 + $0x30] sm:$0xff] }
 0x876   : >> { %v7297_v58 = vpop.f32.mrf.mxu1  ;;  %11955 = vmatmul.msk.f32.gmra.mxu2 %vm444_vm1, %v18203_v41 }
 0x877   : >> { %v7390_v10 = vadd.f32 %v7297_v58, %v7123_v60 }
 0x879   : >> { %v7657_v24 = vadd.f32 %v7564_v4, %v7390_v10  ;;  %11922 = vmatmul.msk.f32.gmra.mxu1 %vm444_vm1, %v18204_v18  ;;  %v7567_v57 = vpop.f32.mrf.mxu2  ;;  %v7782_v18 = vld [vmem:[%s17620_s3 + $0x8] sm:$0xff] }
 0x87b   : >> { %v7719_v7 = vmul.f32 %v7657_v24, %v18205_v42  ;;  %v7125_v24 = vadd.f32 %v16141_v31, %v16214_v28 }
 0x87d   : >> { %v7750_v27 = vsub.f32 %v7688_v23, %v7719_v7 }
 0x87e   : >> { %v7300_v26 = vpop.f32.mrf.mxu1  ;;  %11956 = vmatmul.msk.f32.gmra.mxu2 %vm444_vm1, %v18206_v33  ;;  %v18209_v33 = vld [vmem:[#allocation89_spill] sm:$0xff] }
 0x87f   : >> { %v7812_v9 = vand.u32 2147483647, %v7750_v27  ;;  %vm7905_vm14 = vcmp.gt.f32.partialorder %v7750_v27, 0.0  ;;  %vm7967_vm15 = vcmp.lt.f32.partialorder %v7750_v27, 0.0  ;;  %v7391_v11 = vadd.f32 %v7300_v26, %v7124_v35  ;;  %v16469_v35 = vpop.f32.mrf.mxu0 }
 0x880   : >> { %v7936_v8 = vsel %vm7905_vm14, 1.0, %v12418_v37  ;;  %v7998_v16 = vsel %vm7967_vm15, 1.0, %v12418_v37 }
 0x881   : >> { %v7843_v34 = vsub.f32 %v7812_v9, %v7781_v56  ;;  %v7658_v63 = vadd.f32 %v7567_v57, %v7391_v11  ;;  %11923 = vmatmul.msk.f32.gmra.mxu1 %vm444_vm1, %v18207_v1  ;;  %v7570_v13 = vpop.f32.mrf.mxu2  ;;  %v8029_v60 = vsub.f32 %v7936_v8, %v7998_v16  ;;  %v18208_v57 = vld [vmem:[#allocation124_spill] sm:$0xff]  ;;  %v7690_v11 = vld [vmem:[#allocation2 + $0x38] sm:$0xff]  ;;  %v16475_v8 = vpop.f32.mrf.mxu3 }
 0x883   : >> { %v7874_v4 = vmax.f32 %v7843_v34, 0.0  ;;  %v7720_v58 = vmul.f32 %v7658_v63, %v18205_v42 }
 0x885   : >> { %v8060_v41 = vmul.f32 %v8029_v60, %v7874_v4  ;;  %v7751_v10 = vsub.f32 %v7689_v25, %v7720_v58  ;;  %v7126_v4 = vadd.f32 %v16157_v39, %v16223_v22  ;;  %v18210_v58 = vld [vmem:[#allocation123_spill] sm:$0xff]  ;;  %v18211_v22 = vld [vmem:[#allocation125_spill] sm:$0xff] }
 0x886   : >> { %v7303_v23 = vpop.f32.mrf.mxu1  ;;  %11957 = vmatmul.msk.f32.gmra.mxu2 %vm444_vm1, %v18208_v57 }
 0x887   : >> { %8091 = vst.msk [vmem:[#allocation2 + $0x28] sm:$0xff] %vm267_vm7, %v8060_v41  ;;  %v7813_v7 = vand.u32 2147483647, %v7751_v10  ;;  %vm7906_vm8 = vcmp.gt.f32.partialorder %v7751_v10, 0.0  ;;  %vm7968_vm9 = vcmp.lt.f32.partialorder %v7751_v10, 0.0  ;;  %v7392_v27 = vadd.f32 %v7303_v23, %v7125_v24 }
 0x888   : >> { %v7937_v56 = vsel %vm7906_vm8, 1.0, %v12418_v37  ;;  %v7999_v31 = vsel %vm7968_vm9, 1.0, %v12418_v37 }
 0x889   : >> { %v7844_v28 = vsub.f32 %v7813_v7, %v7782_v18  ;;  %v7659_v26 = vadd.f32 %v7570_v13, %v7392_v27  ;;  %11924 = vmatmul.msk.f32.gmra.mxu1 %vm444_vm1, %v18209_v33  ;;  %v7573_v9 = vpop.f32.mrf.mxu2  ;;  %v8030_v34 = vsub.f32 %v7937_v56, %v7999_v31  ;;  %v7783_v13 = vld [vmem:[%s17620_s3 + $0x10] sm:$0xff]  ;;  %v16490_v7 = vpop.f32.mrf.mxu0  ;;  %v7691_v27 = vld [vmem:[#allocation2 + $0x40] sm:$0xff] }
 0x88b   : >> { %v7875_v16 = vmax.f32 %v7844_v28, 0.0  ;;  %v7721_v63 = vmul.f32 %v7659_v26, %v18205_v42  ;;  %v16493_v26 = vpop.f32.mrf.mxu3 }
 0x88d   : >> { %v8061_v1 = vmul.f32 %v8030_v34, %v7875_v16  ;;  %v7752_v25 = vsub.f32 %v7690_v11, %v7721_v63  ;;  %v7127_v16 = vadd.f32 %v16171_v52, %v16232_v55  ;;  %v18212_v63 = vld [vmem:[#allocation16_spill] sm:$0xff]  ;;  %v18213_v55 = vld [vmem:[#allocation47_spill] sm:$0xff] }
 0x88e   : >> { %v7306_v60 = vpop.f32.mrf.mxu1  ;;  %11958 = vmatmul.msk.f32.gmra.mxu2 %vm444_vm1, %v18210_v58 }
 0x88f   : >> { %8092 = vst.msk [vmem:[#allocation2 + $0x30] sm:$0xff] %vm267_vm7, %v8061_v1  ;;  %v7814_v41 = vand.u32 2147483647, %v7752_v25  ;;  %vm7907_vm10 = vcmp.gt.f32.partialorder %v7752_v25, 0.0  ;;  %vm7969_vm11 = vcmp.lt.f32.partialorder %v7752_v25, 0.0  ;;  %v7393_v10 = vadd.f32 %v7306_v60, %v7126_v4 }
 0x890   : >> { %v7938_v24 = vsel %vm7907_vm10, 1.0, %v12418_v37  ;;  %v8000_v18 = vsel %vm7969_vm11, 1.0, %v12418_v37 }
 0x891   : >> { %v7845_v23 = vsub.f32 %v7814_v41, %v7783_v13  ;;  %v7660_v39 = vadd.f32 %v7573_v9, %v7393_v10  ;;  %11925 = vmatmul.msk.f32.gmra.mxu1 %vm444_vm1, %v18211_v22  ;;  %v7576_v57 = vpop.f32.mrf.mxu2  ;;  %v8031_v31 = vsub.f32 %v7938_v24, %v8000_v18  ;;  %v7784_v9 = vld [vmem:[%s17620_s3 + $0x18] sm:$0xff]  ;;  %v7692_v41 = vld [vmem:[#allocation2 + $0x48] sm:$0xff] }
 0x893   : >> { %v7876_v56 = vmax.f32 %v7845_v23, 0.0  ;;  %v7722_v28 = vmul.f32 %v7660_v39, %v18205_v42  ;;  %v16508_v23 = vpop.f32.mrf.mxu0 }
 0x895   : >> { %v8062_v33 = vmul.f32 %v8031_v31, %v7876_v56  ;;  %v7753_v11 = vsub.f32 %v7691_v27, %v7722_v28  ;;  %v7128_v27 = vadd.f32 %v16188_v53, %v16241_v20  ;;  %v18214_v31 = vld [vmem:[#allocation137_spill] sm:$0xff]  ;;  %v16517_v28 = vpop.f32.mrf.mxu3 }
 0x896   : >> { %v7309_v34 = vpop.f32.mrf.mxu1  ;;  %11959 = vmatmul.msk.f32.gmra.mxu2 %vm444_vm1, %v18212_v63 }
 0x897   : >> { %8093 = vst.msk [vmem:[#allocation2 + $0x38] sm:$0xff] %vm267_vm7, %v8062_v33  ;;  %v7815_v1 = vand.u32 2147483647, %v7753_v11  ;;  %vm7908_vm12 = vcmp.gt.f32.partialorder %v7753_v11, 0.0  ;;  %vm7970_vm13 = vcmp.lt.f32.partialorder %v7753_v11, 0.0  ;;  %v7394_v25 = vadd.f32 %v7309_v34, %v7127_v16  ;;  %v18215_v34 = vld [vmem:[#allocation93_spill] sm:$0xff] }
 0x898   : >> { %v7939_v4 = vsel %vm7908_vm12, 1.0, %v12418_v37  ;;  %v8001_v13 = vsel %vm7970_vm13, 1.0, %v12418_v37 }
 0x899   : >> { %v7846_v60 = vsub.f32 %v7815_v1, %v7784_v9  ;;  %v7661_v52 = vadd.f32 %v7576_v57, %v7394_v25  ;;  %11926 = vmatmul.msk.f32.gmra.mxu1 %vm444_vm1, %v18213_v55  ;;  %v7579_v58 = vpop.f32.mrf.mxu2  ;;  %v8032_v24 = vsub.f32 %v7939_v4, %v8001_v13  ;;  %v7785_v57 = vld [vmem:[%s17620_s3 + $0x20] sm:$0xff]  ;;  %v7693_v1 = vld [vmem:[#allocation2 + $0x50] sm:$0xff]  ;;  %v7129_v55 = vadd.f32 %v16201_v46, %v16250_v43 }
 0x89a   : >> { %v6978_v43 = vadd.f32 %v16440_v5, %v16259_v38  ;;  %v7787_v38 = vld [vmem:[%s17620_s3 + $0x30] sm:$0xff] }
 0x89b   : >> { %v7877_v10 = vmax.f32 %v7846_v60, 0.0  ;;  %v7723_v18 = vmul.f32 %v7661_v52, %v18205_v42 }
 0x89d   : >> { %v8063_v39 = vmul.f32 %v8032_v24, %v7877_v10  ;;  %v7754_v22 = vsub.f32 %v7692_v41, %v7723_v18  ;;  %v16527_v41 = vpop.f32.mrf.mxu0  ;;  %v18216_v24 = vld [vmem:[#allocation62_spill] sm:$0xff] }
 0x89e   : >> { %v7312_v56 = vpop.f32.mrf.mxu1  ;;  %11960 = vmatmul.msk.f32.gmra.mxu2 %vm444_vm1, %v18214_v31  ;;  %v18217_v31 = vld [vmem:[#allocation51_spill] sm:$0xff] }
 0x89f   : >> { %8094 = vst.msk [vmem:[#allocation2 + $0x40] sm:$0xff] %vm267_vm7, %v8063_v39  ;;  %v7816_v33 = vand.u32 2147483647, %v7754_v22  ;;  %vm7909_vm14 = vcmp.gt.f32.partialorder %v7754_v22, 0.0  ;;  %vm7971_vm15 = vcmp.lt.f32.partialorder %v7754_v22, 0.0  ;;  %v7395_v11 = vadd.f32 %v7312_v56, %v7128_v27  ;;  %v16539_v27 = vpop.f32.mrf.mxu3 }
 0x8a0   : >> { %v7940_v16 = vsel %vm7909_vm14, 1.0, %v12418_v37  ;;  %v8002_v53 = vsel %vm7971_vm15, 1.0, %v12418_v37 }
 0x8a1   : >> { %v7847_v20 = vsub.f32 %v7816_v33, %v7785_v57  ;;  %v7662_v9 = vadd.f32 %v7579_v58, %v7395_v11  ;;  %11927 = vmatmul.msk.f32.gmra.mxu1 %vm444_vm1, %v18215_v34  ;;  %v7582_v63 = vpop.f32.mrf.mxu2  ;;  %v8033_v4 = vsub.f32 %v7940_v16, %v8002_v53  ;;  %v7786_v58 = vld [vmem:[%s17620_s3 + $0x28] sm:$0xff]  ;;  %v7694_v11 = vld [vmem:[#allocation2 + $0x58] sm:$0xff] }
 0x8a3   : >> { %v7878_v25 = vmax.f32 %v7847_v20, 0.0  ;;  %v7724_v13 = vmul.f32 %v7662_v9, %v18205_v42 }
 0x8a5   : >> { %v8064_v60 = vmul.f32 %v8033_v4, %v7878_v25  ;;  %v7755_v52 = vsub.f32 %v7693_v1, %v7724_v13  ;;  %v7130_v1 = vadd.f32 %v16447_v45, %v6978_v43  ;;  %v18218_v25 = vld [vmem:[#allocation18_spill] sm:$0xff]  ;;  %v16551_v13 = vpop.f32.mrf.mxu0 }
 0x8a6   : >> { %v7315_v10 = vpop.f32.mrf.mxu1  ;;  %11961 = vmatmul.msk.f32.gmra.mxu2 %vm444_vm1, %v18216_v24 }
 0x8a7   : >> { %8095 = vst.msk [vmem:[#allocation2 + $0x48] sm:$0xff] %vm267_vm7, %v8064_v60  ;;  %v7817_v18 = vand.u32 2147483647, %v7755_v52  ;;  %vm7910_vm8 = vcmp.gt.f32.partialorder %v7755_v52, 0.0  ;;  %vm7972_vm9 = vcmp.lt.f32.partialorder %v7755_v52, 0.0  ;;  %v7396_v39 = vadd.f32 %v7315_v10, %v7129_v55  ;;  %v18219_v10 = vld [vmem:[#allocation75_spill] sm:$0xff] }
 0x8a8   : >> { %v7941_v22 = vsel %vm7910_vm8, 1.0, %v12418_v37  ;;  %v8003_v46 = vsel %vm7972_vm9, 1.0, %v12418_v37  ;;  %v6979_v52 = vadd.f32 %v16456_v2, %v16268_v47  ;;  %v7788_v47 = vld [vmem:[%s17620_s3 + $0x38] sm:$0xff] }
 0x8a9   : >> { %v7848_v57 = vsub.f32 %v7817_v18, %v7786_v58  ;;  %v7663_v56 = vadd.f32 %v7582_v63, %v7396_v39  ;;  %11928 = vmatmul.msk.f32.gmra.mxu1 %vm444_vm1, %v18217_v31  ;;  %v7585_v33 = vpop.f32.mrf.mxu2  ;;  %v8034_v53 = vsub.f32 %v7941_v22, %v8003_v46  ;;  %v7695_v18 = vld [vmem:[#allocation2 + $0x60] sm:$0xff]  ;;  %v16559_v39 = vpop.f32.mrf.mxu3 }
 0x8aa   : >> { %v7131_v31 = vadd.f32 %v16469_v35, %v6979_v52  ;;  %v6980_v35 = vadd.f32 %v16475_v8, %v16277_v61  ;;  %v7789_v61 = vld [vmem:[%s17620_s3 + $0x40] sm:$0xff] }
 0x8ab   : >> { %v7879_v16 = vmax.f32 %v7848_v57, 0.0  ;;  %v7725_v20 = vmul.f32 %v7663_v56, %v18205_v42 }
 0x8ad   : >> { %v8065_v9 = vmul.f32 %v8034_v53, %v7879_v16  ;;  %v7756_v34 = vsub.f32 %v7694_v11, %v7725_v20 }
 0x8ae   : >> { %v7318_v5 = vpop.f32.mrf.mxu1  ;;  %11962 = vmatmul.msk.f32.gmra.mxu2 %vm444_vm1, %v18218_v25  ;;  %v7696_v25 = vld [vmem:[#allocation2 + $0x68] sm:$0xff] }
 0x8af   : >> { %8096 = vst.msk [vmem:[#allocation2 + $0x50] sm:$0xff] %vm267_vm7, %v8065_v9  ;;  %v7818_v63 = vand.u32 2147483647, %v7756_v34  ;;  %vm7911_vm10 = vcmp.gt.f32.partialorder %v7756_v34, 0.0  ;;  %vm7973_vm11 = vcmp.lt.f32.partialorder %v7756_v34, 0.0  ;;  %v7397_v4 = vadd.f32 %v7318_v5, %v7130_v1  ;;  %v18221_v1 = vld [vmem:[#allocation98_spill] sm:$0xff]  ;;  %v16575_v5 = vpop.f32.mrf.mxu0 }
 0x8b0   : >> { %v7942_v60 = vsel %vm7911_vm10, 1.0, %v12418_v37  ;;  %v8004_v45 = vsel %vm7973_vm11, 1.0, %v12418_v37 }
 0x8b1   : >> { %v7849_v55 = vsub.f32 %v7818_v63, %v7787_v38  ;;  %v7664_v58 = vadd.f32 %v7585_v33, %v7397_v4  ;;  %11929 = vmatmul.msk.f32.gmra.mxu1 %vm444_vm1, %v18219_v10  ;;  %v7588_v24 = vpop.f32.mrf.mxu2  ;;  %v8035_v46 = vsub.f32 %v7942_v60, %v8004_v45  ;;  %v18220_v33 = vld [vmem:[#allocation141_spill] sm:$0xff]  ;;  %v16578_v45 = vpop.f32.mrf.mxu3 }
 0x8b3   : >> { %v7880_v22 = vmax.f32 %v7849_v55, 0.0  ;;  %v7726_v43 = vmul.f32 %v7664_v58, %v18205_v42  ;;  %v7132_v58 = vadd.f32 %v16490_v7, %v6980_v35  ;;  %v6981_v7 = vadd.f32 %v16493_v26, %v16286_v12  ;;  %v7790_v12 = vld [vmem:[%s17620_s3 + $0x48] sm:$0xff] }
 0x8b5   : >> { %v8066_v57 = vmul.f32 %v8035_v46, %v7880_v22  ;;  %v7757_v56 = vsub.f32 %v7695_v18, %v7726_v43 }
 0x8b6   : >> { %v7321_v2 = vpop.f32.mrf.mxu1  ;;  %11963 = vmatmul.msk.f32.gmra.mxu2 %vm444_vm1, %v18220_v33 }
 0x8b7   : >> { %8097 = vst.msk [vmem:[#allocation2 + $0x58] sm:$0xff] %vm267_vm7, %v8066_v57  ;;  %v7819_v11 = vand.u32 2147483647, %v7757_v56  ;;  %vm7912_vm12 = vcmp.gt.f32.partialorder %v7757_v56, 0.0  ;;  %vm7974_vm13 = vcmp.lt.f32.partialorder %v7757_v56, 0.0  ;;  %v7398_v16 = vadd.f32 %v7321_v2, %v7131_v31  ;;  %v18222_v57 = vld [vmem:[#allocation99_spill] sm:$0xff]  ;;  %v16594_v33 = vpop.f32.mrf.mxu0 }
 0x8b8   : >> { %v7943_v53 = vsel %vm7912_vm12, 1.0, %v12418_v37  ;;  %v8005_v20 = vsel %vm7974_vm13, 1.0, %v12418_v37 }
 0x8b9   : >> { %v7850_v9 = vsub.f32 %v7819_v11, %v7788_v47  ;;  %v7665_v34 = vadd.f32 %v7588_v24, %v7398_v16  ;;  %11930 = vmatmul.msk.f32.gmra.mxu1 %vm444_vm1, %v18221_v1  ;;  %v7591_v38 = vpop.f32.mrf.mxu2  ;;  %v8036_v4 = vsub.f32 %v7943_v53, %v8005_v20  ;;  %v7133_v53 = vadd.f32 %v16508_v23, %v6981_v7  ;;  %v18223_v20 = vld [vmem:[#allocation151_spill] sm:$0xff]  ;;  %v16602_v35 = vpop.f32.mrf.mxu3 }
 0x8bb   : >> { %v7881_v63 = vmax.f32 %v7850_v9, 0.0  ;;  %v7727_v60 = vmul.f32 %v7665_v34, %v18205_v42 }
 0x8bd   : >> { %v8067_v52 = vmul.f32 %v8036_v4, %v7881_v63  ;;  %v7758_v55 = vsub.f32 %v7696_v25, %v7727_v60  ;;  %v18224_v4 = vld [vmem:[#allocation79_spill] sm:$0xff] }
 0x8be   : >> { %v7324_v8 = vpop.f32.mrf.mxu1  ;;  %11964 = vmatmul.msk.f32.gmra.mxu2 %vm444_vm1, %v15939_v44  ;;  %v7697_v44 = vld [vmem:[#allocation2 + $0x70] sm:$0xff] }
 0x8bf   : >> { %8098 = vst.msk [vmem:[#allocation2 + $0x60] sm:$0xff] %vm267_vm7, %v8067_v52  ;;  %v7820_v10 = vand.u32 2147483647, %v7758_v55  ;;  %vm7913_vm14 = vcmp.gt.f32.partialorder %v7758_v55, 0.0  ;;  %vm7975_vm15 = vcmp.lt.f32.partialorder %v7758_v55, 0.0  ;;  %v7399_v24 = vadd.f32 %v7324_v8, %v7132_v58  ;;  %v7698_v52 = vld [vmem:[#allocation2 + $0x78] sm:$0xff] }
 0x8c0   : >> { %v7944_v18 = vsel %vm7913_vm14, 1.0, %v12418_v37  ;;  %v8006_v22 = vsel %vm7975_vm15, 1.0, %v12418_v37 }
 0x8c1   : >> { %v7851_v46 = vsub.f32 %v7820_v10, %v7789_v61  ;;  %v7666_v43 = vadd.f32 %v7591_v38, %v7399_v24  ;;  %11931 = vmatmul.msk.f32.gmra.mxu1 %vm444_vm1, %v18222_v57  ;;  %v7594_v56 = vpop.f32.mrf.mxu2  ;;  %v8037_v47 = vsub.f32 %v7944_v18, %v8006_v22  ;;  %v6982_v38 = vadd.f32 %v16517_v28, %v16295_v40  ;;  %v16613_v18 = vpop.f32.mrf.mxu0  ;;  %v7791_v40 = vld [vmem:[%s17620_s3 + $0x50] sm:$0xff] }
 0x8c2   : >> { %v18225_v22 = vld [vmem:[#allocation57_spill] sm:$0xff]  ;;  %v6983_v57 = vadd.f32 %v16539_v27, %v16304_v50  ;;  %v7792_v50 = vld [vmem:[%s17620_s3 + $0x58] sm:$0xff] }
 0x8c3   : >> { %v7882_v31 = vmax.f32 %v7851_v46, 0.0  ;;  %v7728_v2 = vmul.f32 %v7666_v43, %v18205_v42  ;;  %v7134_v24 = vadd.f32 %v16527_v41, %v6982_v38 }
 0x8c5   : >> { %v8068_v11 = vmul.f32 %v8037_v47, %v7882_v31  ;;  %v7759_v16 = vsub.f32 %v7697_v44, %v7728_v2  ;;  %v18226_v47 = vld [vmem:[#allocation152_spill] sm:$0xff] }
 0x8c6   : >> { %v7327_v26 = vpop.f32.mrf.mxu1  ;;  %11965 = vmatmul.msk.f32.gmra.mxu2 %vm444_vm1, %v18223_v20 }
 0x8c7   : >> { %8099 = vst.msk [vmem:[#allocation2 + $0x68] sm:$0xff] %vm267_vm7, %v8068_v11  ;;  %v7821_v9 = vand.u32 2147483647, %v7759_v16  ;;  %vm7914_vm8 = vcmp.gt.f32.partialorder %v7759_v16, 0.0  ;;  %vm7976_vm9 = vcmp.lt.f32.partialorder %v7759_v16, 0.0  ;;  %v7400_v34 = vadd.f32 %v7327_v26, %v7133_v53  ;;  %v7699_v11 = vld [vmem:[#allocation2 + $0x80] sm:$0xff] }
 0x8c8   : >> { %v7945_v1 = vsel %vm7914_vm8, 1.0, %v12418_v37  ;;  %v8007_v23 = vsel %vm7976_vm9, 1.0, %v12418_v37 }
 0x8c9   : >> { %v7852_v25 = vsub.f32 %v7821_v9, %v7790_v12  ;;  %v7667_v63 = vadd.f32 %v7594_v56, %v7400_v34  ;;  %11932 = vmatmul.msk.f32.gmra.mxu1 %vm444_vm1, %v18224_v4  ;;  %v7597_v60 = vpop.f32.mrf.mxu2  ;;  %v8038_v58 = vsub.f32 %v7945_v1, %v8007_v23  ;;  %v16625_v56 = vpop.f32.mrf.mxu3  ;;  %v7135_v9 = vadd.f32 %v16551_v13, %v6983_v57  ;;  %v18227_v34 = vld [vmem:[#allocation100_spill] sm:$0xff] }
 0x8ca   : >> { %v16637_v38 = vpop.f32.mrf.mxu0 }
 0x8cb   : >> { %v7883_v55 = vmax.f32 %v7852_v25, 0.0  ;;  %v7729_v61 = vmul.f32 %v7667_v63, %v18205_v42  ;;  %v6984_v63 = vadd.f32 %v16559_v39, %v16313_v3  ;;  %v7793_v3 = vld [vmem:[%s17620_s3 + $0x60] sm:$0xff] }
 0x8cd   : >> { %v8069_v8 = vmul.f32 %v8038_v58, %v7883_v55  ;;  %v7760_v10 = vsub.f32 %v7698_v52, %v7729_v61  ;;  %v18228_v52 = vld [vmem:[#allocation20_spill] sm:$0xff] }
 0x8ce   : >> { %v7330_v28 = vpop.f32.mrf.mxu1  ;;  %11966 = vmatmul.msk.f32.gmra.mxu2 %vm444_vm1, %v18225_v22  ;;  %v7700_v58 = vld [vmem:[#allocation2 + $0x88] sm:$0xff]  ;;  %v7136_v22 = vadd.f32 %v16575_v5, %v6984_v63  ;;  %v6985_v5 = vadd.f32 %v16578_v45, %v16322_v32 }
 0x8cf   : >> { %8100 = vst.msk [vmem:[#allocation2 + $0x70] sm:$0xff] %vm267_vm7, %v8069_v8  ;;  %v7822_v7 = vand.u32 2147483647, %v7760_v10  ;;  %vm7915_vm10 = vcmp.gt.f32.partialorder %v7760_v10, 0.0  ;;  %vm7977_vm11 = vcmp.lt.f32.partialorder %v7760_v10, 0.0  ;;  %v7401_v46 = vadd.f32 %v7330_v28, %v7134_v24  ;;  %v7794_v32 = vld [vmem:[%s17620_s3 + $0x68] sm:$0xff] }
 0x8d0   : >> { %v7946_v43 = vsel %vm7915_vm10, 1.0, %v12418_v37  ;;  %v8008_v41 = vsel %vm7977_vm11, 1.0, %v12418_v37 }
 0x8d1   : >> { %v7853_v44 = vsub.f32 %v7822_v7, %v7791_v40  ;;  %v7668_v31 = vadd.f32 %v7597_v60, %v7401_v46  ;;  %11933 = vmatmul.msk.f32.gmra.mxu1 %vm444_vm1, %v18226_v47  ;;  %v7600_v2 = vpop.f32.mrf.mxu2  ;;  %v8039_v53 = vsub.f32 %v7946_v43, %v8008_v41  ;;  %v16645_v61 = vpop.f32.mrf.mxu3  ;;  %v18229_v7 = vld [vmem:[#allocation50_spill] sm:$0xff] }
 0x8d2   : >> { %v18230_v47 = vld [vmem:[#allocation150_spill] sm:$0xff] }
 0x8d3   : >> { %v7884_v16 = vmax.f32 %v7853_v44, 0.0  ;;  %v7730_v12 = vmul.f32 %v7668_v31, %v18205_v42 }
 0x8d5   : >> { %v8070_v26 = vmul.f32 %v8039_v53, %v7884_v16  ;;  %v7761_v20 = vsub.f32 %v7699_v11, %v7730_v12  ;;  %v16661_v11 = vpop.f32.mrf.mxu0  ;;  %v7701_v16 = vld [vmem:[#allocation2 + $0x90] sm:$0xff] }
 0x8d6   : >> { %v7333_v27 = vpop.f32.mrf.mxu1  ;;  %11967 = vmatmul.msk.f32.gmra.mxu2 %vm444_vm1, %v18227_v34 }
 0x8d7   : >> { %8101 = vst.msk [vmem:[#allocation2 + $0x78] sm:$0xff] %vm267_vm7, %v8070_v26  ;;  %v7823_v1 = vand.u32 2147483647, %v7761_v20  ;;  %vm7916_vm12 = vcmp.gt.f32.partialorder %v7761_v20, 0.0  ;;  %vm7978_vm13 = vcmp.lt.f32.partialorder %v7761_v20, 0.0  ;;  %v7402_v23 = vadd.f32 %v7333_v27, %v7135_v9 }
 0x8d8   : >> { %v7947_v25 = vsel %vm7916_vm12, 1.0, %v12418_v37  ;;  %v8009_v13 = vsel %vm7978_vm13, 1.0, %v12418_v37  ;;  %v7137_v27 = vadd.f32 %v16594_v33, %v6985_v5  ;;  %v7703_v5 = vld [vmem:[#allocation2 + $0xa0] sm:$0xff] }
 0x8d9   : >> { %v7854_v4 = vsub.f32 %v7823_v1, %v7792_v50  ;;  %v7669_v60 = vadd.f32 %v7600_v2, %v7402_v23  ;;  %11934 = vmatmul.msk.f32.gmra.mxu1 %vm444_vm1, %v18228_v52  ;;  %v7603_v55 = vpop.f32.mrf.mxu2  ;;  %v8040_v10 = vsub.f32 %v7947_v25, %v8009_v13  ;;  %v16664_v20 = vpop.f32.mrf.mxu3  ;;  %v6986_v13 = vadd.f32 %v16602_v35, %v16329_v30  ;;  %v7702_v52 = vld [vmem:[#allocation2 + $0x98] sm:$0xff]  ;;  %v7795_v30 = vld [vmem:[%s17620_s3 + $0x70] sm:$0xff] }
 0x8db   : >> { %v7885_v8 = vmax.f32 %v7854_v4, 0.0  ;;  %v7731_v24 = vmul.f32 %v7669_v60, %v18205_v42  ;;  %v18231_v4 = vld [vmem:[#allocation82_spill] sm:$0xff] }
 0x8dd   : >> { %v8071_v40 = vmul.f32 %v8040_v10, %v7885_v8  ;;  %v7762_v28 = vsub.f32 %v7700_v58, %v7731_v24  ;;  %v16678_v10 = vpop.f32.mrf.mxu0 }
 0x8de   : >> { %v7336_v39 = vpop.f32.mrf.mxu1  ;;  %11968 = vmatmul.msk.f32.gmra.mxu2 %vm444_vm1, %v18229_v7 }
 0x8df   : >> { %8102 = vst.msk [vmem:[#allocation2 + $0x80] sm:$0xff] %vm267_vm7, %v8071_v40  ;;  %v7824_v46 = vand.u32 2147483647, %v7762_v28  ;;  %vm7917_vm14 = vcmp.gt.f32.partialorder %v7762_v28, 0.0  ;;  %vm7979_vm15 = vcmp.lt.f32.partialorder %v7762_v28, 0.0  ;;  %v7403_v43 = vadd.f32 %v7336_v39, %v7136_v22 }
 0x8e0   : >> { %v7948_v41 = vsel %vm7917_vm14, 1.0, %v12418_v37  ;;  %v8010_v57 = vsel %vm7979_vm15, 1.0, %v12418_v37  ;;  %v7138_v28 = vadd.f32 %v16613_v18, %v6986_v13  ;;  %v6987_v18 = vadd.f32 %v16625_v56, %v16336_v49 }
 0x8e1   : >> { %v7855_v44 = vsub.f32 %v7824_v46, %v7793_v3  ;;  %v7670_v31 = vadd.f32 %v7603_v55, %v7403_v43  ;;  %11935 = vmatmul.msk.f32.gmra.mxu1 %vm444_vm1, %v18230_v47  ;;  %v7606_v2 = vpop.f32.mrf.mxu2  ;;  %v8041_v12 = vsub.f32 %v7948_v41, %v8010_v57  ;;  %v16684_v22 = vpop.f32.mrf.mxu3 }
 0x8e3   : >> { %v7886_v53 = vmax.f32 %v7855_v44, 0.0  ;;  %v7732_v26 = vmul.f32 %v7670_v31, %v18205_v42 }
 0x8e5   : >> { %v8072_v9 = vmul.f32 %v8041_v12, %v7886_v53  ;;  %v7763_v50 = vsub.f32 %v7701_v16, %v7732_v26  ;;  %v7139_v53 = vadd.f32 %v16637_v38, %v6987_v18  ;;  %v16693_v12 = vpop.f32.mrf.mxu0  ;;  %v7796_v26 = vld [vmem:[%s17620_s3 + $0x78] sm:$0xff]  ;;  %v6988_v38 = vadd.f32 %v16645_v61, %v16343_v17 }
 0x8e6   : >> { %v7339_v45 = vpop.f32.mrf.mxu1 }
 0x8e7   : >> { %8103 = vst.msk [vmem:[#allocation2 + $0x88] sm:$0xff] %vm267_vm7, %v8072_v9  ;;  %v7825_v34 = vand.u32 2147483647, %v7763_v50  ;;  %vm7918_vm8 = vcmp.gt.f32.partialorder %v7763_v50, 0.0  ;;  %vm7980_vm9 = vcmp.lt.f32.partialorder %v7763_v50, 0.0  ;;  %v7404_v1 = vadd.f32 %v7339_v45, %v7137_v27 }
 0x8e8   : >> { %v7949_v23 = vsel %vm7918_vm8, 1.0, %v12418_v37  ;;  %v8011_v25 = vsel %vm7980_vm9, 1.0, %v12418_v37 }
 0x8e9   : >> { %v7856_v63 = vsub.f32 %v7825_v34, %v7794_v32  ;;  %v7671_v33 = vadd.f32 %v7606_v2, %v7404_v1  ;;  %11936 = vmatmul.msk.f32.gmra.mxu1 %vm444_vm1, %v18231_v4  ;;  %v7609_v60 = vpop.f32.mrf.mxu2  ;;  %v8042_v58 = vsub.f32 %v7949_v23, %v8011_v25  ;;  %v16703_v32 = vpop.f32.mrf.mxu3  ;;  %v7704_v23 = vld [vmem:[#allocation2 + $0xa8] sm:$0xff] }
 0x8eb   : >> { %v7887_v55 = vmax.f32 %v7856_v63, 0.0  ;;  %v7733_v8 = vmul.f32 %v7671_v33, %v18205_v42 }
 0x8ed   : >> { %v8073_v24 = vmul.f32 %v8042_v58, %v7887_v55  ;;  %v7764_v40 = vsub.f32 %v7702_v52, %v7733_v8  ;;  %v7797_v52 = vld [vmem:[%s17620_s3 + $0x80] sm:$0xff]  ;;  %v7090_v58 = vpop.f32.mrf.mxu0 }
 0x8ee   : >> { %v7342_v35 = vpop.f32.mrf.mxu1 }
 0x8ef   : >> { %8104 = vst.msk [vmem:[#allocation2 + $0x90] sm:$0xff] %vm267_vm7, %v8073_v24  ;;  %v7826_v3 = vand.u32 2147483647, %v7764_v40  ;;  %vm7919_vm10 = vcmp.gt.f32.partialorder %v7764_v40, 0.0  ;;  %vm7981_vm11 = vcmp.lt.f32.partialorder %v7764_v40, 0.0  ;;  %v7405_v39 = vadd.f32 %v7342_v35, %v7138_v28  ;;  %v7705_v35 = vld [vmem:[#allocation2 + $0xb0] sm:$0xff] }
 0x8f0   : >> { %v7950_v7 = vsel %vm7919_vm10, 1.0, %v12418_v37  ;;  %v8012_v46 = vsel %vm7981_vm11, 1.0, %v12418_v37  ;;  %v6989_v40 = vadd.f32 %v16664_v20, %v16350_v15 }
 0x8f1   : >> { %v7857_v43 = vsub.f32 %v7826_v3, %v7795_v30  ;;  %v7672_v41 = vadd.f32 %v7609_v60, %v7405_v39  ;;  %v7612_v57 = vpop.f32.mrf.mxu2  ;;  %v8043_v31 = vsub.f32 %v7950_v7, %v8012_v46  ;;  %v7140_v60 = vadd.f32 %v16661_v11, %v6988_v38  ;;  %v6941_v3 = vpop.f32.mrf.mxu3 }
 0x8f3   : >> { %v7888_v44 = vmax.f32 %v7857_v43, 0.0  ;;  %v7734_v47 = vmul.f32 %v7672_v41, %v18205_v42  ;;  %v7141_v41 = vadd.f32 %v16678_v10, %v6989_v40  ;;  %v7800_v40 = vld [vmem:[%s17620_s3 + $0x98] sm:$0xff] }
 0x8f5   : >> { %v8074_v2 = vmul.f32 %v8043_v31, %v7888_v44  ;;  %v7765_v16 = vsub.f32 %v7703_v5, %v7734_v47  ;;  %v6990_v47 = vadd.f32 %v16684_v22, %v16357_v48 }
 0x8f6   : >> { %v7345_v9 = vpop.f32.mrf.mxu1 }
 0x8f7   : >> { %8105 = vst.msk [vmem:[#allocation2 + $0x98] sm:$0xff] %vm267_vm7, %v8074_v2  ;;  %v7827_v49 = vand.u32 2147483647, %v7765_v16  ;;  %vm7920_vm12 = vcmp.gt.f32.partialorder %v7765_v16, 0.0  ;;  %vm7982_vm13 = vcmp.lt.f32.partialorder %v7765_v16, 0.0  ;;  %v7406_v56 = vadd.f32 %v7345_v9, %v7139_v53  ;;  %v7093_v53 = vpop.f32.mrf.mxu0 }
 0x8f8   : >> { %v7951_v50 = vsel %vm7920_vm12, 1.0, %v12418_v37  ;;  %v8013_v27 = vsel %vm7982_vm13, 1.0, %v12418_v37 }
 0x8f9   : >> { %v7858_v45 = vsub.f32 %v7827_v49, %v7796_v26  ;;  %v7673_v34 = vadd.f32 %v7612_v57, %v7406_v56  ;;  %v7615_v1 = vpop.f32.mrf.mxu2  ;;  %v8044_v13 = vsub.f32 %v7951_v50, %v8013_v27  ;;  %v7798_v57 = vld [vmem:[%s17620_s3 + $0x88] sm:$0xff]  ;;  %v7706_v26 = vld [vmem:[#allocation2 + $0xb8] sm:$0xff]  ;;  %v6944_v50 = vpop.f32.mrf.mxu3 }
 0x8fb   : >> { %v7889_v25 = vmax.f32 %v7858_v45, 0.0  ;;  %v7735_v63 = vmul.f32 %v7673_v34, %v18205_v42  ;;  %v7142_v45 = vadd.f32 %v16693_v12, %v6990_v47  ;;  %v7799_v34 = vld [vmem:[%s17620_s3 + $0x90] sm:$0xff] }
 0x8fd   : >> { %v8075_v33 = vmul.f32 %v8044_v13, %v7889_v25  ;;  %v7766_v4 = vsub.f32 %v7704_v23, %v7735_v63  ;;  %v6991_v13 = vadd.f32 %v16703_v32, %v16364_v54 }
 0x8fe   : >> { %v7348_v55 = vpop.f32.mrf.mxu1 }
 0x8ff   : >> { %8106 = vst.msk [vmem:[#allocation2 + $0xa0] sm:$0xff] %vm267_vm7, %v8075_v33  ;;  %v7828_v17 = vand.u32 2147483647, %v7766_v4  ;;  %vm7921_vm14 = vcmp.gt.f32.partialorder %v7766_v4, 0.0  ;;  %vm7983_vm15 = vcmp.lt.f32.partialorder %v7766_v4, 0.0  ;;  %v7407_v61 = vadd.f32 %v7348_v55, %v7140_v60  ;;  %v7707_v4 = vld [vmem:[#allocation2 + $0xc0] sm:$0xff] }
 0x900   : >> { %v7952_v8 = vsel %vm7921_vm14, 1.0, %v12418_v37  ;;  %v8014_v24 = vsel %vm7983_vm15, 1.0, %v12418_v37 }
 0x901   : >> { %v7859_v11 = vsub.f32 %v7828_v17, %v7797_v52  ;;  %v7674_v28 = vadd.f32 %v7615_v1, %v7407_v61  ;;  %v7618_v30 = vpop.f32.mrf.mxu2  ;;  %v8045_v7 = vsub.f32 %v7952_v8, %v8014_v24  ;;  %v7096_v17 = vpop.f32.mrf.mxu0  ;;  %v7143_v24 = vadd.f32 %v7090_v58, %v6991_v13 }
 0x903   : >> { %v7890_v39 = vmax.f32 %v7859_v11, 0.0  ;;  %v7736_v46 = vmul.f32 %v7674_v28, %v18205_v42  ;;  %v6947_v28 = vpop.f32.mrf.mxu3 }
 0x905   : >> { %v8076_v18 = vmul.f32 %v8045_v7, %v7890_v39  ;;  %v7767_v43 = vsub.f32 %v7705_v35, %v7736_v46  ;;  %v6992_v39 = vadd.f32 %v6941_v3, %v16371_v51 }
 0x906   : >> { %v7351_v5 = vpop.f32.mrf.mxu1 }
 0x907   : >> { %8107 = vst.msk [vmem:[#allocation2 + $0xa8] sm:$0xff] %vm267_vm7, %v8076_v18  ;;  %v7829_v15 = vand.u32 2147483647, %v7767_v43  ;;  %vm7922_vm8 = vcmp.gt.f32.partialorder %v7767_v43, 0.0  ;;  %vm7984_vm9 = vcmp.lt.f32.partialorder %v7767_v43, 0.0  ;;  %v7408_v20 = vadd.f32 %v7351_v5, %v7141_v41  ;;  %v7708_v18 = vld [vmem:[#allocation2 + $0xc8] sm:$0xff] }
 0x908   : >> { %v7953_v44 = vsel %vm7922_vm8, 1.0, %v12418_v37  ;;  %v8015_v31 = vsel %vm7984_vm9, 1.0, %v12418_v37 }
 0x909   : >> { %v7860_v2 = vsub.f32 %v7829_v15, %v7798_v57  ;;  %v7675_v10 = vadd.f32 %v7618_v30, %v7408_v20  ;;  %v7621_v16 = vpop.f32.mrf.mxu2  ;;  %v8046_v49 = vsub.f32 %v7953_v44, %v8015_v31  ;;  %v7144_v20 = vadd.f32 %v7093_v53, %v6992_v39  ;;  %v7099_v44 = vpop.f32.mrf.mxu0  ;;  %v7801_v31 = vld [vmem:[%s17620_s3 + $0xa0] sm:$0xff] }
 0x90b   : >> { %v7891_v9 = vmax.f32 %v7860_v2, 0.0  ;;  %v7737_v56 = vmul.f32 %v7675_v10, %v18205_v42 }
 0x90d   : >> { %v8077_v27 = vmul.f32 %v8046_v49, %v7891_v9  ;;  %v7768_v38 = vsub.f32 %v7706_v26, %v7737_v56  ;;  %v6950_v26 = vpop.f32.mrf.mxu3  ;;  %v7709_v56 = vld [vmem:[#allocation2 + $0xd0] sm:$0xff] }
 0x90e   : >> { %v7354_v1 = vpop.f32.mrf.mxu1  ;;  %v6995_v39 = vadd.f32 %v6950_v26, %v16392_v21 }
 0x90f   : >> { %8108 = vst.msk [vmem:[#allocation2 + $0xb0] sm:$0xff] %vm267_vm7, %v8077_v27  ;;  %v7830_v48 = vand.u32 2147483647, %v7768_v38  ;;  %vm7923_vm10 = vcmp.gt.f32.partialorder %v7768_v38, 0.0  ;;  %vm7985_vm11 = vcmp.lt.f32.partialorder %v7768_v38, 0.0  ;;  %v7409_v22 = vadd.f32 %v7354_v1, %v7142_v45 }
 0x910   : >> { %v7954_v23 = vsel %vm7923_vm10, 1.0, %v12418_v37  ;;  %v8016_v25 = vsel %vm7985_vm11, 1.0, %v12418_v37 }
 0x911   : >> { %v7861_v63 = vsub.f32 %v7830_v48, %v7799_v34  ;;  %v7676_v12 = vadd.f32 %v7621_v16, %v7409_v22  ;;  %v7624_v33 = vpop.f32.mrf.mxu2  ;;  %v8047_v52 = vsub.f32 %v7954_v23, %v8016_v25  ;;  %v6993_v16 = vadd.f32 %v6944_v50, %v16378_v62  ;;  %v7802_v22 = vld [vmem:[%s17620_s3 + $0xa8] sm:$0xff]  ;;  %v7102_v25 = vpop.f32.mrf.mxu0 }
 0x913   : >> { %v7892_v60 = vmax.f32 %v7861_v63, 0.0  ;;  %v7738_v55 = vmul.f32 %v7676_v12, %v18205_v42  ;;  %v7145_v48 = vadd.f32 %v7096_v17, %v6993_v16  ;;  %v6994_v12 = vadd.f32 %v6947_v28, %v16385_v29 }
 0x915   : >> { %v8078_v61 = vmul.f32 %v8047_v52, %v7892_v60  ;;  %v7769_v8 = vsub.f32 %v7707_v4, %v7738_v55  ;;  %v7710_v52 = vld [vmem:[#allocation2 + $0xd8] sm:$0xff]  ;;  %v6953_v55 = vpop.f32.mrf.mxu3 }
 0x916   : >> { %v7357_v11 = vpop.f32.mrf.mxu1  ;;  %v6996_v16 = vadd.f32 %v6953_v55, %v16399_v0 }
 0x917   : >> { %8109 = vst.msk [vmem:[#allocation2 + $0xb8] sm:$0xff] %vm267_vm7, %v8078_v61  ;;  %v7831_v54 = vand.u32 2147483647, %v7769_v8  ;;  %vm7924_vm12 = vcmp.gt.f32.partialorder %v7769_v8, 0.0  ;;  %vm7986_vm13 = vcmp.lt.f32.partialorder %v7769_v8, 0.0  ;;  %v7410_v32 = vadd.f32 %v7357_v11, %v7143_v24 }
 0x918   : >> { %v7955_v30 = vsel %vm7924_vm12, 1.0, %v12418_v37  ;;  %v8017_v35 = vsel %vm7986_vm13, 1.0, %v12418_v37  ;;  %v7146_v11 = vadd.f32 %v7099_v44, %v6994_v12 }
 0x919   : >> { %v7862_v7 = vsub.f32 %v7831_v54, %v7800_v40  ;;  %v7677_v58 = vadd.f32 %v7624_v33, %v7410_v32  ;;  %v7627_v46 = vpop.f32.mrf.mxu2  ;;  %v8048_v41 = vsub.f32 %v7955_v30, %v8017_v35  ;;  %v7803_v54 = vld [vmem:[%s17620_s3 + $0xb0] sm:$0xff] }
 0x91b   : >> { %v7893_v43 = vmax.f32 %v7862_v7, 0.0  ;;  %v7739_v57 = vmul.f32 %v7677_v58, %v18205_v42 }
 0x91d   : >> { %v8079_v5 = vmul.f32 %v8048_v41, %v7893_v43  ;;  %v7770_v15 = vsub.f32 %v7708_v18, %v7739_v57  ;;  %v7105_v18 = vpop.f32.mrf.mxu0  ;;  %v7711_v43 = vld [vmem:[#allocation2 + $0xe0] sm:$0xff] }
 0x91e   : >> { %v7360_v47 = vpop.f32.mrf.mxu1 }
 0x91f   : >> { %8110 = vst.msk [vmem:[#allocation2 + $0xc0] sm:$0xff] %vm267_vm7, %v8079_v5  ;;  %v7832_v51 = vand.u32 2147483647, %v7770_v15  ;;  %vm7925_vm14 = vcmp.gt.f32.partialorder %v7770_v15, 0.0  ;;  %vm7987_vm15 = vcmp.lt.f32.partialorder %v7770_v15, 0.0  ;;  %v7411_v3 = vadd.f32 %v7360_v47, %v7144_v20  ;;  %v6956_v15 = vpop.f32.mrf.mxu3  ;;  %v7804_v47 = vld [vmem:[%s17620_s3 + $0xb8] sm:$0xff] }
 0x920   : >> { %v7956_v2 = vsel %vm7925_vm14, 1.0, %v12418_v37  ;;  %v8018_v10 = vsel %vm7987_vm15, 1.0, %v12418_v37 }
 0x921   : >> { %v7863_v53 = vsub.f32 %v7832_v51, %v7801_v31  ;;  %v7678_v9 = vadd.f32 %v7627_v46, %v7411_v3  ;;  %v7630_v49 = vpop.f32.mrf.mxu2  ;;  %v8049_v38 = vsub.f32 %v7956_v2, %v8018_v10  ;;  %v7147_v31 = vadd.f32 %v7102_v25, %v6995_v39 }
 0x923   : >> { %v7894_v27 = vmax.f32 %v7863_v53, 0.0  ;;  %v7740_v45 = vmul.f32 %v7678_v9, %v18205_v42 }
 0x925   : >> { %v8080_v34 = vmul.f32 %v8049_v38, %v7894_v27  ;;  %v7771_v1 = vsub.f32 %v7709_v56, %v7740_v45  ;;  %v7108_v45 = vpop.f32.mrf.mxu0 }
 0x926   : >> { %v7363_v23 = vpop.f32.mrf.mxu1 }
 0x927   : >> { %8111 = vst.msk [vmem:[#allocation2 + $0xc8] sm:$0xff] %vm267_vm7, %v8080_v34  ;;  %v7833_v62 = vand.u32 2147483647, %v7771_v1  ;;  %vm7926_vm8 = vcmp.gt.f32.partialorder %v7771_v1, 0.0  ;;  %vm7988_vm9 = vcmp.lt.f32.partialorder %v7771_v1, 0.0  ;;  %v7412_v50 = vadd.f32 %v7363_v23, %v7145_v48 }
 0x928   : >> { %v7957_v13 = vsel %vm7926_vm8, 1.0, %v12418_v37  ;;  %v8019_v63 = vsel %vm7988_vm9, 1.0, %v12418_v37  ;;  %v7148_v48 = vadd.f32 %v7105_v18, %v6996_v16  ;;  %v7715_v16 = vld [vmem:[#allocation2 + $0x100] sm:$0xff] }
 0x929   : >> { %v7864_v33 = vsub.f32 %v7833_v62, %v7802_v22  ;;  %v7679_v4 = vadd.f32 %v7630_v49, %v7412_v50  ;;  %v7633_v60 = vpop.f32.mrf.mxu2  ;;  %v8050_v61 = vsub.f32 %v7957_v13, %v8019_v63  ;;  %v7712_v49 = vld [vmem:[#allocation2 + $0xe8] sm:$0xff]  ;;  %v7805_v22 = vld [vmem:[%s17620_s3 + $0xc0] sm:$0xff]  ;;  %v6959_v62 = vpop.f32.mrf.mxu3  ;;  %v6997_v63 = vadd.f32 %v6956_v15, %v16406_v36 }
 0x92b   : >> { %v7895_v17 = vmax.f32 %v7864_v33, 0.0  ;;  %v7741_v8 = vmul.f32 %v7679_v4, %v18205_v42 }
 0x92d   : >> { %v8081_v24 = vmul.f32 %v8050_v61, %v7895_v17  ;;  %v7772_v40 = vsub.f32 %v7710_v52, %v7741_v8 }
 0x92e   : >> { %v7366_v32 = vpop.f32.mrf.mxu1 }
 0x92f   : >> { %8112 = vst.msk [vmem:[#allocation2 + $0xd0] sm:$0xff] %vm267_vm7, %v8081_v24  ;;  %v7834_v29 = vand.u32 2147483647, %v7772_v40  ;;  %vm7927_vm10 = vcmp.gt.f32.partialorder %v7772_v40, 0.0  ;;  %vm7989_vm11 = vcmp.lt.f32.partialorder %v7772_v40, 0.0  ;;  %v7413_v28 = vadd.f32 %v7366_v32, %v7146_v11  ;;  %v7111_v40 = vpop.f32.mrf.mxu0  ;;  %v7806_v11 = vld [vmem:[%s17620_s3 + $0xc8] sm:$0xff] }
 0x930   : >> { %v7958_v30 = vsel %vm7927_vm10, 1.0, %v12418_v37  ;;  %v8020_v35 = vsel %vm7989_vm11, 1.0, %v12418_v37  ;;  %v7149_v24 = vadd.f32 %v7108_v45, %v6997_v63 }
 0x931   : >> { %v7865_v7 = vsub.f32 %v7834_v29, %v7803_v54  ;;  %v7680_v58 = vadd.f32 %v7633_v60, %v7413_v28  ;;  %v7636_v46 = vpop.f32.mrf.mxu2  ;;  %v8051_v57 = vsub.f32 %v7958_v30, %v8020_v35  ;;  %v7713_v60 = vld [vmem:[#allocation2 + $0xf0] sm:$0xff]  ;;  %v6998_v30 = vadd.f32 %v6959_v62, %v16413_v59  ;;  %v6962_v35 = vpop.f32.mrf.mxu3 }
 0x933   : >> { %v7896_v41 = vmax.f32 %v7865_v7, 0.0  ;;  %v7742_v5 = vmul.f32 %v7680_v58, %v18205_v42  ;;  %v7714_v58 = vld [vmem:[#allocation2 + $0xf8] sm:$0xff]  ;;  %v7150_v15 = vadd.f32 %v7111_v40, %v6998_v30 }
 0x935   : >> { %v8082_v20 = vmul.f32 %v8051_v57, %v7896_v41  ;;  %v7773_v44 = vsub.f32 %v7711_v43, %v7742_v5 }
 0x936   : >> { %v7369_v51 = vpop.f32.mrf.mxu1 }
 0x937   : >> { %8113 = vst.msk [vmem:[#allocation2 + $0xd8] sm:$0xff] %vm267_vm7, %v8082_v20  ;;  %v7835_v21 = vand.u32 2147483647, %v7773_v44  ;;  %vm7928_vm12 = vcmp.gt.f32.partialorder %v7773_v44, 0.0  ;;  %vm7990_vm13 = vcmp.lt.f32.partialorder %v7773_v44, 0.0  ;;  %v7414_v3 = vadd.f32 %v7369_v51, %v7147_v31  ;;  %v7807_v20 = vld [vmem:[%s17620_s3 + $0xd0] sm:$0xff] }
 0x938   : >> { %v7959_v2 = vsel %vm7928_vm12, 1.0, %v12418_v37  ;;  %v8021_v10 = vsel %vm7990_vm13, 1.0, %v12418_v37 }
 0x939   : >> { %v7866_v26 = vsub.f32 %v7835_v21, %v7804_v47  ;;  %v7681_v53 = vadd.f32 %v7636_v46, %v7414_v3  ;;  %v7639_v9 = vpop.f32.mrf.mxu2  ;;  %v8052_v27 = vsub.f32 %v7959_v2, %v8021_v10  ;;  %v7114_v47 = vpop.f32.mrf.mxu0  ;;  %v6999_v3 = vadd.f32 %v6962_v35, %v16420_v14 }
 0x93b   : >> { %v7897_v56 = vmax.f32 %v7866_v26, 0.0  ;;  %v7743_v38 = vmul.f32 %v7681_v53, %v18205_v42  ;;  %v6965_v26 = vpop.f32.mrf.mxu3  ;;  %v7151_v45 = vadd.f32 %v7114_v47, %v6999_v3 }
 0x93c   : >> { %v7000_v62 = vadd.f32 %v6965_v26, %v16427_v6 }
 0x93d   : >> { %v8083_v34 = vmul.f32 %v8052_v27, %v7897_v56  ;;  %v7774_v1 = vsub.f32 %v7712_v49, %v7743_v38 }
 0x93e   : >> { %v7372_v23 = vpop.f32.mrf.mxu1 }
 0x93f   : >> { %8114 = vst.msk [vmem:[#allocation2 + $0xe0] sm:$0xff] %vm267_vm7, %v8083_v34  ;;  %v7836_v0 = vand.u32 2147483647, %v7774_v1  ;;  %vm7929_vm14 = vcmp.gt.f32.partialorder %v7774_v1, 0.0  ;;  %vm7991_vm15 = vcmp.lt.f32.partialorder %v7774_v1, 0.0  ;;  %v7415_v50 = vadd.f32 %v7372_v23, %v7148_v48  ;;  %v7808_v34 = vld [vmem:[%s17620_s3 + $0xd8] sm:$0xff] }
 0x940   : >> { %v7960_v25 = vsel %vm7929_vm14, 1.0, %v12418_v37  ;;  %v8022_v13 = vsel %vm7991_vm15, 1.0, %v12418_v37 }
 0x941   : >> { %v7867_v12 = vsub.f32 %v7836_v0, %v7805_v22  ;;  %v7682_v33 = vadd.f32 %v7639_v9, %v7415_v50  ;;  %v7642_v4 = vpop.f32.mrf.mxu2  ;;  %v8053_v55 = vsub.f32 %v7960_v25, %v8022_v13  ;;  %v7117_v25 = vpop.f32.mrf.mxu0  ;;  %v7716_v13 = vld [vmem:[#allocation2 + $0x108] sm:$0xff] }
 0x943   : >> { %v7898_v52 = vmax.f32 %v7867_v12, 0.0  ;;  %v7744_v17 = vmul.f32 %v7682_v33, %v18205_v42 }
 0x945   : >> { %v8084_v61 = vmul.f32 %v8053_v55, %v7898_v52  ;;  %v7775_v8 = vsub.f32 %v7713_v60, %v7744_v17  ;;  %v7152_v55 = vadd.f32 %v7117_v25, %v7000_v62  ;;  %v7809_v17 = vld [vmem:[%s17620_s3 + $0xe0] sm:$0xff]  ;;  %v12047_v62 = vld [vmem:[%s17619_s2 + $0x50] sm:$0xff] (%p2815_p4) }
 0x946   : >> { %v7375_v54 = vpop.f32.mrf.mxu1  ;;  %v8160_v25 = vld [vmem:[%s17619_s2 + $0x10] sm:$0xff] (%p2815_p4) }
 0x947   : >> { %8115 = vst.msk [vmem:[#allocation2 + $0xe8] sm:$0xff] %vm267_vm7, %v8084_v61  ;;  %v7837_v36 = vand.u32 2147483647, %v7775_v8  ;;  %vm7930_vm8 = vcmp.gt.f32.partialorder %v7775_v8, 0.0  ;;  %vm7992_vm9 = vcmp.lt.f32.partialorder %v7775_v8, 0.0  ;;  %v7416_v32 = vadd.f32 %v7375_v54, %v7149_v24 }
 0x948   : >> { %v7961_v29 = vsel %vm7930_vm8, 1.0, %v12418_v37  ;;  %v8023_v28 = vsel %vm7992_vm9, 1.0, %v12418_v37 }
 0x949   : >> { %v7868_v39 = vsub.f32 %v7837_v36, %v7806_v11  ;;  %v7683_v7 = vadd.f32 %v7642_v4, %v7416_v32  ;;  %v7645_v46 = vpop.f32.mrf.mxu2  ;;  %v8054_v43 = vsub.f32 %v7961_v29, %v8023_v28  ;;  %v6968_v4 = vpop.f32.mrf.mxu3  ;;  %v7717_v29 = vld [vmem:[#allocation2 + $0x110] sm:$0xff] }
 0x94a   : >> { %v7001_v54 = vadd.f32 %v6968_v4, %v16434_v19  ;;  %v8181_v4 = vld [vmem:[#allocation2 + $0x9b] sm:$0xff] (%p2815_p4) }
 0x94b   : >> { %v7899_v18 = vmax.f32 %v7868_v39, 0.0  ;;  %v7745_v41 = vmul.f32 %v7683_v7, %v18205_v42  ;;  %v7120_v39 = vpop.f32.mrf.mxu0 }
 0x94d   : >> { %v8085_v57 = vmul.f32 %v8054_v43, %v7899_v18  ;;  %v7776_v5 = vsub.f32 %v7714_v58, %v7745_v41  ;;  %v7810_v18 = vld [vmem:[%s17620_s3 + $0xe8] sm:$0xff] }
 0x94e   : >> { %v7378_v44 = vpop.f32.mrf.mxu1 }
 0x94f   : >> { %8116 = vst.msk [vmem:[#allocation2 + $0xf0] sm:$0xff] %vm267_vm7, %v8085_v57  ;;  %v7838_v59 = vand.u32 2147483647, %v7776_v5  ;;  %vm7931_vm10 = vcmp.gt.f32.partialorder %v7776_v5, 0.0  ;;  %vm7993_vm11 = vcmp.lt.f32.partialorder %v7776_v5, 0.0  ;;  %v7417_v31 = vadd.f32 %v7378_v44, %v7150_v15 }
 0x950   : >> { %v7962_v51 = vsel %vm7931_vm10, 1.0, %v12418_v37  ;;  %v8024_v21 = vsel %vm7993_vm11, 1.0, %v12418_v37 }
 0x951   : >> { %v7869_v2 = vsub.f32 %v7838_v59, %v7807_v20  ;;  %v7684_v10 = vadd.f32 %v7645_v46, %v7417_v31  ;;  %v8055_v9 = vsub.f32 %v7962_v51, %v8024_v21  ;;  %v7648_v56 = vpop.f32.mrf.mxu2  ;;  %v7153_v46 = vadd.f32 %v7120_v39, %v7001_v54  ;;  %v7718_v59 = vld [vmem:[#allocation2 + $0x118] sm:$0xff]  ;;  %v8183_v54 = vld [vmem:[#allocation2 + $0xab] sm:$0xff] (%p2815_p4) }
 0x953   : >> { %v7900_v53 = vmax.f32 %v7869_v2, 0.0  ;;  %v7746_v49 = vmul.f32 %v7684_v10, %v18205_v42  ;;  %v7811_v2 = vld [vmem:[%s17620_s3 + $0xf0] sm:$0xff] }
 0x955   : >> { %v8086_v27 = vmul.f32 %v8055_v9, %v7900_v53  ;;  %v7777_v38 = vsub.f32 %v7715_v16, %v7746_v49 }
 0x956   : >> { %v7381_v1 = vpop.f32.mrf.mxu1 }
 0x957   : >> { %8117 = vst.msk [vmem:[#allocation2 + $0xf8] sm:$0xff] %vm267_vm7, %v8086_v27  ;;  %v7839_v14 = vand.u32 2147483647, %v7777_v38  ;;  %vm7932_vm12 = vcmp.gt.f32.partialorder %v7777_v38, 0.0  ;;  %vm7994_vm13 = vcmp.lt.f32.partialorder %v7777_v38, 0.0  ;;  %v7418_v48 = vadd.f32 %v7381_v1, %v7151_v45  ;;  %v11972_v27 = vld [vmem:[%s17619_s2 + $0x38] sm:$0xff] (%p2815_p4) }
 0x958   : >> { %v7963_v22 = vsel %vm7932_vm12, 1.0, %v12418_v37  ;;  %v8025_v23 = vsel %vm7994_vm13, 1.0, %v12418_v37  ;;  %12342 = vmatpush.msra.mxu1 (%p2815_p4), %v11972_v27  ;;  %12343 = vmatpush.msra.mxu2 (%p2815_p4), %v11972_v27  ;;  %v11970_v38 = vld [vmem:[%s17619_s2 + $0x28] sm:$0xff] (%p2815_p4)  ;;  %v12048_v1 = vld [vmem:[%s17619_s2 + $0x58] sm:$0xff] (%p2815_p4) }
 0x959   : >> { %v7870_v0 = vsub.f32 %v7839_v14, %v7808_v34  ;;  %v7685_v50 = vadd.f32 %v7648_v56, %v7418_v48  ;;  %v8056_v12 = vsub.f32 %v7963_v22, %v8025_v23  ;;  %v7651_v61 = vpop.f32.mrf.mxu2  ;;  %12344 = vmatpush.msra.mxu3 (%p2815_p4), %v11972_v27  ;;  %8323 = vmatpush.msra.mxu0 (%p2815_p4), %v11972_v27  ;;  %v8171_v45 = vld [vmem:[#allocation2 + $0x4b] sm:$0xff] (%p2815_p4)  ;;  %v8180_v34 = vld [vmem:[#allocation2 + $0x93] sm:$0xff] (%p2815_p4)  ;;  %v8189_v14 = vld [vmem:[#allocation2 + $0xdb] sm:$0xff] (%p2815_p4) }
 0x95a   : > { %v8161_v48 = vld [vmem:[%s17619_s2 + $0x18] sm:$0xff] (%p2815_p4)  ;;  %v8162_v23 = vld [vmem:[#allocation2 + $0x3] sm:$0xff] (%p2815_p4) }
 0x95b   : >> { %v7901_v63 = vmax.f32 %v7870_v0, 0.0  ;;  %v7747_v33 = vmul.f32 %v7685_v50, %v18205_v42  ;;  %v12088_v22 = vld [vmem:[%s17619_s2 + $0x78] sm:$0xff] (%p2815_p4)  ;;  %v12087_v50 = vld [vmem:[%s17619_s2 + $0x70] sm:$0xff] (%p2815_p4) }
 0x95c   : > { %v12128_v0 = vld [vmem:[%s17619_s2 + $0x98] sm:$0xff] (%p2815_p4)  ;;  %v8123_v27 = vld [vmem:[#allocation2 + $0xa] sm:$0xff] (%p2815_p4) }
 0x95d   : >> { %v8087_v60 = vmul.f32 %v8056_v12, %v7901_v63  ;;  %v7778_v52 = vsub.f32 %v7716_v13, %v7747_v33  ;;  %v12046_v13 = vld [vmem:[%s17619_s2 + $0x48] sm:$0xff] (%p2815_p4)  ;;  %v12127_v63 = vld [vmem:[%s17619_s2 + $0x90] sm:$0xff] (%p2815_p4) }
 0x95e   : >> { %v7384_v8 = vpop.f32.mrf.mxu1  ;;  %v12086_v12 = vld [vmem:[%s17619_s2 + $0x68] sm:$0xff] (%p2815_p4)  ;;  %v8172_v33 = vld [vmem:[#allocation2 + $0x53] sm:$0xff] (%p2815_p4) }
 0x95f   : >> { %8118 = vst.msk [vmem:[#allocation2 + $0x100] sm:$0xff] %vm267_vm7, %v8087_v60  ;;  %v7840_v6 = vand.u32 2147483647, %v7778_v52  ;;  %vm7933_vm14 = vcmp.gt.f32.partialorder %v7778_v52, 0.0  ;;  %vm7995_vm15 = vcmp.lt.f32.partialorder %v7778_v52, 0.0  ;;  %v7419_v24 = vadd.f32 %v7384_v8, %v7152_v55  ;;  %v8190_v60 = vld [vmem:[#allocation2 + $0xe3] sm:$0xff] (%p2815_p4) }
 0x960   : >> { %v7964_v40 = vsel %vm7933_vm14, 1.0, %v12418_v37  ;;  %v8026_v11 = vsel %vm7995_vm15, 1.0, %v12418_v37  ;;  %v8159_v52 = vld [vmem:[%s17619_s2 + $0x8] sm:$0xff] (%p2815_p4) }
 0x961   : >> { %v7871_v36 = vsub.f32 %v7840_v6, %v7809_v17  ;;  %v7686_v32 = vadd.f32 %v7651_v61, %v7419_v24  ;;  %v8057_v30 = vsub.f32 %v7964_v40, %v8026_v11  ;;  %v7654_v15 = vpop.f32.mrf.mxu2  ;;  %v8163_v55 = vld [vmem:[#allocation2 + $0xb] sm:$0xff] (%p2815_p4)  ;;  %v8173_v61 = vld [vmem:[#allocation2 + $0x5b] sm:$0xff] (%p2815_p4)  ;;  %v8182_v8 = vld [vmem:[#allocation2 + $0xa3] sm:$0xff] (%p2815_p4) }
 0x962   : > { %v12126_v17 = vld [vmem:[%s17619_s2 + $0x88] sm:$0xff] (%p2815_p4)  ;;  %v8164_v24 = vld [vmem:[#allocation2 + $0x13] sm:$0xff] (%p2815_p4)  ;;  %v12045_v40 = vld [vmem:[%s17619_s2 + $0x40] sm:$0xff] (%p2815_p4) }
 0x963   : >> { %v7902_v28 = vmax.f32 %v7871_v36, 0.0  ;;  %v7748_v35 = vmul.f32 %v7686_v32, %v18205_v42  ;;  %v8191_v6 = vld [vmem:[#allocation2 + $0xeb] sm:$0xff] (%p2815_p4)  ;;  %v8174_v11 = vld [vmem:[#allocation2 + $0x63] sm:$0xff] (%p2815_p4)  ;;  %v8192_v36 = vld [vmem:[#allocation2 + $0xf3] sm:$0xff] (%p2815_p4) }
 0x964   : > { %v12085_v32 = vld [vmem:[%s17619_s2 + $0x60] sm:$0xff] (%p2815_p4) }
 0x965   : >> { %v8088_v7 = vmul.f32 %v8057_v30, %v7902_v28  ;;  %v7779_v58 = vsub.f32 %v7717_v29, %v7748_v35  ;;  %v8165_v29 = vld [vmem:[#allocation2 + $0x1b] sm:$0xff] (%p2815_p4)  ;;  %v8175_v30 = vld [vmem:[#allocation2 + $0x6b] sm:$0xff] (%p2815_p4)  ;;  %v8184_v35 = vld [vmem:[#allocation2 + $0xb3] sm:$0xff] (%p2815_p4) }
 0x966   : >> { %v7387_v43 = vpop.f32.mrf.mxu1  ;;  %v8158_v28 = vld [vmem:[%s17619_s2] sm:$0xff] (%p2815_p4) }
 0x967   : >> { %8119 = vst.msk [vmem:[#allocation2 + $0x108] sm:$0xff] %vm267_vm7, %v8088_v7  ;;  %v7841_v41 = vand.u32 2147483647, %v7779_v58  ;;  %vm7934_vm8 = vcmp.gt.f32.partialorder %v7779_v58, 0.0  ;;  %vm7996_vm9 = vcmp.lt.f32.partialorder %v7779_v58, 0.0  ;;  %v7420_v19 = vadd.f32 %v7387_v43, %v7153_v46  ;;  %v8193_v39 = vld [vmem:[#allocation2 + $0xfb] sm:$0xff] (%p2815_p4) }
 0x968   : >> { %v7965_v57 = vsel %vm7934_vm8, 1.0, %v12418_v37  ;;  %v8027_v5 = vsel %vm7996_vm9, 1.0, %v12418_v37  ;;  %v12125_v7 = vld [vmem:[%s17619_s2 + $0x80] sm:$0xff] (%p2815_p4)  ;;  %v8176_v46 = vld [vmem:[#allocation2 + $0x73] sm:$0xff] (%p2815_p4) }
 0x969   : >> { %v7872_v20 = vsub.f32 %v7841_v41, %v7810_v18  ;;  %v7687_v44 = vadd.f32 %v7654_v15, %v7420_v19  ;;  %v8058_v47 = vsub.f32 %v7965_v57, %v8027_v5  ;;  %v8166_v58 = vld [vmem:[#allocation2 + $0x23] sm:$0xff] (%p2815_p4)  ;;  %v8185_v18 = vld [vmem:[#allocation2 + $0xbb] sm:$0xff] (%p2815_p4)  ;;  %v8167_v19 = vld [vmem:[#allocation2 + $0x2b] sm:$0xff] (%p2815_p4) }
 0x96a   : > { %v12208_v41 = vld [vmem:[%s17619_s2 + $0xd8] sm:$0xff] (%p2815_p4) }
 0x96b   : >> { %v7903_v31 = vmax.f32 %v7872_v20, 0.0  ;;  %v7749_v51 = vmul.f32 %v7687_v44, %v18205_v42  ;;  %v11969_v42 = vld [vmem:[%s17619_s2 + $0x20] sm:$0xff] (%p2815_p4)  ;;  %v12248_v57 = vld [vmem:[%s17619_s2 + $0xf8] sm:$0xff] (%p2815_p4) }
 0x96c   : > { %v12168_v5 = vld [vmem:[%s17619_s2 + $0xb8] sm:$0xff] (%p2815_p4)  ;;  %v8186_v20 = vld [vmem:[#allocation2 + $0xc3] sm:$0xff] (%p2815_p4) }
 0x96d   : >> { %v8089_v21 = vmul.f32 %v8058_v47, %v7903_v31  ;;  %v7780_v3 = vsub.f32 %v7718_v59, %v7749_v51  ;;  %v8177_v15 = vld [vmem:[#allocation2 + $0x7b] sm:$0xff] (%p2815_p4)  ;;  %v8168_v59 = vld [vmem:[#allocation2 + $0x33] sm:$0xff] (%p2815_p4)  ;;  %v8178_v47 = vld [vmem:[#allocation2 + $0x83] sm:$0xff] (%p2815_p4) }
 0x96e   : > { %v8194_v43 = vld [vmem:[#allocation2 + $0x103] sm:$0xff] (%p2815_p4)  ;;  %v12288_v31 = vld [vmem:[%s17619_s2 + $0x118] sm:$0xff] (%p2815_p4)  ;;  %v8187_v51 = vld [vmem:[#allocation2 + $0xcb] sm:$0xff] (%p2815_p4) }
 0x96f   : >> { %8120 = vst.msk [vmem:[#allocation2 + $0x110] sm:$0xff] %vm267_vm7, %v8089_v21  ;;  %v7842_v10 = vand.u32 2147483647, %v7780_v3  ;;  %vm7935_vm10 = vcmp.gt.f32.partialorder %v7780_v3, 0.0  ;;  %vm7997_vm11 = vcmp.lt.f32.partialorder %v7780_v3, 0.0  ;;  %v8169_v3 = vld [vmem:[#allocation2 + $0x3b] sm:$0xff] (%p2815_p4) }
 0x970   : >> { %v7966_v16 = vsel %vm7935_vm10, 1.0, %v12418_v37  ;;  %v8028_v26 = vsel %vm7997_vm11, 1.0, %v12418_v37  ;;  %v11971_v37 = vld [vmem:[%s17619_s2 + $0x30] sm:$0xff] (%p2815_p4) }
 0x971   : >> { %v7873_v53 = vsub.f32 %v7842_v10, %v7811_v2  ;;  %v8059_v49 = vsub.f32 %v7966_v16, %v8028_v26  ;;  %12345 = vmatpush.msra.mxu1 (%p2815_p4), %v11971_v37  ;;  %12346 = vmatpush.msra.mxu2 (%p2815_p4), %v11971_v37  ;;  %v8179_v2 = vld [vmem:[#allocation2 + $0x8b] sm:$0xff] (%p2815_p4)  ;;  %v8188_v10 = vld [vmem:[#allocation2 + $0xd3] sm:$0xff] (%p2815_p4)  ;;  %v8170_v26 = vld [vmem:[#allocation2 + $0x43] sm:$0xff] (%p2815_p4) }
 0x972   : > { %12347 = vmatpush.msra.mxu3 (%p2815_p4), %v11971_v37  ;;  %8324 = vmatpush.msra.mxu0 (%p2815_p4), %v11971_v37  ;;  %v8670_v37 = vld [vmem:[#allocation2 + $0xc] sm:$0xff] (%p2815_p4) }
 0x973   : >> { %v7904_v9 = vmax.f32 %v7873_v53, 0.0  ;;  %2817 = sbr.rel (!%p2815_p4) target bundleno = 724 (0x2d4), region = 113  ;;  %12348 = vmatpush.msra.mxu1 (%p2815_p4), %v11970_v38  ;;  %12349 = vmatpush.msra.mxu2 (%p2815_p4), %v11970_v38  ;;  %v8122_v53 = vld [vmem:[#allocation2 + $0x2] sm:$0xff] (%p2815_p4) }
 0x974   : > { %12350 = vmatpush.msra.mxu3 (%p2815_p4), %v11970_v38  ;;  %8325 = vmatpush.msra.mxu0 (%p2815_p4), %v11970_v38  ;;  %v8980_v38 = vld [vmem:[#allocation2 + $0x1c] sm:$0xff] (%p2815_p4) }
 0x975   : >> { %v8090_v56 = vmul.f32 %v8059_v49, %v7904_v9  ;;  %12351 = vmatpush.msra.mxu1 (%p2815_p4), %v11969_v42  ;;  %12352 = vmatpush.msra.mxu2 (%p2815_p4), %v11969_v42  ;;  %v8669_v9 = vld [vmem:[#allocation2 + $0x4] sm:$0xff] (%p2815_p4)  ;;  %v8979_v49 = vld [vmem:[#allocation2 + $0x14] sm:$0xff] (%p2815_p4) }
 0x976   : > { %11982 = vmatmul.msk.f32.vlgmr.msra.gmra.mxu1 (%p2815_p4), %vm267_vm7, %v8171_v45  ;;  %11991 = vmatmul.msk.f32.vlgmr.msra.gmra.mxu2 (%p2815_p4), %vm267_vm7, %v8180_v34  ;;  %v8195_v44 = vld [vmem:[#allocation2 + $0x10b] sm:$0xff] (%p2815_p4) }
 0x977   : >> { %8121 = vst.msk [vmem:[#allocation2 + $0x118] sm:$0xff] %vm267_vm7, %v8090_v56  ;;  %8830 = vmatpush.msrb.mxu2 (%p2815_p4), %v12048_v1  ;;  %12353 = vmatpush.msra.mxu3 (%p2815_p4), %v11969_v42  ;;  %v9289_v56 = vld [vmem:[#allocation2 + $0x15] sm:$0xff] (%p2815_p4)  ;;  %v8981_v34 = vld [vmem:[#allocation2 + $0x24] sm:$0xff] (%p2815_p4) }
 0x978   : > { %12000 = vmatmul.msk.f32.vlgmr.msra.gmra.mxu3 %vm267_vm7, %v8189_v14  ;;  %8556 = vmatpush.msrb.mxu1 %v8161_v48  ;;  %v8124_v45 = vld [vmem:[#allocation2 + $0x12] sm:$0xff]  ;;  %v9291_v1 = vld [vmem:[#allocation2 + $0x25] sm:$0xff]  ;;  %v8125_v14 = vld [vmem:[#allocation2 + $0x1a] sm:$0xff] }
 0x979   : > { %9140 = vmatpush.msrb.mxu3 %v12088_v22  ;;  %8326 = vmatpush.msra.mxu0 %v11969_v42  ;;  %v9290_v42 = vld [vmem:[#allocation2 + $0x1d] sm:$0xff]  ;;  %v8982_v48 = vld [vmem:[#allocation2 + $0x2c] sm:$0xff] }
 0x97a   : > { %11973 = vmatmul.msk.f32.vlgmr.msra.gmra.mxu0 %vm267_vm7, %v8162_v23  ;;  %8831 = vmatpush.msrb.mxu2 %v12047_v62  ;;  %v9292_v22 = vld [vmem:[#allocation2 + $0x2d] sm:$0xff]  ;;  %v8126_v23 = vld [vmem:[#allocation2 + $0x22] sm:$0xff] }
 0x97b   : > { %9450 = vmatpush.msrb.mxu0 %v12128_v0  ;;  %9141 = vmatpush.msrb.mxu3 %v12087_v50  ;;  %v8983_v62 = vld [vmem:[#allocation2 + $0x34] sm:$0xff]  ;;  %v8127_v50 = vld [vmem:[#allocation2 + $0x2a] sm:$0xff] }
 0x97c   : > { %8557 = vmatpush.msrb.mxu1 %v8160_v25  ;;  %8832 = vmatpush.msrb.mxu2 %v12046_v13  ;;  %v9293_v0 = vld [vmem:[#allocation2 + $0x35] sm:$0xff] }
 0x97d   : > { %9451 = vmatpush.msrb.mxu0 %v12127_v63  ;;  %9142 = vmatpush.msrb.mxu3 %v12086_v12  ;;  %v8984_v25 = vld [vmem:[#allocation2 + $0x3c] sm:$0xff]  ;;  %v12207_v13 = vld [vmem:[%s17619_s2 + $0xd0] sm:$0xff] }
 0x97e   : > { %11983 = vmatmul.msk.f32.gmra.mxu1 %vm267_vm7, %v8172_v33  ;;  %11992 = vmatmul.msk.f32.gmra.mxu2 %vm267_vm7, %v8181_v4  ;;  %v8196_v21 = vld [vmem:[#allocation2 + $0x113] sm:$0xff]  ;;  %v8197_v16 = vld [vmem:[#allocation2 + $0x11b] sm:$0x3f] }
 0x97f   : > { %8558 = vmatpush.msrb.mxu1 %v8159_v52  ;;  %9452 = vmatpush.msrb.mxu0 %v12126_v17  ;;  %v9294_v63 = vld [vmem:[#allocation2 + $0x3d] sm:$0xff]  ;;  %v12247_v12 = vld [vmem:[%s17619_s2 + $0xf0] sm:$0xff]  ;;  %v9295_v52 = vld [vmem:[#allocation2 + $0x45] sm:$0xff] }
 0x980   : > { %12001 = vmatmul.msk.f32.gmra.mxu3 %vm267_vm7, %v8190_v60  ;;  %8833 = vmatpush.msrb.mxu2 %v12045_v40  ;;  %v12167_v33 = vld [vmem:[%s17619_s2 + $0xb0] sm:$0xff]  ;;  %v8985_v60 = vld [vmem:[#allocation2 + $0x44] sm:$0xff] }
 0x981   : > { %9143 = vmatpush.msrb.mxu3 %v12085_v32  ;;  %8559 = vmatpush.msrb.mxu1 %v8158_v28  ;;  %v8128_v4 = vld [vmem:[#allocation2 + $0x32] sm:$0xff] }
 0x982   : > { %11974 = vmatmul.msk.f32.gmra.mxu0 %vm267_vm7, %v8163_v55  ;;  %10070 = vmatpush.msra.mxu2 %v12208_v41  ;;  %v12287_v55 = vld [vmem:[%s17619_s2 + $0x110] sm:$0xff] }
 0x983   : > { %9453 = vmatpush.msrb.mxu0 %v12125_v7  ;;  %10380 = vmatpush.msra.mxu3 %v12248_v57  ;;  %v8987_v32 = vld [vmem:[#allocation2 + $0x54] sm:$0xff]  ;;  %v8131_v7 = vld [vmem:[#allocation2 + $0x4a] sm:$0xff] }
 0x984   : > { %9760 = vmatpush.msra.mxu1 %v12168_v5  ;;  %10071 = vmatpush.msra.mxu2 %v12207_v13  ;;  %v9297_v28 = vld [vmem:[#allocation2 + $0x55] sm:$0xff]  ;;  %v8989_v5 = vld [vmem:[#allocation2 + $0x64] sm:$0xff] }
 0x985   : > { %10690 = vmatpush.msra.mxu0 %v12288_v31  ;;  %10381 = vmatpush.msra.mxu3 %v12247_v12  ;;  %v8132_v57 = vld [vmem:[#allocation2 + $0x52] sm:$0xff] }
 0x986   : > { %11984 = vmatmul.msk.f32.gmra.mxu1 %vm267_vm7, %v8173_v61  ;;  %11993 = vmatmul.msk.f32.gmra.mxu2 %vm267_vm7, %v8182_v8  ;;  %v8129_v61 = vld [vmem:[#allocation2 + $0x3a] sm:$0xff]  ;;  %v8986_v8 = vld [vmem:[#allocation2 + $0x4c] sm:$0xff] }
 0x987   : > { %9761 = vmatpush.msra.mxu1 %v12167_v33  ;;  %10691 = vmatpush.msra.mxu0 %v12287_v55  ;;  %v9304_v55 = vld [vmem:[#allocation2 + $0x8d] sm:$0xff] }
 0x988   : > { %12002 = vmatmul.msk.f32.gmra.mxu3 %vm267_vm7, %v8191_v6 }
 0x98a   : > { %11975 = vmatmul.msk.f32.gmra.mxu0 %vm267_vm7, %v8164_v24  ;;  %v9296_v24 = vld [vmem:[#allocation2 + $0x4d] sm:$0xff] }
 0x98e   : > { %11985 = vmatmul.msk.f32.gmra.mxu1 %vm267_vm7, %v8174_v11  ;;  %11994 = vmatmul.msk.f32.gmra.mxu2 %vm267_vm7, %v8183_v54 }
 0x990   : > { %12003 = vmatmul.msk.f32.gmra.mxu3 %vm267_vm7, %v8192_v36  ;;  %v8130_v36 = vld [vmem:[#allocation2 + $0x42] sm:$0xff] }
 0x992   : > { %11976 = vmatmul.msk.f32.gmra.mxu0 %vm267_vm7, %v8165_v29 }
 0x996   : > { %11986 = vmatmul.msk.f32.gmra.mxu1 %vm267_vm7, %v8175_v30  ;;  %11995 = vmatmul.msk.f32.gmra.mxu2 %vm267_vm7, %v8184_v35 }
 0x998   : > { %12004 = vmatmul.msk.f32.gmra.mxu3 %vm267_vm7, %v8193_v39 }
 0x99a   : > { %11977 = vmatmul.msk.f32.gmra.mxu0 %vm267_vm7, %v8166_v58  ;;  %v8988_v58 = vld [vmem:[#allocation2 + $0x5c] sm:$0xff] }
 0x99e   : > { %11987 = vmatmul.msk.f32.gmra.mxu1 %vm267_vm7, %v8176_v46  ;;  %11996 = vmatmul.msk.f32.gmra.mxu2 %vm267_vm7, %v8185_v18  ;;  %v9298_v18 = vld [vmem:[#allocation2 + $0x5d] sm:$0xff] }
 0x9a0   : > { %12005 = vmatmul.msk.f32.gmra.mxu3 %vm267_vm7, %v8194_v43 }
 0x9a2   : > { %11978 = vmatmul.msk.f32.gmra.mxu0 %vm267_vm7, %v8167_v19 }
 0x9a6   : > { %11988 = vmatmul.msk.f32.gmra.mxu1 %vm267_vm7, %v8177_v15  ;;  %11997 = vmatmul.msk.f32.gmra.mxu2 %vm267_vm7, %v8186_v20  ;;  %v9299_v20 = vld [vmem:[#allocation2 + $0x65] sm:$0xff] }
 0x9a8   : > { %12006 = vmatmul.msk.f32.gmra.mxu3 %vm267_vm7, %v8195_v44 }
 0x9aa   : > { %11979 = vmatmul.msk.f32.gmra.mxu0 %vm267_vm7, %v8168_v59 }
 0x9ae   : > { %11989 = vmatmul.msk.f32.gmra.mxu1 %vm267_vm7, %v8178_v47  ;;  %11998 = vmatmul.msk.f32.gmra.mxu2 %vm267_vm7, %v8187_v51  ;;  %v8133_v47 = vld [vmem:[#allocation2 + $0x5a] sm:$0xff]  ;;  %v8990_v51 = vld [vmem:[#allocation2 + $0x6c] sm:$0xff] }
 0x9b0   : > { %12007 = vmatmul.msk.f32.gmra.mxu3 %vm267_vm7, %v8196_v21 }
 0x9b2   : > { %11980 = vmatmul.msk.f32.gmra.mxu0 %vm267_vm7, %v8169_v3  ;;  %v9300_v3 = vld [vmem:[#allocation2 + $0x6d] sm:$0xff] }
 0x9b6   : > { %11990 = vmatmul.msk.f32.gmra.mxu1 %vm267_vm7, %v8179_v2  ;;  %11999 = vmatmul.msk.f32.gmra.mxu2 %vm267_vm7, %v8188_v10 }
 0x9b8   : > { %12008 = vmatmul.msk.f32.gmra.mxu3 %vm267_vm7, %v8197_v16 }
 0x9ba   : > { %11981 = vmatmul.msk.f32.gmra.mxu0 %vm267_vm7, %v8170_v26  ;;  %v8134_v26 = vld [vmem:[#allocation2 + $0x62] sm:$0xff] }
 0x9be   : > { %12009 = vmatmul.msk.f32.vlgmr.msrb.gmra.mxu1 %vm267_vm7, %v8122_v53  ;;  %12049 = vmatmul.msk.f32.vlgmr.msrb.gmra.mxu2 %vm267_vm7, %v8669_v9  ;;  %v8991_v53 = vld [vmem:[#allocation2 + $0x74] sm:$0xff] }
 0x9c0   : > { %12089 = vmatmul.msk.f32.vlgmr.msrb.gmra.mxu3 %vm267_vm7, %v8979_v49 }
 0x9c2   : > { %12129 = vmatmul.msk.f32.vlgmr.msrb.gmra.mxu0 %vm267_vm7, %v9289_v56 }
 0x9c6   : > { %12010 = vmatmul.msk.f32.gmra.mxu1 %vm267_vm7, %v8123_v27  ;;  %12050 = vmatmul.msk.f32.gmra.mxu2 %vm267_vm7, %v8670_v37 }
 0x9c8   : > { %12090 = vmatmul.msk.f32.gmra.mxu3 %vm267_vm7, %v8980_v38 }
 0x9ca   : > { %12130 = vmatmul.msk.f32.gmra.mxu0 %vm267_vm7, %v9290_v42  ;;  %v8992_v42 = vld [vmem:[#allocation2 + $0x7c] sm:$0xff] }
 0x9ce   : > { %12011 = vmatmul.msk.f32.gmra.mxu1 %vm267_vm7, %v8124_v45  ;;  %12051 = vmatmul.msk.f32.gmra.mxu2 %vm267_vm7, %v8979_v49  ;;  %v9301_v49 = vld [vmem:[#allocation2 + $0x75] sm:$0xff] }
 0x9d0   : > { %12091 = vmatmul.msk.f32.gmra.mxu3 %vm267_vm7, %v8981_v34 }
 0x9d2   : > { %12131 = vmatmul.msk.f32.gmra.mxu0 %vm267_vm7, %v9291_v1 }
 0x9d6   : > { %12012 = vmatmul.msk.f32.gmra.mxu1 %vm267_vm7, %v8125_v14  ;;  %12052 = vmatmul.msk.f32.gmra.mxu2 %vm267_vm7, %v8980_v38  ;;  %v8135_v38 = vld [vmem:[#allocation2 + $0x6a] sm:$0xff] }
 0x9d8   : > { %12092 = vmatmul.msk.f32.gmra.mxu3 %vm267_vm7, %v8982_v48 }
 0x9da   : > { %12132 = vmatmul.msk.f32.gmra.mxu0 %vm267_vm7, %v9292_v22  ;;  %v8136_v22 = vld [vmem:[#allocation2 + $0x72] sm:$0xff] }
 0x9de   : > { %12013 = vmatmul.msk.f32.gmra.mxu1 %vm267_vm7, %v8126_v23  ;;  %12053 = vmatmul.msk.f32.gmra.mxu2 %vm267_vm7, %v8981_v34  ;;  %v9302_v34 = vld [vmem:[#allocation2 + $0x7d] sm:$0xff] }
 0x9df   : > { %v8993_v23 = vld [vmem:[#allocation2 + $0x84] sm:$0xff] }
 0x9e0   : > { %12093 = vmatmul.msk.f32.gmra.mxu3 %vm267_vm7, %v8983_v62 }
 0x9e2   : > { %12133 = vmatmul.msk.f32.gmra.mxu0 %vm267_vm7, %v9293_v0 }
 0x9e6   : > { %12014 = vmatmul.msk.f32.gmra.mxu1 %vm267_vm7, %v8127_v50  ;;  %12054 = vmatmul.msk.f32.gmra.mxu2 %vm267_vm7, %v8982_v48  ;;  %v9303_v50 = vld [vmem:[#allocation2 + $0x85] sm:$0xff] }
 0x9e8   : > { %12094 = vmatmul.msk.f32.gmra.mxu3 %vm267_vm7, %v8984_v25 }
 0x9ea   : > { %12134 = vmatmul.msk.f32.gmra.mxu0 %vm267_vm7, %v9294_v63  ;;  %v12166_v63 = vld [vmem:[%s17619_s2 + $0xa8] sm:$0xff] }
 0x9eb   : > { %9762 = vmatpush.msra.mxu1 %v12166_v63 }
 0x9ee   : > { %12015 = vmatmul.msk.f32.gmra.mxu1 %vm267_vm7, %v8128_v4  ;;  %12055 = vmatmul.msk.f32.gmra.mxu2 %vm267_vm7, %v8983_v62  ;;  %v12206_v62 = vld [vmem:[%s17619_s2 + $0xc8] sm:$0xff]  ;;  %v8137_v4 = vld [vmem:[#allocation2 + $0x7a] sm:$0xff] }
 0x9ef   : > { %10072 = vmatpush.msra.mxu2 %v12206_v62  ;;  %v8140_v62 = vld [vmem:[#allocation2 + $0x92] sm:$0xff] }
 0x9f0   : > { %12095 = vmatmul.msk.f32.gmra.mxu3 %vm267_vm7, %v8985_v60 }
 0x9f2   : > { %12135 = vmatmul.msk.f32.gmra.mxu0 %vm267_vm7, %v9295_v52 }
 0x9f3   : > { %v16981_v17 = vpop.f32.mrf.mxu1 }
 0x9f6   : > { %12016 = vmatmul.msk.f32.gmra.mxu1 %vm267_vm7, %v8129_v61  ;;  %12056 = vmatmul.msk.f32.gmra.mxu2 %vm267_vm7, %v8984_v25  ;;  %v12246_v25 = vld [vmem:[%s17619_s2 + $0xe8] sm:$0xff] }
 0x9f7   : > { %v16985_v6 = vpop.f32.mrf.mxu0  ;;  %10382 = vmatpush.msra.mxu3 %v12246_v25  ;;  %v12286_v61 = vld [vmem:[%s17619_s2 + $0x108] sm:$0xff] }
 0x9f8   : > { %12096 = vmatmul.msk.f32.gmra.mxu3 %vm267_vm7, %v8986_v8  ;;  %10692 = vmatpush.msra.mxu0 %v12286_v61  ;;  %v8997_v25 = vld [vmem:[#allocation2 + $0xa4] sm:$0xff] }
 0x9f9   : > { %v16988_v40 = vpop.f32.mrf.mxu2 }
 0x9fa   : > { %12136 = vmatmul.msk.f32.gmra.mxu0 %vm267_vm7, %v9296_v24 }
 0x9fb   : > { %v16991_v11 = vpop.f32.mrf.mxu1  ;;  %v16993_v54 = vpop.f32.mrf.mxu3 }
 0x9fe   : > { %12017 = vmatmul.msk.f32.gmra.mxu1 %vm267_vm7, %v8130_v36  ;;  %12057 = vmatmul.msk.f32.gmra.mxu2 %vm267_vm7, %v8985_v60  ;;  %v8994_v60 = vld [vmem:[#allocation2 + $0x8c] sm:$0xff] }
 0x9ff   : > { %v16997_v29 = vpop.f32.mrf.mxu0 }
 0xa00   : > { %12097 = vmatmul.msk.f32.gmra.mxu3 %vm267_vm7, %v8987_v32 }
 0xa01   : > { %v17000_v30 = vpop.f32.mrf.mxu2 }
 0xa02   : > { %12137 = vmatmul.msk.f32.gmra.mxu0 %vm267_vm7, %v9297_v28  ;;  %v8995_v28 = vld [vmem:[#allocation2 + $0x94] sm:$0xff] }
 0xa03   : > { %v17003_v35 = vpop.f32.mrf.mxu1  ;;  %v17005_v39 = vpop.f32.mrf.mxu3 }
 0xa06   : > { %12018 = vmatmul.msk.f32.gmra.mxu1 %vm267_vm7, %v8131_v7  ;;  %12058 = vmatmul.msk.f32.gmra.mxu2 %vm267_vm7, %v8986_v8 }
 0xa07   : > { %v17009_v46 = vpop.f32.mrf.mxu0 }
 0xa08   : > { %12098 = vmatmul.msk.f32.gmra.mxu3 %vm267_vm7, %v8988_v58 }
 0xa09   : > { %v17012_v43 = vpop.f32.mrf.mxu2 }
 0xa0a   : > { %12138 = vmatmul.msk.f32.gmra.mxu0 %vm267_vm7, %v9298_v18 }
 0xa0b   : > { %v17015_v41 = vpop.f32.mrf.mxu1  ;;  %v17017_v19 = vpop.f32.mrf.mxu3 }
 0xa0e   : > { %12019 = vmatmul.msk.f32.gmra.mxu1 %vm267_vm7, %v8132_v57  ;;  %12059 = vmatmul.msk.f32.gmra.mxu2 %vm267_vm7, %v8987_v32  ;;  %v8138_v32 = vld [vmem:[#allocation2 + $0x82] sm:$0xff] }
 0xa0f   : > { %v17021_v15 = vpop.f32.mrf.mxu0 }
 0xa10   : > { %12099 = vmatmul.msk.f32.gmra.mxu3 %vm267_vm7, %v8989_v5 }
 0xa11   : > { %v17024_v44 = vpop.f32.mrf.mxu2 }
 0xa12   : > { %12139 = vmatmul.msk.f32.gmra.mxu0 %vm267_vm7, %v9299_v20 }
 0xa13   : > { %v17027_v59 = vpop.f32.mrf.mxu1  ;;  %v17029_v31 = vpop.f32.mrf.mxu3 }
 0xa16   : > { %12020 = vmatmul.msk.f32.gmra.mxu1 %vm267_vm7, %v8133_v47  ;;  %12060 = vmatmul.msk.f32.gmra.mxu2 %vm267_vm7, %v8988_v58  ;;  %v9305_v58 = vld [vmem:[#allocation2 + $0x95] sm:$0xff] }
 0xa17   : > { %v17033_v21 = vpop.f32.mrf.mxu0 }
 0xa18   : > { %12100 = vmatmul.msk.f32.gmra.mxu3 %vm267_vm7, %v8990_v51 }
 0xa19   : > { %v17036_v2 = vpop.f32.mrf.mxu2 }
 0xa1a   : > { %12140 = vmatmul.msk.f32.gmra.mxu0 %vm267_vm7, %v9300_v3 }
 0xa1b   : > { %v17039_v10 = vpop.f32.mrf.mxu1  ;;  %v17041_v16 = vpop.f32.mrf.mxu3 }
 0xa1e   : > { %12021 = vmatmul.msk.f32.gmra.mxu1 %vm267_vm7, %v8134_v26  ;;  %12061 = vmatmul.msk.f32.gmra.mxu2 %vm267_vm7, %v8989_v5  ;;  %v8996_v26 = vld [vmem:[#allocation2 + $0x9c] sm:$0xff] }
 0xa1f   : > { %v17045_v9 = vpop.f32.mrf.mxu0 }
 0xa20   : > { %12101 = vmatmul.msk.f32.gmra.mxu3 %vm267_vm7, %v8991_v53 }
 0xa21   : > { %v17048_v56 = vpop.f32.mrf.mxu2 }
 0xa22   : > { %12141 = vmatmul.msk.f32.gmra.mxu0 %vm267_vm7, %v9301_v49 }
 0xa23   : > { %v17051_v27 = vpop.f32.mrf.mxu1  ;;  %v17053_v37 = vpop.f32.mrf.mxu3 }
 0xa26   : > { %12022 = vmatmul.msk.f32.gmra.mxu1 %vm267_vm7, %v8135_v38  ;;  %12062 = vmatmul.msk.f32.gmra.mxu2 %vm267_vm7, %v8990_v51  ;;  %v8139_v51 = vld [vmem:[#allocation2 + $0x8a] sm:$0xff]  ;;  %v9306_v38 = vld [vmem:[#allocation2 + $0x9d] sm:$0xff] }
 0xa27   : > { %v17057_v45 = vpop.f32.mrf.mxu0 }
 0xa28   : > { %12102 = vmatmul.msk.f32.gmra.mxu3 %vm267_vm7, %v8992_v42 }
 0xa29   : > { %v17060_v1 = vpop.f32.mrf.mxu2 }
 0xa2a   : > { %12142 = vmatmul.msk.f32.gmra.mxu0 %vm267_vm7, %v9302_v34 }
 0xa2b   : > { %v17063_v14 = vpop.f32.mrf.mxu1  ;;  %v17065_v48 = vpop.f32.mrf.mxu3 }
 0xa2e   : > { %12023 = vmatmul.msk.f32.gmra.mxu1 %vm267_vm7, %v8136_v22  ;;  %12063 = vmatmul.msk.f32.gmra.mxu2 %vm267_vm7, %v8991_v53 }
 0xa2f   : > { %v17072_v0 = vpop.f32.mrf.mxu0 }
 0xa30   : > { %12103 = vmatmul.msk.f32.gmra.mxu3 %vm267_vm7, %v8993_v23 }
 0xa31   : > { %v17078_v13 = vpop.f32.mrf.mxu2 }
 0xa32   : > { %12143 = vmatmul.msk.f32.gmra.mxu0 %vm267_vm7, %v9303_v50 }
 0xa33   : > { %v17084_v12 = vpop.f32.mrf.mxu1  ;;  %v17086_v33 = vpop.f32.mrf.mxu3 }
 0xa36   : > { %12024 = vmatmul.msk.f32.gmra.mxu1 %vm267_vm7, %v8137_v4  ;;  %12064 = vmatmul.msk.f32.gmra.mxu2 %vm267_vm7, %v8992_v42 }
 0xa37   : > { %v17090_v52 = vpop.f32.mrf.mxu0 }
 0xa38   : > { %12104 = vmatmul.msk.f32.gmra.mxu3 %vm267_vm7, %v8994_v60 }
 0xa39   : > { %v17096_v8 = vpop.f32.mrf.mxu2 }
 0xa3a   : > { %12144 = vmatmul.msk.f32.gmra.mxu0 %vm267_vm7, %v9304_v55 }
 0xa3b   : > { %v17099_v24 = vpop.f32.mrf.mxu3  ;;  %v8561_v36 = vpop.f32.mrf.mxu1 }
 0xa3c   : > { %v8562_v18 = vadd.f32 %v8561_v36, %v16985_v6 }
 0xa3e   : > { %12025 = vmatmul.msk.f32.gmra.mxu1 %vm267_vm7, %v8138_v32  ;;  %12065 = vmatmul.msk.f32.gmra.mxu2 %vm267_vm7, %v8993_v23 }
 0xa3f   : > { %v9455_v7 = vpop.f32.mrf.mxu0 }
 0xa40   : > { %12105 = vmatmul.msk.f32.gmra.mxu3 %vm267_vm7, %v8995_v28 }
 0xa41   : > { %v8835_v57 = vpop.f32.mrf.mxu2 }
 0xa42   : > { %v8943_v5 = vadd.f32 %v8835_v57, %v8562_v18  ;;  %12145 = vmatmul.msk.f32.gmra.mxu0 %vm267_vm7, %v9305_v58  ;;  %v8998_v18 = vld [vmem:[#allocation2 + $0xac] sm:$0xff] }
 0xa43   : > { %v8564_v20 = vpop.f32.mrf.mxu1  ;;  %v9145_v47 = vpop.f32.mrf.mxu3 }
 0xa44   : > { %v9253_v3 = vadd.f32 %v9145_v47, %v8943_v5  ;;  %v8565_v6 = vadd.f32 %v8564_v20, %v16997_v29  ;;  %v9308_v5 = vld [vmem:[#allocation2 + $0xad] sm:$0xff] }
 0xa46   : > { %v17106_v53 = vadd.f32 %v9455_v7, %v9253_v3  ;;  %12026 = vmatmul.msk.f32.gmra.mxu1 %vm267_vm7, %v8139_v51  ;;  %12066 = vmatmul.msk.f32.gmra.mxu2 %vm267_vm7, %v8994_v60  ;;  %v9307_v60 = vld [vmem:[#allocation2 + $0xa5] sm:$0xff]  ;;  %v8141_v7 = vld [vmem:[#allocation2 + $0x9a] sm:$0xff] }
 0xa47   : > { %v9458_v49 = vpop.f32.mrf.mxu0 }
 0xa48   : > { %12106 = vmatmul.msk.f32.gmra.mxu3 %vm267_vm7, %v8996_v26 }
 0xa49   : > { %v8838_v42 = vpop.f32.mrf.mxu2 }
 0xa4a   : > { %v8944_v34 = vadd.f32 %v8838_v42, %v8565_v6  ;;  %12146 = vmatmul.msk.f32.gmra.mxu0 %vm267_vm7, %v9306_v38  ;;  %v8999_v6 = vld [vmem:[#allocation2 + $0xb4] sm:$0xff] }
 0xa4b   : > { %v8567_v22 = vpop.f32.mrf.mxu1  ;;  %v9148_v23 = vpop.f32.mrf.mxu3 }
 0xa4c   : > { %v9254_v50 = vadd.f32 %v9148_v23, %v8944_v34  ;;  %v8568_v29 = vadd.f32 %v8567_v22, %v17009_v46  ;;  %v9309_v34 = vld [vmem:[#allocation2 + $0xb5] sm:$0xff] }
 0xa4e   : > { %v17113_v63 = vadd.f32 %v9458_v49, %v9254_v50  ;;  %12027 = vmatmul.msk.f32.gmra.mxu1 %vm267_vm7, %v8140_v62  ;;  %12067 = vmatmul.msk.f32.gmra.mxu2 %vm267_vm7, %v8995_v28  ;;  %v8142_v49 = vld [vmem:[#allocation2 + $0xa2] sm:$0xff] }
 0xa4f   : > { %v9461_v4 = vpop.f32.mrf.mxu0 }
 0xa50   : > { %12107 = vmatmul.msk.f32.gmra.mxu3 %vm267_vm7, %v8997_v25 }
 0xa51   : > { %v8841_v55 = vpop.f32.mrf.mxu2 }
 0xa52   : > { %v8945_v61 = vadd.f32 %v8841_v55, %v8568_v29  ;;  %12147 = vmatmul.msk.f32.gmra.mxu0 %vm267_vm7, %v9307_v60  ;;  %v9000_v29 = vld [vmem:[#allocation2 + $0xbc] sm:$0xff] }
 0xa53   : > { %v8570_v36 = vpop.f32.mrf.mxu1  ;;  %v9151_v32 = vpop.f32.mrf.mxu3 }
 0xa54   : > { %v9255_v58 = vadd.f32 %v9151_v32, %v8945_v61  ;;  %v8571_v46 = vadd.f32 %v8570_v36, %v17021_v15  ;;  %v9310_v61 = vld [vmem:[#allocation2 + $0xbd] sm:$0xff] }
 0xa56   : > { %v17120_v57 = vadd.f32 %v9461_v4, %v9255_v58  ;;  %12028 = vmatmul.msk.f32.gmra.mxu1 %vm267_vm7, %v8141_v7  ;;  %12068 = vmatmul.msk.f32.gmra.mxu2 %vm267_vm7, %v8996_v26  ;;  %v8143_v4 = vld [vmem:[#allocation2 + $0xaa] sm:$0xff] }
 0xa57   : > { %v9464_v28 = vpop.f32.mrf.mxu0 }
 0xa58   : > { %12108 = vmatmul.msk.f32.gmra.mxu3 %vm267_vm7, %v8998_v18 }
 0xa59   : > { %v8844_v20 = vpop.f32.mrf.mxu2 }
 0xa5a   : > { %v8946_v47 = vadd.f32 %v8844_v20, %v8571_v46  ;;  %12148 = vmatmul.msk.f32.gmra.mxu0 %vm267_vm7, %v9308_v5  ;;  %v9001_v46 = vld [vmem:[#allocation2 + $0xc4] sm:$0xff] }
 0xa5b   : > { %v8573_v51 = vpop.f32.mrf.mxu1  ;;  %v9154_v3 = vpop.f32.mrf.mxu3 }
 0xa5c   : > { %v9256_v38 = vadd.f32 %v9154_v3, %v8946_v47  ;;  %v8574_v15 = vadd.f32 %v8573_v51, %v17033_v21  ;;  %v9311_v47 = vld [vmem:[#allocation2 + $0xc5] sm:$0xff] }
 0xa5e   : > { %v17127_v42 = vadd.f32 %v9464_v28, %v9256_v38  ;;  %12029 = vmatmul.msk.f32.gmra.mxu1 %vm267_vm7, %v8142_v49  ;;  %12069 = vmatmul.msk.f32.gmra.mxu2 %vm267_vm7, %v8997_v25  ;;  %v8144_v28 = vld [vmem:[#allocation2 + $0xb2] sm:$0xff] }
 0xa5f   : > { %v9467_v26 = vpop.f32.mrf.mxu0 }
 0xa60   : > { %12109 = vmatmul.msk.f32.gmra.mxu3 %vm267_vm7, %v8999_v6 }
 0xa61   : > { %v8847_v22 = vpop.f32.mrf.mxu2 }
 0xa62   : > { %v8947_v23 = vadd.f32 %v8847_v22, %v8574_v15  ;;  %12149 = vmatmul.msk.f32.gmra.mxu0 %vm267_vm7, %v9309_v34  ;;  %v9002_v15 = vld [vmem:[#allocation2 + $0xcc] sm:$0xff] }
 0xa63   : > { %v8576_v62 = vpop.f32.mrf.mxu1  ;;  %v9157_v50 = vpop.f32.mrf.mxu3 }
 0xa64   : > { %v9257_v60 = vadd.f32 %v9157_v50, %v8947_v23  ;;  %v8577_v21 = vadd.f32 %v8576_v62, %v17045_v9  ;;  %v9312_v23 = vld [vmem:[#allocation2 + $0xcd] sm:$0xff]  ;;  %v12245_v50 = vld [vmem:[%s17619_s2 + $0xe0] sm:$0xff] }
 0xa65   : > { %10383 = vmatpush.msra.mxu3 %v12245_v50  ;;  %v8148_v50 = vld [vmem:[#allocation2 + $0xd2] sm:$0xff] }
 0xa66   : > { %v17134_v55 = vadd.f32 %v9467_v26, %v9257_v60  ;;  %12030 = vmatmul.msk.f32.gmra.mxu1 %vm267_vm7, %v8143_v4  ;;  %12070 = vmatmul.msk.f32.gmra.mxu2 %vm267_vm7, %v8998_v18  ;;  %v8145_v26 = vld [vmem:[#allocation2 + $0xba] sm:$0xff] }
 0xa67   : > { %v9470_v25 = vpop.f32.mrf.mxu0 }
 0xa68   : > { %12110 = vmatmul.msk.f32.gmra.mxu3 %vm267_vm7, %v9000_v29 }
 0xa69   : > { %v8850_v36 = vpop.f32.mrf.mxu2 }
 0xa6a   : > { %v8948_v32 = vadd.f32 %v8850_v36, %v8577_v21  ;;  %12150 = vmatmul.msk.f32.gmra.mxu0 %vm267_vm7, %v9310_v61  ;;  %v8146_v21 = vld [vmem:[#allocation2 + $0xc2] sm:$0xff]  ;;  %v9003_v36 = vld [vmem:[#allocation2 + $0xd4] sm:$0xff] }
 0xa6b   : > { %v8579_v7 = vpop.f32.mrf.mxu1  ;;  %v9160_v58 = vpop.f32.mrf.mxu3 }
 0xa6c   : > { %v9258_v5 = vadd.f32 %v9160_v58, %v8948_v32  ;;  %v8580_v9 = vadd.f32 %v8579_v7, %v17057_v45  ;;  %v12205_v45 = vld [vmem:[%s17619_s2 + $0xc0] sm:$0xff]  ;;  %v9313_v58 = vld [vmem:[#allocation2 + $0xd5] sm:$0xff] }
 0xa6d   : > { %10073 = vmatpush.msra.mxu2 %v12205_v45 }
 0xa6e   : > { %v17141_v20 = vadd.f32 %v9470_v25, %v9258_v5  ;;  %12031 = vmatmul.msk.f32.gmra.mxu1 %vm267_vm7, %v8144_v28  ;;  %12071 = vmatmul.msk.f32.gmra.mxu2 %vm267_vm7, %v8999_v6  ;;  %v12285_v5 = vld [vmem:[%s17619_s2 + $0x100] sm:$0xff] }
 0xa6f   : > { %v9473_v18 = vpop.f32.mrf.mxu0  ;;  %10693 = vmatpush.msra.mxu0 %v12285_v5  ;;  %v9006_v5 = vld [vmem:[#allocation2 + $0xec] sm:$0xff] }
 0xa70   : > { %12111 = vmatmul.msk.f32.gmra.mxu3 %vm267_vm7, %v9001_v46 }
 0xa71   : > { %v8853_v51 = vpop.f32.mrf.mxu2 }
 0xa72   : > { %v8949_v3 = vadd.f32 %v8853_v51, %v8580_v9  ;;  %12151 = vmatmul.msk.f32.gmra.mxu0 %vm267_vm7, %v9311_v47 }
 0xa73   : > { %v8582_v49 = vpop.f32.mrf.mxu1  ;;  %v9163_v38 = vpop.f32.mrf.mxu3 }
 0xa74   : > { %v9259_v34 = vadd.f32 %v9163_v38, %v8949_v3  ;;  %v8583_v62 = vadd.f32 %v8582_v49, %v17072_v0  ;;  %v8147_v3 = vld [vmem:[#allocation2 + $0xca] sm:$0xff] }
 0xa76   : > { %v17148_v22 = vadd.f32 %v9473_v18, %v9259_v34  ;;  %12032 = vmatmul.msk.f32.gmra.mxu1 %vm267_vm7, %v8145_v26  ;;  %12072 = vmatmul.msk.f32.gmra.mxu2 %vm267_vm7, %v9000_v29  ;;  %v12165_v29 = vld [vmem:[%s17619_s2 + $0xa0] sm:$0xff] }
 0xa77   : > { %v9476_v6 = vpop.f32.mrf.mxu0  ;;  %9763 = vmatpush.msra.mxu1 %v12165_v29  ;;  %v9314_v26 = vld [vmem:[#allocation2 + $0xdd] sm:$0xff] }
 0xa78   : > { %12112 = vmatmul.msk.f32.gmra.mxu3 %vm267_vm7, %v9002_v15 }
 0xa79   : > { %v8856_v4 = vpop.f32.mrf.mxu2 }
 0xa7a   : > { %v8950_v60 = vadd.f32 %v8856_v4, %v8583_v62  ;;  %12152 = vmatmul.msk.f32.gmra.mxu0 %vm267_vm7, %v9312_v23 }
 0xa7b   : > { %v8585_v25 = vpop.f32.mrf.mxu1  ;;  %v9166_v61 = vpop.f32.mrf.mxu3 }
 0xa7c   : > { %v9260_v0 = vadd.f32 %v9166_v61, %v8950_v60  ;;  %v8586_v28 = vadd.f32 %v8585_v25, %v17090_v52  ;;  %v9005_v60 = vld [vmem:[#allocation2 + $0xe4] sm:$0xff] }
 0xa7d   : > { %v9315_v25 = vld [vmem:[#allocation2 + $0xe5] sm:$0xff] }
 0xa7e   : > { %v17164_v32 = vadd.f32 %v9476_v6, %v9260_v0  ;;  %12033 = vmatmul.msk.f32.gmra.mxu1 %vm267_vm7, %v8146_v21  ;;  %12073 = vmatmul.msk.f32.gmra.mxu2 %vm267_vm7, %v9001_v46  ;;  %v9004_v46 = vld [vmem:[#allocation2 + $0xdc] sm:$0xff] }
 0xa7f   : > { %v9479_v7 = vpop.f32.mrf.mxu0 }
 0xa80   : > { %12113 = vmatmul.msk.f32.gmra.mxu3 %vm267_vm7, %v9003_v36 }
 0xa81   : > { %v8859_v18 = vpop.f32.mrf.mxu2 }
 0xa82   : > { %v8951_v47 = vadd.f32 %v8859_v18, %v8586_v28  ;;  %12153 = vmatmul.msk.f32.gmra.mxu0 %vm267_vm7, %v9313_v58  ;;  %v8149_v58 = vld [vmem:[#allocation2 + $0xda] sm:$0xff] }
 0xa83   : > { %v8588_v9 = vpop.f32.mrf.mxu1  ;;  %v9169_v51 = vpop.f32.mrf.mxu3 }
 0xa84   : > { %v9261_v49 = vadd.f32 %v9169_v51, %v8951_v47  ;;  %v8589_v34 = vadd.f32 %v8588_v9, %v16981_v17  ;;  %v9316_v47 = vld [vmem:[#allocation2 + $0xed] sm:$0xff] }
 0xa86   : > { %v17174_v38 = vadd.f32 %v9479_v7, %v9261_v49  ;;  %12034 = vmatmul.msk.f32.gmra.mxu1 %vm267_vm7, %v8147_v3  ;;  %12074 = vmatmul.msk.f32.gmra.mxu2 %vm267_vm7, %v9002_v15 }
 0xa87   : > { %v9482_v52 = vpop.f32.mrf.mxu0 }
 0xa88   : > { %12114 = vmatmul.msk.f32.gmra.mxu3 %vm267_vm7, %v9004_v46 }
 0xa89   : > { %v8862_v45 = vpop.f32.mrf.mxu2 }
 0xa8a   : > { %v8952_v6 = vadd.f32 %v8862_v45, %v8589_v34  ;;  %12154 = vmatmul.msk.f32.gmra.mxu0 %vm267_vm7, %v9314_v26  ;;  %v9007_v34 = vld [vmem:[#allocation2 + $0xf4] sm:$0xff] }
 0xa8b   : > { %v8591_v23 = vpop.f32.mrf.mxu1  ;;  %v9172_v62 = vpop.f32.mrf.mxu3 }
 0xa8c   : > { %v9262_v4 = vadd.f32 %v9172_v62, %v8952_v6  ;;  %v8592_v17 = vadd.f32 %v8591_v23, %v16991_v11  ;;  %v9317_v6 = vld [vmem:[#allocation2 + $0xf5] sm:$0xff] }
 0xa8e   : > { %v17181_v29 = vadd.f32 %v9482_v52, %v9262_v4  ;;  %12035 = vmatmul.msk.f32.gmra.mxu1 %vm267_vm7, %v8148_v50  ;;  %12075 = vmatmul.msk.f32.gmra.mxu2 %vm267_vm7, %v9003_v36  ;;  %v8150_v52 = vld [vmem:[#allocation2 + $0xe2] sm:$0xff] }
 0xa8f   : > { %v9485_v15 = vpop.f32.mrf.mxu0 }
 0xa90   : > { %12115 = vmatmul.msk.f32.gmra.mxu3 %vm267_vm7, %v9005_v60 }
 0xa91   : > { %v8865_v61 = vpop.f32.mrf.mxu2 }
 0xa92   : > { %v8953_v21 = vadd.f32 %v8865_v61, %v8592_v17  ;;  %12155 = vmatmul.msk.f32.gmra.mxu0 %vm267_vm7, %v9315_v25  ;;  %v9008_v17 = vld [vmem:[#allocation2 + $0xfc] sm:$0xff] }
 0xa93   : > { %v8594_v0 = vpop.f32.mrf.mxu1  ;;  %v9175_v7 = vpop.f32.mrf.mxu3 }
 0xa94   : > { %v9263_v28 = vadd.f32 %v9175_v7, %v8953_v21  ;;  %v8595_v11 = vadd.f32 %v8594_v0, %v17003_v35  ;;  %v9318_v21 = vld [vmem:[#allocation2 + $0xfd] sm:$0xff] }
 0xa96   : > { %v17188_v18 = vadd.f32 %v9485_v15, %v9263_v28  ;;  %12036 = vmatmul.msk.f32.gmra.mxu1 %vm267_vm7, %v8149_v58  ;;  %12076 = vmatmul.msk.f32.gmra.mxu2 %vm267_vm7, %v9004_v46  ;;  %v8151_v15 = vld [vmem:[#allocation2 + $0xea] sm:$0xff] }
 0xa97   : > { %v9488_v36 = vpop.f32.mrf.mxu0 }
 0xa98   : > { %12116 = vmatmul.msk.f32.gmra.mxu3 %vm267_vm7, %v9006_v5 }
 0xa99   : > { %v8868_v9 = vpop.f32.mrf.mxu2 }
 0xa9a   : > { %v8954_v51 = vadd.f32 %v8868_v9, %v8595_v11  ;;  %12156 = vmatmul.msk.f32.gmra.mxu0 %vm267_vm7, %v9316_v47  ;;  %v9009_v11 = vld [vmem:[#allocation2 + $0x104] sm:$0xff] }
 0xa9b   : > { %v8597_v3 = vpop.f32.mrf.mxu1  ;;  %v9178_v49 = vpop.f32.mrf.mxu3 }
 0xa9c   : > { %v9264_v26 = vadd.f32 %v9178_v49, %v8954_v51  ;;  %v8598_v35 = vadd.f32 %v8597_v3, %v17015_v41  ;;  %v9319_v51 = vld [vmem:[#allocation2 + $0x105] sm:$0xff] }
 0xa9e   : > { %v17195_v45 = vadd.f32 %v9488_v36, %v9264_v26  ;;  %12037 = vmatmul.msk.f32.gmra.mxu1 %vm267_vm7, %v8150_v52  ;;  %12077 = vmatmul.msk.f32.gmra.mxu2 %vm267_vm7, %v9005_v60  ;;  %v8152_v36 = vld [vmem:[#allocation2 + $0xf2] sm:$0xff] }
 0xa9f   : > { %v9491_v46 = vpop.f32.mrf.mxu0 }
 0xaa0   : > { %12117 = vmatmul.msk.f32.gmra.mxu3 %vm267_vm7, %v9007_v34 }
 0xaa1   : > { %v8871_v23 = vpop.f32.mrf.mxu2 }
 0xaa2   : > { %v8955_v62 = vadd.f32 %v8871_v23, %v8598_v35  ;;  %12157 = vmatmul.msk.f32.gmra.mxu0 %vm267_vm7, %v9317_v6  ;;  %v9010_v35 = vld [vmem:[#allocation2 + $0x10c] sm:$0xff] }
 0xaa3   : > { %v8600_v50 = vpop.f32.mrf.mxu1  ;;  %v9181_v4 = vpop.f32.mrf.mxu3 }
 0xaa4   : > { %v9265_v25 = vadd.f32 %v9181_v4, %v8955_v62  ;;  %v8601_v41 = vadd.f32 %v8600_v50, %v17027_v59  ;;  %v9320_v62 = vld [vmem:[#allocation2 + $0x10d] sm:$0xff] }
 0xaa6   : > { %v17202_v61 = vadd.f32 %v9491_v46, %v9265_v25  ;;  %12038 = vmatmul.msk.f32.gmra.mxu1 %vm267_vm7, %v8151_v15  ;;  %12078 = vmatmul.msk.f32.gmra.mxu2 %vm267_vm7, %v9006_v5  ;;  %v8153_v46 = vld [vmem:[#allocation2 + $0xfa] sm:$0xff] }
 0xaa7   : > { %v9494_v60 = vpop.f32.mrf.mxu0 }
 0xaa8   : > { %12118 = vmatmul.msk.f32.gmra.mxu3 %vm267_vm7, %v9008_v17 }
 0xaa9   : > { %v8874_v0 = vpop.f32.mrf.mxu2 }
 0xaaa   : > { %v8956_v7 = vadd.f32 %v8874_v0, %v8601_v41  ;;  %12158 = vmatmul.msk.f32.gmra.mxu0 %vm267_vm7, %v9318_v21  ;;  %v9011_v41 = vld [vmem:[#allocation2 + $0x114] sm:$0xff] }
 0xaab   : > { %v8603_v58 = vpop.f32.mrf.mxu1  ;;  %v9184_v28 = vpop.f32.mrf.mxu3 }
 0xaac   : > { %v9266_v47 = vadd.f32 %v9184_v28, %v8956_v7  ;;  %v8604_v59 = vadd.f32 %v8603_v58, %v17039_v10  ;;  %v9321_v7 = vld [vmem:[#allocation2 + $0x115] sm:$0xff] }
 0xaae   : > { %v17209_v9 = vadd.f32 %v9494_v60, %v9266_v47  ;;  %12039 = vmatmul.msk.f32.gmra.mxu1 %vm267_vm7, %v8152_v36  ;;  %12079 = vmatmul.msk.f32.gmra.mxu2 %vm267_vm7, %v9007_v34  ;;  %v8154_v60 = vld [vmem:[#allocation2 + $0x102] sm:$0xff] }
 0xaaf   : > { %v9497_v5 = vpop.f32.mrf.mxu0 }
 0xab0   : > { %12119 = vmatmul.msk.f32.gmra.mxu3 %vm267_vm7, %v9009_v11 }
 0xab1   : > { %v8877_v3 = vpop.f32.mrf.mxu2 }
 0xab2   : > { %v8957_v49 = vadd.f32 %v8877_v3, %v8604_v59  ;;  %12159 = vmatmul.msk.f32.gmra.mxu0 %vm267_vm7, %v9319_v51  ;;  %v9012_v59 = vld [vmem:[#allocation2 + $0x11c] sm:$0xff] }
 0xab3   : > { %v8606_v52 = vpop.f32.mrf.mxu1  ;;  %v9187_v26 = vpop.f32.mrf.mxu3 }
 0xab4   : > { %v9267_v6 = vadd.f32 %v9187_v26, %v8957_v49  ;;  %v8607_v10 = vadd.f32 %v8606_v52, %v17051_v27  ;;  %v9322_v49 = vld [vmem:[#allocation2 + $0x11d] sm:$0xff] }
 0xab6   : > { %v17216_v23 = vadd.f32 %v9497_v5, %v9267_v6  ;;  %12040 = vmatmul.msk.f32.gmra.mxu1 %vm267_vm7, %v8153_v46  ;;  %12080 = vmatmul.msk.f32.gmra.mxu2 %vm267_vm7, %v9008_v17  ;;  %v8155_v5 = vld [vmem:[#allocation2 + $0x10a] sm:$0xff] }
 0xab7   : > { %v9500_v34 = vpop.f32.mrf.mxu0 }
 0xab8   : > { %12120 = vmatmul.msk.f32.gmra.mxu3 %vm267_vm7, %v9010_v35 }
 0xab9   : > { %v8880_v50 = vpop.f32.mrf.mxu2 }
 0xaba   : > { %v8958_v4 = vadd.f32 %v8880_v50, %v8607_v10  ;;  %12160 = vmatmul.msk.f32.gmra.mxu0 %vm267_vm7, %v9320_v62  ;;  %v9013_v10 = vld [vmem:[#allocation2 + $0x124] sm:$0xff] }
 0xabb   : > { %v8609_v15 = vpop.f32.mrf.mxu1  ;;  %v9190_v25 = vpop.f32.mrf.mxu3 }
 0xabc   : > { %v9268_v21 = vadd.f32 %v9190_v25, %v8958_v4  ;;  %v8610_v27 = vadd.f32 %v8609_v15, %v17063_v14  ;;  %v9323_v4 = vld [vmem:[#allocation2 + $0x125] sm:$0xff] }
 0xabe   : > { %v17223_v0 = vadd.f32 %v9500_v34, %v9268_v21  ;;  %12041 = vmatmul.msk.f32.gmra.mxu1 %vm267_vm7, %v8154_v60  ;;  %12081 = vmatmul.msk.f32.gmra.mxu2 %vm267_vm7, %v9009_v11  ;;  %v8156_v34 = vld [vmem:[#allocation2 + $0x112] sm:$0xff] }
 0xabf   : > { %v9503_v17 = vpop.f32.mrf.mxu0 }
 0xac0   : > { %12121 = vmatmul.msk.f32.gmra.mxu3 %vm267_vm7, %v9011_v41 }
 0xac1   : > { %v8883_v58 = vpop.f32.mrf.mxu2 }
 0xac2   : > { %v8959_v28 = vadd.f32 %v8883_v58, %v8610_v27  ;;  %12161 = vmatmul.msk.f32.gmra.mxu0 %vm267_vm7, %v9321_v7  ;;  %v8704_v7 = vld [vmem:[#allocation2 + $0x11c] sm:$0x3f]  ;;  %v9014_v58 = vld [vmem:[#allocation2 + $0x12c] sm:$0x3f] }
 0xac3   : > { %v8612_v36 = vpop.f32.mrf.mxu1  ;;  %v9193_v47 = vpop.f32.mrf.mxu3 }
 0xac4   : > { %v9269_v51 = vadd.f32 %v9193_v47, %v8959_v28  ;;  %v8613_v14 = vadd.f32 %v8612_v36, %v17084_v12 }
 0xac6   : > { %v17230_v3 = vadd.f32 %v9503_v17, %v9269_v51  ;;  %12042 = vmatmul.msk.f32.gmra.mxu1 %vm267_vm7, %v8155_v5  ;;  %12082 = vmatmul.msk.f32.gmra.mxu2 %vm267_vm7, %v9010_v35  ;;  %v8157_v17 = vld [vmem:[#allocation2 + $0x11a] sm:$0x3f] }
 0xac7   : > { %v9506_v11 = vpop.f32.mrf.mxu0 }
 0xac8   : > { %12122 = vmatmul.msk.f32.gmra.mxu3 %vm267_vm7, %v9012_v59 }
 0xac9   : > { %v8886_v52 = vpop.f32.mrf.mxu2 }
 0xaca   : > { %v8960_v26 = vadd.f32 %v8886_v52, %v8613_v14  ;;  %12162 = vmatmul.msk.f32.gmra.mxu0 %vm267_vm7, %v9322_v49  ;;  %v9909_v49 = vld [vmem:[#allocation2 + $0x26] sm:$0xff] }
 0xacb   : > { %v8615_v46 = vpop.f32.mrf.mxu1  ;;  %v9196_v6 = vpop.f32.mrf.mxu3  ;;  %v10219_v52 = vld [vmem:[#allocation2 + $0x27] sm:$0xff] }
 0xacc   : > { %v9270_v62 = vadd.f32 %v9196_v6, %v8960_v26  ;;  %v8616_v12 = vadd.f32 %v8615_v46, %v16988_v40  ;;  %v9324_v40 = vld [vmem:[#allocation2 + $0x12d] sm:$0x3f] }
 0xace   : > { %v17237_v50 = vadd.f32 %v9506_v11, %v9270_v62  ;;  %12043 = vmatmul.msk.f32.gmra.mxu1 %vm267_vm7, %v8156_v34  ;;  %12083 = vmatmul.msk.f32.gmra.mxu2 %vm267_vm7, %v9011_v41  ;;  %v9599_v11 = vld [vmem:[#allocation2 + $0x16] sm:$0xff] }
 0xacf   : > { %v9509_v35 = vpop.f32.mrf.mxu0 }
 0xad0   : > { %12123 = vmatmul.msk.f32.gmra.mxu3 %vm267_vm7, %v9013_v10 }
 0xad1   : > { %v8889_v15 = vpop.f32.mrf.mxu2 }
 0xad2   : > { %v8961_v25 = vadd.f32 %v8889_v15, %v8616_v12  ;;  %12163 = vmatmul.msk.f32.gmra.mxu0 %vm267_vm7, %v9323_v4  ;;  %v9600_v4 = vld [vmem:[#allocation2 + $0x1e] sm:$0xff]  ;;  %v9910_v12 = vld [vmem:[#allocation2 + $0x2e] sm:$0xff] }
 0xad3   : > { %v8618_v60 = vpop.f32.mrf.mxu1  ;;  %v9199_v21 = vpop.f32.mrf.mxu3 }
 0xad4   : > { %v9271_v27 = vadd.f32 %v9199_v21, %v8961_v25  ;;  %v8619_v36 = vadd.f32 %v8618_v60, %v17000_v30  ;;  %v10529_v30 = vld [vmem:[#allocation2 + $0x28] sm:$0xff] }
 0xad5   : > { %v10220_v25 = vld [vmem:[#allocation2 + $0x2f] sm:$0xff] }
 0xad6   : > { %v17244_v28 = vadd.f32 %v9509_v35, %v9271_v27  ;;  %12044 = vmatmul.msk.f32.gmra.mxu1 %vm267_vm7, %v8157_v17  ;;  %12084 = vmatmul.msk.f32.gmra.mxu2 %vm267_vm7, %v8704_v7 }
 0xad7   : > { %v9512_v41 = vpop.f32.mrf.mxu0 }
 0xad8   : > { %12124 = vmatmul.msk.f32.gmra.mxu3 %vm267_vm7, %v9014_v58 }
 0xad9   : > { %v8892_v47 = vpop.f32.mrf.mxu2 }
 0xada   : > { %v8962_v5 = vadd.f32 %v8892_v47, %v8619_v36  ;;  %12164 = vmatmul.msk.f32.gmra.mxu0 %vm267_vm7, %v9324_v40  ;;  %v9911_v40 = vld [vmem:[#allocation2 + $0x36] sm:$0xff] }
 0xadb   : > { %v8621_v51 = vpop.f32.mrf.mxu1  ;;  %v9202_v59 = vpop.f32.mrf.mxu3  ;;  %v10221_v47 = vld [vmem:[#allocation2 + $0x37] sm:$0xff] }
 0xadc   : > { %v9272_v14 = vadd.f32 %v9202_v59, %v8962_v5  ;;  %v8622_v6 = vadd.f32 %v8621_v51, %v17012_v43  ;;  %v10530_v43 = vld [vmem:[#allocation2 + $0x30] sm:$0xff]  ;;  %v10531_v59 = vld [vmem:[#allocation2 + $0x38] sm:$0xff] }
 0xade   : > { %v17251_v26 = vadd.f32 %v9512_v41, %v9272_v14  ;;  %12169 = vmatmul.msk.f32.vlgmr.msra.gmra.mxu1 %vm267_vm7, %v9599_v11  ;;  %12209 = vmatmul.msk.f32.vlgmr.msra.gmra.mxu2 %vm267_vm7, %v9909_v49 }
 0xadf   : > { %v9515_v46 = vpop.f32.mrf.mxu0 }
 0xae0   : > { %12249 = vmatmul.msk.f32.vlgmr.msra.gmra.mxu3 %vm267_vm7, %v10219_v52 }
 0xae1   : > { %v8895_v34 = vpop.f32.mrf.mxu2 }
 0xae2   : > { %v8963_v62 = vadd.f32 %v8895_v34, %v8622_v6  ;;  %12289 = vmatmul.msk.f32.vlgmr.msra.gmra.mxu0 %vm267_vm7, %v10529_v30  ;;  %v9912_v30 = vld [vmem:[#allocation2 + $0x3e] sm:$0xff] }
 0xae3   : > { %v8624_v10 = vpop.f32.mrf.mxu1  ;;  %v9205_v35 = vpop.f32.mrf.mxu3  ;;  %v10222_v34 = vld [vmem:[#allocation2 + $0x3f] sm:$0xff] }
 0xae4   : > { %v9273_v15 = vadd.f32 %v9205_v35, %v8963_v62  ;;  %v8625_v17 = vadd.f32 %v8624_v10, %v17024_v44  ;;  %v10532_v10 = vld [vmem:[#allocation2 + $0x40] sm:$0xff] }
 0xae6   : > { %v17258_v60 = vadd.f32 %v9515_v46, %v9273_v15  ;;  %12170 = vmatmul.msk.f32.gmra.mxu1 %vm267_vm7, %v9600_v4  ;;  %12210 = vmatmul.msk.f32.gmra.mxu2 %vm267_vm7, %v9910_v12 }
 0xae7   : > { %v9518_v21 = vpop.f32.mrf.mxu0 }
 0xae8   : > { %12250 = vmatmul.msk.f32.gmra.mxu3 %vm267_vm7, %v10220_v25 }
 0xae9   : > { %v8898_v7 = vpop.f32.mrf.mxu2 }
 0xaea   : > { %v8964_v27 = vadd.f32 %v8898_v7, %v8625_v17  ;;  %12290 = vmatmul.msk.f32.gmra.mxu0 %vm267_vm7, %v10530_v43  ;;  %v10223_v17 = vld [vmem:[#allocation2 + $0x47] sm:$0xff] }
 0xaeb   : > { %v8627_v58 = vpop.f32.mrf.mxu1  ;;  %v9208_v41 = vpop.f32.mrf.mxu3 }
 0xaec   : > { %v9274_v36 = vadd.f32 %v9208_v41, %v8964_v27  ;;  %v8628_v44 = vadd.f32 %v8627_v58, %v17036_v2  ;;  %v10533_v27 = vld [vmem:[#allocation2 + $0x48] sm:$0xff] }
 0xaee   : > { %v17265_v5 = vadd.f32 %v9518_v21, %v9274_v36  ;;  %12171 = vmatmul.msk.f32.gmra.mxu1 %vm267_vm7, %v9909_v49  ;;  %12211 = vmatmul.msk.f32.gmra.mxu2 %vm267_vm7, %v9911_v40  ;;  %v9913_v21 = vld [vmem:[#allocation2 + $0x46] sm:$0xff] }
 0xaef   : > { %v9521_v51 = vpop.f32.mrf.mxu0 }
 0xaf0   : > { %12251 = vmatmul.msk.f32.gmra.mxu3 %vm267_vm7, %v10221_v47 }
 0xaf1   : > { %v8901_v11 = vpop.f32.mrf.mxu2 }
 0xaf2   : > { %v8965_v14 = vadd.f32 %v8901_v11, %v8628_v44  ;;  %12291 = vmatmul.msk.f32.gmra.mxu0 %vm267_vm7, %v10531_v59  ;;  %v10224_v44 = vld [vmem:[#allocation2 + $0x4f] sm:$0xff] }
 0xaf3   : > { %v8630_v52 = vpop.f32.mrf.mxu1  ;;  %v9211_v46 = vpop.f32.mrf.mxu3 }
 0xaf4   : > { %v9275_v6 = vadd.f32 %v9211_v46, %v8965_v14  ;;  %v8631_v2 = vadd.f32 %v8630_v52, %v17048_v56  ;;  %v10534_v14 = vld [vmem:[#allocation2 + $0x50] sm:$0xff] }
 0xaf6   : > { %v17272_v62 = vadd.f32 %v9521_v51, %v9275_v6  ;;  %12172 = vmatmul.msk.f32.gmra.mxu1 %vm267_vm7, %v9910_v12  ;;  %12212 = vmatmul.msk.f32.gmra.mxu2 %vm267_vm7, %v9912_v30  ;;  %v9914_v51 = vld [vmem:[#allocation2 + $0x4e] sm:$0xff] }
 0xaf7   : > { %v9524_v49 = vpop.f32.mrf.mxu0 }
 0xaf8   : > { %12252 = vmatmul.msk.f32.gmra.mxu3 %vm267_vm7, %v10222_v34 }
 0xaf9   : > { %v8904_v35 = vpop.f32.mrf.mxu2 }
 0xafa   : > { %v8966_v4 = vadd.f32 %v8904_v35, %v8631_v2  ;;  %12292 = vmatmul.msk.f32.gmra.mxu0 %vm267_vm7, %v10532_v10  ;;  %v10225_v2 = vld [vmem:[#allocation2 + $0x57] sm:$0xff] }
 0xafb   : > { %v8633_v15 = vpop.f32.mrf.mxu1  ;;  %v9214_v25 = vpop.f32.mrf.mxu3 }
 0xafc   : > { %v9276_v43 = vadd.f32 %v9214_v25, %v8966_v4  ;;  %v8634_v56 = vadd.f32 %v8633_v15, %v17060_v1  ;;  %v10535_v4 = vld [vmem:[#allocation2 + $0x58] sm:$0xff] }
 0xafe   : > { %v17279_v7 = vadd.f32 %v9524_v49, %v9276_v43  ;;  %12173 = vmatmul.msk.f32.gmra.mxu1 %vm267_vm7, %v9911_v40  ;;  %12213 = vmatmul.msk.f32.gmra.mxu2 %vm267_vm7, %v9913_v21  ;;  %v9915_v49 = vld [vmem:[#allocation2 + $0x56] sm:$0xff] }
 0xaff   : > { %v9527_v12 = vpop.f32.mrf.mxu0 }
 0xb00   : > { %12253 = vmatmul.msk.f32.gmra.mxu3 %vm267_vm7, %v10223_v17 }
 0xb01   : > { %v8907_v58 = vpop.f32.mrf.mxu2 }
 0xb02   : > { %v8967_v41 = vadd.f32 %v8907_v58, %v8634_v56  ;;  %12293 = vmatmul.msk.f32.gmra.mxu0 %vm267_vm7, %v10533_v27  ;;  %v10226_v56 = vld [vmem:[#allocation2 + $0x5f] sm:$0xff] }
 0xb03   : > { %v8636_v36 = vpop.f32.mrf.mxu1  ;;  %v9217_v47 = vpop.f32.mrf.mxu3 }
 0xb04   : > { %v9277_v59 = vadd.f32 %v9217_v47, %v8967_v41  ;;  %v8637_v1 = vadd.f32 %v8636_v36, %v17078_v13  ;;  %v10536_v41 = vld [vmem:[#allocation2 + $0x60] sm:$0xff] }
 0xb06   : > { %v17286_v11 = vadd.f32 %v9527_v12, %v9277_v59  ;;  %12174 = vmatmul.msk.f32.gmra.mxu1 %vm267_vm7, %v9912_v30  ;;  %12214 = vmatmul.msk.f32.gmra.mxu2 %vm267_vm7, %v9914_v51  ;;  %v9916_v12 = vld [vmem:[#allocation2 + $0x5e] sm:$0xff] }
 0xb07   : > { %v9530_v40 = vpop.f32.mrf.mxu0 }
 0xb08   : > { %12254 = vmatmul.msk.f32.gmra.mxu3 %vm267_vm7, %v10224_v44 }
 0xb09   : > { %v8910_v52 = vpop.f32.mrf.mxu2 }
 0xb0a   : > { %v8968_v46 = vadd.f32 %v8910_v52, %v8637_v1  ;;  %12294 = vmatmul.msk.f32.gmra.mxu0 %vm267_vm7, %v10534_v14  ;;  %v10227_v1 = vld [vmem:[#allocation2 + $0x67] sm:$0xff] }
 0xb0b   : > { %v8639_v6 = vpop.f32.mrf.mxu1  ;;  %v9220_v34 = vpop.f32.mrf.mxu3 }
 0xb0c   : > { %v9278_v10 = vadd.f32 %v9220_v34, %v8968_v46  ;;  %v8640_v13 = vadd.f32 %v8639_v6, %v17096_v8  ;;  %v10537_v46 = vld [vmem:[#allocation2 + $0x68] sm:$0xff] }
 0xb0e   : > { %v17293_v35 = vadd.f32 %v9530_v40, %v9278_v10  ;;  %12175 = vmatmul.msk.f32.gmra.mxu1 %vm267_vm7, %v9913_v21  ;;  %12215 = vmatmul.msk.f32.gmra.mxu2 %vm267_vm7, %v9915_v49  ;;  %v9917_v40 = vld [vmem:[#allocation2 + $0x66] sm:$0xff] }
 0xb0f   : > { %v9533_v30 = vpop.f32.mrf.mxu0 }
 0xb10   : > { %12255 = vmatmul.msk.f32.gmra.mxu3 %vm267_vm7, %v10225_v2 }
 0xb11   : > { %v8913_v15 = vpop.f32.mrf.mxu2 }
 0xb12   : > { %v8969_v25 = vadd.f32 %v8913_v15, %v8640_v13  ;;  %12295 = vmatmul.msk.f32.gmra.mxu0 %vm267_vm7, %v10535_v4  ;;  %v10228_v13 = vld [vmem:[#allocation2 + $0x6f] sm:$0xff] }
 0xb13   : > { %v8642_v43 = vpop.f32.mrf.mxu1  ;;  %v9223_v17 = vpop.f32.mrf.mxu3 }
 0xb14   : > { %v9279_v27 = vadd.f32 %v9223_v17, %v8969_v25  ;;  %v8643_v8 = vadd.f32 %v8642_v43, %v16993_v54  ;;  %v10538_v25 = vld [vmem:[#allocation2 + $0x70] sm:$0xff] }
 0xb16   : > { %v17300_v58 = vadd.f32 %v9533_v30, %v9279_v27  ;;  %12176 = vmatmul.msk.f32.gmra.mxu1 %vm267_vm7, %v9914_v51  ;;  %12216 = vmatmul.msk.f32.gmra.mxu2 %vm267_vm7, %v9916_v12  ;;  %v9918_v30 = vld [vmem:[#allocation2 + $0x6e] sm:$0xff] }
 0xb17   : > { %v9536_v21 = vpop.f32.mrf.mxu0 }
 0xb18   : > { %12256 = vmatmul.msk.f32.gmra.mxu3 %vm267_vm7, %v10226_v56 }
 0xb19   : > { %v8916_v36 = vpop.f32.mrf.mxu2 }
 0xb1a   : > { %v8970_v47 = vadd.f32 %v8916_v36, %v8643_v8  ;;  %12296 = vmatmul.msk.f32.gmra.mxu0 %vm267_vm7, %v10536_v41  ;;  %v10229_v8 = vld [vmem:[#allocation2 + $0x77] sm:$0xff] }
 0xb1b   : > { %v8645_v59 = vpop.f32.mrf.mxu1  ;;  %v9226_v44 = vpop.f32.mrf.mxu3 }
 0xb1c   : > { %v9280_v14 = vadd.f32 %v9226_v44, %v8970_v47  ;;  %v8646_v54 = vadd.f32 %v8645_v59, %v17005_v39  ;;  %v10539_v47 = vld [vmem:[#allocation2 + $0x78] sm:$0xff] }
 0xb1e   : > { %v17307_v52 = vadd.f32 %v9536_v21, %v9280_v14  ;;  %12177 = vmatmul.msk.f32.gmra.mxu1 %vm267_vm7, %v9915_v49  ;;  %12217 = vmatmul.msk.f32.gmra.mxu2 %vm267_vm7, %v9917_v40  ;;  %v9919_v21 = vld [vmem:[#allocation2 + $0x76] sm:$0xff] }
 0xb1f   : > { %v9539_v51 = vpop.f32.mrf.mxu0 }
 0xb20   : > { %12257 = vmatmul.msk.f32.gmra.mxu3 %vm267_vm7, %v10227_v1 }
 0xb21   : > { %v8919_v6 = vpop.f32.mrf.mxu2 }
 0xb22   : > { %v8971_v34 = vadd.f32 %v8919_v6, %v8646_v54  ;;  %12297 = vmatmul.msk.f32.gmra.mxu0 %vm267_vm7, %v10537_v46  ;;  %v10230_v54 = vld [vmem:[#allocation2 + $0x7f] sm:$0xff] }
 0xb23   : > { %v8648_v10 = vpop.f32.mrf.mxu1  ;;  %v9229_v2 = vpop.f32.mrf.mxu3 }
 0xb24   : > { %v9281_v4 = vadd.f32 %v9229_v2, %v8971_v34  ;;  %v8649_v39 = vadd.f32 %v8648_v10, %v17017_v19  ;;  %v10543_v34 = vld [vmem:[#allocation2 + $0x98] sm:$0xff] }
 0xb25   : > { %10921 = vst.msk [vmem:[%s12493_s20 + $0x70] sm:$0xff] %vm267_vm7, %v10543_v34 }
 0xb26   : > { %v17314_v15 = vadd.f32 %v9539_v51, %v9281_v4  ;;  %12178 = vmatmul.msk.f32.gmra.mxu1 %vm267_vm7, %v9916_v12  ;;  %12218 = vmatmul.msk.f32.gmra.mxu2 %vm267_vm7, %v9918_v30  ;;  %v9920_v51 = vld [vmem:[#allocation2 + $0x7e] sm:$0xff] }
 0xb27   : > { %v9542_v49 = vpop.f32.mrf.mxu0 }
 0xb28   : > { %12258 = vmatmul.msk.f32.gmra.mxu3 %vm267_vm7, %v10228_v13 }
 0xb29   : > { %v8922_v43 = vpop.f32.mrf.mxu2 }
 0xb2a   : > { %v8972_v17 = vadd.f32 %v8922_v43, %v8649_v39  ;;  %12298 = vmatmul.msk.f32.gmra.mxu0 %vm267_vm7, %v10538_v25  ;;  %v9921_v25 = vld [vmem:[#allocation2 + $0x86] sm:$0xff] }
 0xb2b   : > { %v8651_v27 = vpop.f32.mrf.mxu1  ;;  %v9232_v56 = vpop.f32.mrf.mxu3  ;;  %v10231_v39 = vld [vmem:[#allocation2 + $0x87] sm:$0xff] }
 0xb2c   : > { %v9282_v41 = vadd.f32 %v9232_v56, %v8972_v17  ;;  %v8652_v19 = vadd.f32 %v8651_v27, %v17029_v31  ;;  %v10540_v31 = vld [vmem:[#allocation2 + $0x80] sm:$0xff]  ;;  %v10541_v17 = vld [vmem:[#allocation2 + $0x88] sm:$0xff] }
 0xb2d   : > { %v10544_v27 = vld [vmem:[#allocation2 + $0xa0] sm:$0xff] }
 0xb2e   : > { %v17321_v36 = vadd.f32 %v9542_v49, %v9282_v41  ;;  %12179 = vmatmul.msk.f32.gmra.mxu1 %vm267_vm7, %v9917_v40  ;;  %12219 = vmatmul.msk.f32.gmra.mxu2 %vm267_vm7, %v9919_v21  ;;  %10922 = vst.msk [vmem:[%s12493_s20 + $0x78] sm:$0xff] %vm267_vm7, %v10544_v27 }
 0xb2f   : > { %v9545_v12 = vpop.f32.mrf.mxu0 }
 0xb30   : > { %12259 = vmatmul.msk.f32.gmra.mxu3 %vm267_vm7, %v10229_v8 }
 0xb31   : > { %v8925_v59 = vpop.f32.mrf.mxu2 }
 0xb32   : > { %v8973_v44 = vadd.f32 %v8925_v59, %v8652_v19  ;;  %12299 = vmatmul.msk.f32.gmra.mxu0 %vm267_vm7, %v10539_v47  ;;  %v9922_v19 = vld [vmem:[#allocation2 + $0x8e] sm:$0xff] }
 0xb33   : > { %v8654_v14 = vpop.f32.mrf.mxu1  ;;  %v9235_v1 = vpop.f32.mrf.mxu3  ;;  %v10232_v59 = vld [vmem:[#allocation2 + $0x8f] sm:$0xff] }
 0xb34   : > { %v9283_v46 = vadd.f32 %v9235_v1, %v8973_v44  ;;  %v8655_v10 = vadd.f32 %v8654_v14, %v17041_v16  ;;  %v10542_v14 = vld [vmem:[#allocation2 + $0x90] sm:$0xff]  ;;  %v10545_v1 = vld [vmem:[#allocation2 + $0xa8] sm:$0xff] }
 0xb35   : > { %10923 = vst.msk [vmem:[%s12493_s20 + $0x80] sm:$0xff] %vm267_vm7, %v10545_v1 }
 0xb36   : > { %v17328_v6 = vadd.f32 %v9545_v12, %v9283_v46  ;;  %12180 = vmatmul.msk.f32.gmra.mxu1 %vm267_vm7, %v9918_v30  ;;  %12220 = vmatmul.msk.f32.gmra.mxu2 %vm267_vm7, %v9920_v51 }
 0xb37   : > { %v9548_v40 = vpop.f32.mrf.mxu0 }
 0xb38   : > { %12260 = vmatmul.msk.f32.gmra.mxu3 %vm267_vm7, %v10230_v54 }
 0xb39   : > { %v8928_v2 = vpop.f32.mrf.mxu2 }
 0xb3a   : > { %v8974_v4 = vadd.f32 %v8928_v2, %v8655_v10  ;;  %12300 = vmatmul.msk.f32.gmra.mxu0 %vm267_vm7, %v10540_v31  ;;  %v9923_v2 = vld [vmem:[#allocation2 + $0x96] sm:$0xff] }
 0xb3b   : > { %v8657_v13 = vpop.f32.mrf.mxu1  ;;  %v9238_v49 = vpop.f32.mrf.mxu3 }
 0xb3c   : > { %v9284_v30 = vadd.f32 %v9238_v49, %v8974_v4  ;;  %v8658_v56 = vadd.f32 %v8657_v13, %v17053_v37  ;;  %v10233_v4 = vld [vmem:[#allocation2 + $0x97] sm:$0xff] }
 0xb3d   : > { %v10546_v49 = vld [vmem:[#allocation2 + $0xb0] sm:$0xff] }
 0xb3e   : > { %v17337_v43 = vadd.f32 %v9548_v40, %v9284_v30  ;;  %12181 = vmatmul.msk.f32.gmra.mxu1 %vm267_vm7, %v9919_v21  ;;  %12221 = vmatmul.msk.f32.gmra.mxu2 %vm267_vm7, %v9921_v25  ;;  %10924 = vst.msk [vmem:[%s12493_s20 + $0x88] sm:$0xff] %vm267_vm7, %v10546_v49 }
 0xb3f   : > { %v9551_v16 = vpop.f32.mrf.mxu0 }
 0xb40   : > { %12261 = vmatmul.msk.f32.gmra.mxu3 %vm267_vm7, %v10231_v39 }
 0xb41   : > { %v8931_v41 = vpop.f32.mrf.mxu2 }
 0xb42   : > { %v8975_v8 = vadd.f32 %v8931_v41, %v8658_v56  ;;  %12301 = vmatmul.msk.f32.gmra.mxu0 %vm267_vm7, %v10541_v17  ;;  %v9924_v41 = vld [vmem:[#allocation2 + $0x9e] sm:$0xff] }
 0xb43   : > { %v8660_v12 = vpop.f32.mrf.mxu1  ;;  %v9241_v47 = vpop.f32.mrf.mxu3 }
 0xb44   : > { %v9285_v21 = vadd.f32 %v9241_v47, %v8975_v8  ;;  %v8661_v46 = vadd.f32 %v8660_v12, %v17065_v48  ;;  %v10547_v47 = vld [vmem:[#allocation2 + $0xb8] sm:$0xff] }
 0xb45   : > { %10925 = vst.msk [vmem:[%s12493_s20 + $0x90] sm:$0xff] %vm267_vm7, %v10547_v47 }
 0xb46   : > { %v17346_v44 = vadd.f32 %v9551_v16, %v9285_v21  ;;  %12182 = vmatmul.msk.f32.gmra.mxu1 %vm267_vm7, %v9920_v51  ;;  %12222 = vmatmul.msk.f32.gmra.mxu2 %vm267_vm7, %v9922_v19 }
 0xb47   : > { %v9554_v37 = vpop.f32.mrf.mxu0 }
 0xb48   : > { %12262 = vmatmul.msk.f32.gmra.mxu3 %vm267_vm7, %v10232_v59 }
 0xb49   : > { %v8934_v54 = vpop.f32.mrf.mxu2 }
 0xb4a   : > { %v8976_v40 = vadd.f32 %v8934_v54, %v8661_v46  ;;  %12302 = vmatmul.msk.f32.gmra.mxu0 %vm267_vm7, %v10542_v14  ;;  %v9925_v46 = vld [vmem:[#allocation2 + $0xa6] sm:$0xff] }
 0xb4b   : > { %v8663_v31 = vpop.f32.mrf.mxu1  ;;  %v9244_v10 = vpop.f32.mrf.mxu3 }
 0xb4c   : > { %v9286_v51 = vadd.f32 %v9244_v10, %v8976_v40  ;;  %v8664_v30 = vadd.f32 %v8663_v31, %v17086_v33  ;;  %v10548_v31 = vld [vmem:[#allocation2 + $0xc0] sm:$0xff] }
 0xb4d   : > { %10926 = vst.msk [vmem:[%s12493_s20 + $0x98] sm:$0xff] %vm267_vm7, %v10548_v31 }
 0xb4e   : > { %v17355_v13 = vadd.f32 %v9554_v37, %v9286_v51  ;;  %12183 = vmatmul.msk.f32.gmra.mxu1 %vm267_vm7, %v9921_v25  ;;  %12223 = vmatmul.msk.f32.gmra.mxu2 %vm267_vm7, %v9923_v2  ;;  %v10234_v25 = vld [vmem:[#allocation2 + $0x9f] sm:$0xff] }
 0xb4f   : > { %v9557_v48 = vpop.f32.mrf.mxu0 }
 0xb50   : > { %12263 = vmatmul.msk.f32.gmra.mxu3 %vm267_vm7, %v10233_v4 }
 0xb51   : > { %v8937_v39 = vpop.f32.mrf.mxu2 }
 0xb52   : > { %v8977_v16 = vadd.f32 %v8937_v39, %v8664_v30  ;;  %12303 = vmatmul.msk.f32.gmra.mxu0 %vm267_vm7, %v10543_v34  ;;  %v9926_v30 = vld [vmem:[#allocation2 + $0xae] sm:$0xff] }
 0xb53   : > { %v8666_v17 = vpop.f32.mrf.mxu1  ;;  %v9247_v56 = vpop.f32.mrf.mxu3  ;;  %v10236_v39 = vld [vmem:[#allocation2 + $0xaf] sm:$0xff] }
 0xb54   : > { %v9287_v8 = vadd.f32 %v9247_v56, %v8977_v16  ;;  %v8667_v21 = vadd.f32 %v8666_v17, %v17099_v24  ;;  %v10549_v56 = vld [vmem:[#allocation2 + $0xc8] sm:$0xff] }
 0xb55   : > { %10927 = vst.msk [vmem:[%s12493_s20 + $0xa0] sm:$0xff] %vm267_vm7, %v10549_v56 }
 0xb56   : > { %v17364_v12 = vadd.f32 %v9557_v48, %v9287_v8  ;;  %12184 = vmatmul.msk.f32.gmra.mxu1 %vm267_vm7, %v9922_v19  ;;  %12224 = vmatmul.msk.f32.gmra.mxu2 %vm267_vm7, %v9924_v41  ;;  %v10235_v19 = vld [vmem:[#allocation2 + $0xa7] sm:$0xff] }
 0xb57   : > { %v9560_v33 = vpop.f32.mrf.mxu0 }
 0xb58   : > { %12264 = vmatmul.msk.f32.gmra.mxu3 %vm267_vm7, %v10234_v25 }
 0xb59   : > { %v8940_v34 = vpop.f32.mrf.mxu2 }
 0xb5a   : > { %v8978_v59 = vadd.f32 %v8940_v34, %v8667_v21  ;;  %12304 = vmatmul.msk.f32.gmra.mxu0 %vm267_vm7, %v10544_v27  ;;  %v10237_v34 = vld [vmem:[#allocation2 + $0xb7] sm:$0xff] }
 0xb5b   : > { %v9250_v37 = vpop.f32.mrf.mxu3  ;;  %v9765_v14 = vpop.f32.mrf.mxu1 }
 0xb5c   : > { %v9288_v54 = vadd.f32 %v9250_v37, %v8978_v59  ;;  %v9873_v10 = vadd.f32 %v9765_v14, %v17106_v53  ;;  %v10550_v14 = vld [vmem:[#allocation2 + $0xd0] sm:$0xff] }
 0xb5d   : > { %10928 = vst.msk [vmem:[%s12493_s20 + $0xa8] sm:$0xff] %vm267_vm7, %v10550_v14 }
 0xb5e   : > { %v17373_v40 = vadd.f32 %v9560_v33, %v9288_v54  ;;  %12185 = vmatmul.msk.f32.gmra.mxu1 %vm267_vm7, %v9923_v2  ;;  %12225 = vmatmul.msk.f32.gmra.mxu2 %vm267_vm7, %v9925_v46  ;;  %v9927_v33 = vld [vmem:[#allocation2 + $0xb6] sm:$0xff] }
 0xb5f   : > { %v10695_v24 = vpop.f32.mrf.mxu0 }
 0xb60   : > { %12265 = vmatmul.msk.f32.gmra.mxu3 %vm267_vm7, %v10235_v19 }
 0xb61   : > { %v10075_v27 = vpop.f32.mrf.mxu2 }
 0xb62   : > { %v10183_v51 = vadd.f32 %v10075_v27, %v9873_v10  ;;  %12305 = vmatmul.msk.f32.gmra.mxu0 %vm267_vm7, %v10545_v1  ;;  %v10238_v27 = vld [vmem:[#allocation2 + $0xbf] sm:$0xff] }
 0xb63   : > { %v9768_v4 = vpop.f32.mrf.mxu1  ;;  %v10385_v48 = vpop.f32.mrf.mxu3 }
 0xb64   : > { %v10493_v2 = vadd.f32 %v10385_v48, %v10183_v51  ;;  %v9874_v17 = vadd.f32 %v9768_v4, %v17113_v63  ;;  %v10551_v48 = vld [vmem:[#allocation2 + $0xd8] sm:$0xff] }
 0xb65   : > { %10929 = vst.msk [vmem:[%s12493_s20 + $0xb0] sm:$0xff] %vm267_vm7, %v10551_v48 }
 0xb66   : > { %v10803_v16 = vadd.f32 %v10695_v24, %v10493_v2  ;;  %12186 = vmatmul.msk.f32.gmra.mxu1 %vm267_vm7, %v9924_v41  ;;  %12226 = vmatmul.msk.f32.gmra.mxu2 %vm267_vm7, %v9926_v30  ;;  %v9928_v24 = vld [vmem:[#allocation2 + $0xbe] sm:$0xff] }
 0xb67   : > { %v10698_v53 = vpop.f32.mrf.mxu0 }
 0xb68   : > { %10839 = vst.msk [vmem:[%s12488_s17] sm:$0xff] %vm444_vm1, %v10803_v16  ;;  %12266 = vmatmul.msk.f32.gmra.mxu3 %vm267_vm7, %v10236_v39  ;;  %v9929_v16 = vld [vmem:[#allocation2 + $0xc6] sm:$0xff] }
 0xb69   : > { %v10078_v1 = vpop.f32.mrf.mxu2 }
 0xb6a   : > { %v10184_v8 = vadd.f32 %v10078_v1, %v9874_v17  ;;  %12306 = vmatmul.msk.f32.gmra.mxu0 %vm267_vm7, %v10546_v49  ;;  %v10239_v17 = vld [vmem:[#allocation2 + $0xc7] sm:$0xff] }
 0xb6b   : > { %v9771_v25 = vpop.f32.mrf.mxu1  ;;  %v10388_v41 = vpop.f32.mrf.mxu3 }
 0xb6c   : > { %v10494_v21 = vadd.f32 %v10388_v41, %v10184_v8  ;;  %v9875_v37 = vadd.f32 %v9771_v25, %v17120_v57  ;;  %v10552_v25 = vld [vmem:[#allocation2 + $0xe0] sm:$0xff] }
 0xb6d   : > { %10930 = vst.msk [vmem:[%s12493_s20 + $0xb8] sm:$0xff] %vm267_vm7, %v10552_v25 }
 0xb6e   : > { %v10804_v59 = vadd.f32 %v10698_v53, %v10494_v21  ;;  %12187 = vmatmul.msk.f32.gmra.mxu1 %vm267_vm7, %v9925_v46  ;;  %12227 = vmatmul.msk.f32.gmra.mxu2 %vm267_vm7, %v9927_v33 }
 0xb6f   : > { %v10701_v63 = vpop.f32.mrf.mxu0 }
 0xb70   : > { %10840 = vst.msk [vmem:[%s12488_s17 + $0x8] sm:$0xff] %vm444_vm1, %v10804_v59  ;;  %12267 = vmatmul.msk.f32.gmra.mxu3 %vm267_vm7, %v10237_v34  ;;  %v9930_v34 = vld [vmem:[#allocation2 + $0xce] sm:$0xff] }
 0xb71   : > { %v10081_v49 = vpop.f32.mrf.mxu2 }
 0xb72   : > { %v10185_v54 = vadd.f32 %v10081_v49, %v9875_v37  ;;  %12307 = vmatmul.msk.f32.gmra.mxu0 %vm267_vm7, %v10547_v47 }
 0xb73   : > { %v9774_v19 = vpop.f32.mrf.mxu1  ;;  %v10391_v46 = vpop.f32.mrf.mxu3 }
 0xb74   : > { %v10495_v10 = vadd.f32 %v10391_v46, %v10185_v54  ;;  %v9876_v4 = vadd.f32 %v9774_v19, %v17127_v42  ;;  %v10553_v54 = vld [vmem:[#allocation2 + $0xe8] sm:$0xff] }
 0xb75   : > { %10931 = vst.msk [vmem:[%s12493_s20 + $0xc0] sm:$0xff] %vm267_vm7, %v10553_v54 }
 0xb76   : > { %v10805_v51 = vadd.f32 %v10701_v63, %v10495_v10  ;;  %12188 = vmatmul.msk.f32.gmra.mxu1 %vm267_vm7, %v9926_v30  ;;  %12228 = vmatmul.msk.f32.gmra.mxu2 %vm267_vm7, %v9928_v24  ;;  %v10240_v63 = vld [vmem:[#allocation2 + $0xcf] sm:$0xff] }
 0xb77   : > { %v10704_v57 = vpop.f32.mrf.mxu0  ;;  %v9931_v10 = vld [vmem:[#allocation2 + $0xd6] sm:$0xff] }
 0xb78   : > { %10841 = vst.msk [vmem:[%s12488_s17 + $0x10] sm:$0xff] %vm444_vm1, %v10805_v51  ;;  %12268 = vmatmul.msk.f32.gmra.mxu3 %vm267_vm7, %v10238_v27  ;;  %v10241_v51 = vld [vmem:[#allocation2 + $0xd7] sm:$0xff] }
 0xb79   : > { %v10084_v47 = vpop.f32.mrf.mxu2 }
 0xb7a   : > { %v10186_v2 = vadd.f32 %v10084_v47, %v9876_v4  ;;  %12308 = vmatmul.msk.f32.gmra.mxu0 %vm267_vm7, %v10548_v31  ;;  %v10554_v47 = vld [vmem:[#allocation2 + $0xf0] sm:$0xff] }
 0xb7b   : > { %v9777_v39 = vpop.f32.mrf.mxu1  ;;  %v10394_v30 = vpop.f32.mrf.mxu3  ;;  %10932 = vst.msk [vmem:[%s12493_s20 + $0xc8] sm:$0xff] %vm267_vm7, %v10554_v47 }
 0xb7c   : > { %v10496_v53 = vadd.f32 %v10394_v30, %v10186_v2  ;;  %v9877_v8 = vadd.f32 %v9777_v39, %v17134_v55 }
 0xb7e   : > { %v10806_v1 = vadd.f32 %v10704_v57, %v10496_v53  ;;  %12189 = vmatmul.msk.f32.gmra.mxu1 %vm267_vm7, %v9927_v33  ;;  %12229 = vmatmul.msk.f32.gmra.mxu2 %vm267_vm7, %v9929_v16 }
 0xb7f   : > { %v10707_v42 = vpop.f32.mrf.mxu0 }
 0xb80   : > { %10842 = vst.msk [vmem:[%s12488_s17 + $0x18] sm:$0xff] %vm444_vm1, %v10806_v1  ;;  %12269 = vmatmul.msk.f32.gmra.mxu3 %vm267_vm7, %v10239_v17  ;;  %v10242_v17 = vld [vmem:[#allocation2 + $0xdf] sm:$0xff] }
 0xb81   : > { %v10087_v31 = vpop.f32.mrf.mxu2 }
 0xb82   : > { %v10187_v41 = vadd.f32 %v10087_v31, %v9877_v8  ;;  %12309 = vmatmul.msk.f32.gmra.mxu0 %vm267_vm7, %v10549_v56  ;;  %v10555_v8 = vld [vmem:[#allocation2 + $0xf8] sm:$0xff] }
 0xb83   : > { %v9780_v21 = vpop.f32.mrf.mxu1  ;;  %v10397_v33 = vpop.f32.mrf.mxu3  ;;  %10933 = vst.msk [vmem:[%s12493_s20 + $0xd0] sm:$0xff] %vm267_vm7, %v10555_v8 }
 0xb84   : > { %v10497_v59 = vadd.f32 %v10397_v33, %v10187_v41  ;;  %v9878_v49 = vadd.f32 %v9780_v21, %v17141_v20  ;;  %v9933_v33 = vld [vmem:[#allocation2 + $0xe6] sm:$0xff] }
 0xb86   : > { %v10807_v37 = vadd.f32 %v10707_v42, %v10497_v59  ;;  %12190 = vmatmul.msk.f32.gmra.mxu1 %vm267_vm7, %v9928_v24  ;;  %12230 = vmatmul.msk.f32.gmra.mxu2 %vm267_vm7, %v9930_v34  ;;  %v10243_v59 = vld [vmem:[#allocation2 + $0xe7] sm:$0xff] }
 0xb87   : > { %v10710_v55 = vpop.f32.mrf.mxu0 }
 0xb88   : > { %10843 = vst.msk [vmem:[%s12488_s17 + $0x20] sm:$0xff] %vm444_vm1, %v10807_v37  ;;  %12270 = vmatmul.msk.f32.gmra.mxu3 %vm267_vm7, %v10240_v63 }
 0xb89   : > { %v10090_v56 = vpop.f32.mrf.mxu2 }
 0xb8a   : > { %v10188_v19 = vadd.f32 %v10090_v56, %v9878_v49  ;;  %12310 = vmatmul.msk.f32.gmra.mxu0 %vm267_vm7, %v10550_v14 }
 0xb8b   : > { %v9783_v46 = vpop.f32.mrf.mxu1  ;;  %v10400_v24 = vpop.f32.mrf.mxu3 }
 0xb8c   : > { %v10498_v27 = vadd.f32 %v10400_v24, %v10188_v19  ;;  %v9879_v4 = vadd.f32 %v9783_v46, %v17148_v22  ;;  %v9934_v46 = vld [vmem:[#allocation2 + $0xee] sm:$0xff] }
 0xb8e   : > { %v10808_v57 = vadd.f32 %v10710_v55, %v10498_v27  ;;  %12191 = vmatmul.msk.f32.gmra.mxu1 %vm267_vm7, %v9929_v16  ;;  %12231 = vmatmul.msk.f32.gmra.mxu2 %vm267_vm7, %v9931_v10  ;;  %v9932_v16 = vld [vmem:[#allocation2 + $0xde] sm:$0xff] }
 0xb8f   : > { %v10713_v20 = vpop.f32.mrf.mxu0  ;;  %v10556_v55 = vld [vmem:[#allocation2 + $0x100] sm:$0xff] }
 0xb90   : > { %10844 = vst.msk [vmem:[%s12488_s17 + $0x28] sm:$0xff] %vm444_vm1, %v10808_v57  ;;  %12271 = vmatmul.msk.f32.gmra.mxu3 %vm267_vm7, %v10241_v51  ;;  %v10557_v57 = vld [vmem:[#allocation2 + $0x108] sm:$0xff] }
 0xb91   : > { %v10093_v14 = vpop.f32.mrf.mxu2  ;;  %10934 = vst.msk [vmem:[%s12493_s20 + $0xd8] sm:$0xff] %vm267_vm7, %v10556_v55 }
 0xb92   : > { %v10189_v2 = vadd.f32 %v10093_v14, %v9879_v4  ;;  %12311 = vmatmul.msk.f32.gmra.mxu0 %vm267_vm7, %v10551_v48  ;;  %10935 = vst.msk [vmem:[%s12493_s20 + $0xe0] sm:$0xff] %vm267_vm7, %v10557_v57 }
 0xb93   : > { %v9786_v39 = vpop.f32.mrf.mxu1  ;;  %v10403_v30 = vpop.f32.mrf.mxu3 }
 0xb94   : > { %v10499_v53 = vadd.f32 %v10403_v30, %v10189_v2  ;;  %v9880_v42 = vadd.f32 %v9786_v39, %v17164_v32  ;;  %v9935_v2 = vld [vmem:[#allocation2 + $0xf6] sm:$0xff] }
 0xb95   : > { %v10245_v30 = vld [vmem:[#allocation2 + $0xf7] sm:$0xff] }
 0xb96   : > { %v10809_v1 = vadd.f32 %v10713_v20, %v10499_v53  ;;  %12192 = vmatmul.msk.f32.gmra.mxu1 %vm267_vm7, %v9930_v34  ;;  %12232 = vmatmul.msk.f32.gmra.mxu2 %vm267_vm7, %v9932_v16 }
 0xb97   : > { %v10716_v22 = vpop.f32.mrf.mxu0 }
 0xb98   : > { %10845 = vst.msk [vmem:[%s12488_s17 + $0x30] sm:$0xff] %vm444_vm1, %v10809_v1  ;;  %12272 = vmatmul.msk.f32.gmra.mxu3 %vm267_vm7, %v10242_v17  ;;  %v10558_v17 = vld [vmem:[#allocation2 + $0x110] sm:$0xff] }
 0xb99   : > { %v10096_v48 = vpop.f32.mrf.mxu2  ;;  %10936 = vst.msk [vmem:[%s12493_s20 + $0xe8] sm:$0xff] %vm267_vm7, %v10558_v17 }
 0xb9a   : > { %v10190_v31 = vadd.f32 %v10096_v48, %v9880_v42  ;;  %12312 = vmatmul.msk.f32.gmra.mxu0 %vm267_vm7, %v10552_v25  ;;  %v9936_v48 = vld [vmem:[#allocation2 + $0xfe] sm:$0xff] }
 0xb9b   : > { %v9789_v41 = vpop.f32.mrf.mxu1  ;;  %v10406_v21 = vpop.f32.mrf.mxu3 }
 0xb9c   : > { %v10500_v34 = vadd.f32 %v10406_v21, %v10190_v31  ;;  %v9881_v37 = vadd.f32 %v9789_v41, %v17174_v38  ;;  %v10246_v41 = vld [vmem:[#allocation2 + $0xff] sm:$0xff] }
 0xb9e   : > { %v10810_v63 = vadd.f32 %v10716_v22, %v10500_v34  ;;  %12193 = vmatmul.msk.f32.gmra.mxu1 %vm267_vm7, %v9931_v10  ;;  %12233 = vmatmul.msk.f32.gmra.mxu2 %vm267_vm7, %v9933_v33  ;;  %v10244_v10 = vld [vmem:[#allocation2 + $0xef] sm:$0xff]  ;;  %v10559_v34 = vld [vmem:[#allocation2 + $0x118] sm:$0xff] }
 0xb9f   : > { %v10719_v32 = vpop.f32.mrf.mxu0  ;;  %10937 = vst.msk [vmem:[%s12493_s20 + $0xf0] sm:$0xff] %vm267_vm7, %v10559_v34 }
 0xba0   : > { %10846 = vst.msk [vmem:[%s12488_s17 + $0x38] sm:$0xff] %vm444_vm1, %v10810_v63  ;;  %12273 = vmatmul.msk.f32.gmra.mxu3 %vm267_vm7, %v10243_v59 }
 0xba1   : > { %v10099_v25 = vpop.f32.mrf.mxu2 }
 0xba2   : > { %v10191_v49 = vadd.f32 %v10099_v25, %v9881_v37  ;;  %12313 = vmatmul.msk.f32.gmra.mxu0 %vm267_vm7, %v10553_v54  ;;  %v9937_v37 = vld [vmem:[#allocation2 + $0x106] sm:$0xff] }
 0xba3   : > { %v9792_v56 = vpop.f32.mrf.mxu1  ;;  %v10409_v19 = vpop.f32.mrf.mxu3 }
 0xba4   : > { %v10501_v24 = vadd.f32 %v10409_v19, %v10191_v49  ;;  %v9882_v51 = vadd.f32 %v9792_v56, %v17181_v29  ;;  %v10247_v49 = vld [vmem:[#allocation2 + $0x107] sm:$0xff] }
 0xba6   : > { %v10811_v27 = vadd.f32 %v10719_v32, %v10501_v24  ;;  %12194 = vmatmul.msk.f32.gmra.mxu1 %vm267_vm7, %v9932_v16  ;;  %12234 = vmatmul.msk.f32.gmra.mxu2 %vm267_vm7, %v9934_v46 }
 0xba7   : > { %v10722_v38 = vpop.f32.mrf.mxu0 }
 0xba8   : > { %10847 = vst.msk [vmem:[%s12488_s17 + $0x40] sm:$0xff] %vm444_vm1, %v10811_v27  ;;  %12274 = vmatmul.msk.f32.gmra.mxu3 %vm267_vm7, %v10244_v10  ;;  %v9938_v27 = vld [vmem:[#allocation2 + $0x10e] sm:$0xff] }
 0xba9   : > { %v10102_v54 = vpop.f32.mrf.mxu2 }
 0xbaa   : > { %v10192_v20 = vadd.f32 %v10102_v54, %v9882_v51  ;;  %12314 = vmatmul.msk.f32.gmra.mxu0 %vm267_vm7, %v10554_v47  ;;  %v10248_v51 = vld [vmem:[#allocation2 + $0x10f] sm:$0xff] }
 0xbab   : > { %v9795_v4 = vpop.f32.mrf.mxu1  ;;  %v10412_v14 = vpop.f32.mrf.mxu3 }
 0xbac   : > { %v10502_v39 = vadd.f32 %v10412_v14, %v10192_v20  ;;  %v9883_v53 = vadd.f32 %v9795_v4, %v17188_v18 }
 0xbae   : > { %v10812_v16 = vadd.f32 %v10722_v38, %v10502_v39  ;;  %12195 = vmatmul.msk.f32.gmra.mxu1 %vm267_vm7, %v9933_v33  ;;  %12235 = vmatmul.msk.f32.gmra.mxu2 %vm267_vm7, %v9935_v2  ;;  %v9939_v39 = vld [vmem:[#allocation2 + $0x116] sm:$0xff] }
 0xbaf   : > { %v10725_v29 = vpop.f32.mrf.mxu0 }
 0xbb0   : > { %10848 = vst.msk [vmem:[%s12488_s17 + $0x48] sm:$0xff] %vm444_vm1, %v10812_v16  ;;  %12275 = vmatmul.msk.f32.gmra.mxu3 %vm267_vm7, %v10245_v30  ;;  %v10249_v16 = vld [vmem:[#allocation2 + $0x117] sm:$0xff] }
 0xbb1   : > { %v10105_v47 = vpop.f32.mrf.mxu2 }
 0xbb2   : > { %v10193_v1 = vadd.f32 %v10105_v47, %v9883_v53  ;;  %12315 = vmatmul.msk.f32.gmra.mxu0 %vm267_vm7, %v10555_v8 }
 0xbb3   : > { %v9798_v22 = vpop.f32.mrf.mxu1  ;;  %v10415_v42 = vpop.f32.mrf.mxu3 }
 0xbb4   : > { %v10503_v31 = vadd.f32 %v10415_v42, %v10193_v1  ;;  %v9884_v33 = vadd.f32 %v9798_v22, %v17195_v45  ;;  %v9940_v42 = vld [vmem:[#allocation2 + $0x11e] sm:$0xff] }
 0xbb6   : > { %v10813_v21 = vadd.f32 %v10725_v29, %v10503_v31  ;;  %12196 = vmatmul.msk.f32.gmra.mxu1 %vm267_vm7, %v9934_v46  ;;  %12236 = vmatmul.msk.f32.gmra.mxu2 %vm267_vm7, %v9936_v48  ;;  %v10250_v31 = vld [vmem:[#allocation2 + $0x11f] sm:$0xff] }
 0xbb7   : > { %v10728_v18 = vpop.f32.mrf.mxu0 }
 0xbb8   : > { %10849 = vst.msk [vmem:[%s12488_s17 + $0x50] sm:$0xff] %vm444_vm1, %v10813_v21  ;;  %12276 = vmatmul.msk.f32.gmra.mxu3 %vm267_vm7, %v10246_v41  ;;  %v10560_v21 = vld [vmem:[#allocation2 + $0x120] sm:$0xff] }
 0xbb9   : > { %v10108_v8 = vpop.f32.mrf.mxu2 }
 0xbba   : > { %v10194_v59 = vadd.f32 %v10108_v8, %v9884_v33  ;;  %12316 = vmatmul.msk.f32.gmra.mxu0 %vm267_vm7, %v10556_v55 }
 0xbbb   : > { %v9801_v63 = vpop.f32.mrf.mxu1  ;;  %v10418_v32 = vpop.f32.mrf.mxu3 }
 0xbbc   : > { %v10504_v25 = vadd.f32 %v10418_v32, %v10194_v59  ;;  %v9885_v19 = vadd.f32 %v9801_v63, %v17202_v61  ;;  %v9941_v63 = vld [vmem:[#allocation2 + $0x126] sm:$0xff] }
 0xbbe   : > { %v10814_v56 = vadd.f32 %v10728_v18, %v10504_v25  ;;  %12197 = vmatmul.msk.f32.gmra.mxu1 %vm267_vm7, %v9935_v2  ;;  %12237 = vmatmul.msk.f32.gmra.mxu2 %vm267_vm7, %v9937_v37 }
 0xbbf   : > { %v10731_v45 = vpop.f32.mrf.mxu0 }
 0xbc0   : > { %10850 = vst.msk [vmem:[%s12488_s17 + $0x58] sm:$0xff] %vm444_vm1, %v10814_v56  ;;  %12277 = vmatmul.msk.f32.gmra.mxu3 %vm267_vm7, %v10247_v49  ;;  %v10561_v49 = vld [vmem:[#allocation2 + $0x128] sm:$0xff] }
 0xbc1   : > { %v10111_v46 = vpop.f32.mrf.mxu2 }
 0xbc2   : > { %v10195_v55 = vadd.f32 %v10111_v46, %v9885_v19  ;;  %12317 = vmatmul.msk.f32.gmra.mxu0 %vm267_vm7, %v10557_v57 }
 0xbc3   : > { %v9804_v24 = vpop.f32.mrf.mxu1  ;;  %v10421_v10 = vpop.f32.mrf.mxu3 }
 0xbc4   : > { %v10505_v38 = vadd.f32 %v10421_v10, %v10195_v55  ;;  %v9886_v20 = vadd.f32 %v9804_v24, %v17209_v9  ;;  %v9942_v24 = vld [vmem:[#allocation2 + $0x12e] sm:$0xff] }
 0xbc6   : > { %v10815_v54 = vadd.f32 %v10731_v45, %v10505_v38  ;;  %12198 = vmatmul.msk.f32.gmra.mxu1 %vm267_vm7, %v9936_v48  ;;  %12238 = vmatmul.msk.f32.gmra.mxu2 %vm267_vm7, %v9938_v27 }
 0xbc7   : > { %v10734_v61 = vpop.f32.mrf.mxu0 }
 0xbc8   : > { %10851 = vst.msk [vmem:[%s12488_s17 + $0x60] sm:$0xff] %vm444_vm1, %v10815_v54  ;;  %12278 = vmatmul.msk.f32.gmra.mxu3 %vm267_vm7, %v10248_v51  ;;  %v10562_v51 = vld [vmem:[#allocation2 + $0x130] sm:$0xff] }
 0xbc9   : > { %v10114_v4 = vpop.f32.mrf.mxu2 }
 0xbca   : > { %v10196_v57 = vadd.f32 %v10114_v4, %v9886_v20  ;;  %12318 = vmatmul.msk.f32.gmra.mxu0 %vm267_vm7, %v10558_v17 }
 0xbcb   : > { %v9807_v14 = vpop.f32.mrf.mxu1  ;;  %v10424_v2 = vpop.f32.mrf.mxu3 }
 0xbcc   : > { %v10506_v30 = vadd.f32 %v10424_v2, %v10196_v57  ;;  %v9887_v53 = vadd.f32 %v9807_v14, %v17216_v23  ;;  %v9943_v14 = vld [vmem:[#allocation2 + $0x136] sm:$0xff] }
 0xbce   : > { %v10816_v29 = vadd.f32 %v10734_v61, %v10506_v30  ;;  %12199 = vmatmul.msk.f32.gmra.mxu1 %vm267_vm7, %v9937_v37  ;;  %12239 = vmatmul.msk.f32.gmra.mxu2 %vm267_vm7, %v9939_v39  ;;  %v10251_v37 = vld [vmem:[#allocation2 + $0x127] sm:$0xff] }
 0xbcf   : > { %v10737_v9 = vpop.f32.mrf.mxu0 }
 0xbd0   : > { %10852 = vst.msk [vmem:[%s12488_s17 + $0x68] sm:$0xff] %vm444_vm1, %v10816_v29  ;;  %12279 = vmatmul.msk.f32.gmra.mxu3 %vm267_vm7, %v10249_v16  ;;  %v10563_v16 = vld [vmem:[#allocation2 + $0x138] sm:$0xff] }
 0xbd1   : > { %v10117_v47 = vpop.f32.mrf.mxu2 }
 0xbd2   : > { %v10197_v17 = vadd.f32 %v10117_v47, %v9887_v53  ;;  %12319 = vmatmul.msk.f32.gmra.mxu0 %vm267_vm7, %v10559_v34 }
 0xbd3   : > { %v9810_v1 = vpop.f32.mrf.mxu1  ;;  %v10427_v22 = vpop.f32.mrf.mxu3 }
 0xbd4   : > { %v10507_v48 = vadd.f32 %v10427_v22, %v10197_v17  ;;  %v9888_v18 = vadd.f32 %v9810_v1, %v17223_v0  ;;  %v9634_v1 = vld [vmem:[#allocation2 + $0x12e] sm:$0x3f]  ;;  %v9944_v22 = vld [vmem:[#allocation2 + $0x13e] sm:$0x3f] }
 0xbd6   : > { %v10817_v41 = vadd.f32 %v10737_v9, %v10507_v48  ;;  %12200 = vmatmul.msk.f32.gmra.mxu1 %vm267_vm7, %v9938_v27  ;;  %12240 = vmatmul.msk.f32.gmra.mxu2 %vm267_vm7, %v9940_v42  ;;  %v10252_v27 = vld [vmem:[#allocation2 + $0x12f] sm:$0xff]  ;;  %v10254_v48 = vld [vmem:[#allocation2 + $0x13f] sm:$0x3f] }
 0xbd7   : > { %v10740_v23 = vpop.f32.mrf.mxu0 }
 0xbd8   : > { %10853 = vst.msk [vmem:[%s12488_s17 + $0x70] sm:$0xff] %vm444_vm1, %v10817_v41  ;;  %12280 = vmatmul.msk.f32.gmra.mxu3 %vm267_vm7, %v10250_v31  ;;  %v10564_v41 = vld [vmem:[#allocation2 + $0x140] sm:$0x3f] }
 0xbd9   : > { %v10120_v33 = vpop.f32.mrf.mxu2 }
 0xbda   : > { %v10198_v34 = vadd.f32 %v10120_v33, %v9888_v18  ;;  %12320 = vmatmul.msk.f32.gmra.mxu0 %vm267_vm7, %v10560_v21 }
 0xbdb   : > { %v9813_v8 = vpop.f32.mrf.mxu1  ;;  %v10430_v59 = vpop.f32.mrf.mxu3 }
 0xbdc   : > { %v10508_v32 = vadd.f32 %v10430_v59, %v10198_v34  ;;  %v9889_v56 = vadd.f32 %v9813_v8, %v17230_v3 }
 0xbde   : > { %v10818_v25 = vadd.f32 %v10740_v23, %v10508_v32  ;;  %12201 = vmatmul.msk.f32.gmra.mxu1 %vm267_vm7, %v9939_v39  ;;  %12241 = vmatmul.msk.f32.gmra.mxu2 %vm267_vm7, %v9941_v63  ;;  %v10253_v39 = vld [vmem:[#allocation2 + $0x137] sm:$0xff] }
 0xbdf   : > { %v10743_v0 = vpop.f32.mrf.mxu0 }
 0xbe0   : > { %10854 = vst.msk [vmem:[%s12488_s17 + $0x78] sm:$0xff] %vm444_vm1, %v10818_v25  ;;  %12281 = vmatmul.msk.f32.gmra.mxu3 %vm267_vm7, %v10251_v37 }
 0xbe1   : > { %v10123_v45 = vpop.f32.mrf.mxu2 }
 0xbe2   : > { %v10199_v19 = vadd.f32 %v10123_v45, %v9889_v56  ;;  %12321 = vmatmul.msk.f32.gmra.mxu0 %vm267_vm7, %v10561_v49 }
 0xbe3   : > { %v9816_v46 = vpop.f32.mrf.mxu1  ;;  %v10433_v55 = vpop.f32.mrf.mxu3 }
 0xbe4   : > { %v10509_v10 = vadd.f32 %v10433_v55, %v10199_v19  ;;  %v9890_v54 = vadd.f32 %v9816_v46, %v17237_v50 }
 0xbe6   : > { %v10819_v38 = vadd.f32 %v10743_v0, %v10509_v10  ;;  %12202 = vmatmul.msk.f32.gmra.mxu1 %vm267_vm7, %v9940_v42  ;;  %12242 = vmatmul.msk.f32.gmra.mxu2 %vm267_vm7, %v9942_v24 }
 0xbe7   : > { %v10746_v3 = vpop.f32.mrf.mxu0 }
 0xbe8   : > { %10855 = vst.msk [vmem:[%s12488_s17 + $0x80] sm:$0xff] %vm444_vm1, %v10819_v38  ;;  %12282 = vmatmul.msk.f32.gmra.mxu3 %vm267_vm7, %v10252_v27 }
 0xbe9   : > { %v10126_v61 = vpop.f32.mrf.mxu2 }
 0xbea   : > { %v10200_v20 = vadd.f32 %v10126_v61, %v9890_v54  ;;  %12322 = vmatmul.msk.f32.gmra.mxu0 %vm267_vm7, %v10562_v51 }
 0xbeb   : > { %v9819_v4 = vpop.f32.mrf.mxu1  ;;  %v10436_v57 = vpop.f32.mrf.mxu3 }
 0xbec   : > { %v10510_v2 = vadd.f32 %v10436_v57, %v10200_v20  ;;  %v9891_v29 = vadd.f32 %v9819_v4, %v17244_v28 }
 0xbee   : > { %v10820_v30 = vadd.f32 %v10746_v3, %v10510_v2  ;;  %12203 = vmatmul.msk.f32.gmra.mxu1 %vm267_vm7, %v9941_v63  ;;  %12243 = vmatmul.msk.f32.gmra.mxu2 %vm267_vm7, %v9943_v14 }
 0xbef   : > { %v10749_v50 = vpop.f32.mrf.mxu0 }
 0xbf0   : > { %10856 = vst.msk [vmem:[%s12488_s17 + $0x88] sm:$0xff] %vm444_vm1, %v10820_v30  ;;  %12283 = vmatmul.msk.f32.gmra.mxu3 %vm267_vm7, %v10253_v39 }
 0xbf1   : > { %v10129_v9 = vpop.f32.mrf.mxu2 }
 0xbf2   : > { %v10201_v53 = vadd.f32 %v10129_v9, %v9891_v29  ;;  %12323 = vmatmul.msk.f32.gmra.mxu0 %vm267_vm7, %v10563_v16 }
 0xbf3   : > { %v9822_v47 = vpop.f32.mrf.mxu1  ;;  %v10439_v17 = vpop.f32.mrf.mxu3 }
 0xbf4   : > { %v10511_v42 = vadd.f32 %v10439_v17, %v10201_v53  ;;  %v9892_v23 = vadd.f32 %v9822_v47, %v17251_v26 }
 0xbf6   : > { %v10821_v31 = vadd.f32 %v10749_v50, %v10511_v42  ;;  %12204 = vmatmul.msk.f32.gmra.mxu1 %vm267_vm7, %v9634_v1  ;;  %12244 = vmatmul.msk.f32.gmra.mxu2 %vm267_vm7, %v9944_v22 }
 0xbf7   : > { %v10752_v28 = vpop.f32.mrf.mxu0 }
 0xbf8   : > { %10857 = vst.msk [vmem:[%s12488_s17 + $0x90] sm:$0xff] %vm444_vm1, %v10821_v31  ;;  %12284 = vmatmul.msk.f32.gmra.mxu3 %vm267_vm7, %v10254_v48 }
 0xbf9   : > { %v10132_v21 = vpop.f32.mrf.mxu2 }
 0xbfa   : > { %v10202_v18 = vadd.f32 %v10132_v21, %v9892_v23  ;;  %12324 = vmatmul.msk.f32.gmra.mxu0 %vm267_vm7, %v10564_v41 }
 0xbfb   : > { %v9825_v33 = vpop.f32.mrf.mxu1  ;;  %v10442_v34 = vpop.f32.mrf.mxu3 }
 0xbfc   : > { %v10512_v8 = vadd.f32 %v10442_v34, %v10202_v18  ;;  %v9893_v32 = vadd.f32 %v9825_v33, %v17258_v60 }
 0xbfe   : > { %v10822_v59 = vadd.f32 %v10752_v28, %v10512_v8 }
 0xbff   : > { %v10755_v63 = vpop.f32.mrf.mxu0 }
 0xc00   : > { %10858 = vst.msk [vmem:[%s12488_s17 + $0x98] sm:$0xff] %vm444_vm1, %v10822_v59 }
 0xc01   : > { %v10135_v37 = vpop.f32.mrf.mxu2 }
 0xc02   : > { %v10203_v26 = vadd.f32 %v10135_v37, %v9893_v32 }
 0xc03   : > { %v9828_v25 = vpop.f32.mrf.mxu1  ;;  %v10445_v0 = vpop.f32.mrf.mxu3 }
 0xc04   : > { %v10513_v49 = vadd.f32 %v10445_v0, %v10203_v26  ;;  %v9894_v19 = vadd.f32 %v9828_v25, %v17265_v5 }
 0xc06   : > { %v10823_v56 = vadd.f32 %v10755_v63, %v10513_v49 }
 0xc07   : > { %v10758_v45 = vpop.f32.mrf.mxu0 }
 0xc08   : > { %10859 = vst.msk [vmem:[%s12488_s17 + $0xa0] sm:$0xff] %vm444_vm1, %v10823_v56 }
 0xc09   : > { %v10138_v46 = vpop.f32.mrf.mxu2 }
 0xc0a   : > { %v10204_v55 = vadd.f32 %v10138_v46, %v9894_v19 }
 0xc0b   : > { %v9831_v24 = vpop.f32.mrf.mxu1  ;;  %v10448_v10 = vpop.f32.mrf.mxu3 }
 0xc0c   : > { %v10514_v60 = vadd.f32 %v10448_v10, %v10204_v55  ;;  %v9895_v3 = vadd.f32 %v9831_v24, %v17272_v62 }
 0xc0e   : > { %v10824_v27 = vadd.f32 %v10758_v45, %v10514_v60 }
 0xc0f   : > { %v10761_v38 = vpop.f32.mrf.mxu0 }
 0xc10   : > { %10860 = vst.msk [vmem:[%s12488_s17 + $0xa8] sm:$0xff] %vm444_vm1, %v10824_v27 }
 0xc11   : > { %v10141_v51 = vpop.f32.mrf.mxu2 }
 0xc12   : > { %v10205_v54 = vadd.f32 %v10141_v51, %v9895_v3 }
 0xc13   : > { %v9834_v61 = vpop.f32.mrf.mxu1  ;;  %v10451_v20 = vpop.f32.mrf.mxu3 }
 0xc14   : > { %v10515_v5 = vadd.f32 %v10451_v20, %v10205_v54  ;;  %v9896_v14 = vadd.f32 %v9834_v61, %v17279_v7 }
 0xc16   : > { %v10825_v4 = vadd.f32 %v10761_v38, %v10515_v5 }
 0xc17   : > { %v10764_v57 = vpop.f32.mrf.mxu0 }
 0xc18   : > { %10861 = vst.msk [vmem:[%s12488_s17 + $0xb0] sm:$0xff] %vm444_vm1, %v10825_v4 }
 0xc19   : > { %v10144_v2 = vpop.f32.mrf.mxu2 }
 0xc1a   : > { %v10206_v39 = vadd.f32 %v10144_v2, %v9896_v14 }
 0xc1b   : > { %v9837_v30 = vpop.f32.mrf.mxu1  ;;  %v10454_v50 = vpop.f32.mrf.mxu3 }
 0xc1c   : > { %v10516_v62 = vadd.f32 %v10454_v50, %v10206_v39  ;;  %v9897_v9 = vadd.f32 %v9837_v30, %v17286_v11 }
 0xc1e   : > { %v10826_v16 = vadd.f32 %v10764_v57, %v10516_v62 }
 0xc1f   : > { %v10767_v29 = vpop.f32.mrf.mxu0 }
 0xc20   : > { %10862 = vst.msk [vmem:[%s12488_s17 + $0xb8] sm:$0xff] %vm444_vm1, %v10826_v16 }
 0xc21   : > { %v10147_v53 = vpop.f32.mrf.mxu2 }
 0xc22   : > { %v10207_v47 = vadd.f32 %v10147_v53, %v9897_v9 }
 0xc23   : > { %v9840_v17 = vpop.f32.mrf.mxu1  ;;  %v10457_v1 = vpop.f32.mrf.mxu3 }
 0xc24   : > { %v10517_v7 = vadd.f32 %v10457_v1, %v10207_v47  ;;  %v9898_v48 = vadd.f32 %v9840_v17, %v17293_v35 }
 0xc26   : > { %v10827_v22 = vadd.f32 %v10767_v29, %v10517_v7  ;;  %v10876_v7 = vld [vmem:[#allocation2 + $0x28] sm:$0xff] }
 0xc27   : > { %v10770_v42 = vpop.f32.mrf.mxu0  ;;  %10907 = vst.msk [vmem:[%s12493_s20] sm:$0xff] %vm267_vm7, %v10876_v7 }
 0xc28   : > { %10863 = vst.msk [vmem:[%s12488_s17 + $0xc0] sm:$0xff] %vm444_vm1, %v10827_v22  ;;  %v10877_v22 = vld [vmem:[#allocation2 + $0x30] sm:$0xff] }
 0xc29   : > { %v10150_v31 = vpop.f32.mrf.mxu2  ;;  %10908 = vst.msk [vmem:[%s12493_s20 + $0x8] sm:$0xff] %vm267_vm7, %v10877_v22 }
 0xc2a   : > { %v10208_v28 = vadd.f32 %v10150_v31, %v9898_v48  ;;  %v10879_v31 = vld [vmem:[#allocation2 + $0x40] sm:$0xff] }
 0xc2b   : > { %v9843_v41 = vpop.f32.mrf.mxu1  ;;  %v10460_v23 = vpop.f32.mrf.mxu3  ;;  %10910 = vst.msk [vmem:[%s12493_s20 + $0x18] sm:$0xff] %vm267_vm7, %v10879_v31 }
 0xc2c   : > { %v10518_v11 = vadd.f32 %v10460_v23, %v10208_v28  ;;  %v9899_v33 = vadd.f32 %v9843_v41, %v17300_v58  ;;  %v10880_v41 = vld [vmem:[#allocation2 + $0x48] sm:$0xff] }
 0xc2d   : > { %10911 = vst.msk [vmem:[%s12493_s20 + $0x20] sm:$0xff] %vm267_vm7, %v10880_v41 }
 0xc2e   : > { %v10828_v21 = vadd.f32 %v10770_v42, %v10518_v11 }
 0xc2f   : > { %v10773_v18 = vpop.f32.mrf.mxu0 }
 0xc30   : > { %10864 = vst.msk [vmem:[%s12488_s17 + $0xc8] sm:$0xff] %vm444_vm1, %v10828_v21  ;;  %v10881_v21 = vld [vmem:[#allocation2 + $0x50] sm:$0xff] }
 0xc31   : > { %v10153_v34 = vpop.f32.mrf.mxu2  ;;  %10912 = vst.msk [vmem:[%s12493_s20 + $0x28] sm:$0xff] %vm267_vm7, %v10881_v21 }
 0xc32   : > { %v10209_v8 = vadd.f32 %v10153_v34, %v9899_v33  ;;  %v10883_v34 = vld [vmem:[#allocation2 + $0x60] sm:$0xff] }
 0xc33   : > { %v9846_v59 = vpop.f32.mrf.mxu1  ;;  %v10463_v63 = vpop.f32.mrf.mxu3  ;;  %10914 = vst.msk [vmem:[%s12493_s20 + $0x38] sm:$0xff] %vm267_vm7, %v10883_v34 }
 0xc34   : > { %v10519_v35 = vadd.f32 %v10463_v63, %v10209_v8  ;;  %v9900_v26 = vadd.f32 %v9846_v59, %v17307_v52  ;;  %v10884_v59 = vld [vmem:[#allocation2 + $0x68] sm:$0xff] }
 0xc35   : > { %10915 = vst.msk [vmem:[%s12493_s20 + $0x40] sm:$0xff] %vm267_vm7, %v10884_v59 }
 0xc36   : > { %v10829_v32 = vadd.f32 %v10773_v18, %v10519_v35  ;;  %v10882_v18 = vld [vmem:[#allocation2 + $0x58] sm:$0xff]  ;;  %v10885_v35 = vld [vmem:[#allocation2 + $0x70] sm:$0xff] }
 0xc37   : > { %v10776_v37 = vpop.f32.mrf.mxu0  ;;  %10913 = vst.msk [vmem:[%s12493_s20 + $0x30] sm:$0xff] %vm267_vm7, %v10882_v18 }
 0xc38   : > { %10865 = vst.msk [vmem:[%s12488_s17 + $0xd0] sm:$0xff] %vm444_vm1, %v10829_v32 }
 0xc39   : > { %v10156_v25 = vpop.f32.mrf.mxu2  ;;  %10916 = vst.msk [vmem:[%s12493_s20 + $0x48] sm:$0xff] %vm267_vm7, %v10885_v35 }
 0xc3a   : > { %v10210_v0 = vadd.f32 %v10156_v25, %v9900_v26  ;;  %v10887_v25 = vld [vmem:[#allocation2 + $0x80] sm:$0xff] }
 0xc3b   : > { %v9849_v49 = vpop.f32.mrf.mxu1  ;;  %v10466_v56 = vpop.f32.mrf.mxu3  ;;  %10918 = vst.msk [vmem:[%s12493_s20 + $0x58] sm:$0xff] %vm267_vm7, %v10887_v25 }
 0xc3c   : > { %v10520_v58 = vadd.f32 %v10466_v56, %v10210_v0  ;;  %v9901_v46 = vadd.f32 %v9849_v49, %v17314_v15  ;;  %v10888_v56 = vld [vmem:[#allocation2 + $0x88] sm:$0xff] }
 0xc3d   : > { %10919 = vst.msk [vmem:[%s12493_s20 + $0x60] sm:$0xff] %vm267_vm7, %v10888_v56 }
 0xc3e   : > { %v10830_v45 = vadd.f32 %v10776_v37, %v10520_v58  ;;  %v10886_v37 = vld [vmem:[#allocation2 + $0x78] sm:$0xff]  ;;  %v10889_v58 = vld [vmem:[#allocation2 + $0x90] sm:$0xff] }
 0xc3f   : > { %v10779_v19 = vpop.f32.mrf.mxu0  ;;  %10917 = vst.msk [vmem:[%s12493_s20 + $0x50] sm:$0xff] %vm267_vm7, %v10886_v37 }
 0xc40   : > { %10866 = vst.msk [vmem:[%s12488_s17 + $0xd8] sm:$0xff] %vm444_vm1, %v10830_v45 }
 0xc41   : > { %v10159_v55 = vpop.f32.mrf.mxu2  ;;  %10920 = vst.msk [vmem:[%s12493_s20 + $0x68] sm:$0xff] %vm267_vm7, %v10889_v58 }
 0xc42   : > { %v10211_v24 = vadd.f32 %v10159_v55, %v9901_v46 }
 0xc43   : > { %v9852_v10 = vpop.f32.mrf.mxu1  ;;  %v10469_v60 = vpop.f32.mrf.mxu3 }
 0xc44   : > { %v10521_v52 = vadd.f32 %v10469_v60, %v10211_v24  ;;  %v9902_v3 = vadd.f32 %v9852_v10, %v17321_v36 }
 0xc46   : > { %v10831_v27 = vadd.f32 %v10779_v19, %v10521_v52 }
 0xc47   : > { %v10782_v38 = vpop.f32.mrf.mxu0 }
 0xc48   : > { %10867 = vst.msk [vmem:[%s12488_s17 + $0xe0] sm:$0xff] %vm444_vm1, %v10831_v27 }
 0xc49   : > { %v10162_v51 = vpop.f32.mrf.mxu2 }
 0xc4a   : > { %v10212_v54 = vadd.f32 %v10162_v51, %v9902_v3 }
 0xc4b   : > { %v9855_v61 = vpop.f32.mrf.mxu1  ;;  %v10472_v20 = vpop.f32.mrf.mxu3 }
 0xc4c   : > { %v10522_v15 = vadd.f32 %v10472_v20, %v10212_v54  ;;  %v9903_v57 = vadd.f32 %v9855_v61, %v17328_v6 }
 0xc4e   : > { %v10832_v5 = vadd.f32 %v10782_v38, %v10522_v15 }
 0xc4f   : > { %v10785_v4 = vpop.f32.mrf.mxu0 }
 0xc50   : > { %10868 = vst.msk [vmem:[%s12488_s17 + $0xe8] sm:$0xff] %vm444_vm1, %v10832_v5 }
 0xc51   : > { %v10165_v14 = vpop.f32.mrf.mxu2 }
 0xc52   : > { %v10213_v2 = vadd.f32 %v10165_v14, %v9903_v57 }
 0xc53   : > { %v9858_v39 = vpop.f32.mrf.mxu1  ;;  %v10475_v30 = vpop.f32.mrf.mxu3 }
 0xc54   : > { %v10523_v36 = vadd.f32 %v10475_v30, %v10213_v2  ;;  %v9904_v16 = vadd.f32 %v9858_v39, %v17337_v43  ;;  %v10878_v43 = vld [vmem:[#allocation2 + $0x38] sm:$0xff] }
 0xc55   : > { %10909 = vst.msk [vmem:[%s12493_s20 + $0x10] sm:$0xff] %vm267_vm7, %v10878_v43 }
 0xc56   : > { %v10833_v50 = vadd.f32 %v10785_v4, %v10523_v36 }
 0xc57   : > { %v10788_v62 = vpop.f32.mrf.mxu0 }
 0xc58   : > { %10869 = vst.msk [vmem:[%s12488_s17 + $0xf0] sm:$0xff] %vm444_vm1, %v10833_v50 }
 0xc59   : > { %v10168_v29 = vpop.f32.mrf.mxu2 }
 0xc5a   : > { %v10214_v9 = vadd.f32 %v10168_v29, %v9904_v16 }
 0xc5b   : > { %v9861_v53 = vpop.f32.mrf.mxu1  ;;  %v10478_v6 = vpop.f32.mrf.mxu3 }
 0xc5c   : > { %v10524_v47 = vadd.f32 %v10478_v6, %v10214_v9  ;;  %v9905_v42 = vadd.f32 %v9861_v53, %v17346_v44 }
 0xc5e   : > { %v10834_v17 = vadd.f32 %v10788_v62, %v10524_v47 }
 0xc5f   : > { %v10791_v1 = vpop.f32.mrf.mxu0 }
 0xc60   : > { %10870 = vst.msk [vmem:[%s12488_s17 + $0xf8] sm:$0xff] %vm444_vm1, %v10834_v17 }
 0xc61   : > { %v10171_v48 = vpop.f32.mrf.mxu2 }
 0xc62   : > { %v10215_v28 = vadd.f32 %v10171_v48, %v9905_v42 }
 0xc63   : > { %v9864_v23 = vpop.f32.mrf.mxu1  ;;  %v10481_v11 = vpop.f32.mrf.mxu3 }
 0xc64   : > { %v10525_v44 = vadd.f32 %v10481_v11, %v10215_v28  ;;  %v9906_v63 = vadd.f32 %v9864_v23, %v17355_v13 }
 0xc66   : > { %v10835_v33 = vadd.f32 %v10791_v1, %v10525_v44 }
 0xc67   : > { %v10794_v8 = vpop.f32.mrf.mxu0 }
 0xc68   : > { %10871 = vst.msk [vmem:[%s12488_s17 + $0x100] sm:$0xff] %vm444_vm1, %v10835_v33 }
 0xc69   : > { %v10174_v32 = vpop.f32.mrf.mxu2 }
 0xc6a   : > { %v10216_v26 = vadd.f32 %v10174_v32, %v9906_v63 }
 0xc6b   : > { %v9867_v0 = vpop.f32.mrf.mxu1  ;;  %v10484_v49 = vpop.f32.mrf.mxu3 }
 0xc6c   : > { %v10526_v13 = vadd.f32 %v10484_v49, %v10216_v26  ;;  %v9907_v19 = vadd.f32 %v9867_v0, %v17364_v12 }
 0xc6e   : > { %v10836_v45 = vadd.f32 %v10794_v8, %v10526_v13 }
 0xc6f   : > { %v10797_v55 = vpop.f32.mrf.mxu0 }
 0xc70   : > { %10872 = vst.msk [vmem:[%s12488_s17 + $0x108] sm:$0xff] %vm444_vm1, %v10836_v45 }
 0xc71   : > { %v10177_v46 = vpop.f32.mrf.mxu2 }
 0xc72   : > { %v10217_v24 = vadd.f32 %v10177_v46, %v9907_v19 }
 0xc73   : > { %v10487_v10 = vpop.f32.mrf.mxu3  ;;  %v9870_v52 = vpop.f32.mrf.mxu1 }
 0xc74   : > { %v10527_v60 = vadd.f32 %v10487_v10, %v10217_v24  ;;  %v9908_v38 = vadd.f32 %v9870_v52, %v17373_v40 }
 0xc76   : > { %v10837_v27 = vadd.f32 %v10797_v55, %v10527_v60 }
 0xc77   : > { %v10800_v61 = vpop.f32.mrf.mxu0 }
 0xc78   : > { %10873 = vst.msk [vmem:[%s12488_s17 + $0x110] sm:$0xff] %vm444_vm1, %v10837_v27 }
 0xc79   : > { %v10180_v3 = vpop.f32.mrf.mxu2 }
 0xc7a   : > { %v10218_v51 = vadd.f32 %v10180_v3, %v9908_v38 }
 0xc7b   : > { %v10490_v54 = vpop.f32.mrf.mxu3 }
 0xc7c   : > { %v10528_v20 = vadd.f32 %v10490_v54, %v10218_v51 }
 0xc7e   : > { %v10838_v12 = vadd.f32 %v10800_v61, %v10528_v20 }
 0xc80   : > { %10875 = vst.msk [vmem:[%s12488_s17 + $0x118] sm:$0x3f] %vm10874_vm0, %v10838_v12 }
 0xc81 PF: > { %s18_s23 = sadd.s32 1, %s12411_s23  }
 0xc82   : > { %p15_p5 = scmp.ge.s32.totalorder %s18_s23, 4  }
 0xc84   :  { %17 = sbr.rel (!%p15_p5) target bundleno = 2 (0x2), region = 124 }

</bundles_post_ra>
